<compile_context>
chip_gen: v5e
topology: v5e:2x2
jax: 0.10.0
libtpu: 0.0.40
codegen_flags: <defaults>
</compile_context>

<pallas_src>
import functools
import math

import jax
import jax.numpy as jnp
from jax import lax
from jax.experimental import pallas as pl
from jax.experimental.pallas import tpu as pltpu

BN_EPS = 1e-3
NEG_PAD = -1e9  # maxpool padding value; every valid window contains real data


def _round_up(x, m):
    return (x + m - 1) // m * m


def _fold_bn(params):
    w, gamma, beta, mean, var = params
    scale = gamma / jnp.sqrt(var + BN_EPS)
    bias = beta - mean * scale
    return w, scale, bias


# ---------------------------------------------------------------------------
# Kernel 1: fused (x @ w) * scale + bias -> relu, tiled over pixels (M axis).
# ---------------------------------------------------------------------------
def matmul_bn_relu_kernel(x_ref, w_ref, scale_ref, bias_ref, o_ref):
    y = jnp.dot(x_ref[...], w_ref[...], preferred_element_type=jnp.float32)
    y = y * scale_ref[...] + bias_ref[...]
    o_ref[...] = jnp.maximum(y, 0.0)


def matmul_bn_relu(x2d, w, scale, bias, tm=256):
    """x2d: (P, K) bf16, w: (K, Cout) bf16, scale/bias: (Cout,) f32 -> (P, Cout) f32."""
    p, k = x2d.shape
    cout = w.shape[1]
    tm = min(tm, _round_up(p, 8))
    pp = _round_up(p, tm)
    if pp != p:
        x2d = jnp.pad(x2d, ((0, pp - p), (0, 0)))
    out = pl.pallas_call(
        matmul_bn_relu_kernel,
        out_shape=jax.ShapeDtypeStruct((pp, cout), jnp.float32),
        grid_spec=pltpu.PrefetchScalarGridSpec(
            num_scalar_prefetch=0,
            grid=(pp // tm,),
            in_specs=[
                pl.BlockSpec((tm, k), lambda m: (m, 0)),     # full K block: no K padding
                pl.BlockSpec((k, cout), lambda m: (0, 0)),   # weights stay VMEM-resident
                pl.BlockSpec((1, cout), lambda m: (0, 0)),
                pl.BlockSpec((1, cout), lambda m: (0, 0)),
            ],
            out_specs=pl.BlockSpec((tm, cout), lambda m: (m, 0)),
        ),
        compiler_params=pltpu.CompilerParams(
            dimension_semantics=("parallel",)),
    )(x2d, w, scale.reshape(1, cout), bias.reshape(1, cout))
    return out[:p]


# ---------------------------------------------------------------------------
# Kernel 2: 3x3x3 conv + BN + ReLU, no im2col slab (9 in-plane taps in-kernel,
# depth tap kd on the grid as the reduction axis, accumulate into o_ref).
# ---------------------------------------------------------------------------
def conv3x3x3_kernel(x_ref, w_ref, scale_ref, bias_ref, o_ref, *, wp):
    qout, cout = o_ref.shape
    cin = x_ref.shape[-1]
    kd = pl.program_id(2)

    acc = jnp.zeros((qout, cout), jnp.float32)
    for t in range(9):  # unrolled: static row offsets into the padded plane
        kh, kw = divmod(t, 3)
        xs = x_ref[pl.ds(kh * wp + kw, qout), :]
        wt = w_ref[pl.ds(t * cin, cin), :]
        acc = acc + jnp.dot(xs, wt, preferred_element_type=jnp.float32)

    @pl.when(kd == 0)
    def _():
        o_ref[...] = acc

    @pl.when(kd == 1)
    def _():
        o_ref[...] = o_ref[...] + acc

    @pl.when(kd == 2)
    def _():
        y = (o_ref[...] + acc) * scale_ref[...] + bias_ref[...]
        o_ref[...] = jnp.maximum(y, 0.0)


def _pad_planes(x_ndhwc, pad_value, dtype):
    """(N,D,H,W,C) -> (N, D+2, (H+2)*(W+2)+8, C) padded, per-frame flattened planes."""
    n, d, h, w, c = x_ndhwc.shape
    xp = jnp.pad(x_ndhwc, ((0, 0), (1, 1), (1, 1), (1, 1), (0, 0)),
                 constant_values=pad_value)
    xpl = xp.reshape(n, d + 2, (h + 2) * (w + 2), c)
    # 8 tail rows keep the shifted in-kernel reads in-bounds for garbage columns.
    xpl = jnp.pad(xpl, ((0, 0), (0, 0), (0, 8), (0, 0)), constant_values=pad_value)
    return xpl.astype(dtype)


def conv3x3x3_bn_relu(x_ndhwc, params):
    w, scale, bias = _fold_bn(params)
    n, d, h, wdt, cin = x_ndhwc.shape
    cout = w.shape[0]
    wp = wdt + 2
    qin = (h + 2) * wp + 8
    qout = h * wp

    xpl = _pad_planes(x_ndhwc, 0.0, jnp.bfloat16)
    # (Cout, Cin, 3,3,3) -> (3, 9*Cin, Cout): per kd, 9 stacked (Cin, Cout) tap matrices
    w3 = jnp.transpose(w, (2, 3, 4, 1, 0)).reshape(3, 9 * cin, cout).astype(jnp.bfloat16)

    out = pl.pallas_call(
        functools.partial(conv3x3x3_kernel, wp=wp),
        out_shape=jax.ShapeDtypeStruct((n, d, qout, cout), jnp.float32),
        grid_spec=pltpu.PrefetchScalarGridSpec(
            num_scalar_prefetch=0,
            grid=(n, d, 3),
            in_specs=[
                pl.BlockSpec((None, None, qin, cin),
                             lambda ni, di, kd: (ni, di + kd, 0, 0)),
                pl.BlockSpec((None, 9 * cin, cout),
                             lambda ni, di, kd: (kd, 0, 0)),
                pl.BlockSpec((1, cout), lambda ni, di, kd: (0, 0)),
                pl.BlockSpec((1, cout), lambda ni, di, kd: (0, 0)),
            ],
            out_specs=pl.BlockSpec((None, None, qout, cout),
                                   lambda ni, di, kd: (ni, di, 0, 0)),
        ),
        compiler_params=pltpu.CompilerParams(
            dimension_semantics=("parallel", "parallel", "arbitrary")),
    )(xpl, w3, scale.reshape(1, cout), bias.reshape(1, cout))
    # crop garbage columns (padded-plane w coordinates >= W)
    return out.reshape(n, d, h, wp, cout)[:, :, :, :wdt, :]


# ---------------------------------------------------------------------------
# Kernel 3: MaxPool3d(3,1,1) fused with the following 1x1 conv + BN + ReLU.
# ---------------------------------------------------------------------------
def maxpool_conv_kernel(x_ref, w_ref, scale_ref, bias_ref, o_ref, mx_ref, *, wp):
    qout = o_ref.shape[0]
    kd = pl.program_id(2)

    m = x_ref[pl.ds(0, qout), :]
    for t in range(1, 9):
        kh, kw = divmod(t, 3)
        m = jnp.maximum(m, x_ref[pl.ds(kh * wp + kw, qout), :])

    @pl.when(kd == 0)
    def _():
        mx_ref[...] = m

    @pl.when(kd > 0)
    def _():
        mx_ref[...] = jnp.maximum(mx_ref[...], m)

    @pl.when(kd == 2)
    def _():
        y = jnp.dot(mx_ref[...], w_ref[...], preferred_element_type=jnp.float32)
        y = y * scale_ref[...] + bias_ref[...]
        o_ref[...] = jnp.maximum(y, 0.0)


def maxpool_conv_bn_relu(x_ndhwc, params):
    w, scale, bias = _fold_bn(params)
    n, d, h, wdt, c = x_ndhwc.shape
    cout = w.shape[0]
    wp = wdt + 2
    qin = (h + 2) * wp + 8
    qout = h * wp

    xpl = _pad_planes(x_ndhwc, NEG_PAD, jnp.bfloat16)
    wm = w[:, :, 0, 0, 0].T.astype(jnp.bfloat16)  # (832, 128)

    out = pl.pallas_call(
        functools.partial(maxpool_conv_kernel, wp=wp),
        out_shape=jax.ShapeDtypeStruct((n, d, qout, cout), jnp.float32),
        grid_spec=pltpu.PrefetchScalarGridSpec(
            num_scalar_prefetch=0,
            grid=(n, d, 3),
            in_specs=[
                pl.BlockSpec((None, None, qin, c),
                             lambda ni, di, kd: (ni, di + kd, 0, 0)),
                pl.BlockSpec((c, cout), lambda ni, di, kd: (0, 0)),
                pl.BlockSpec((1, cout), lambda ni, di, kd: (0, 0)),
                pl.BlockSpec((1, cout), lambda ni, di, kd: (0, 0)),
            ],
            out_specs=pl.BlockSpec((None, None, qout, cout),
                                   lambda ni, di, kd: (ni, di, 0, 0)),
            scratch_shapes=[pltpu.VMEM((qout, c), jnp.bfloat16)],
        ),
        compiler_params=pltpu.CompilerParams(
            dimension_semantics=("parallel", "parallel", "arbitrary")),
    )(xpl, wm, scale.reshape(1, cout), bias.reshape(1, cout))
    return out.reshape(n, d, h, wp, cout)[:, :, :, :wdt, :]


# ---------------------------------------------------------------------------
# Mixed_5c forward (glue in plain JAX, hot paths in Pallas)
# ---------------------------------------------------------------------------
def mixed_5c_forward(x_ncdhw, params):
    x = jnp.transpose(x_ncdhw, (0, 2, 3, 4, 1))          # NCDHW -> NDHWC
    n, d, h, w, c = x.shape

    # --- branch0 / branch1a / branch2a: three 1x1 convs sharing x, fused ---
    w0, s0, b0 = _fold_bn(params['b0_0'])                # 832 -> 384
    w1, s1, b1 = _fold_bn(params['b1_0'])                # 832 -> 192
    w2, s2, b2 = _fold_bn(params['b2_0'])                # 832 -> 48
    wcat = jnp.concatenate([w0[:, :, 0, 0, 0].T,
                            w1[:, :, 0, 0, 0].T,
                            w2[:, :, 0, 0, 0].T], axis=1)    # (832, 624)
    scat = jnp.concatenate([s0, s1, s2])
    bcat = jnp.concatenate([b0, b1, b2])
    c_sum = wcat.shape[1]                                 # 624
    c_pad = _round_up(c_sum, 128)                         # 640: lane-dense stores
    wcat = jnp.pad(wcat, ((0, 0), (0, c_pad - c_sum))).astype(jnp.bfloat16)
    scat = jnp.pad(scat, (0, c_pad - c_sum))
    bcat = jnp.pad(bcat, (0, c_pad - c_sum))

    x2d = x.reshape(-1, c).astype(jnp.bfloat16)
    fused = matmul_bn_relu(x2d, wcat, scat, bcat)         # (P, 640) f32

    br0 = fused[:, :384].reshape(n, d, h, w, 384)
    y1 = fused[:, 384:576].reshape(n, d, h, w, 192)
    y2 = fused[:, 576:624].reshape(n, d, h, w, 48)

    # --- branch1 / branch2: 3x3x3 convs ---
    br1 = conv3x3x3_bn_relu(y1, params['b1_1'])           # -> 384
    br2 = conv3x3x3_bn_relu(y2, params['b2_1'])           # -> 128

    # --- branch3: maxpool(3,1,1) fused with its 1x1 conv ---
    br3 = maxpool_conv_bn_relu(x, params['b3_1'])         # -> 128

    out = jnp.concatenate([br0, br1, br2, br3], axis=-1)  # (N,D,H,W,1024)
    return jnp.transpose(out, (0, 4, 1, 2, 3))            # back to NCDHW


# ---------------------------------------------------------------------------
# Deterministic parameter init (synthetic; Conv3d bias=False, BN affine=True)
# ---------------------------------------------------------------------------
def init_basic_conv3d(key, cin, cout, k):
    kw, kg, kb, km, kv = jax.random.split(key, 5)
    fan_in = cin * k * k * k
    w = jax.random.normal(kw, (cout, cin, k, k, k), jnp.float32) / math.sqrt(fan_in)
    gamma = jax.random.uniform(kg, (cout,), jnp.float32, 0.5, 1.5)
    beta = jax.random.normal(kb, (cout,), jnp.float32) * 0.1
    mean = jax.random.normal(km, (cout,), jnp.float32) * 0.1
    var = jax.random.uniform(kv, (cout,), jnp.float32, 0.5, 1.5)
    return (w, gamma, beta, mean, var)


# ---------------------------------------------------------------------------
# Mixed-precision reference (bf16 conv operands, f32 accumulation) for checks
# ---------------------------------------------------------------------------
def _conv_bn_relu_ref(x, params, pad):
    w, gamma, beta, mean, var = params
    wd = jnp.transpose(w, (2, 3, 4, 1, 0)).astype(jnp.bfloat16)
    y = lax.conv_general_dilated(
        x.astype(jnp.bfloat16), wd, window_strides=(1, 1, 1),
        padding=[(pad, pad)] * 3,
        dimension_numbers=('NDHWC', 'DHWIO', 'NDHWC'),
        preferred_element_type=jnp.float32)
    scale = gamma / jnp.sqrt(var + BN_EPS)
    bias = beta - mean * scale
    return jnp.maximum(y * scale + bias, 0.0)


def mixed_5c_ref(x_ncdhw, params):
    x = jnp.transpose(x_ncdhw, (0, 2, 3, 4, 1))
    b0 = _conv_bn_relu_ref(x, params['b0_0'], 0)
    b1 = _conv_bn_relu_ref(_conv_bn_relu_ref(x, params['b1_0'], 0), params['b1_1'], 1)
    b2 = _conv_bn_relu_ref(_conv_bn_relu_ref(x, params['b2_0'], 0), params['b2_1'], 1)
    neg = jnp.finfo(x.dtype).min
    mp = lax.reduce_window(x, neg, lax.max, (1, 3, 3, 3, 1), (1, 1, 1, 1, 1),
                           [(0, 0), (1, 1), (1, 1), (1, 1), (0, 0)])
    b3 = _conv_bn_relu_ref(mp, params['b3_1'], 0)
    out = jnp.concatenate([b0, b1, b2, b3], axis=-1)
    return jnp.transpose(out, (0, 4, 1, 2, 3))


if __name__ == "__main__":
    key = jax.random.PRNGKey(0)
    kx, kp = jax.random.split(key)

    # Small spatial shape; channel counts are fixed by the module (832 in).
    N, C, D, H, W = 2, 832, 2, 4, 4
    x = jax.random.normal(kx, (N, C, D, H, W), jnp.float32)

    ks = jax.random.split(kp, 6)
    params = {
        'b0_0': init_basic_conv3d(ks[0], 832, 384, 1),
        'b1_0': init_basic_conv3d(ks[1], 832, 192, 1),
        'b1_1': init_basic_conv3d(ks[2], 192, 384, 3),
        'b2_0': init_basic_conv3d(ks[3], 832, 48, 1),
        'b2_1': init_basic_conv3d(ks[4], 48, 128, 3),
        'b3_1': init_basic_conv3d(ks[5], 832, 128, 1),
    }

    out = jax.jit(mixed_5c_forward)(x, params)
    out = jax.block_until_ready(out)
    assert out.shape == (N, 1024, D, H, W), out.shape

    ref = mixed_5c_ref(x, params)
    max_err = float(jnp.max(jnp.abs(out - ref)))
    assert jnp.allclose(out, ref, atol=2e-2, rtol=2e-2), max_err

    print("KERNEL_OK")
</pallas_src>

<mosaic_0001>
module attributes {stable_mosaic.version = 11 : i64} {
  func.func @maxpool_conv_kernel(%arg0: i32, %arg1: i32, %arg2: i32, %arg3: memref<1x1x44x832xbf16, #tpu.memory_space<vmem>>, %arg4: memref<832x128xbf16, #tpu.memory_space<vmem>>, %arg5: memref<1x128xf32, #tpu.memory_space<vmem>>, %arg6: memref<1x128xf32, #tpu.memory_space<vmem>>, %arg7: memref<1x1x24x128xf32, #tpu.memory_space<vmem>>, %arg8: memref<24x832xbf16, #tpu.memory_space<vmem>>) attributes {dimension_semantics = [#tpu.dimension_semantics<parallel>, #tpu.dimension_semantics<parallel>, #tpu.dimension_semantics<arbitrary>], iteration_bounds = array<i64: 2, 2, 3>, scalar_prefetch = 0 : i64, scratch_operands = 1 : i64, tpu.core_type = #tpu.core_type<tc>, window_params = [{transform_indices = @transform_0, window_bounds = array<i64: 1, 1, 44, 832>}, {pipeline_mode = #tpu.pipeline_mode<synchronous>, transform_indices = @transform_1, window_bounds = array<i64: 832, 128>}, {pipeline_mode = #tpu.pipeline_mode<synchronous>, transform_indices = @transform_2, window_bounds = array<i64: 1, 128>}, {pipeline_mode = #tpu.pipeline_mode<synchronous>, transform_indices = @transform_3, window_bounds = array<i64: 1, 128>}, {transform_indices = @transform_4, window_bounds = array<i64: 1, 1, 24, 128>}]} {
    %c0 = arith.constant 0 : index
    %c0_0 = arith.constant 0 : index
    %c0_1 = arith.constant 0 : index
    %c0_2 = arith.constant 0 : index
    %0 = vector.load %arg3[%c0, %c0_0, %c0_1, %c0_2] : memref<1x1x44x832xbf16, #tpu.memory_space<vmem>>, vector<1x1x24x832xbf16>
    %1 = vector.shape_cast %0 : vector<1x1x24x832xbf16> to vector<24x832xbf16>
    %c0_3 = arith.constant 0 : index
    %c0_4 = arith.constant 0 : index
    %c1 = arith.constant 1 : index
    %c0_5 = arith.constant 0 : index
    %2 = vector.load %arg3[%c0_3, %c0_4, %c1, %c0_5] : memref<1x1x44x832xbf16, #tpu.memory_space<vmem>>, vector<1x1x24x832xbf16>
    %3 = vector.shape_cast %2 : vector<1x1x24x832xbf16> to vector<24x832xbf16>
    %4 = arith.maximumf %1, %3 : vector<24x832xbf16>
    %c0_6 = arith.constant 0 : index
    %c0_7 = arith.constant 0 : index
    %c2 = arith.constant 2 : index
    %c0_8 = arith.constant 0 : index
    %5 = vector.load %arg3[%c0_6, %c0_7, %c2, %c0_8] : memref<1x1x44x832xbf16, #tpu.memory_space<vmem>>, vector<1x1x24x832xbf16>
    %6 = vector.shape_cast %5 : vector<1x1x24x832xbf16> to vector<24x832xbf16>
    %7 = arith.maximumf %4, %6 : vector<24x832xbf16>
    %c0_9 = arith.constant 0 : index
    %c0_10 = arith.constant 0 : index
    %c6 = arith.constant 6 : index
    %c0_11 = arith.constant 0 : index
    %8 = vector.load %arg3[%c0_9, %c0_10, %c6, %c0_11] : memref<1x1x44x832xbf16, #tpu.memory_space<vmem>>, vector<1x1x24x832xbf16>
    %9 = vector.shape_cast %8 : vector<1x1x24x832xbf16> to vector<24x832xbf16>
    %10 = arith.maximumf %7, %9 : vector<24x832xbf16>
    %c0_12 = arith.constant 0 : index
    %c0_13 = arith.constant 0 : index
    %c7 = arith.constant 7 : index
    %c0_14 = arith.constant 0 : index
    %11 = vector.load %arg3[%c0_12, %c0_13, %c7, %c0_14] : memref<1x1x44x832xbf16, #tpu.memory_space<vmem>>, vector<1x1x24x832xbf16>
    %12 = vector.shape_cast %11 : vector<1x1x24x832xbf16> to vector<24x832xbf16>
    %13 = arith.maximumf %10, %12 : vector<24x832xbf16>
    %c0_15 = arith.constant 0 : index
    %c0_16 = arith.constant 0 : index
    %c8 = arith.constant 8 : index
    %c0_17 = arith.constant 0 : index
    %14 = vector.load %arg3[%c0_15, %c0_16, %c8, %c0_17] : memref<1x1x44x832xbf16, #tpu.memory_space<vmem>>, vector<1x1x24x832xbf16>
    %15 = vector.shape_cast %14 : vector<1x1x24x832xbf16> to vector<24x832xbf16>
    %16 = arith.maximumf %13, %15 : vector<24x832xbf16>
    %c0_18 = arith.constant 0 : index
    %c0_19 = arith.constant 0 : index
    %c12 = arith.constant 12 : index
    %c0_20 = arith.constant 0 : index
    %17 = vector.load %arg3[%c0_18, %c0_19, %c12, %c0_20] : memref<1x1x44x832xbf16, #tpu.memory_space<vmem>>, vector<1x1x24x832xbf16>
    %18 = vector.shape_cast %17 : vector<1x1x24x832xbf16> to vector<24x832xbf16>
    %19 = arith.maximumf %16, %18 : vector<24x832xbf16>
    %c0_21 = arith.constant 0 : index
    %c0_22 = arith.constant 0 : index
    %c13 = arith.constant 13 : index
    %c0_23 = arith.constant 0 : index
    %20 = vector.load %arg3[%c0_21, %c0_22, %c13, %c0_23] : memref<1x1x44x832xbf16, #tpu.memory_space<vmem>>, vector<1x1x24x832xbf16>
    %21 = vector.shape_cast %20 : vector<1x1x24x832xbf16> to vector<24x832xbf16>
    %22 = arith.maximumf %19, %21 : vector<24x832xbf16>
    %c0_24 = arith.constant 0 : index
    %c0_25 = arith.constant 0 : index
    %c14 = arith.constant 14 : index
    %c0_26 = arith.constant 0 : index
    %23 = vector.load %arg3[%c0_24, %c0_25, %c14, %c0_26] : memref<1x1x44x832xbf16, #tpu.memory_space<vmem>>, vector<1x1x24x832xbf16>
    %24 = vector.shape_cast %23 : vector<1x1x24x832xbf16> to vector<24x832xbf16>
    %25 = arith.maximumf %22, %24 : vector<24x832xbf16>
    %c0_i32 = arith.constant 0 : i32
    %26 = arith.cmpi eq, %arg2, %c0_i32 : i32
    %27 = arith.extui %26 : i1 to i32
    %c0_i32_27 = arith.constant 0 : i32
    %28 = arith.cmpi ne, %27, %c0_i32_27 : i32
    scf.if %28 {
      %c0_31 = arith.constant 0 : index
      %c0_32 = arith.constant 0 : index
      %35 = vector.load %arg8[%c0_31, %c0_32] : memref<24x832xbf16, #tpu.memory_space<vmem>>, vector<24x832xbf16>
      tpu.vector_store %arg8[%c0_31, %c0_32], %25 {strides = array<i32>} : memref<24x832xbf16, #tpu.memory_space<vmem>>, vector<24x832xbf16>,
    } else {
    }
    %c0_i32_28 = arith.constant 0 : i32
    %29 = arith.cmpi sgt, %arg2, %c0_i32_28 : i32
    %30 = arith.extui %29 : i1 to i32
    %c0_i32_29 = arith.constant 0 : i32
    %31 = arith.cmpi ne, %30, %c0_i32_29 : i32
    scf.if %31 {
      %c0_31 = arith.constant 0 : index
      %c0_32 = arith.constant 0 : index
      %35 = vector.load %arg8[%c0_31, %c0_32] : memref<24x832xbf16, #tpu.memory_space<vmem>>, vector<24x832xbf16>
      %36 = arith.maximumf %35, %25 : vector<24x832xbf16>
      %c0_33 = arith.constant 0 : index
      %c0_34 = arith.constant 0 : index
      %37 = vector.load %arg8[%c0_33, %c0_34] : memref<24x832xbf16, #tpu.memory_space<vmem>>, vector<24x832xbf16>
      tpu.vector_store %arg8[%c0_33, %c0_34], %36 {strides = array<i32>} : memref<24x832xbf16, #tpu.memory_space<vmem>>, vector<24x832xbf16>,
    } else {
    }
    %c2_i32 = arith.constant 2 : i32
    %32 = arith.cmpi eq, %arg2, %c2_i32 : i32
    %33 = arith.extui %32 : i1 to i32
    %c0_i32_30 = arith.constant 0 : i32
    %34 = arith.cmpi ne, %33, %c0_i32_30 : i32
    scf.if %34 {
      %c0_31 = arith.constant 0 : index
      %c0_32 = arith.constant 0 : index
      %35 = vector.load %arg8[%c0_31, %c0_32] : memref<24x832xbf16, #tpu.memory_space<vmem>>, vector<24x832xbf16>
      %c0_33 = arith.constant 0 : index
      %c0_34 = arith.constant 0 : index
      %36 = vector.load %arg4[%c0_33, %c0_34] : memref<832x128xbf16, #tpu.memory_space<vmem>>, vector<832x128xbf16>
      %cst = arith.constant dense<0.000000e+00> : vector<24x128xf32>
      %37 = tpu.matmul %35, %36, %cst {dimension_numbers = #tpu.dot_dimension_numbers<[1], [0], [0], [1], [0, 0, 1, 1], [], []>} : vector<24x832xbf16>, vector<832x128xbf16>, vector<24x128xf32> -> vector<24x128xf32>
      %c0_35 = arith.constant 0 : index
      %c0_36 = arith.constant 0 : index
      %38 = vector.load %arg5[%c0_35, %c0_36] : memref<1x128xf32, #tpu.memory_space<vmem>>, vector<1x128xf32>
      %39 = vector.broadcast %38 : vector<1x128xf32> to vector<24x128xf32>
      %40 = arith.mulf %37, %39 : vector<24x128xf32>
      %c0_37 = arith.constant 0 : index
      %c0_38 = arith.constant 0 : index
      %41 = vector.load %arg6[%c0_37, %c0_38] : memref<1x128xf32, #tpu.memory_space<vmem>>, vector<1x128xf32>
      %42 = vector.broadcast %41 : vector<1x128xf32> to vector<24x128xf32>
      %43 = arith.addf %40, %42 : vector<24x128xf32>
      %cst_39 = arith.constant 0.000000e+00 : f32
      %44 = vector.broadcast %cst_39 : f32 to vector<24x128xf32>
      %45 = arith.maximumf %43, %44 : vector<24x128xf32>
      %c0_40 = arith.constant 0 : index
      %c0_41 = arith.constant 0 : index
      %c0_42 = arith.constant 0 : index
      %c0_43 = arith.constant 0 : index
      %46 = vector.load %arg7[%c0_40, %c0_41, %c0_42, %c0_43] : memref<1x1x24x128xf32, #tpu.memory_space<vmem>>, vector<1x1x24x128xf32>
      %47 = vector.shape_cast %46 : vector<1x1x24x128xf32> to vector<24x128xf32>
      %48 = vector.shape_cast %45 : vector<24x128xf32> to vector<1x1x24x128xf32>
      tpu.vector_store %arg7[%c0_40, %c0_41, %c0_42, %c0_43], %48 {strides = array<i32>} : memref<1x1x24x128xf32, #tpu.memory_space<vmem>>, vector<1x1x24x128xf32>,
    } else {
    }
    return
  }
  func.func @transform_0(%arg0: i32, %arg1: i32, %arg2: i32) -> (i32, i32, i32, i32) {
    %0 = arith.addi %arg1, %arg2 : i32
    %c0_i32 = arith.constant 0 : i32
    %c0_i32_0 = arith.constant 0 : i32
    %c0_i32_1 = arith.constant 0 : i32
    return %arg0, %0, %c0_i32, %c0_i32_0 : i32, i32, i32, i32
  }
  func.func @transform_1(%arg0: i32, %arg1: i32, %arg2: i32) -> (i32, i32) {
    %c0_i32 = arith.constant 0 : i32
    %c0_i32_0 = arith.constant 0 : i32
    %c0_i32_1 = arith.constant 0 : i32
    return %c0_i32, %c0_i32_0 : i32, i32
  }
  func.func @transform_2(%arg0: i32, %arg1: i32, %arg2: i32) -> (i32, i32) {
    %c0_i32 = arith.constant 0 : i32
    %c0_i32_0 = arith.constant 0 : i32
    %c0_i32_1 = arith.constant 0 : i32
    return %c0_i32, %c0_i32_0 : i32, i32
  }
  func.func @transform_3(%arg0: i32, %arg1: i32, %arg2: i32) -> (i32, i32) {
    %c0_i32 = arith.constant 0 : i32
    %c0_i32_0 = arith.constant 0 : i32
    %c0_i32_1 = arith.constant 0 : i32
    return %c0_i32, %c0_i32_0 : i32, i32
  }
  func.func @transform_4(%arg0: i32, %arg1: i32, %arg2: i32) -> (i32, i32, i32, i32) {
    %c0_i32 = arith.constant 0 : i32
    %c0_i32_0 = arith.constant 0 : i32
    %c0_i32_1 = arith.constant 0 : i32
    return %arg0, %arg1, %c0_i32, %c0_i32_0 : i32, i32, i32, i32
  }
}

module attributes {stable_mosaic.version = 11 : i64} {
  func.func @matmul_bn_relu_kernel(%arg0: i32, %arg1: memref<64x832xbf16, #tpu.memory_space<vmem>>, %arg2: memref<832x640xbf16, #tpu.memory_space<vmem>>, %arg3: memref<1x640xf32, #tpu.memory_space<vmem>>, %arg4: memref<1x640xf32, #tpu.memory_space<vmem>>, %arg5: memref<64x640xf32, #tpu.memory_space<vmem>>) attributes {dimension_semantics = [#tpu.dimension_semantics<parallel>], iteration_bounds = array<i64: 1>, scalar_prefetch = 0 : i64, scratch_operands = 0 : i64, tpu.core_type = #tpu.core_type<tc>, window_params = [{transform_indices = @transform_0, window_bounds = array<i64: 64, 832>}, {pipeline_mode = #tpu.pipeline_mode<synchronous>, transform_indices = @transform_1, window_bounds = array<i64: 832, 640>}, {pipeline_mode = #tpu.pipeline_mode<synchronous>, transform_indices = @transform_2, window_bounds = array<i64: 1, 640>}, {pipeline_mode = #tpu.pipeline_mode<synchronous>, transform_indices = @transform_3, window_bounds = array<i64: 1, 640>}, {transform_indices = @transform_4, window_bounds = array<i64: 64, 640>}]} {
    %c0 = arith.constant 0 : index
    %c0_0 = arith.constant 0 : index
    %0 = vector.load %arg1[%c0, %c0_0] : memref<64x832xbf16, #tpu.memory_space<vmem>>, vector<64x832xbf16>
    %c0_1 = arith.constant 0 : index
    %c0_2 = arith.constant 0 : index
    %1 = vector.load %arg2[%c0_1, %c0_2] : memref<832x640xbf16, #tpu.memory_space<vmem>>, vector<832x640xbf16>
    %cst = arith.constant dense<0.000000e+00> : vector<64x640xf32>
    %2 = tpu.matmul %0, %1, %cst {dimension_numbers = #tpu.dot_dimension_numbers<[1], [0], [0], [1], [0, 0, 1, 1], [], []>} : vector<64x832xbf16>, vector<832x640xbf16>, vector<64x640xf32> -> vector<64x640xf32>
    %c0_3 = arith.constant 0 : index
    %c0_4 = arith.constant 0 : index
    %3 = vector.load %arg3[%c0_3, %c0_4] : memref<1x640xf32, #tpu.memory_space<vmem>>, vector<1x640xf32>
    %4 = vector.broadcast %3 : vector<1x640xf32> to vector<64x640xf32>
    %5 = arith.mulf %2, %4 : vector<64x640xf32>
    %c0_5 = arith.constant 0 : index
    %c0_6 = arith.constant 0 : index
    %6 = vector.load %arg4[%c0_5, %c0_6] : memref<1x640xf32, #tpu.memory_space<vmem>>, vector<1x640xf32>
    %7 = vector.broadcast %6 : vector<1x640xf32> to vector<64x640xf32>
    %8 = arith.addf %5, %7 : vector<64x640xf32>
    %cst_7 = arith.constant 0.000000e+00 : f32
    %9 = vector.broadcast %cst_7 : f32 to vector<64x640xf32>
    %10 = arith.maximumf %8, %9 : vector<64x640xf32>
    %c0_8 = arith.constant 0 : index
    %c0_9 = arith.constant 0 : index
    %11 = vector.load %arg5[%c0_8, %c0_9] : memref<64x640xf32, #tpu.memory_space<vmem>>, vector<64x640xf32>
    tpu.vector_store %arg5[%c0_8, %c0_9], %10 {strides = array<i32>} : memref<64x640xf32, #tpu.memory_space<vmem>>, vector<64x640xf32>,
    return
  }
  func.func @transform_0(%arg0: i32) -> (i32, i32) {
    %c0_i32 = arith.constant 0 : i32
    %c0_i32_0 = arith.constant 0 : i32
    return %arg0, %c0_i32 : i32, i32
  }
  func.func @transform_1(%arg0: i32) -> (i32, i32) {
    %c0_i32 = arith.constant 0 : i32
    %c0_i32_0 = arith.constant 0 : i32
    %c0_i32_1 = arith.constant 0 : i32
    return %c0_i32, %c0_i32_0 : i32, i32
  }
  func.func @transform_2(%arg0: i32) -> (i32, i32) {
    %c0_i32 = arith.constant 0 : i32
    %c0_i32_0 = arith.constant 0 : i32
    %c0_i32_1 = arith.constant 0 : i32
    return %c0_i32, %c0_i32_0 : i32, i32
  }
  func.func @transform_3(%arg0: i32) -> (i32, i32) {
    %c0_i32 = arith.constant 0 : i32
    %c0_i32_0 = arith.constant 0 : i32
    %c0_i32_1 = arith.constant 0 : i32
    return %c0_i32, %c0_i32_0 : i32, i32
  }
  func.func @transform_4(%arg0: i32) -> (i32, i32) {
    %c0_i32 = arith.constant 0 : i32
    %c0_i32_0 = arith.constant 0 : i32
    return %arg0, %c0_i32 : i32, i32
  }
}

module attributes {stable_mosaic.version = 11 : i64} {
  func.func @conv3x3x3_kernel(%arg0: i32, %arg1: i32, %arg2: i32, %arg3: memref<1x1x44x48xbf16, #tpu.memory_space<vmem>>, %arg4: memref<1x432x128xbf16, #tpu.memory_space<vmem>>, %arg5: memref<1x128xf32, #tpu.memory_space<vmem>>, %arg6: memref<1x128xf32, #tpu.memory_space<vmem>>, %arg7: memref<1x1x24x128xf32, #tpu.memory_space<vmem>>) attributes {dimension_semantics = [#tpu.dimension_semantics<parallel>, #tpu.dimension_semantics<parallel>, #tpu.dimension_semantics<arbitrary>], iteration_bounds = array<i64: 2, 2, 3>, scalar_prefetch = 0 : i64, scratch_operands = 0 : i64, tpu.core_type = #tpu.core_type<tc>, window_params = [{transform_indices = @transform_0, window_bounds = array<i64: 1, 1, 44, 48>}, {transform_indices = @transform_1, window_bounds = array<i64: 1, 432, 128>}, {pipeline_mode = #tpu.pipeline_mode<synchronous>, transform_indices = @transform_2, window_bounds = array<i64: 1, 128>}, {pipeline_mode = #tpu.pipeline_mode<synchronous>, transform_indices = @transform_3, window_bounds = array<i64: 1, 128>}, {transform_indices = @transform_4, window_bounds = array<i64: 1, 1, 24, 128>}]} {
    %cst = arith.constant 0.000000e+00 : f32
    %0 = vector.broadcast %cst : f32 to vector<24x128xf32>
    %c0 = arith.constant 0 : index
    %c0_0 = arith.constant 0 : index
    %c0_1 = arith.constant 0 : index
    %c0_2 = arith.constant 0 : index
    %1 = vector.load %arg3[%c0, %c0_0, %c0_1, %c0_2] : memref<1x1x44x48xbf16, #tpu.memory_space<vmem>>, vector<1x1x24x48xbf16>
    %2 = vector.shape_cast %1 : vector<1x1x24x48xbf16> to vector<24x48xbf16>
    %c0_3 = arith.constant 0 : index
    %c0_4 = arith.constant 0 : index
    %c0_5 = arith.constant 0 : index
    %3 = vector.load %arg4[%c0_3, %c0_4, %c0_5] : memref<1x432x128xbf16, #tpu.memory_space<vmem>>, vector<1x48x128xbf16>
    %4 = vector.shape_cast %3 : vector<1x48x128xbf16> to vector<48x128xbf16>
    %cst_6 = arith.constant dense<0.000000e+00> : vector<24x128xf32>
    %5 = tpu.matmul %2, %4, %cst_6 {dimension_numbers = #tpu.dot_dimension_numbers<[1], [0], [0], [1], [0, 0, 1, 1], [], []>} : vector<24x48xbf16>, vector<48x128xbf16>, vector<24x128xf32> -> vector<24x128xf32>
    %6 = arith.addf %0, %5 : vector<24x128xf32>
    %c0_7 = arith.constant 0 : index
    %c0_8 = arith.constant 0 : index
    %c1 = arith.constant 1 : index
    %c0_9 = arith.constant 0 : index
    %7 = vector.load %arg3[%c0_7, %c0_8, %c1, %c0_9] : memref<1x1x44x48xbf16, #tpu.memory_space<vmem>>, vector<1x1x24x48xbf16>
    %8 = vector.shape_cast %7 : vector<1x1x24x48xbf16> to vector<24x48xbf16>
    %c0_10 = arith.constant 0 : index
    %c48 = arith.constant 48 : index
    %c0_11 = arith.constant 0 : index
    %9 = vector.load %arg4[%c0_10, %c48, %c0_11] : memref<1x432x128xbf16, #tpu.memory_space<vmem>>, vector<1x48x128xbf16>
    %10 = vector.shape_cast %9 : vector<1x48x128xbf16> to vector<48x128xbf16>
    %cst_12 = arith.constant dense<0.000000e+00> : vector<24x128xf32>
    %11 = tpu.matmul %8, %10, %cst_12 {dimension_numbers = #tpu.dot_dimension_numbers<[1], [0], [0], [1], [0, 0, 1, 1], [], []>} : vector<24x48xbf16>, vector<48x128xbf16>, vector<24x128xf32> -> vector<24x128xf32>
    %12 = arith.addf %6, %11 : vector<24x128xf32>
    %c0_13 = arith.constant 0 : index
    %c0_14 = arith.constant 0 : index
    %c2 = arith.constant 2 : index
    %c0_15 = arith.constant 0 : index
    %13 = vector.load %arg3[%c0_13, %c0_14, %c2, %c0_15] : memref<1x1x44x48xbf16, #tpu.memory_space<vmem>>, vector<1x1x24x48xbf16>
    %14 = vector.shape_cast %13 : vector<1x1x24x48xbf16> to vector<24x48xbf16>
    %c0_16 = arith.constant 0 : index
    %c96 = arith.constant 96 : index
    %c0_17 = arith.constant 0 : index
    %15 = vector.load %arg4[%c0_16, %c96, %c0_17] : memref<1x432x128xbf16, #tpu.memory_space<vmem>>, vector<1x48x128xbf16>
    %16 = vector.shape_cast %15 : vector<1x48x128xbf16> to vector<48x128xbf16>
    %cst_18 = arith.constant dense<0.000000e+00> : vector<24x128xf32>
    %17 = tpu.matmul %14, %16, %cst_18 {dimension_numbers = #tpu.dot_dimension_numbers<[1], [0], [0], [1], [0, 0, 1, 1], [], []>} : vector<24x48xbf16>, vector<48x128xbf16>, vector<24x128xf32> -> vector<24x128xf32>
    %18 = arith.addf %12, %17 : vector<24x128xf32>
    %c0_19 = arith.constant 0 : index
    %c0_20 = arith.constant 0 : index
    %c6 = arith.constant 6 : index
    %c0_21 = arith.constant 0 : index
    %19 = vector.load %arg3[%c0_19, %c0_20, %c6, %c0_21] : memref<1x1x44x48xbf16, #tpu.memory_space<vmem>>, vector<1x1x24x48xbf16>
    %20 = vector.shape_cast %19 : vector<1x1x24x48xbf16> to vector<24x48xbf16>
    %c0_22 = arith.constant 0 : index
    %c144 = arith.constant 144 : index
    %c0_23 = arith.constant 0 : index
    %21 = vector.load %arg4[%c0_22, %c144, %c0_23] : memref<1x432x128xbf16, #tpu.memory_space<vmem>>, vector<1x48x128xbf16>
    %22 = vector.shape_cast %21 : vector<1x48x128xbf16> to vector<48x128xbf16>
    %cst_24 = arith.constant dense<0.000000e+00> : vector<24x128xf32>
    %23 = tpu.matmul %20, %22, %cst_24 {dimension_numbers = #tpu.dot_dimension_numbers<[1], [0], [0], [1], [0, 0, 1, 1], [], []>} : vector<24x48xbf16>, vector<48x128xbf16>, vector<24x128xf32> -> vector<24x128xf32>
    %24 = arith.addf %18, %23 : vector<24x128xf32>
    %c0_25 = arith.constant 0 : index
    %c0_26 = arith.constant 0 : index
    %c7 = arith.constant 7 : index
    %c0_27 = arith.constant 0 : index
    %25 = vector.load %arg3[%c0_25, %c0_26, %c7, %c0_27] : memref<1x1x44x48xbf16, #tpu.memory_space<vmem>>, vector<1x1x24x48xbf16>
    %26 = vector.shape_cast %25 : vector<1x1x24x48xbf16> to vector<24x48xbf16>
    %c0_28 = arith.constant 0 : index
    %c192 = arith.constant 192 : index
    %c0_29 = arith.constant 0 : index
    %27 = vector.load %arg4[%c0_28, %c192, %c0_29] : memref<1x432x128xbf16, #tpu.memory_space<vmem>>, vector<1x48x128xbf16>
    %28 = vector.shape_cast %27 : vector<1x48x128xbf16> to vector<48x128xbf16>
    %cst_30 = arith.constant dense<0.000000e+00> : vector<24x128xf32>
    %29 = tpu.matmul %26, %28, %cst_30 {dimension_numbers = #tpu.dot_dimension_numbers<[1], [0], [0], [1], [0, 0, 1, 1], [], []>} : vector<24x48xbf16>, vector<48x128xbf16>, vector<24x128xf32> -> vector<24x128xf32>
    %30 = arith.addf %24, %29 : vector<24x128xf32>
    %c0_31 = arith.constant 0 : index
    %c0_32 = arith.constant 0 : index
    %c8 = arith.constant 8 : index
    %c0_33 = arith.constant 0 : index
    %31 = vector.load %arg3[%c0_31, %c0_32, %c8, %c0_33] : memref<1x1x44x48xbf16, #tpu.memory_space<vmem>>, vector<1x1x24x48xbf16>
    %32 = vector.shape_cast %31 : vector<1x1x24x48xbf16> to vector<24x48xbf16>
    %c0_34 = arith.constant 0 : index
    %c240 = arith.constant 240 : index
    %c0_35 = arith.constant 0 : index
    %33 = vector.load %arg4[%c0_34, %c240, %c0_35] : memref<1x432x128xbf16, #tpu.memory_space<vmem>>, vector<1x48x128xbf16>
    %34 = vector.shape_cast %33 : vector<1x48x128xbf16> to vector<48x128xbf16>
    %cst_36 = arith.constant dense<0.000000e+00> : vector<24x128xf32>
    %35 = tpu.matmul %32, %34, %cst_36 {dimension_numbers = #tpu.dot_dimension_numbers<[1], [0], [0], [1], [0, 0, 1, 1], [], []>} : vector<24x48xbf16>, vector<48x128xbf16>, vector<24x128xf32> -> vector<24x128xf32>
    %36 = arith.addf %30, %35 : vector<24x128xf32>
    %c0_37 = arith.constant 0 : index
    %c0_38 = arith.constant 0 : index
    %c12 = arith.constant 12 : index
    %c0_39 = arith.constant 0 : index
    %37 = vector.load %arg3[%c0_37, %c0_38, %c12, %c0_39] : memref<1x1x44x48xbf16, #tpu.memory_space<vmem>>, vector<1x1x24x48xbf16>
    %38 = vector.shape_cast %37 : vector<1x1x24x48xbf16> to vector<24x48xbf16>
    %c0_40 = arith.constant 0 : index
    %c288 = arith.constant 288 : index
    %c0_41 = arith.constant 0 : index
    %39 = vector.load %arg4[%c0_40, %c288, %c0_41] : memref<1x432x128xbf16, #tpu.memory_space<vmem>>, vector<1x48x128xbf16>
    %40 = vector.shape_cast %39 : vector<1x48x128xbf16> to vector<48x128xbf16>
    %cst_42 = arith.constant dense<0.000000e+00> : vector<24x128xf32>
    %41 = tpu.matmul %38, %40, %cst_42 {dimension_numbers = #tpu.dot_dimension_numbers<[1], [0], [0], [1], [0, 0, 1, 1], [], []>} : vector<24x48xbf16>, vector<48x128xbf16>, vector<24x128xf32> -> vector<24x128xf32>
    %42 = arith.addf %36, %41 : vector<24x128xf32>
    %c0_43 = arith.constant 0 : index
    %c0_44 = arith.constant 0 : index
    %c13 = arith.constant 13 : index
    %c0_45 = arith.constant 0 : index
    %43 = vector.load %arg3[%c0_43, %c0_44, %c13, %c0_45] : memref<1x1x44x48xbf16, #tpu.memory_space<vmem>>, vector<1x1x24x48xbf16>
    %44 = vector.shape_cast %43 : vector<1x1x24x48xbf16> to vector<24x48xbf16>
    %c0_46 = arith.constant 0 : index
    %c336 = arith.constant 336 : index
    %c0_47 = arith.constant 0 : index
    %45 = vector.load %arg4[%c0_46, %c336, %c0_47] : memref<1x432x128xbf16, #tpu.memory_space<vmem>>, vector<1x48x128xbf16>
    %46 = vector.shape_cast %45 : vector<1x48x128xbf16> to vector<48x128xbf16>
    %cst_48 = arith.constant dense<0.000000e+00> : vector<24x128xf32>
    %47 = tpu.matmul %44, %46, %cst_48 {dimension_numbers = #tpu.dot_dimension_numbers<[1], [0], [0], [1], [0, 0, 1, 1], [], []>} : vector<24x48xbf16>, vector<48x128xbf16>, vector<24x128xf32> -> vector<24x128xf32>
    %48 = arith.addf %42, %47 : vector<24x128xf32>
    %c0_49 = arith.constant 0 : index
    %c0_50 = arith.constant 0 : index
    %c14 = arith.constant 14 : index
    %c0_51 = arith.constant 0 : index
    %49 = vector.load %arg3[%c0_49, %c0_50, %c14, %c0_51] : memref<1x1x44x48xbf16, #tpu.memory_space<vmem>>, vector<1x1x24x48xbf16>
    %50 = vector.shape_cast %49 : vector<1x1x24x48xbf16> to vector<24x48xbf16>
    %c0_52 = arith.constant 0 : index
    %c384 = arith.constant 384 : index
    %c0_53 = arith.constant 0 : index
    %51 = vector.load %arg4[%c0_52, %c384, %c0_53] : memref<1x432x128xbf16, #tpu.memory_space<vmem>>, vector<1x48x128xbf16>
    %52 = vector.shape_cast %51 : vector<1x48x128xbf16> to vector<48x128xbf16>
    %cst_54 = arith.constant dense<0.000000e+00> : vector<24x128xf32>
    %53 = tpu.matmul %50, %52, %cst_54 {dimension_numbers = #tpu.dot_dimension_numbers<[1], [0], [0], [1], [0, 0, 1, 1], [], []>} : vector<24x48xbf16>, vector<48x128xbf16>, vector<24x128xf32> -> vector<24x128xf32>
    %54 = arith.addf %48, %53 : vector<24x128xf32>
    %c0_i32 = arith.constant 0 : i32
    %55 = arith.cmpi eq, %arg2, %c0_i32 : i32
    %56 = arith.extui %55 : i1 to i32
    %c0_i32_55 = arith.constant 0 : i32
    %57 = arith.cmpi ne, %56, %c0_i32_55 : i32
    scf.if %57 {
      %c0_58 = arith.constant 0 : index
      %c0_59 = arith.constant 0 : index
      %c0_60 = arith.constant 0 : index
      %c0_61 = arith.constant 0 : index
      %64 = vector.load %arg7[%c0_58, %c0_59, %c0_60, %c0_61] : memref<1x1x24x128xf32, #tpu.memory_space<vmem>>, vector<1x1x24x128xf32>
      %65 = vector.shape_cast %64 : vector<1x1x24x128xf32> to vector<24x128xf32>
      %66 = vector.shape_cast %54 : vector<24x128xf32> to vector<1x1x24x128xf32>
      tpu.vector_store %arg7[%c0_58, %c0_59, %c0_60, %c0_61], %66 {strides = array<i32>} : memref<1x1x24x128xf32, #tpu.memory_space<vmem>>, vector<1x1x24x128xf32>,
    } else {
    }
    %c1_i32 = arith.constant 1 : i32
    %58 = arith.cmpi eq, %arg2, %c1_i32 : i32
    %59 = arith.extui %58 : i1 to i32
    %c0_i32_56 = arith.constant 0 : i32
    %60 = arith.cmpi ne, %59, %c0_i32_56 : i32
    scf.if %60 {
      %c0_58 = arith.constant 0 : index
      %c0_59 = arith.constant 0 : index
      %c0_60 = arith.constant 0 : index
      %c0_61 = arith.constant 0 : index
      %64 = vector.load %arg7[%c0_58, %c0_59, %c0_60, %c0_61] : memref<1x1x24x128xf32, #tpu.memory_space<vmem>>, vector<1x1x24x128xf32>
      %65 = vector.shape_cast %64 : vector<1x1x24x128xf32> to vector<24x128xf32>
      %66 = arith.addf %65, %54 : vector<24x128xf32>
      %c0_62 = arith.constant 0 : index
      %c0_63 = arith.constant 0 : index
      %c0_64 = arith.constant 0 : index
      %c0_65 = arith.constant 0 : index
      %67 = vector.load %arg7[%c0_62, %c0_63, %c0_64, %c0_65] : memref<1x1x24x128xf32, #tpu.memory_space<vmem>>, vector<1x1x24x128xf32>
      %68 = vector.shape_cast %67 : vector<1x1x24x128xf32> to vector<24x128xf32>
      %69 = vector.shape_cast %66 : vector<24x128xf32> to vector<1x1x24x128xf32>
      tpu.vector_store %arg7[%c0_62, %c0_63, %c0_64, %c0_65], %69 {strides = array<i32>} : memref<1x1x24x128xf32, #tpu.memory_space<vmem>>, vector<1x1x24x128xf32>,
    } else {
    }
    %c2_i32 = arith.constant 2 : i32
    %61 = arith.cmpi eq, %arg2, %c2_i32 : i32
    %62 = arith.extui %61 : i1 to i32
    %c0_i32_57 = arith.constant 0 : i32
    %63 = arith.cmpi ne, %62, %c0_i32_57 : i32
    scf.if %63 {
      %c0_58 = arith.constant 0 : index
      %c0_59 = arith.constant 0 : index
      %c0_60 = arith.constant 0 : index
      %c0_61 = arith.constant 0 : index
      %64 = vector.load %arg7[%c0_58, %c0_59, %c0_60, %c0_61] : memref<1x1x24x128xf32, #tpu.memory_space<vmem>>, vector<1x1x24x128xf32>
      %65 = vector.shape_cast %64 : vector<1x1x24x128xf32> to vector<24x128xf32>
      %66 = arith.addf %65, %54 : vector<24x128xf32>
      %c0_62 = arith.constant 0 : index
      %c0_63 = arith.constant 0 : index
      %67 = vector.load %arg5[%c0_62, %c0_63] : memref<1x128xf32, #tpu.memory_space<vmem>>, vector<1x128xf32>
      %68 = vector.broadcast %67 : vector<1x128xf32> to vector<24x128xf32>
      %69 = arith.mulf %66, %68 : vector<24x128xf32>
      %c0_64 = arith.constant 0 : index
      %c0_65 = arith.constant 0 : index
      %70 = vector.load %arg6[%c0_64, %c0_65] : memref<1x128xf32, #tpu.memory_space<vmem>>, vector<1x128xf32>
      %71 = vector.broadcast %70 : vector<1x128xf32> to vector<24x128xf32>
      %72 = arith.addf %69, %71 : vector<24x128xf32>
      %cst_66 = arith.constant 0.000000e+00 : f32
      %73 = vector.broadcast %cst_66 : f32 to vector<24x128xf32>
      %74 = arith.maximumf %72, %73 : vector<24x128xf32>
      %c0_67 = arith.constant 0 : index
      %c0_68 = arith.constant 0 : index
      %c0_69 = arith.constant 0 : index
      %c0_70 = arith.constant 0 : index
      %75 = vector.load %arg7[%c0_67, %c0_68, %c0_69, %c0_70] : memref<1x1x24x128xf32, #tpu.memory_space<vmem>>, vector<1x1x24x128xf32>
      %76 = vector.shape_cast %75 : vector<1x1x24x128xf32> to vector<24x128xf32>
      %77 = vector.shape_cast %74 : vector<24x128xf32> to vector<1x1x24x128xf32>
      tpu.vector_store %arg7[%c0_67, %c0_68, %c0_69, %c0_70], %77 {strides = array<i32>} : memref<1x1x24x128xf32, #tpu.memory_space<vmem>>, vector<1x1x24x128xf32>,
    } else {
    }
    return
  }
  func.func @transform_0(%arg0: i32, %arg1: i32, %arg2: i32) -> (i32, i32, i32, i32) {
    %0 = arith.addi %arg1, %arg2 : i32
    %c0_i32 = arith.constant 0 : i32
    %c0_i32_0 = arith.constant 0 : i32
    %c0_i32_1 = arith.constant 0 : i32
    return %arg0, %0, %c0_i32, %c0_i32_0 : i32, i32, i32, i32
  }
  func.func @transform_1(%arg0: i32, %arg1: i32, %arg2: i32) -> (i32, i32, i32) {
    %c0_i32 = arith.constant 0 : i32
    %c0_i32_0 = arith.constant 0 : i32
    %c0_i32_1 = arith.constant 0 : i32
    return %arg2, %c0_i32, %c0_i32_0 : i32, i32, i32
  }
  func.func @transform_2(%arg0: i32, %arg1: i32, %arg2: i32) -> (i32, i32) {
    %c0_i32 = arith.constant 0 : i32
    %c0_i32_0 = arith.constant 0 : i32
    %c0_i32_1 = arith.constant 0 : i32
    return %c0_i32, %c0_i32_0 : i32, i32
  }
  func.func @transform_3(%arg0: i32, %arg1: i32, %arg2: i32) -> (i32, i32) {
    %c0_i32 = arith.constant 0 : i32
    %c0_i32_0 = arith.constant 0 : i32
    %c0_i32_1 = arith.constant 0 : i32
    return %c0_i32, %c0_i32_0 : i32, i32
  }
  func.func @transform_4(%arg0: i32, %arg1: i32, %arg2: i32) -> (i32, i32, i32, i32) {
    %c0_i32 = arith.constant 0 : i32
    %c0_i32_0 = arith.constant 0 : i32
    %c0_i32_1 = arith.constant 0 : i32
    return %arg0, %arg1, %c0_i32, %c0_i32_0 : i32, i32, i32, i32
  }
}

module attributes {stable_mosaic.version = 11 : i64} {
  func.func @conv3x3x3_kernel(%arg0: i32, %arg1: i32, %arg2: i32, %arg3: memref<1x1x44x192xbf16, #tpu.memory_space<vmem>>, %arg4: memref<1x1728x384xbf16, #tpu.memory_space<vmem>>, %arg5: memref<1x384xf32, #tpu.memory_space<vmem>>, %arg6: memref<1x384xf32, #tpu.memory_space<vmem>>, %arg7: memref<1x1x24x384xf32, #tpu.memory_space<vmem>>) attributes {dimension_semantics = [#tpu.dimension_semantics<parallel>, #tpu.dimension_semantics<parallel>, #tpu.dimension_semantics<arbitrary>], iteration_bounds = array<i64: 2, 2, 3>, scalar_prefetch = 0 : i64, scratch_operands = 0 : i64, tpu.core_type = #tpu.core_type<tc>, window_params = [{transform_indices = @transform_0, window_bounds = array<i64: 1, 1, 44, 192>}, {transform_indices = @transform_1, window_bounds = array<i64: 1, 1728, 384>}, {pipeline_mode = #tpu.pipeline_mode<synchronous>, transform_indices = @transform_2, window_bounds = array<i64: 1, 384>}, {pipeline_mode = #tpu.pipeline_mode<synchronous>, transform_indices = @transform_3, window_bounds = array<i64: 1, 384>}, {transform_indices = @transform_4, window_bounds = array<i64: 1, 1, 24, 384>}]} {
    %cst = arith.constant 0.000000e+00 : f32
    %0 = vector.broadcast %cst : f32 to vector<24x384xf32>
    %c0 = arith.constant 0 : index
    %c0_0 = arith.constant 0 : index
    %c0_1 = arith.constant 0 : index
    %c0_2 = arith.constant 0 : index
    %1 = vector.load %arg3[%c0, %c0_0, %c0_1, %c0_2] : memref<1x1x44x192xbf16, #tpu.memory_space<vmem>>, vector<1x1x24x192xbf16>
    %2 = vector.shape_cast %1 : vector<1x1x24x192xbf16> to vector<24x192xbf16>
    %c0_3 = arith.constant 0 : index
    %c0_4 = arith.constant 0 : index
    %c0_5 = arith.constant 0 : index
    %3 = vector.load %arg4[%c0_3, %c0_4, %c0_5] : memref<1x1728x384xbf16, #tpu.memory_space<vmem>>, vector<1x192x384xbf16>
    %4 = vector.shape_cast %3 : vector<1x192x384xbf16> to vector<192x384xbf16>
    %cst_6 = arith.constant dense<0.000000e+00> : vector<24x384xf32>
    %5 = tpu.matmul %2, %4, %cst_6 {dimension_numbers = #tpu.dot_dimension_numbers<[1], [0], [0], [1], [0, 0, 1, 1], [], []>} : vector<24x192xbf16>, vector<192x384xbf16>, vector<24x384xf32> -> vector<24x384xf32>
    %6 = arith.addf %0, %5 : vector<24x384xf32>
    %c0_7 = arith.constant 0 : index
    %c0_8 = arith.constant 0 : index
    %c1 = arith.constant 1 : index
    %c0_9 = arith.constant 0 : index
    %7 = vector.load %arg3[%c0_7, %c0_8, %c1, %c0_9] : memref<1x1x44x192xbf16, #tpu.memory_space<vmem>>, vector<1x1x24x192xbf16>
    %8 = vector.shape_cast %7 : vector<1x1x24x192xbf16> to vector<24x192xbf16>
    %c0_10 = arith.constant 0 : index
    %c192 = arith.constant 192 : index
    %c0_11 = arith.constant 0 : index
    %9 = vector.load %arg4[%c0_10, %c192, %c0_11] : memref<1x1728x384xbf16, #tpu.memory_space<vmem>>, vector<1x192x384xbf16>
    %10 = vector.shape_cast %9 : vector<1x192x384xbf16> to vector<192x384xbf16>
    %cst_12 = arith.constant dense<0.000000e+00> : vector<24x384xf32>
    %11 = tpu.matmul %8, %10, %cst_12 {dimension_numbers = #tpu.dot_dimension_numbers<[1], [0], [0], [1], [0, 0, 1, 1], [], []>} : vector<24x192xbf16>, vector<192x384xbf16>, vector<24x384xf32> -> vector<24x384xf32>
    %12 = arith.addf %6, %11 : vector<24x384xf32>
    %c0_13 = arith.constant 0 : index
    %c0_14 = arith.constant 0 : index
    %c2 = arith.constant 2 : index
    %c0_15 = arith.constant 0 : index
    %13 = vector.load %arg3[%c0_13, %c0_14, %c2, %c0_15] : memref<1x1x44x192xbf16, #tpu.memory_space<vmem>>, vector<1x1x24x192xbf16>
    %14 = vector.shape_cast %13 : vector<1x1x24x192xbf16> to vector<24x192xbf16>
    %c0_16 = arith.constant 0 : index
    %c384 = arith.constant 384 : index
    %c0_17 = arith.constant 0 : index
    %15 = vector.load %arg4[%c0_16, %c384, %c0_17] : memref<1x1728x384xbf16, #tpu.memory_space<vmem>>, vector<1x192x384xbf16>
    %16 = vector.shape_cast %15 : vector<1x192x384xbf16> to vector<192x384xbf16>
    %cst_18 = arith.constant dense<0.000000e+00> : vector<24x384xf32>
    %17 = tpu.matmul %14, %16, %cst_18 {dimension_numbers = #tpu.dot_dimension_numbers<[1], [0], [0], [1], [0, 0, 1, 1], [], []>} : vector<24x192xbf16>, vector<192x384xbf16>, vector<24x384xf32> -> vector<24x384xf32>
    %18 = arith.addf %12, %17 : vector<24x384xf32>
    %c0_19 = arith.constant 0 : index
    %c0_20 = arith.constant 0 : index
    %c6 = arith.constant 6 : index
    %c0_21 = arith.constant 0 : index
    %19 = vector.load %arg3[%c0_19, %c0_20, %c6, %c0_21] : memref<1x1x44x192xbf16, #tpu.memory_space<vmem>>, vector<1x1x24x192xbf16>
    %20 = vector.shape_cast %19 : vector<1x1x24x192xbf16> to vector<24x192xbf16>
    %c0_22 = arith.constant 0 : index
    %c576 = arith.constant 576 : index
    %c0_23 = arith.constant 0 : index
    %21 = vector.load %arg4[%c0_22, %c576, %c0_23] : memref<1x1728x384xbf16, #tpu.memory_space<vmem>>, vector<1x192x384xbf16>
    %22 = vector.shape_cast %21 : vector<1x192x384xbf16> to vector<192x384xbf16>
    %cst_24 = arith.constant dense<0.000000e+00> : vector<24x384xf32>
    %23 = tpu.matmul %20, %22, %cst_24 {dimension_numbers = #tpu.dot_dimension_numbers<[1], [0], [0], [1], [0, 0, 1, 1], [], []>} : vector<24x192xbf16>, vector<192x384xbf16>, vector<24x384xf32> -> vector<24x384xf32>
    %24 = arith.addf %18, %23 : vector<24x384xf32>
    %c0_25 = arith.constant 0 : index
    %c0_26 = arith.constant 0 : index
    %c7 = arith.constant 7 : index
    %c0_27 = arith.constant 0 : index
    %25 = vector.load %arg3[%c0_25, %c0_26, %c7, %c0_27] : memref<1x1x44x192xbf16, #tpu.memory_space<vmem>>, vector<1x1x24x192xbf16>
    %26 = vector.shape_cast %25 : vector<1x1x24x192xbf16> to vector<24x192xbf16>
    %c0_28 = arith.constant 0 : index
    %c768 = arith.constant 768 : index
    %c0_29 = arith.constant 0 : index
    %27 = vector.load %arg4[%c0_28, %c768, %c0_29] : memref<1x1728x384xbf16, #tpu.memory_space<vmem>>, vector<1x192x384xbf16>
    %28 = vector.shape_cast %27 : vector<1x192x384xbf16> to vector<192x384xbf16>
    %cst_30 = arith.constant dense<0.000000e+00> : vector<24x384xf32>
    %29 = tpu.matmul %26, %28, %cst_30 {dimension_numbers = #tpu.dot_dimension_numbers<[1], [0], [0], [1], [0, 0, 1, 1], [], []>} : vector<24x192xbf16>, vector<192x384xbf16>, vector<24x384xf32> -> vector<24x384xf32>
    %30 = arith.addf %24, %29 : vector<24x384xf32>
    %c0_31 = arith.constant 0 : index
    %c0_32 = arith.constant 0 : index
    %c8 = arith.constant 8 : index
    %c0_33 = arith.constant 0 : index
    %31 = vector.load %arg3[%c0_31, %c0_32, %c8, %c0_33] : memref<1x1x44x192xbf16, #tpu.memory_space<vmem>>, vector<1x1x24x192xbf16>
    %32 = vector.shape_cast %31 : vector<1x1x24x192xbf16> to vector<24x192xbf16>
    %c0_34 = arith.constant 0 : index
    %c960 = arith.constant 960 : index
    %c0_35 = arith.constant 0 : index
    %33 = vector.load %arg4[%c0_34, %c960, %c0_35] : memref<1x1728x384xbf16, #tpu.memory_space<vmem>>, vector<1x192x384xbf16>
    %34 = vector.shape_cast %33 : vector<1x192x384xbf16> to vector<192x384xbf16>
    %cst_36 = arith.constant dense<0.000000e+00> : vector<24x384xf32>
    %35 = tpu.matmul %32, %34, %cst_36 {dimension_numbers = #tpu.dot_dimension_numbers<[1], [0], [0], [1], [0, 0, 1, 1], [], []>} : vector<24x192xbf16>, vector<192x384xbf16>, vector<24x384xf32> -> vector<24x384xf32>
    %36 = arith.addf %30, %35 : vector<24x384xf32>
    %c0_37 = arith.constant 0 : index
    %c0_38 = arith.constant 0 : index
    %c12 = arith.constant 12 : index
    %c0_39 = arith.constant 0 : index
    %37 = vector.load %arg3[%c0_37, %c0_38, %c12, %c0_39] : memref<1x1x44x192xbf16, #tpu.memory_space<vmem>>, vector<1x1x24x192xbf16>
    %38 = vector.shape_cast %37 : vector<1x1x24x192xbf16> to vector<24x192xbf16>
    %c0_40 = arith.constant 0 : index
    %c1152 = arith.constant 1152 : index
    %c0_41 = arith.constant 0 : index
    %39 = vector.load %arg4[%c0_40, %c1152, %c0_41] : memref<1x1728x384xbf16, #tpu.memory_space<vmem>>, vector<1x192x384xbf16>
    %40 = vector.shape_cast %39 : vector<1x192x384xbf16> to vector<192x384xbf16>
    %cst_42 = arith.constant dense<0.000000e+00> : vector<24x384xf32>
    %41 = tpu.matmul %38, %40, %cst_42 {dimension_numbers = #tpu.dot_dimension_numbers<[1], [0], [0], [1], [0, 0, 1, 1], [], []>} : vector<24x192xbf16>, vector<192x384xbf16>, vector<24x384xf32> -> vector<24x384xf32>
    %42 = arith.addf %36, %41 : vector<24x384xf32>
    %c0_43 = arith.constant 0 : index
    %c0_44 = arith.constant 0 : index
    %c13 = arith.constant 13 : index
    %c0_45 = arith.constant 0 : index
    %43 = vector.load %arg3[%c0_43, %c0_44, %c13, %c0_45] : memref<1x1x44x192xbf16, #tpu.memory_space<vmem>>, vector<1x1x24x192xbf16>
    %44 = vector.shape_cast %43 : vector<1x1x24x192xbf16> to vector<24x192xbf16>
    %c0_46 = arith.constant 0 : index
    %c1344 = arith.constant 1344 : index
    %c0_47 = arith.constant 0 : index
    %45 = vector.load %arg4[%c0_46, %c1344, %c0_47] : memref<1x1728x384xbf16, #tpu.memory_space<vmem>>, vector<1x192x384xbf16>
    %46 = vector.shape_cast %45 : vector<1x192x384xbf16> to vector<192x384xbf16>
    %cst_48 = arith.constant dense<0.000000e+00> : vector<24x384xf32>
    %47 = tpu.matmul %44, %46, %cst_48 {dimension_numbers = #tpu.dot_dimension_numbers<[1], [0], [0], [1], [0, 0, 1, 1], [], []>} : vector<24x192xbf16>, vector<192x384xbf16>, vector<24x384xf32> -> vector<24x384xf32>
    %48 = arith.addf %42, %47 : vector<24x384xf32>
    %c0_49 = arith.constant 0 : index
    %c0_50 = arith.constant 0 : index
    %c14 = arith.constant 14 : index
    %c0_51 = arith.constant 0 : index
    %49 = vector.load %arg3[%c0_49, %c0_50, %c14, %c0_51] : memref<1x1x44x192xbf16, #tpu.memory_space<vmem>>, vector<1x1x24x192xbf16>
    %50 = vector.shape_cast %49 : vector<1x1x24x192xbf16> to vector<24x192xbf16>
    %c0_52 = arith.constant 0 : index
    %c1536 = arith.constant 1536 : index
    %c0_53 = arith.constant 0 : index
    %51 = vector.load %arg4[%c0_52, %c1536, %c0_53] : memref<1x1728x384xbf16, #tpu.memory_space<vmem>>, vector<1x192x384xbf16>
    %52 = vector.shape_cast %51 : vector<1x192x384xbf16> to vector<192x384xbf16>
    %cst_54 = arith.constant dense<0.000000e+00> : vector<24x384xf32>
    %53 = tpu.matmul %50, %52, %cst_54 {dimension_numbers = #tpu.dot_dimension_numbers<[1], [0], [0], [1], [0, 0, 1, 1], [], []>} : vector<24x192xbf16>, vector<192x384xbf16>, vector<24x384xf32> -> vector<24x384xf32>
    %54 = arith.addf %48, %53 : vector<24x384xf32>
    %c0_i32 = arith.constant 0 : i32
    %55 = arith.cmpi eq, %arg2, %c0_i32 : i32
    %56 = arith.extui %55 : i1 to i32
    %c0_i32_55 = arith.constant 0 : i32
    %57 = arith.cmpi ne, %56, %c0_i32_55 : i32
    scf.if %57 {
      %c0_58 = arith.constant 0 : index
      %c0_59 = arith.constant 0 : index
      %c0_60 = arith.constant 0 : index
      %c0_61 = arith.constant 0 : index
      %64 = vector.load %arg7[%c0_58, %c0_59, %c0_60, %c0_61] : memref<1x1x24x384xf32, #tpu.memory_space<vmem>>, vector<1x1x24x384xf32>
      %65 = vector.shape_cast %64 : vector<1x1x24x384xf32> to vector<24x384xf32>
      %66 = vector.shape_cast %54 : vector<24x384xf32> to vector<1x1x24x384xf32>
      tpu.vector_store %arg7[%c0_58, %c0_59, %c0_60, %c0_61], %66 {strides = array<i32>} : memref<1x1x24x384xf32, #tpu.memory_space<vmem>>, vector<1x1x24x384xf32>,
    } else {
    }
    %c1_i32 = arith.constant 1 : i32
    %58 = arith.cmpi eq, %arg2, %c1_i32 : i32
    %59 = arith.extui %58 : i1 to i32
    %c0_i32_56 = arith.constant 0 : i32
    %60 = arith.cmpi ne, %59, %c0_i32_56 : i32
    scf.if %60 {
      %c0_58 = arith.constant 0 : index
      %c0_59 = arith.constant 0 : index
      %c0_60 = arith.constant 0 : index
      %c0_61 = arith.constant 0 : index
      %64 = vector.load %arg7[%c0_58, %c0_59, %c0_60, %c0_61] : memref<1x1x24x384xf32, #tpu.memory_space<vmem>>, vector<1x1x24x384xf32>
      %65 = vector.shape_cast %64 : vector<1x1x24x384xf32> to vector<24x384xf32>
      %66 = arith.addf %65, %54 : vector<24x384xf32>
      %c0_62 = arith.constant 0 : index
      %c0_63 = arith.constant 0 : index
      %c0_64 = arith.constant 0 : index
      %c0_65 = arith.constant 0 : index
      %67 = vector.load %arg7[%c0_62, %c0_63, %c0_64, %c0_65] : memref<1x1x24x384xf32, #tpu.memory_space<vmem>>, vector<1x1x24x384xf32>
      %68 = vector.shape_cast %67 : vector<1x1x24x384xf32> to vector<24x384xf32>
      %69 = vector.shape_cast %66 : vector<24x384xf32> to vector<1x1x24x384xf32>
      tpu.vector_store %arg7[%c0_62, %c0_63, %c0_64, %c0_65], %69 {strides = array<i32>} : memref<1x1x24x384xf32, #tpu.memory_space<vmem>>, vector<1x1x24x384xf32>,
    } else {
    }
    %c2_i32 = arith.constant 2 : i32
    %61 = arith.cmpi eq, %arg2, %c2_i32 : i32
    %62 = arith.extui %61 : i1 to i32
    %c0_i32_57 = arith.constant 0 : i32
    %63 = arith.cmpi ne, %62, %c0_i32_57 : i32
    scf.if %63 {
      %c0_58 = arith.constant 0 : index
      %c0_59 = arith.constant 0 : index
      %c0_60 = arith.constant 0 : index
      %c0_61 = arith.constant 0 : index
      %64 = vector.load %arg7[%c0_58, %c0_59, %c0_60, %c0_61] : memref<1x1x24x384xf32, #tpu.memory_space<vmem>>, vector<1x1x24x384xf32>
      %65 = vector.shape_cast %64 : vector<1x1x24x384xf32> to vector<24x384xf32>
      %66 = arith.addf %65, %54 : vector<24x384xf32>
      %c0_62 = arith.constant 0 : index
      %c0_63 = arith.constant 0 : index
      %67 = vector.load %arg5[%c0_62, %c0_63] : memref<1x384xf32, #tpu.memory_space<vmem>>, vector<1x384xf32>
      %68 = vector.broadcast %67 : vector<1x384xf32> to vector<24x384xf32>
      %69 = arith.mulf %66, %68 : vector<24x384xf32>
      %c0_64 = arith.constant 0 : index
      %c0_65 = arith.constant 0 : index
      %70 = vector.load %arg6[%c0_64, %c0_65] : memref<1x384xf32, #tpu.memory_space<vmem>>, vector<1x384xf32>
      %71 = vector.broadcast %70 : vector<1x384xf32> to vector<24x384xf32>
      %72 = arith.addf %69, %71 : vector<24x384xf32>
      %cst_66 = arith.constant 0.000000e+00 : f32
      %73 = vector.broadcast %cst_66 : f32 to vector<24x384xf32>
      %74 = arith.maximumf %72, %73 : vector<24x384xf32>
      %c0_67 = arith.constant 0 : index
      %c0_68 = arith.constant 0 : index
      %c0_69 = arith.constant 0 : index
      %c0_70 = arith.constant 0 : index
      %75 = vector.load %arg7[%c0_67, %c0_68, %c0_69, %c0_70] : memref<1x1x24x384xf32, #tpu.memory_space<vmem>>, vector<1x1x24x384xf32>
      %76 = vector.shape_cast %75 : vector<1x1x24x384xf32> to vector<24x384xf32>
      %77 = vector.shape_cast %74 : vector<24x384xf32> to vector<1x1x24x384xf32>
      tpu.vector_store %arg7[%c0_67, %c0_68, %c0_69, %c0_70], %77 {strides = array<i32>} : memref<1x1x24x384xf32, #tpu.memory_space<vmem>>, vector<1x1x24x384xf32>,
    } else {
    }
    return
  }
  func.func @transform_0(%arg0: i32, %arg1: i32, %arg2: i32) -> (i32, i32, i32, i32) {
    %0 = arith.addi %arg1, %arg2 : i32
    %c0_i32 = arith.constant 0 : i32
    %c0_i32_0 = arith.constant 0 : i32
    %c0_i32_1 = arith.constant 0 : i32
    return %arg0, %0, %c0_i32, %c0_i32_0 : i32, i32, i32, i32
  }
  func.func @transform_1(%arg0: i32, %arg1: i32, %arg2: i32) -> (i32, i32, i32) {
    %c0_i32 = arith.constant 0 : i32
    %c0_i32_0 = arith.constant 0 : i32
    %c0_i32_1 = arith.constant 0 : i32
    return %arg2, %c0_i32, %c0_i32_0 : i32, i32, i32
  }
  func.func @transform_2(%arg0: i32, %arg1: i32, %arg2: i32) -> (i32, i32) {
    %c0_i32 = arith.constant 0 : i32
    %c0_i32_0 = arith.constant 0 : i32
    %c0_i32_1 = arith.constant 0 : i32
    return %c0_i32, %c0_i32_0 : i32, i32
  }
  func.func @transform_3(%arg0: i32, %arg1: i32, %arg2: i32) -> (i32, i32) {
    %c0_i32 = arith.constant 0 : i32
    %c0_i32_0 = arith.constant 0 : i32
    %c0_i32_1 = arith.constant 0 : i32
    return %c0_i32, %c0_i32_0 : i32, i32
  }
  func.func @transform_4(%arg0: i32, %arg1: i32, %arg2: i32) -> (i32, i32, i32, i32) {
    %c0_i32 = arith.constant 0 : i32
    %c0_i32_0 = arith.constant 0 : i32
    %c0_i32_1 = arith.constant 0 : i32
    return %arg0, %arg1, %c0_i32, %c0_i32_0 : i32, i32, i32, i32
  }
}

</mosaic_0001>

<bundles_post_ra>
// kernel: mixed_5c_forward.7
= control target key start
LH: loop header
LB: loop body
LE: loop exit
PB: predicated region body
PF: predicated region fallthrough
CT: control target
= control target key end

     0   :  { %s2691_s15 = smov 0   ;;  %s2693_s16 = smov 0   ;;  %s4246_s0 = inlined_call_operand.vmem [shape: bf16[2,4,44,832], index: 0, kind: input, shape index: {}]   ;;  %s4247_s1 = inlined_call_operand.vmem [shape: bf16[832,128], index: 1, kind: input, shape index: {}]   ;;  %s4248_s2 = inlined_call_operand.vmem [shape: f32[1,128], index: 2, kind: input, shape index: {}]   ;;  %s4249_s3 = inlined_call_operand.vmem [shape: f32[1,128], index: 3, kind: input, shape index: {}]   ;;  %s4250_s4 = inlined_call_operand.vmem [shape: f32[2,2,24,128], index: 4, kind: output, shape index: {}]  }
   0x1   :  { %s2695_s17 = smov 0   ;;  %s2697_s18 = smov 0  }
   0x2   :  { %s2699_s19 = smov 0   ;;  %s2701_s20 = smov 0  }
   0x3   :  { %s2703_s21 = smov 0  }
   0x4 LB: > { %s26_s22 = sadd.s32 1, %s2652_s18  ;;  %s29_s23 = sadd.s32 1, %s2656_s19  ;;  %s2664_s21 = sphi %s2703_s21, %s14_s21   ;;  %s2660_s20 = sphi %s2701_s20, %s4663_s20   ;;  %s2656_s19 = sphi %s2699_s19, %s4662_s19   ;;  %s2652_s18 = sphi %s2697_s18, %s4661_s18   ;;  %s2648_s17 = sphi %s2695_s17, %s4660_s17   ;;  %s2644_s16 = sphi %s2693_s16, %s4659_s16   ;;  %s2640_s15 = sphi %s2691_s15, %s4658_s15  }
   0x5   : > { %p27_p0 = scmp.ge.s32.totalorder %s26_s22, 3  ;;  %p2235_p1 = scmp.ge.s32.totalorder %s2664_s21, 1 }
   0x6   : > { %p193_p2 = scmp.lt.s32.totalorder %s2664_s21, 13  ;;  %s33_s24 = sadd.s32 1, %s2660_s20 }
   0x7   : > { %s4665_s22 = smov (%p27_p0, %s26_s22), 0  ;;  %s4667_s23 = smov (!%p27_p0, %s29_s23), %s2656_s19 }
   0x8   : > { %p194_p3 = pnand %p2235_p1, %p193_p2  ;;  %p31_p4 = scmp.ge.s32.totalorder %s4667_s23, 2 }
   0xa   : > { %s4669_s23 = smov (%p31_p4, %s4667_s23), 0  ;;  %s4671_s24 = smov (!%p31_p4, %s33_s24), %s2660_s20 }
   0xb   : > { %p35_p5 = scmp.ge.s32.totalorder %s4671_s24, 2  ;;  %197 = sbr.rel (%p194_p3) target bundleno = 454 (0x1c6), region = 36 }
   0xd   : > { %s4673_s24 = smov (%p35_p5, %s4671_s24), 0 }
  0x10   : > { %s228_s25 = sadd.s32 %s2640_s15, %s2644_s16  ;;  %p229_p6 = scmp.lt.s32.totalorder %s2648_s17, 1  ;;  %vm321_vm0 = vcmask 1046528   ;;  %vm464_vm1 = vcmask 1045504   ;;  %vm625_vm2 = vcmask 1041408   ;;  %vm768_vm3 = vcmask 1040384  }
  0x11   : > { %p231_p7 = scmp.lt.s32.totalorder %s228_s25, 3  ;;  %p241_p8 = scmp.lt.s32.totalorder %s2644_s16, 1  ;;  %vm983_vm4 = vcmask 1043456   ;;  %vm1126_vm5 = vcmask 1042432  }
  0x12   : > { %s4675_s17 = smov (!%p229_p6, %s2648_s17), 1  ;;  %p2238_p9 = scmp.ne.s32.totalorder %s2640_s15, 0 }
  0x13   : > { %s4677_s25 = smov (!%p231_p7, %s228_s25), 3  ;;  %s2549_s26 = smul.u32 168, %s4675_s17 }
  0x14   : > { %s2548_s27 = smul.u32 42, %s4677_s25  ;;  %s4679_s16 = smov (!%p241_p8, %s2644_s16), 1 }
  0x15   : > { %s2551_s29 = smul.u32 6, %s4675_s17 }
  0x16   : > { %s235_s28 = sadd.s32 %s2549_s26, %s2548_s27  ;;  %s2550_s5 = smul.u32 3, %s4679_s16 }
  0x17   : > { %s2236_s30 = sshll.u32 %s235_s28, 2 }
  0x18   : > { %s2739_s8 = scalar_lea.vmem %s4246_s0, %s2236_s30  ;;  %s245_s9 = sadd.s32 %s2551_s29, %s2550_s5 }
  0x19   : > { %v2742_v0 = vld [vmem:[%s2739_s8] sm:$0xff]  ;;  %v2745_v1 = vld [vmem:[%s2739_s8 + $0x8] sm:$0xff]  ;;  %v2748_v2 = vld [vmem:[%s2739_s8 + $0x10] sm:$0xff]  ;;  %s2237_s10 = sshll.u32 %s245_s9, 3 }
  0x1a   : > { %v2751_v3 = vld [vmem:[%s2739_s8 + $0x18] sm:$0xf]  ;;  %v253_v4 = vld [vmem:[%s2739_s8 + $0x1c] sm:$0xff]  ;;  %v254_v5 = vld [vmem:[%s2739_s8 + $0x24] sm:$0xff]  ;;  %v265_v6 = vunpack.c.l.bf16 %v2742_v0  ;;  %v266_v7 = vunpack.c.h.bf16 %v2742_v0  ;;  %v267_v8 = vunpack.c.l.bf16 %v2745_v1  ;;  %v268_v9 = vunpack.c.h.bf16 %v2745_v1  ;;  %s2762_s13 = scalar_lea.vmem %s4250_s4, %s2237_s10 }
  0x1b   : > { %v255_v10 = vld [vmem:[%s2739_s8 + $0x2c] sm:$0xff]  ;;  %v256_v11 = vld [vmem:[%s2739_s8 + $0x34] sm:$0xf]  ;;  %v257_v12 = vld [vmem:[%s2739_s8 + $0x38] sm:$0xff]  ;;  %v269_v13 = vunpack.c.l.bf16 %v2748_v2  ;;  %v270_v14 = vunpack.c.h.bf16 %v2748_v2  ;;  %v271_v15 = vunpack.c.l.bf16 %v2751_v3  ;;  %v2770_v16 = vunpack.c.l.bf16 %v253_v4 }
  0x1c   : > { %v258_v17 = vld [vmem:[%s2739_s8 + $0x40] sm:$0xff]  ;;  %v259_v18 = vld [vmem:[%s2739_s8 + $0x48] sm:$0xff]  ;;  %v260_v19 = vld [vmem:[%s2739_s8 + $0x50] sm:$0xf]  ;;  %v2775_v20 = vunpack.c.h.bf16 %v253_v4  ;;  %v2777_v21 = vunpack.c.l.bf16 %v254_v5  ;;  %v2779_v22 = vunpack.c.h.bf16 %v254_v5  ;;  %v2781_v23 = vunpack.c.l.bf16 %v255_v10 }
  0x1d   : > { %4381 = vst [vmem:[#allocation3_spill] sm:$0xff] %v2770_v16  ;;  %v2784_v24 = vld [vmem:[%s2739_s8 + $0x54] sm:$0x11]  ;;  %v2787_v25 = vld [vmem:[%s2739_s8 + $0x5c] sm:$0x11]  ;;  %v2792_v27 = vunpack.c.h.bf16 %v255_v10  ;;  %v2794_v28 = vunpack.c.l.bf16 %v256_v11  ;;  %v2796_v29 = vunpack.c.l.bf16 %v257_v12  ;;  %v2798_v30 = vunpack.c.h.bf16 %v257_v12 }
  0x1e   : > { %4382 = vst [vmem:[#allocation4_spill] sm:$0xff] %v2775_v20  ;;  %v2790_v26 = vld [vmem:[%s2739_s8 + $0x64] sm:$0x11]  ;;  %v2801_v31 = vld [vmem:[%s2739_s8 + $0x6c] sm:$0x1]  ;;  %v2803_v32 = vunpack.c.l.bf16 %v258_v17  ;;  %v2805_v33 = vunpack.c.h.bf16 %v258_v17  ;;  %v2807_v34 = vunpack.c.l.bf16 %v259_v18  ;;  %v2809_v35 = vunpack.c.h.bf16 %v259_v18 }
  0x1f   : > { %4383 = vst [vmem:[#allocation5_spill] sm:$0xff] %v2777_v21  ;;  %v2811_v36 = vunpack.c.l.bf16 %v260_v19  ;;  %v4251_v37 = vunpack.c.l.bf16 %v2784_v24  ;;  %v4252_v38 = vunpack.c.h.bf16 %v2784_v24  ;;  %v4253_v39 = vunpack.c.l.bf16 %v2787_v25  ;;  %v425_v2 = vld [vmem:[%s2739_s8] sm:$0xee] }
  0x20   : > { %4384 = vst [vmem:[#allocation6_spill] sm:$0xff] %v2779_v22  ;;  %v4254_v40 = vunpack.c.h.bf16 %v2787_v25  ;;  %v4257_v41 = vunpack.c.l.bf16 %v2790_v26  ;;  %v4256_v42 = vunpack.c.h.bf16 %v2790_v26  ;;  %v4255_v43 = vunpack.c.l.bf16 %v2801_v31 }
  0x21   : > { %4385 = vst [vmem:[#allocation7_spill] sm:$0xff] %v2781_v23  ;;  %v322_v44 = vrot.slane %v265_v6, 1  ;;  %v323_v45 = vrot.slane %v2770_v16, 1  ;;  %v325_v46 = vrot.slane %v266_v7, 1  ;;  %v326_v47 = vrot.slane %v2775_v20, 1 }
  0x22   : > { %4386 = vst [vmem:[#allocation8_spill] sm:$0xff] %v2792_v27  ;;  %v328_v48 = vrot.slane %v267_v8, 1  ;;  %v329_v49 = vrot.slane %v2777_v21, 1  ;;  %v331_v50 = vrot.slane %v268_v9, 1  ;;  %v332_v51 = vrot.slane %v2779_v22, 1 }
  0x23   : > { %4387 = vst [vmem:[#allocation9_spill] sm:$0xff] %v2794_v28  ;;  %v324_v52 = vsel %vm321_vm0, %v322_v44, %v323_v45  ;;  %v327_v53 = vsel %vm321_vm0, %v325_v46, %v326_v47  ;;  %v334_v54 = vrot.slane %v269_v13, 1  ;;  %v335_v55 = vrot.slane %v2781_v23, 1 }
  0x24   : > { %4388 = vst [vmem:[#allocation10_spill] sm:$0xff] %v2796_v29  ;;  %v330_v56 = vsel %vm321_vm0, %v328_v48, %v329_v49  ;;  %v333_v57 = vsel %vm321_vm0, %v331_v50, %v332_v51  ;;  %v337_v58 = vrot.slane %v270_v14, 1  ;;  %v338_v59 = vrot.slane %v2792_v27, 1 }
  0x25   : > { %4389 = vst [vmem:[#allocation11_spill] sm:$0xff] %v2798_v30  ;;  %v336_v60 = vsel %vm321_vm0, %v334_v54, %v335_v55  ;;  %v340_v61 = vrot.slane %v271_v15, 1  ;;  %v341_v62 = vrot.slane %v2794_v28, 1  ;;  %v343_v63 = vrot.slane %v2796_v29, 1 }
  0x26   : > { %4390 = vst [vmem:[#allocation12_spill] sm:$0xff] %v2803_v32  ;;  %v339_v4 = vsel %vm321_vm0, %v337_v58, %v338_v59  ;;  %v345_v5 = vrot.slane %v2798_v30, 1  ;;  %v347_v10 = vrot.slane %v2803_v32, 1  ;;  %v349_v11 = vrot.slane %v2805_v33, 1 }
  0x27   : > { %4391 = vst [vmem:[#allocation13_spill] sm:$0xff] %v2805_v33  ;;  %v342_v12 = vsel %vm321_vm0, %v340_v61, %v341_v62  ;;  %v2853_v17 = vsel %vm321_vm0, %v323_v45, %v343_v63  ;;  %v351_v18 = vrot.slane %v2807_v34, 1  ;;  %v353_v19 = vrot.slane %v2809_v35, 1 }
  0x28   : > { %4392 = vst [vmem:[#allocation14_spill] sm:$0xff] %v2807_v34  ;;  %v2858_v44 = vsel %vm321_vm0, %v326_v47, %v345_v5  ;;  %v2861_v46 = vsel %vm321_vm0, %v329_v49, %v347_v10  ;;  %v2864_v48 = vsel %vm321_vm0, %v332_v51, %v349_v11  ;;  %v355_v50 = vrot.slane %v2811_v36, 1 }
  0x29   : > { %4393 = vst [vmem:[#allocation15_spill] sm:$0xff] %v2809_v35  ;;  %v2868_v54 = vsel %vm321_vm0, %v335_v55, %v351_v18  ;;  %v2871_v45 = vsel %vm321_vm0, %v338_v59, %v353_v19  ;;  %v357_v58 = vrot.slane %v4251_v37, 1  ;;  %v359_v47 = vrot.slane %v4252_v38, 1 }
  0x2a   : > { %4394 = vst [vmem:[#allocation16_spill] sm:$0xff] %v2811_v36  ;;  %v2878_v49 = vsel %vm321_vm0, %v341_v62, %v355_v50  ;;  %v361_v51 = vrot.slane %v4253_v39, 1  ;;  %v363_v61 = vrot.slane %v4254_v40, 1  ;;  %v365_v55 = vrot.slane %v4257_v41, 1 }
  0x2b   : > { %v2887_v59 = vsel %vm321_vm0, %v343_v63, %v357_v58  ;;  %v2890_v37 = vsel %vm321_vm0, %v345_v5, %v359_v47  ;;  %v367_v38 = vrot.slane %v4256_v42, 1  ;;  %v369_v62 = vrot.slane %v4255_v43, 1 }
  0x2c   : > { %v2897_v39 = vsel %vm321_vm0, %v347_v10, %v361_v51  ;;  %v2900_v40 = vsel %vm321_vm0, %v349_v11, %v363_v61  ;;  %v2903_v63 = vsel %vm321_vm0, %v351_v18, %v365_v55  ;;  %v2907_v5 = vmax.f32 %v265_v6, %v324_v52  ;;  %v428_v18 = vld [vmem:[%s2739_s8 + $0x18] sm:$0xe] }
  0x2d   : > { %4395 = vst [vmem:[#allocation17_spill] sm:$0xff] %v2897_v39  ;;  %v2910_v58 = vsel %vm321_vm0, %v353_v19, %v367_v38  ;;  %v2913_v47 = vsel %vm321_vm0, %v355_v50, %v369_v62  ;;  %v2917_v10 = vmax.f32 %v266_v7, %v327_v53  ;;  %v2921_v11 = vmax.f32 %v267_v8, %v330_v56  ;;  %v426_v53 = vld [vmem:[%s2739_s8 + $0x8] sm:$0xee]  ;;  %v427_v56 = vld [vmem:[%s2739_s8 + $0x10] sm:$0xee] }
  0x2e   : > { %4396 = vst [vmem:[#allocation18_spill] sm:$0xff] %v2900_v40  ;;  %v2925_v6 = vmax.f32 %v268_v9, %v333_v57  ;;  %v2929_v38 = vmax.f32 %v269_v13, %v336_v60  ;;  %v2933_v52 = vmax.f32 %v270_v14, %v339_v4  ;;  %v2937_v0 = vmax.f32 %v271_v15, %v342_v12 }
  0x2f   : > { %4397 = vst [vmem:[#allocation19_spill] sm:$0xff] %v2903_v63  ;;  %v450_v51 = vunpack.c.l.bf16 %v425_v2  ;;  %v451_v61 = vunpack.c.h.bf16 %v425_v2  ;;  %v452_v55 = vunpack.c.l.bf16 %v426_v53  ;;  %v453_v62 = vunpack.c.h.bf16 %v426_v53 }
  0x30   : > { %4398 = vst [vmem:[#allocation20_spill] sm:$0xff] %v2910_v58  ;;  %v454_v57 = vunpack.c.l.bf16 %v427_v56  ;;  %v455_v15 = vunpack.c.h.bf16 %v427_v56  ;;  %v456_v60 = vunpack.c.l.bf16 %v428_v18  ;;  %v466_v4 = vrot.slane %v2770_v16, 2 }
  0x31   : > { %4399 = vst [vmem:[#allocation21_spill] sm:$0xff] %v2913_v47  ;;  %v465_v14 = vrot.slane %v450_v51, 2  ;;  %v468_v3 = vrot.slane %v451_v61, 2  ;;  %v469_v12 = vrot.slane %v2775_v20, 2  ;;  %v471_v13 = vrot.slane %v452_v55, 2 }
  0x32   : > { %v472_v9 = vrot.slane %v2777_v21, 2  ;;  %v474_v19 = vrot.slane %v453_v62, 2  ;;  %v475_v2 = vrot.slane %v2779_v22, 2  ;;  %v477_v50 = vrot.slane %v454_v57, 2 }
  0x33   : > { %v2975_v8 = vsel %vm464_vm1, %v465_v14, %v466_v4  ;;  %v478_v53 = vrot.slane %v2781_v23, 2  ;;  %v2980_v56 = vsel %vm464_vm1, %v468_v3, %v469_v12  ;;  %v480_v51 = vrot.slane %v455_v15, 2 }
  0x34   : > { %v2983_v18 = vsel %vm464_vm1, %v471_v13, %v472_v9  ;;  %v481_v61 = vrot.slane %v2792_v27, 2  ;;  %v2987_v55 = vsel %vm464_vm1, %v474_v19, %v475_v2  ;;  %v483_v62 = vrot.slane %v456_v60, 2 }
  0x35   : > { %v2990_v14 = vsel %vm464_vm1, %v477_v50, %v478_v53  ;;  %v484_v57 = vrot.slane %v2794_v28, 2  ;;  %v486_v3 = vrot.slane %v2796_v29, 2  ;;  %v488_v13 = vrot.slane %v2798_v30, 2 }
  0x36   : > { %v2994_v1 = vsel %vm464_vm1, %v480_v51, %v481_v61  ;;  %v490_v15 = vrot.slane %v2803_v32, 2  ;;  %v492_v19 = vrot.slane %v2805_v33, 2  ;;  %v494_v50 = vrot.slane %v2807_v34, 2 }
  0x37   : > { %v3000_v7 = vsel %vm464_vm1, %v483_v62, %v484_v57  ;;  %v496_v60 = vrot.slane %v2809_v35, 2  ;;  %v487_v43 = vsel %vm464_vm1, %v466_v4, %v486_v3  ;;  %v489_v51 = vsel %vm464_vm1, %v469_v12, %v488_v13 }
  0x38   : > { %v491_v42 = vsel %vm464_vm1, %v472_v9, %v490_v15  ;;  %v498_v41 = vrot.slane %v2811_v36, 2  ;;  %v493_v47 = vsel %vm464_vm1, %v475_v2, %v492_v19  ;;  %v495_v58 = vsel %vm464_vm1, %v478_v53, %v494_v50 }
  0x39   : > { %v497_v62 = vsel %vm464_vm1, %v481_v61, %v496_v60  ;;  %v4400_v63 = vunpack.c.l.bf16 %v2784_v24  ;;  %v4401_v35 = vunpack.c.h.bf16 %v2784_v24  ;;  %v4402_v12 = vunpack.c.l.bf16 %v2787_v25 }
  0x3a   : > { %v499_v34 = vsel %vm464_vm1, %v484_v57, %v498_v41  ;;  %v4403_v9 = vunpack.c.h.bf16 %v2787_v25  ;;  %v4404_v53 = vunpack.c.l.bf16 %v2790_v26  ;;  %v4405_v61 = vunpack.c.h.bf16 %v2790_v26 }
  0x3b   : > { %v500_v40 = vrot.slane %v4400_v63, 2  ;;  %v502_v4 = vrot.slane %v4401_v35, 2  ;;  %v504_v33 = vrot.slane %v4402_v12, 2  ;;  %v4406_v63 = vunpack.c.l.bf16 %v2801_v31 }
  0x3c   : > { %v506_v36 = vrot.slane %v4403_v9, 2  ;;  %v508_v39 = vrot.slane %v4404_v53, 2  ;;  %v510_v32 = vrot.slane %v4405_v61, 2  ;;  %v3064_v9 = vld [vmem:[%s2739_s8] sm:$0x88]  ;;  %v4411_v53 = vmax.f32 %v2779_v22, %v2864_v48 }
  0x3d   : > { %v501_v2 = vsel %vm464_vm1, %v486_v3, %v500_v40  ;;  %v512_v57 = vrot.slane %v4406_v63, 2  ;;  %v503_v24 = vsel %vm464_vm1, %v488_v13, %v502_v4  ;;  %v505_v35 = vsel %vm464_vm1, %v490_v15, %v504_v33  ;;  %4410 = vst [vmem:[#allocation22_spill] sm:$0xff] %v3064_v9  ;;  %v3087_v48 = vld [vmem:[%s2739_s8 + $0x8] sm:$0x88]  ;;  %v4418_v63 = vld [vmem:[#allocation12_spill] sm:$0xff] }
  0x3e   : > { %v507_v12 = vsel %vm464_vm1, %v492_v19, %v506_v36  ;;  %v509_v40 = vsel %vm464_vm1, %v494_v50, %v508_v39  ;;  %v511_v3 = vsel %vm464_vm1, %v496_v60, %v510_v32  ;;  %v4408_v19 = vmax.f32 %v2775_v20, %v2858_v44  ;;  %4415 = vst [vmem:[#allocation23_spill] sm:$0xff] %v3087_v48  ;;  %v575_v36 = vld [vmem:[%s2739_s8 + $0x6c] sm:$0x7] }
  0x3f   : > { %v513_v26 = vsel %vm464_vm1, %v498_v41, %v512_v57  ;;  %v4407_v41 = vmax.f32 %v2770_v16, %v2853_v17  ;;  %v4409_v60 = vmax.f32 %v2777_v21, %v2861_v46  ;;  %v3069_v17 = vmax.f32 %v4411_v53, %v493_v47  ;;  %v3090_v47 = vld [vmem:[%s2739_s8 + $0x10] sm:$0x88]  ;;  %v4419_v57 = vld [vmem:[#allocation17_spill] sm:$0xff] }
  0x40   : > { %v3056_v50 = vmax.f32 %v4408_v19, %v489_v51  ;;  %v4413_v51 = vmax.f32 %v2792_v27, %v2871_v45  ;;  %v4417_v45 = vmax.f32 %v2798_v30, %v2890_v37  ;;  %v4422_v19 = vld [vmem:[#allocation18_spill] sm:$0xff]  ;;  %v4430_v37 = vld [vmem:[#allocation15_spill] sm:$0xff]  ;;  %v610_v25 = vunpack.c.l.bf16 %v575_v36 }
  0x41   : > { %v3051_v15 = vmax.f32 %v4407_v41, %v487_v43  ;;  %v3061_v4 = vmax.f32 %v4409_v60, %v491_v42  ;;  %v4412_v43 = vmax.f32 %v2781_v23, %v2868_v54  ;;  %v4414_v42 = vmax.f32 %v2794_v28, %v2878_v49 }
  0x42   : > { %v3079_v46 = vmax.f32 %v4413_v51, %v497_v62  ;;  %v4416_v54 = vmax.f32 %v2796_v29, %v2887_v59  ;;  %v3100_v62 = vmax.f32 %v4417_v45, %v503_v24  ;;  %v4420_v49 = vmax.f32 %v4418_v63, %v4419_v57  ;;  %v572_v59 = vld [vmem:[%s2739_s8 + $0x54] sm:$0x77]  ;;  %v4431_v24 = vld [vmem:[#allocation20_spill] sm:$0xff]  ;;  %v4435_v57 = vld [vmem:[#allocation21_spill] sm:$0xff] }
  0x43   : > { %v3074_v44 = vmax.f32 %v4412_v43, %v495_v58  ;;  %v3084_v61 = vmax.f32 %v4414_v42, %v499_v34  ;;  %v4421_v34 = vld [vmem:[#allocation13_spill] sm:$0xff]  ;;  %v3113_v43 = vld [vmem:[%s2739_s8 + $0x18] sm:$0x8]  ;;  %v4432_v45 = vmax.f32 %v4430_v37, %v4431_v24  ;;  %v4439_v24 = vunpack.c.l.bf16 %v3087_v48 }
  0x44   : > { %v3095_v58 = vmax.f32 %v4416_v54, %v501_v2  ;;  %v3105_v41 = vmax.f32 %v4420_v49, %v505_v35  ;;  %v4423_v60 = vmax.f32 %v4421_v34, %v4422_v19  ;;  %4425 = vst [vmem:[#allocation18_spill] sm:$0xff] %v3113_v43  ;;  %v4426_v2 = vld [vmem:[#allocation14_spill] sm:$0xff]  ;;  %v4427_v51 = vld [vmem:[#allocation19_spill] sm:$0xff]  ;;  %v4434_v35 = vld [vmem:[#allocation16_spill] sm:$0xff]  ;;  %v4440_v36 = vunpack.c.h.bf16 %v3087_v48 }
  0x45   : > { %v4428_v42 = vmax.f32 %v4426_v2, %v4427_v51  ;;  %v3124_v32 = vmax.f32 %v4432_v45, %v511_v3  ;;  %v4436_v49 = vmax.f32 %v4434_v35, %v4435_v57  ;;  %v574_v19 = vld [vmem:[%s2739_s8 + $0x64] sm:$0x77]  ;;  %v604_v45 = vunpack.c.l.bf16 %v572_v59 }
  0x46   : > { %v3110_v53 = vmax.f32 %v4423_v60, %v507_v12  ;;  %v573_v12 = vld [vmem:[%s2739_s8 + $0x5c] sm:$0x77]  ;;  %v4275_v60 = vunpack.c.l.bf16 %v3064_v9  ;;  %v608_v13 = vunpack.c.l.bf16 %v574_v19  ;;  %v609_v31 = vunpack.c.h.bf16 %v574_v19 }
  0x47   : > { %v3119_v54 = vmax.f32 %v4428_v42, %v509_v40  ;;  %4433 = vst [vmem:[#allocation20_spill] sm:$0xff] %v3124_v32  ;;  %v3129_v39 = vmax.f32 %v4436_v49, %v513_v26  ;;  %v605_v26 = vunpack.c.h.bf16 %v572_v59  ;;  %v606_v57 = vunpack.c.l.bf16 %v573_v12 }
  0x48   : > { %4424 = vst [vmem:[#allocation17_spill] sm:$0xff] %v3110_v53  ;;  %v607_v49 = vunpack.c.h.bf16 %v573_v12  ;;  %v626_v33 = vrot.slane %v4275_v60, 6  ;;  %v627_v40 = vrot.slane %v2770_v16, 6  ;;  %v4438_v51 = vunpack.c.h.bf16 %v3064_v9  ;;  %v4493_v53 = vld [vmem:[#allocation13_spill] sm:$0xff] }
  0x49   : > { %4429 = vst [vmem:[#allocation19_spill] sm:$0xff] %v3119_v54  ;;  %v630_v3 = vrot.slane %v2775_v20, 6  ;;  %v633_v59 = vrot.slane %v2777_v21, 6  ;;  %v635_v19 = vrot.slane %v4440_v36, 6  ;;  %v636_v32 = vrot.slane %v2779_v22, 6 }
  0x4a   : > { %4437 = vst [vmem:[#allocation21_spill] sm:$0xff] %v3129_v39  ;;  %v629_v42 = vrot.slane %v4438_v51, 6  ;;  %v632_v39 = vrot.slane %v4439_v24, 6  ;;  %v628_v12 = vsel %vm625_vm2, %v626_v33, %v627_v40  ;;  %v4441_v60 = vunpack.c.l.bf16 %v3090_v47 }
  0x4b   : > { %v639_v20 = vrot.slane %v2781_v23, 6  ;;  %v4442_v24 = vunpack.c.h.bf16 %v3090_v47  ;;  %v637_v21 = vsel %vm625_vm2, %v635_v19, %v636_v32  ;;  %v642_v33 = vrot.slane %v2792_v27, 6 }
  0x4c   : > { %v638_v16 = vrot.slane %v4441_v60, 6  ;;  %v631_v9 = vsel %vm625_vm2, %v629_v42, %v630_v3  ;;  %v634_v51 = vsel %vm625_vm2, %v632_v39, %v633_v59  ;;  %v4443_v36 = vunpack.c.l.bf16 %v3113_v43 }
  0x4d   : > { %v641_v54 = vrot.slane %v4442_v24, 6  ;;  %v645_v22 = vrot.slane %v2794_v28, 6  ;;  %v3168_v42 = vrot.slane %v2796_v29, 6  ;;  %v3171_v39 = vrot.slane %v2798_v30, 6 }
  0x4e   : > { %v644_v48 = vrot.slane %v4443_v36, 6  ;;  %v640_v60 = vsel %vm625_vm2, %v638_v16, %v639_v20  ;;  %v3174_v23 = vrot.slane %v4418_v63, 6  ;;  %v3179_v43 = vrot.slane %v4421_v34, 6 }
  0x4f   : > { %4444 = vst [vmem:[#allocation24_spill] sm:$0xff] %v3168_v42  ;;  %v643_v19 = vsel %vm625_vm2, %v641_v54, %v642_v33  ;;  %v3182_v36 = vrot.slane %v4426_v2, 6  ;;  %v3186_v16 = vsel %vm625_vm2, %v627_v40, %v3168_v42  ;;  %v3190_v30 = vsel %vm625_vm2, %v630_v3, %v3171_v39 }
  0x50   : > { %4445 = vst [vmem:[#allocation25_spill] sm:$0xff] %v3171_v39  ;;  %v646_v24 = vsel %vm625_vm2, %v644_v48, %v645_v22  ;;  %v3194_v63 = vsel %vm625_vm2, %v633_v59, %v3174_v23  ;;  %v3197_v48 = vrot.slane %v4430_v37, 6  ;;  %v3201_v54 = vsel %vm625_vm2, %v636_v32, %v3179_v43 }
  0x51   : > { %4446 = vst [vmem:[#allocation26_spill] sm:$0xff] %v3174_v23  ;;  %v3205_v2 = vsel %vm625_vm2, %v639_v20, %v3182_v36  ;;  %v3208_v40 = vrot.slane %v4434_v35, 6  ;;  %v661_v3 = vrot.slane %v604_v45, 6  ;;  %v663_v59 = vrot.slane %v605_v26, 6 }
  0x52   : > { %4447 = vst [vmem:[#allocation27_spill] sm:$0xff] %v3179_v43  ;;  %v3212_v34 = vsel %vm625_vm2, %v642_v33, %v3197_v48  ;;  %v665_v29 = vrot.slane %v606_v57, 6  ;;  %v667_v37 = vrot.slane %v607_v49, 6  ;;  %v669_v20 = vrot.slane %v608_v13, 6 }
  0x53   : > { %4448 = vst [vmem:[#allocation28_spill] sm:$0xff] %v3182_v36  ;;  %v3216_v28 = vsel %vm625_vm2, %v645_v22, %v3208_v40  ;;  %v3220_v32 = vsel %vm625_vm2, %v3168_v42, %v661_v3  ;;  %v671_v27 = vrot.slane %v609_v31, 6  ;;  %v3224_v45 = vsel %vm625_vm2, %v3171_v39, %v663_v59  ;;  %v732_v59 = vld [vmem:[%s2739_s8 + $0x6c] sm:$0xf]  ;;  %v4484_v42 = vld [vmem:[#allocation7_spill] sm:$0xff] }
  0x54   : > { %4449 = vst [vmem:[#allocation29_spill] sm:$0xff] %v3197_v48  ;;  %v3228_v33 = vsel %vm625_vm2, %v3174_v23, %v665_v29  ;;  %v3232_v26 = vsel %vm625_vm2, %v3179_v43, %v667_v37  ;;  %v673_v22 = vrot.slane %v610_v25, 6  ;;  %v3236_v57 = vsel %vm625_vm2, %v3182_v36, %v669_v20  ;;  %v4482_v43 = vld [vmem:[#allocation6_spill] sm:$0xff] }
  0x55   : > { %4450 = vst [vmem:[#allocation30_spill] sm:$0xff] %v3208_v40  ;;  %v3240_v31 = vsel %vm625_vm2, %v3197_v48, %v671_v27  ;;  %v4455_v13 = vmax.f32 %v2907_v5, %v2975_v8  ;;  %v4456_v37 = vmax.f32 %v2917_v10, %v2980_v56  ;;  %v4458_v3 = vmax.f32 %v2921_v11, %v2983_v18  ;;  %v4480_v48 = vld [vmem:[#allocation5_spill] sm:$0xff] }
  0x56   : > { %4451 = vst [vmem:[#allocation31_spill] sm:$0xff] %v3228_v33  ;;  %v3254_v25 = vsel %vm625_vm2, %v3208_v40, %v673_v22  ;;  %v4459_v5 = vmax.f32 %v2925_v6, %v2987_v55  ;;  %v4461_v56 = vmax.f32 %v2933_v52, %v2994_v1  ;;  %v4462_v11 = vmax.f32 %v2937_v0, %v3000_v7  ;;  %v729_v7 = vld [vmem:[%s2739_s8 + $0x54] sm:$0xff]  ;;  %v730_v55 = vld [vmem:[%s2739_s8 + $0x5c] sm:$0xff] }
  0x57   : > { %4452 = vst [vmem:[#allocation32_spill] sm:$0xff] %v3232_v26  ;;  %v3245_v29 = vmax.f32 %v4455_v13, %v628_v12  ;;  %v3250_v49 = vmax.f32 %v4456_v37, %v631_v9  ;;  %v3259_v27 = vmax.f32 %v4458_v3, %v634_v51  ;;  %v4460_v12 = vmax.f32 %v2929_v38, %v2990_v14  ;;  %v4473_v13 = vld [vmem:[#allocation22_spill] sm:$0xff]  ;;  %v4475_v1 = vld [vmem:[#allocation3_spill] sm:$0xff]  ;;  %v4477_v38 = vld [vmem:[#allocation4_spill] sm:$0xff] }
  0x58   : > { %4453 = vst [vmem:[#allocation33_spill] sm:$0xff] %v3236_v57  ;;  %v3264_v8 = vmax.f32 %v4459_v5, %v637_v21  ;;  %v3274_v9 = vmax.f32 %v4461_v56, %v643_v19  ;;  %v3279_v18 = vmax.f32 %v4462_v11, %v646_v24  ;;  %v731_v24 = vld [vmem:[%s2739_s8 + $0x64] sm:$0xff]  ;;  %v3313_v56 = vunpack.c.l.bf16 %v729_v7  ;;  %v4478_v21 = vld [vmem:[#allocation23_spill] sm:$0xff]  ;;  %v4490_v57 = vld [vmem:[#allocation10_spill] sm:$0xff] }
  0x59   : > { %4454 = vst [vmem:[#allocation34_spill] sm:$0xff] %v3240_v31  ;;  %v3269_v10 = vmax.f32 %v4460_v12, %v640_v60  ;;  %v3315_v11 = vunpack.c.h.bf16 %v729_v7  ;;  %v3317_v60 = vunpack.c.l.bf16 %v730_v55  ;;  %v3319_v19 = vunpack.c.h.bf16 %v730_v55  ;;  %v4489_v31 = vld [vmem:[#allocation9_spill] sm:$0xff]  ;;  %v4491_v22 = vld [vmem:[#allocation11_spill] sm:$0xff]  ;;  %v4492_v26 = vld [vmem:[#allocation12_spill] sm:$0xff] }
  0x5a   : > { %4457 = vst [vmem:[#allocation35_spill] sm:$0xff] %v3254_v25  ;;  %v3321_v51 = vunpack.c.l.bf16 %v731_v24  ;;  %v3323_v20 = vunpack.c.h.bf16 %v731_v24  ;;  %v3325_v14 = vunpack.c.l.bf16 %v732_v59  ;;  %v4474_v3 = vunpack.c.l.bf16 %v4473_v13  ;;  %v4487_v25 = vld [vmem:[#allocation18_spill] sm:$0xff] }
  0x5b   : > { %4466 = vst [vmem:[#allocation36_spill] sm:$0xff] %v3313_v56  ;;  %v770_v12 = vrot.slane %v4475_v1, 7  ;;  %v4476_v52 = vunpack.c.h.bf16 %v4473_v13  ;;  %v773_v6 = vrot.slane %v4477_v38, 7  ;;  %v4479_v55 = vunpack.c.l.bf16 %v4478_v21  ;;  %v4486_v1 = vld [vmem:[#allocation8_spill] sm:$0xff] }
  0x5c   : > { %4467 = vst [vmem:[#allocation37_spill] sm:$0xff] %v3315_v11  ;;  %v769_v0 = vrot.slane %v4474_v3, 7  ;;  %v776_v36 = vrot.slane %v4480_v48, 7  ;;  %v4481_v24 = vunpack.c.h.bf16 %v4478_v21  ;;  %v779_v23 = vrot.slane %v4482_v43, 7 }
  0x5d   : > { %4468 = vst [vmem:[#allocation38_spill] sm:$0xff] %v3317_v60  ;;  %v772_v7 = vrot.slane %v4476_v52, 7  ;;  %v775_v40 = vrot.slane %v4479_v55, 7  ;;  %v4483_v52 = vunpack.c.l.bf16 %v3090_v47  ;;  %v782_v38 = vrot.slane %v4484_v42, 7 }
  0x5e   : > { %4469 = vst [vmem:[#allocation39_spill] sm:$0xff] %v3319_v19  ;;  %v778_v59 = vrot.slane %v4481_v24, 7  ;;  %v3340_v39 = vsel %vm768_vm3, %v769_v0, %v770_v12  ;;  %v4485_v21 = vunpack.c.h.bf16 %v3090_v47  ;;  %v785_v43 = vrot.slane %v4486_v1, 7 }
  0x5f   : > { %4470 = vst [vmem:[#allocation40_spill] sm:$0xff] %v3321_v51  ;;  %v3343_v3 = vsel %vm768_vm3, %v772_v7, %v773_v6  ;;  %v781_v13 = vrot.slane %v4483_v52, 7  ;;  %v777_v55 = vsel %vm768_vm3, %v775_v40, %v776_v36  ;;  %v4488_v5 = vunpack.c.l.bf16 %v4487_v25  ;;  %v4495_v25 = vld [vmem:[#allocation15_spill] sm:$0xff] }
  0x60   : > { %4471 = vst [vmem:[#allocation41_spill] sm:$0xff] %v3323_v20  ;;  %v780_v48 = vsel %vm768_vm3, %v778_v59, %v779_v23  ;;  %v784_v24 = vrot.slane %v4485_v21, 7  ;;  %v788_v37 = vrot.slane %v4489_v31, 7  ;;  %v790_v52 = vrot.slane %v4490_v57, 7 }
  0x61   : > { %4472 = vst [vmem:[#allocation42_spill] sm:$0xff] %v3325_v14  ;;  %v783_v0 = vsel %vm768_vm3, %v781_v13, %v782_v38  ;;  %v787_v7 = vrot.slane %v4488_v5, 7  ;;  %v792_v40 = vrot.slane %v4491_v22, 7  ;;  %v794_v59 = vrot.slane %v4492_v26, 7  ;;  %v4494_v13 = vld [vmem:[#allocation14_spill] sm:$0xff] }
  0x62   : > { %v786_v42 = vsel %vm768_vm3, %v784_v24, %v785_v43  ;;  %v796_v47 = vrot.slane %v4493_v53, 7  ;;  %v791_v1 = vsel %vm768_vm3, %v770_v12, %v790_v52  ;;  %v798_v33 = vrot.slane %v4494_v13, 7 }
  0x63   : > { %v789_v21 = vsel %vm768_vm3, %v787_v7, %v788_v37  ;;  %v800_v5 = vrot.slane %v4495_v25, 7  ;;  %v793_v31 = vsel %vm768_vm3, %v773_v6, %v792_v40  ;;  %v795_v57 = vsel %vm768_vm3, %v776_v36, %v794_v59 }
  0x64   : > { %v797_v24 = vsel %vm768_vm3, %v779_v23, %v796_v47  ;;  %v802_v22 = vrot.slane %v4434_v35, 7  ;;  %v799_v26 = vsel %vm768_vm3, %v782_v38, %v798_v33  ;;  %v804_v7 = vrot.slane %v3313_v56, 7 }
  0x65   : > { %v801_v53 = vsel %vm768_vm3, %v785_v43, %v800_v5  ;;  %v806_v12 = vrot.slane %v3315_v11, 7  ;;  %v808_v25 = vrot.slane %v3317_v60, 7  ;;  %v810_v6 = vrot.slane %v3319_v19, 7 }
  0x66   : > { %v803_v13 = vsel %vm768_vm3, %v788_v37, %v802_v22  ;;  %v812_v36 = vrot.slane %v3321_v51, 7  ;;  %v805_v23 = vsel %vm768_vm3, %v790_v52, %v804_v7  ;;  %v814_v38 = vrot.slane %v3323_v20, 7 }
  0x67   : > { %v807_v35 = vsel %vm768_vm3, %v792_v40, %v806_v12  ;;  %v816_v43 = vrot.slane %v3325_v14, 7  ;;  %v809_v56 = vsel %vm768_vm3, %v794_v59, %v808_v25  ;;  %v811_v11 = vsel %vm768_vm3, %v796_v47, %v810_v6  ;;  %v4530_v12 = vld [vmem:[#allocation8_spill] sm:$0xff]  ;;  %v4531_v6 = vld [vmem:[#allocation9_spill] sm:$0xff] }
  0x68   : > { %v813_v37 = vsel %vm768_vm3, %v798_v33, %v812_v36  ;;  %v839_v60 = vmax.f32 %v3245_v29, %v3340_v39  ;;  %v815_v19 = vsel %vm768_vm3, %v800_v5, %v814_v38  ;;  %v840_v52 = vmax.f32 %v3250_v49, %v3343_v3  ;;  %v4532_v36 = vld [vmem:[#allocation10_spill] sm:$0xff]  ;;  %v4533_v38 = vld [vmem:[#allocation11_spill] sm:$0xff] }
  0x69   : > { %v817_v51 = vsel %vm768_vm3, %v802_v22, %v816_v43  ;;  %v841_v40 = vmax.f32 %v3259_v27, %v777_v55  ;;  %v842_v7 = vmax.f32 %v3264_v8, %v780_v48  ;;  %v843_v59 = vmax.f32 %v3269_v10, %v783_v0  ;;  %v4517_v10 = vld [vmem:[#allocation20_spill] sm:$0xff]  ;;  %v4527_v0 = vld [vmem:[#allocation5_spill] sm:$0xff] }
  0x6a   : > { %v844_v47 = vmax.f32 %v3274_v9, %v786_v42  ;;  %v845_v33 = vmax.f32 %v3279_v18, %v789_v21  ;;  %v4496_v39 = vmax.f32 %v3051_v15, %v3186_v16  ;;  %v4497_v22 = vmax.f32 %v3056_v50, %v3190_v30  ;;  %v4521_v9 = vld [vmem:[#allocation21_spill] sm:$0xff] }
  0x6b   : > { %v4498_v49 = vmax.f32 %v3061_v4, %v3194_v63  ;;  %v4499_v42 = vmax.f32 %v3069_v17, %v3201_v54  ;;  %v4500_v15 = vmax.f32 %v3074_v44, %v3205_v2  ;;  %v4501_v30 = vmax.f32 %v3079_v46, %v3212_v34 }
  0x6c   : > { %v3399_v29 = vmax.f32 %v4496_v39, %v791_v1  ;;  %v3404_v25 = vmax.f32 %v4497_v22, %v793_v31  ;;  %v4502_v4 = vmax.f32 %v3084_v61, %v3216_v28  ;;  %v4503_v17 = vmax.f32 %v3095_v58, %v3220_v32  ;;  %v4510_v28 = vld [vmem:[#allocation32_spill] sm:$0xff]  ;;  %v4513_v31 = vld [vmem:[#allocation19_spill] sm:$0xff]  ;;  %v4514_v58 = vld [vmem:[#allocation33_spill] sm:$0xff] }
  0x6d   : > { %v3409_v48 = vmax.f32 %v4498_v49, %v795_v57  ;;  %v3414_v27 = vmax.f32 %v4499_v42, %v797_v24  ;;  %v3419_v16 = vmax.f32 %v4500_v15, %v799_v26  ;;  %v3424_v50 = vmax.f32 %v4501_v30, %v801_v53  ;;  %v4506_v26 = vld [vmem:[#allocation31_spill] sm:$0xff]  ;;  %v4509_v53 = vld [vmem:[#allocation17_spill] sm:$0xff]  ;;  %v4539_v49 = vld [vmem:[#allocation16_spill] sm:$0xff] }
  0x6e   : > { %v3429_v63 = vmax.f32 %v4502_v4, %v803_v13  ;;  %v3434_v54 = vmax.f32 %v4503_v17, %v805_v23  ;;  %v4504_v44 = vmax.f32 %v3100_v62, %v3224_v45  ;;  %v4507_v46 = vmax.f32 %v3105_v41, %v4506_v26  ;;  %v4518_v62 = vld [vmem:[#allocation34_spill] sm:$0xff]  ;;  %v4522_v41 = vld [vmem:[#allocation35_spill] sm:$0xff]  ;;  %v3505_v15 = vld [vmem:[%s2739_s8 + $0x24] sm:$0xcc] }
  0x6f   : > { %v4511_v61 = vmax.f32 %v4509_v53, %v4510_v28  ;;  %v4515_v32 = vmax.f32 %v4513_v31, %v4514_v58  ;;  %v4523_v18 = vmax.f32 %v4521_v9, %v4522_v41  ;;  %v3473_v21 = vmax.f32 %v841_v40, %v4527_v0  ;;  %v4528_v13 = vld [vmem:[#allocation6_spill] sm:$0xff]  ;;  %v3494_v40 = vld [vmem:[%s2739_s8 + $0x1c] sm:$0xcc]  ;;  %v4538_v39 = vld [vmem:[#allocation15_spill] sm:$0xff]  ;;  %4540 = vst [vmem:[#allocation33_spill] sm:$0xff] %v3505_v15 }
  0x70   : > { %v3439_v2 = vmax.f32 %v4504_v44, %v807_v35  ;;  %v3444_v34 = vmax.f32 %v4507_v46, %v809_v56  ;;  %v4519_v35 = vmax.f32 %v4517_v10, %v4518_v62  ;;  %v4525_v56 = vld [vmem:[#allocation3_spill] sm:$0xff]  ;;  %v3476_v5 = vmax.f32 %v842_v7, %v4528_v13  ;;  %4535 = vst [vmem:[#allocation19_spill] sm:$0xff] %v3494_v40  ;;  %v4536_v7 = vld [vmem:[#allocation13_spill] sm:$0xff]  ;;  %v3508_v30 = vld [vmem:[%s2739_s8 + $0x2c] sm:$0xcc] }
  0x71   : > { %v3449_v57 = vmax.f32 %v4511_v61, %v811_v11  ;;  %v3454_v8 = vmax.f32 %v4515_v32, %v813_v37  ;;  %v3464_v1 = vmax.f32 %v4523_v18, %v817_v51  ;;  %v3467_v3 = vmax.f32 %v839_v60, %v4525_v56  ;;  %v4526_v11 = vld [vmem:[#allocation4_spill] sm:$0xff]  ;;  %4541 = vst [vmem:[#allocation20_spill] sm:$0xff] %v3508_v30  ;;  %v4543_v44 = vld [vmem:[#allocation37_spill] sm:$0xff]  ;;  %v4544_v46 = vld [vmem:[#allocation38_spill] sm:$0xff] }
  0x72   : > { %4505 = vst [vmem:[#allocation22_spill] sm:$0xff] %v3439_v2  ;;  %v3459_v45 = vmax.f32 %v4519_v35, %v815_v19  ;;  %v3470_v55 = vmax.f32 %v840_v52, %v4526_v11  ;;  %v4529_v19 = vld [vmem:[#allocation7_spill] sm:$0xff]  ;;  %v3482_v51 = vmax.f32 %v844_v47, %v4530_v12  ;;  %v3485_v60 = vmax.f32 %v845_v33, %v4531_v6  ;;  %v4534_v37 = vld [vmem:[#allocation12_spill] sm:$0xff]  ;;  %v4537_v47 = vld [vmem:[#allocation14_spill] sm:$0xff] }
  0x73   : > { %4508 = vst [vmem:[#allocation23_spill] sm:$0xff] %v3444_v34  ;;  %v3479_v24 = vmax.f32 %v843_v59, %v4529_v19  ;;  %v4542_v4 = vld [vmem:[#allocation36_spill] sm:$0xff]  ;;  %v4545_v28 = vld [vmem:[#allocation39_spill] sm:$0xff]  ;;  %v4335_v18 = vunpack.c.l.bf16 %v3494_v40  ;;  %v933_v56 = vld [vmem:[%s2739_s8 + $0x88] sm:$0x3]  ;;  %v4336_v11 = vunpack.c.h.bf16 %v3494_v40  ;;  %v4337_v0 = vunpack.c.l.bf16 %v3505_v15 }
  0x74   : > { %4512 = vst [vmem:[#allocation18_spill] sm:$0xff] %v3449_v57  ;;  %v3519_v31 = vld [vmem:[%s2739_s8 + $0x34] sm:$0xc]  ;;  %v930_v58 = vld [vmem:[%s2739_s8 + $0x70] sm:$0x33]  ;;  %v4547_v32 = vld [vmem:[#allocation40_spill] sm:$0xff]  ;;  %v4338_v13 = vunpack.c.h.bf16 %v3505_v15  ;;  %v4341_v19 = vunpack.c.l.bf16 %v3508_v30  ;;  %v4346_v12 = vunpack.c.h.bf16 %v3508_v30  ;;  %v968_v17 = vunpack.c.l.bf16 %v933_v56 }
  0x75   : > { %4516 = vst [vmem:[#allocation31_spill] sm:$0xff] %v3454_v8  ;;  %v931_v9 = vld [vmem:[%s2739_s8 + $0x78] sm:$0x33]  ;;  %v932_v41 = vld [vmem:[%s2739_s8 + $0x80] sm:$0x33]  ;;  %v4348_v6 = vunpack.c.l.bf16 %v3519_v31  ;;  %v962_v62 = vunpack.c.l.bf16 %v930_v58  ;;  %v963_v10 = vunpack.c.h.bf16 %v930_v58  ;;  %v984_v42 = vrot.slane %v4335_v18, 4 }
  0x76   : > { %4520 = vst [vmem:[#allocation17_spill] sm:$0xff] %v3459_v45  ;;  %v964_v35 = vunpack.c.l.bf16 %v931_v9  ;;  %v965_v61 = vunpack.c.h.bf16 %v931_v9  ;;  %v966_v53 = vunpack.c.l.bf16 %v932_v41  ;;  %v967_v26 = vunpack.c.h.bf16 %v932_v41 }
  0x77   : > { %4524 = vst [vmem:[#allocation32_spill] sm:$0xff] %v3464_v1  ;;  %v985_v22 = vrot.slane %v4532_v36, 4  ;;  %v987_v33 = vrot.slane %v4336_v11, 4  ;;  %v988_v59 = vrot.slane %v4533_v38, 4  ;;  %v990_v52 = vrot.slane %v4337_v0, 4 }
  0x78   : > { %4546 = vst [vmem:[#allocation34_spill] sm:$0xff] %v3519_v31  ;;  %v991_v58 = vrot.slane %v4534_v37, 4  ;;  %v993_v41 = vrot.slane %v4338_v13, 4  ;;  %v994_v56 = vrot.slane %v4536_v7, 4  ;;  %v996_v18 = vrot.slane %v4341_v19, 4 }
  0x79   : > { %v3548_v9 = vsel %vm983_vm4, %v984_v42, %v985_v22  ;;  %v3556_v11 = vsel %vm983_vm4, %v987_v33, %v988_v59  ;;  %v997_v0 = vrot.slane %v4537_v47, 4  ;;  %v999_v42 = vrot.slane %v4346_v12, 4 }
  0x7a   : > { %v3559_v43 = vsel %vm983_vm4, %v990_v52, %v991_v58  ;;  %v3565_v23 = vsel %vm983_vm4, %v993_v41, %v994_v56  ;;  %v1000_v13 = vrot.slane %v4538_v39, 4  ;;  %v1002_v15 = vrot.slane %v4348_v6, 4 }
  0x7b   : > { %v1003_v19 = vrot.slane %v4539_v49, 4  ;;  %v3572_v33 = vsel %vm983_vm4, %v996_v18, %v997_v0  ;;  %v1005_v52 = vrot.slane %v4542_v4, 4  ;;  %v1007_v40 = vrot.slane %v4543_v44, 4 }
  0x7c   : > { %v1009_v30 = vrot.slane %v4544_v46, 4  ;;  %v3578_v12 = vsel %vm983_vm4, %v999_v42, %v1000_v13  ;;  %v1011_v31 = vrot.slane %v4545_v28, 4  ;;  %v1013_v6 = vrot.slane %v4547_v32, 4 }
  0x7d   : > { %v3581_v41 = vsel %vm983_vm4, %v1002_v15, %v1003_v19  ;;  %v1006_v1 = vsel %vm983_vm4, %v985_v22, %v1005_v52  ;;  %v1008_v18 = vsel %vm983_vm4, %v988_v59, %v1007_v40  ;;  %v1015_v8 = vrot.slane %v3323_v20, 4 }
  0x7e   : > { %v1010_v45 = vsel %vm983_vm4, %v991_v58, %v1009_v30  ;;  %v1012_v57 = vsel %vm983_vm4, %v994_v56, %v1011_v31  ;;  %v1014_v42 = vsel %vm983_vm4, %v997_v0, %v1013_v6  ;;  %v1017_v46 = vrot.slane %v3325_v14, 4 }
  0x7f   : > { %v1019_v15 = vrot.slane %v962_v62, 4  ;;  %v1016_v34 = vsel %vm983_vm4, %v1000_v13, %v1015_v8  ;;  %v1021_v28 = vrot.slane %v963_v10, 4  ;;  %v1023_v44 = vrot.slane %v964_v35, 4 }
  0x80   : > { %v1025_v32 = vrot.slane %v965_v61, 4  ;;  %v1018_v22 = vsel %vm983_vm4, %v1003_v19, %v1017_v46  ;;  %v1027_v2 = vrot.slane %v966_v53, 4  ;;  %v1029_v58 = vrot.slane %v967_v26, 4 }
  0x81   : > { %v1020_v59 = vsel %vm983_vm4, %v1005_v52, %v1019_v15  ;;  %v1022_v20 = vsel %vm983_vm4, %v1007_v40, %v1021_v28  ;;  %v1024_v56 = vsel %vm983_vm4, %v1009_v30, %v1023_v44  ;;  %v1031_v4 = vrot.slane %v968_v17, 4  ;;  %v4583_v30 = vld [vmem:[#allocation33_spill] sm:$0xff] }
  0x82   : > { %v1026_v0 = vsel %vm983_vm4, %v1011_v31, %v1025_v32  ;;  %v1028_v62 = vsel %vm983_vm4, %v1013_v6, %v1027_v2  ;;  %v1030_v10 = vsel %vm983_vm4, %v1015_v8, %v1029_v58  ;;  %v4550_v31 = vmax.f32 %v3409_v48, %v4534_v37  ;;  %v3646_v6 = vld [vmem:[%s2739_s8 + $0x70] sm:$0x77]  ;;  %v3649_v48 = vld [vmem:[%s2739_s8 + $0x78] sm:$0x77] }
  0x83   : > { %v1032_v26 = vsel %vm983_vm4, %v1017_v46, %v1031_v4  ;;  %v4548_v4 = vmax.f32 %v3399_v29, %v4532_v36  ;;  %v4549_v46 = vmax.f32 %v3404_v25, %v4533_v38  ;;  %v4551_v35 = vmax.f32 %v3414_v27, %v4536_v7  ;;  %4554 = vst [vmem:[#allocation21_spill] sm:$0xff] %v3646_v6  ;;  %v4562_v58 = vld [vmem:[#allocation38_spill] sm:$0xff] }
  0x84   : > { %v3628_v32 = vmax.f32 %v4550_v31, %v1010_v45  ;;  %v4552_v29 = vmax.f32 %v3419_v16, %v4537_v47  ;;  %v4553_v25 = vmax.f32 %v3424_v50, %v4538_v39  ;;  %v4555_v45 = vmax.f32 %v3429_v63, %v4539_v49  ;;  %v3672_v31 = vld [vmem:[%s2739_s8 + $0x80] sm:$0x77]  ;;  %v3675_v63 = vld [vmem:[%s2739_s8 + $0x88] sm:$0x7] }
  0x85   : > { %v3618_v44 = vmax.f32 %v4548_v4, %v1006_v1  ;;  %v3623_v28 = vmax.f32 %v4549_v46, %v1008_v18  ;;  %v3633_v13 = vmax.f32 %v4551_v35, %v1012_v57  ;;  %v4556_v57 = vld [vmem:[#allocation36_spill] sm:$0xff]  ;;  %v4558_v18 = vld [vmem:[#allocation22_spill] sm:$0xff]  ;;  %v4566_v35 = vld [vmem:[#allocation39_spill] sm:$0xff]  ;;  %v1131_v2 = vrot.slane %v4533_v38, 5 }
  0x86   : > { %v3638_v1 = vmax.f32 %v4552_v29, %v1014_v42  ;;  %v3643_v19 = vmax.f32 %v4553_v25, %v1016_v34  ;;  %v3654_v27 = vmax.f32 %v4555_v45, %v1018_v22  ;;  %v4557_v52 = vmax.f32 %v3434_v54, %v4556_v57  ;;  %v4559_v42 = vld [vmem:[#allocation37_spill] sm:$0xff]  ;;  %v4561_v34 = vld [vmem:[#allocation23_spill] sm:$0xff]  ;;  %v4565_v22 = vld [vmem:[#allocation18_spill] sm:$0xff] }
  0x87   : > { %v4560_v15 = vmax.f32 %v4558_v18, %v4559_v42  ;;  %v4563_v4 = vmax.f32 %v4561_v34, %v4562_v58  ;;  %v4567_v29 = vmax.f32 %v4565_v22, %v4566_v35  ;;  %v4570_v25 = vld [vmem:[#allocation40_spill] sm:$0xff]  ;;  %v4574_v18 = vld [vmem:[#allocation41_spill] sm:$0xff]  ;;  %v4584_v40 = vunpack.c.l.bf16 %v4583_v30 }
  0x88   : > { %v3659_v16 = vmax.f32 %v4557_v52, %v1020_v59  ;;  %v4569_v59 = vld [vmem:[#allocation31_spill] sm:$0xff]  ;;  %v1134_v61 = vrot.slane %v4534_v37, 5 }
  0x89   : > { %v3664_v50 = vmax.f32 %v4560_v15, %v1022_v20  ;;  %v3669_v46 = vmax.f32 %v4563_v4, %v1024_v56  ;;  %v3680_v54 = vmax.f32 %v4567_v29, %v1026_v0  ;;  %v4571_v45 = vmax.f32 %v4569_v59, %v4570_v25  ;;  %v4573_v20 = vld [vmem:[#allocation17_spill] sm:$0xff]  ;;  %v4577_v56 = vld [vmem:[#allocation32_spill] sm:$0xff] }
  0x8a   : > { %v4575_v15 = vmax.f32 %v4573_v20, %v4574_v18  ;;  %v4578_v4 = vmax.f32 %v4577_v56, %v3325_v14  ;;  %v1133_v53 = vrot.slane %v4584_v40, 5  ;;  %v4585_v59 = vunpack.c.h.bf16 %v4583_v30 }
  0x8b   : > { %4564 = vst [vmem:[#allocation35_spill] sm:$0xff] %v3669_v46  ;;  %v3685_v52 = vmax.f32 %v4571_v45, %v1028_v62  ;;  %v4580_v45 = vld [vmem:[#allocation19_spill] sm:$0xff]  ;;  %v1143_v30 = vrot.slane %v4538_v39, 5 }
  0x8c   : > { %4568 = vst [vmem:[#allocation3_spill] sm:$0xff] %v3680_v54  ;;  %v3690_v34 = vmax.f32 %v4575_v15, %v1030_v10  ;;  %v3695_v17 = vmax.f32 %v4578_v4, %v1032_v26  ;;  %v4581_v20 = vunpack.c.l.bf16 %v4580_v45  ;;  %v1128_v26 = vrot.slane %v4532_v36, 5  ;;  %v4586_v36 = vld [vmem:[#allocation20_spill] sm:$0xff] }
  0x8d   : > { %4572 = vst [vmem:[#allocation4_spill] sm:$0xff] %v3685_v52  ;;  %v4582_v56 = vunpack.c.h.bf16 %v4580_v45  ;;  %v1136_v62 = vrot.slane %v4585_v59, 5  ;;  %v1137_v10 = vrot.slane %v4536_v7, 5  ;;  %v4587_v22 = vunpack.c.l.bf16 %v4586_v36  ;;  %v4589_v59 = vld [vmem:[#allocation34_spill] sm:$0xff] }
  0x8e   : > { %4576 = vst [vmem:[#allocation5_spill] sm:$0xff] %v3690_v34  ;;  %v1127_v15 = vrot.slane %v4581_v20, 5  ;;  %v1135_v38 = vsel %vm1126_vm5, %v1133_v53, %v1134_v61  ;;  %v4588_v37 = vunpack.c.h.bf16 %v4586_v36  ;;  %v1150_v53 = vrot.slane %v4559_v42, 5 }
  0x8f   : > { %4579 = vst [vmem:[#allocation6_spill] sm:$0xff] %v3695_v17  ;;  %v1130_v4 = vrot.slane %v4582_v56, 5  ;;  %v1139_v45 = vrot.slane %v4587_v22, 5  ;;  %v1140_v56 = vrot.slane %v4537_v47, 5  ;;  %v1138_v40 = vsel %vm1126_vm5, %v1136_v62, %v1137_v10 }
  0x90   : > { %v1129_v29 = vsel %vm1126_vm5, %v1127_v15, %v1128_v26  ;;  %v1142_v0 = vrot.slane %v4588_v37, 5  ;;  %v4590_v15 = vunpack.c.l.bf16 %v4589_v59  ;;  %v1148_v22 = vrot.slane %v4556_v57, 5 }
  0x91   : > { %v1132_v20 = vsel %vm1126_vm5, %v1130_v4, %v1131_v2  ;;  %v1141_v7 = vsel %vm1126_vm5, %v1139_v45, %v1140_v56  ;;  %v1146_v4 = vrot.slane %v4539_v49, 5  ;;  %v1152_v62 = vrot.slane %v4562_v58, 5 }
  0x92   : > { %v1145_v8 = vrot.slane %v4590_v15, 5  ;;  %v1144_v47 = vsel %vm1126_vm5, %v1142_v0, %v1143_v30  ;;  %v1154_v36 = vrot.slane %v4566_v35, 5  ;;  %v3737_v39 = vsel %vm1126_vm5, %v1128_v26, %v1148_v22 }
  0x93   : > { %v1156_v45 = vrot.slane %v4570_v25, 5  ;;  %v1158_v59 = vrot.slane %v4574_v18, 5  ;;  %v3742_v49 = vsel %vm1126_vm5, %v1131_v2, %v1150_v53  ;;  %v3745_v0 = vsel %vm1126_vm5, %v1134_v61, %v1152_v62 }
  0x94   : > { %v1147_v37 = vsel %vm1126_vm5, %v1145_v8, %v1146_v4  ;;  %v3748_v15 = vsel %vm1126_vm5, %v1137_v10, %v1154_v36  ;;  %v1160_v35 = vrot.slane %v3325_v14, 5  ;;  %v4591_v25 = vunpack.c.l.bf16 %v3646_v6 }
  0x95   : > { %v3752_v8 = vsel %vm1126_vm5, %v1140_v56, %v1156_v45  ;;  %v3755_v26 = vsel %vm1126_vm5, %v1143_v30, %v1158_v59  ;;  %v4592_v2 = vunpack.c.h.bf16 %v3646_v6  ;;  %v4593_v10 = vunpack.c.l.bf16 %v3649_v48 }
  0x96   : > { %v1162_v18 = vrot.slane %v4591_v25, 5  ;;  %v3762_v61 = vsel %vm1126_vm5, %v1146_v4, %v1160_v35  ;;  %v4594_v14 = vunpack.c.h.bf16 %v3649_v48  ;;  %v4595_v56 = vunpack.c.l.bf16 %v3672_v31 }
  0x97   : > { %v1164_v58 = vrot.slane %v4592_v2, 5  ;;  %v1166_v42 = vrot.slane %v4593_v10, 5  ;;  %v4596_v2 = vunpack.c.h.bf16 %v3672_v31  ;;  %v4597_v4 = vunpack.c.l.bf16 %v3675_v63 }
  0x98   : > { %v1168_v57 = vrot.slane %v4594_v14, 5  ;;  %v1170_v17 = vrot.slane %v4595_v56, 5  ;;  %v3771_v30 = vsel %vm1126_vm5, %v1148_v22, %v1162_v18 }
  0x99   : > { %v3774_v25 = vsel %vm1126_vm5, %v1150_v53, %v1164_v58  ;;  %v1172_v6 = vrot.slane %v4596_v2, 5  ;;  %v1174_v34 = vrot.slane %v4597_v4, 5  ;;  %v3781_v10 = vsel %vm1126_vm5, %v1152_v62, %v1166_v42 }
  0x9a   : > { %4598 = vst [vmem:[#allocation7_spill] sm:$0xff] %v3781_v10  ;;  %v3784_v14 = vsel %vm1126_vm5, %v1154_v36, %v1168_v57  ;;  %v3787_v56 = vsel %vm1126_vm5, %v1156_v45, %v1170_v17  ;;  %v4601_v58 = vmax.f32 %v3467_v3, %v3548_v9  ;;  %v4604_v42 = vmax.f32 %v3470_v55, %v3556_v11  ;;  %v1233_v36 = vld [vmem:[%s2739_s8 + $0x34] sm:$0x8] }
  0x9b   : > { %4599 = vst [vmem:[#allocation8_spill] sm:$0xff] %v3784_v14  ;;  %v3795_v22 = vsel %vm1126_vm5, %v1158_v59, %v1172_v6  ;;  %v3798_v53 = vsel %vm1126_vm5, %v1160_v35, %v1174_v34  ;;  %v4605_v17 = vmax.f32 %v3473_v21, %v3559_v43  ;;  %v4606_v3 = vmax.f32 %v3476_v5, %v3565_v23  ;;  %v4624_v59 = vld [vmem:[#allocation41_spill] sm:$0xff] }
  0x9c   : > { %4600 = vst [vmem:[#allocation9_spill] sm:$0xff] %v3787_v56  ;;  %v3792_v18 = vmax.f32 %v4601_v58, %v1129_v29  ;;  %v3803_v57 = vmax.f32 %v4604_v42, %v1132_v20  ;;  %v4607_v6 = vmax.f32 %v3479_v24, %v3572_v33  ;;  %v4608_v55 = vmax.f32 %v3482_v51, %v3578_v12  ;;  %v1230_v12 = vld [vmem:[%s2739_s8 + $0x1c] sm:$0x88]  ;;  %v1231_v29 = vld [vmem:[%s2739_s8 + $0x24] sm:$0x88]  ;;  %v4621_v24 = vld [vmem:[#allocation38_spill] sm:$0xff] }
  0x9d   : > { %4602 = vst [vmem:[#allocation10_spill] sm:$0xff] %v3795_v22  ;;  %v3808_v62 = vmax.f32 %v4605_v17, %v1135_v38  ;;  %v3813_v9 = vmax.f32 %v4606_v3, %v1138_v40  ;;  %v4609_v21 = vmax.f32 %v3485_v60, %v3581_v41  ;;  %v1232_v20 = vld [vmem:[%s2739_s8 + $0x2c] sm:$0x88]  ;;  %v1255_v4 = vunpack.c.l.bf16 %v1230_v12  ;;  %v4613_v33 = vld [vmem:[#allocation24_spill] sm:$0xff]  ;;  %v4614_v51 = vld [vmem:[#allocation25_spill] sm:$0xff] }
  0x9e   : > { %4603 = vst [vmem:[#allocation11_spill] sm:$0xff] %v3798_v53  ;;  %v3818_v35 = vmax.f32 %v4607_v6, %v1141_v7  ;;  %v3823_v11 = vmax.f32 %v4608_v55, %v1144_v47  ;;  %v1256_v58 = vunpack.c.h.bf16 %v1230_v12  ;;  %v1257_v42 = vunpack.c.l.bf16 %v1231_v29  ;;  %v4612_v7 = vld [vmem:[#allocation36_spill] sm:$0xff]  ;;  %v4626_v56 = vld [vmem:[#allocation21_spill] sm:$0xff] }
  0x9f   : > { %v3828_v43 = vmax.f32 %v4609_v21, %v1147_v37  ;;  %v1258_v17 = vunpack.c.h.bf16 %v1231_v29  ;;  %v1259_v3 = vunpack.c.l.bf16 %v1232_v20  ;;  %v1260_v6 = vunpack.c.h.bf16 %v1232_v20  ;;  %v4615_v20 = vld [vmem:[#allocation26_spill] sm:$0xff]  ;;  %v4623_v53 = vld [vmem:[#allocation40_spill] sm:$0xff] }
  0xa0   : > { %v1261_v55 = vunpack.c.l.bf16 %v1233_v36  ;;  %v1269_v21 = vrot.slane %v1255_v4, 6  ;;  %v1271_v40 = vrot.slane %v1256_v58, 6  ;;  %v1283_v38 = vrot.slane %v4612_v7, 6  ;;  %v4616_v4 = vld [vmem:[#allocation27_spill] sm:$0xff]  ;;  %v4617_v58 = vld [vmem:[#allocation28_spill] sm:$0xff] }
  0xa1   : > { %v1273_v34 = vrot.slane %v1257_v42, 6  ;;  %v1275_v47 = vrot.slane %v1258_v17, 6  ;;  %v1277_v41 = vrot.slane %v1259_v3, 6  ;;  %v1279_v60 = vrot.slane %v1260_v6, 6  ;;  %v4618_v17 = vld [vmem:[#allocation29_spill] sm:$0xff]  ;;  %v4619_v6 = vld [vmem:[#allocation30_spill] sm:$0xff] }
  0xa2   : > { %v1270_v45 = vsel %vm625_vm2, %v1269_v21, %v4613_v33  ;;  %v1272_v2 = vsel %vm625_vm2, %v1271_v40, %v4614_v51  ;;  %v1281_v12 = vrot.slane %v1261_v55, 6  ;;  %v1284_v29 = vsel %vm625_vm2, %v4613_v33, %v1283_v38  ;;  %v4620_v40 = vld [vmem:[#allocation37_spill] sm:$0xff]  ;;  %v4622_v33 = vld [vmem:[#allocation39_spill] sm:$0xff] }
  0xa3   : > { %v1274_v36 = vsel %vm625_vm2, %v1273_v34, %v4615_v20  ;;  %v1276_v7 = vsel %vm625_vm2, %v1275_v47, %v4616_v4  ;;  %v1278_v42 = vsel %vm625_vm2, %v1277_v41, %v4617_v58  ;;  %v1280_v3 = vsel %vm625_vm2, %v1279_v60, %v4618_v17  ;;  %v4625_v47 = vld [vmem:[#allocation42_spill] sm:$0xff] }
  0xa4   : > { %v1282_v21 = vsel %vm625_vm2, %v1281_v12, %v4619_v6  ;;  %v1285_v55 = vrot.slane %v4620_v40, 6  ;;  %v1287_v23 = vrot.slane %v4621_v24, 6  ;;  %v1289_v5 = vrot.slane %v4622_v33, 6 }
  0xa5   : > { %v1291_v34 = vrot.slane %v4623_v53, 6  ;;  %v1293_v22 = vrot.slane %v4624_v59, 6  ;;  %v1295_v37 = vrot.slane %v4625_v47, 6  ;;  %v4627_v41 = vunpack.c.l.bf16 %v4626_v56 }
  0xa6   : > { %v1286_v60 = vsel %vm625_vm2, %v4614_v51, %v1285_v55  ;;  %v1288_v12 = vsel %vm625_vm2, %v4615_v20, %v1287_v23  ;;  %v1290_v24 = vsel %vm625_vm2, %v4616_v4, %v1289_v5  ;;  %v4628_v40 = vunpack.c.h.bf16 %v4626_v56 }
  0xa7   : > { %v1297_v52 = vrot.slane %v4627_v41, 6  ;;  %v1292_v53 = vsel %vm625_vm2, %v4617_v58, %v1291_v34  ;;  %v1294_v59 = vsel %vm625_vm2, %v4618_v17, %v1293_v22  ;;  %v1296_v47 = vsel %vm625_vm2, %v4619_v6, %v1295_v37 }
  0xa8   : > { %v1299_v33 = vrot.slane %v4628_v40, 6  ;;  %v4629_v20 = vunpack.c.l.bf16 %v3649_v48  ;;  %v4630_v4 = vunpack.c.h.bf16 %v3649_v48  ;;  %v4631_v40 = vunpack.c.l.bf16 %v3672_v31 }
  0xa9   : > { %v1298_v51 = vsel %vm625_vm2, %v1283_v38, %v1297_v52  ;;  %v4632_v58 = vunpack.c.h.bf16 %v3672_v31  ;;  %v4633_v17 = vunpack.c.l.bf16 %v3675_v63  ;;  %v3914_v6 = vmax.f32 %v3792_v18, %v1270_v45  ;;  %v4649_v45 = vld [vmem:[#allocation4_spill] sm:$0xff] }
  0xaa   : > { %v1300_v41 = vsel %vm625_vm2, %v1285_v55, %v1299_v33  ;;  %v1301_v14 = vrot.slane %v4629_v20, 6  ;;  %v1303_v56 = vrot.slane %v4630_v4, 6  ;;  %v1305_v54 = vrot.slane %v4631_v40, 6 }
  0xab   : > { %v1307_v10 = vrot.slane %v4632_v58, 6  ;;  %v1309_v46 = vrot.slane %v4633_v17, 6  ;;  %v3917_v52 = vmax.f32 %v3803_v57, %v1272_v2  ;;  %v3923_v33 = vmax.f32 %v3808_v62, %v1274_v36  ;;  %v4650_v2 = vld [vmem:[#allocation9_spill] sm:$0xff]  ;;  %v4653_v36 = vld [vmem:[#allocation10_spill] sm:$0xff] }
  0xac   : > { %v1302_v38 = vsel %vm625_vm2, %v1287_v23, %v1301_v14  ;;  %v1304_v48 = vsel %vm625_vm2, %v1289_v5, %v1303_v56  ;;  %v1306_v55 = vsel %vm625_vm2, %v1291_v34, %v1305_v54  ;;  %v3928_v20 = vmax.f32 %v3813_v9, %v1276_v7  ;;  %v4644_v5 = vld [vmem:[#allocation7_spill] sm:$0xff]  ;;  %v4655_v7 = vld [vmem:[#allocation6_spill] sm:$0xff] }
  0xad   : > { %v1308_v31 = vsel %vm625_vm2, %v1293_v22, %v1307_v10  ;;  %v1310_v63 = vsel %vm625_vm2, %v1295_v37, %v1309_v46  ;;  %v3931_v18 = vmax.f32 %v3818_v35, %v1278_v42  ;;  %v3934_v57 = vmax.f32 %v3823_v11, %v1280_v3  ;;  %v4646_v23 = vld [vmem:[#allocation3_spill] sm:$0xff]  ;;  %v4647_v37 = vld [vmem:[#allocation8_spill] sm:$0xff] }
  0xae   : > { %v3937_v14 = vmax.f32 %v3828_v43, %v1282_v21  ;;  %v4634_v54 = vmax.f32 %v3618_v44, %v3737_v39  ;;  %v4635_v46 = vmax.f32 %v3623_v28, %v3742_v49  ;;  %v4636_v22 = vmax.f32 %v3628_v32, %v3745_v0  ;;  %v4643_v43 = vld [vmem:[#allocation35_spill] sm:$0xff] }
  0xaf   : > { %v4637_v35 = vmax.f32 %v3633_v13, %v3748_v15  ;;  %v4638_v44 = vmax.f32 %v3638_v1, %v3752_v8  ;;  %v4639_v28 = vmax.f32 %v3643_v19, %v3755_v26  ;;  %v4640_v32 = vmax.f32 %v3654_v27, %v3762_v61  ;;  %v4656_v42 = vld [vmem:[#allocation11_spill] sm:$0xff] }
  0xb0   : > { %v3942_v62 = vmax.f32 %v4634_v54, %v1284_v29  ;;  %v3947_v10 = vmax.f32 %v4635_v46, %v1286_v60  ;;  %v3952_v9 = vmax.f32 %v4636_v22, %v1288_v12  ;;  %v4641_v13 = vmax.f32 %v3659_v16, %v3771_v30  ;;  %v4652_v29 = vld [vmem:[#allocation5_spill] sm:$0xff] }
  0xb1   : > { %v3957_v11 = vmax.f32 %v4637_v35, %v1290_v24  ;;  %v3962_v39 = vmax.f32 %v4638_v44, %v1292_v53  ;;  %v3967_v49 = vmax.f32 %v4639_v28, %v1294_v59  ;;  %v3972_v0 = vmax.f32 %v4640_v32, %v1296_v47 }
  0xb2   : > { %v3977_v15 = vmax.f32 %v4641_v13, %v1298_v51  ;;  %v4642_v1 = vmax.f32 %v3664_v50, %v3774_v25  ;;  %v4645_v19 = vmax.f32 %v4643_v43, %v4644_v5  ;;  %v4648_v27 = vmax.f32 %v4646_v23, %v4647_v37 }
  0xb3   : > { %v4651_v16 = vmax.f32 %v4649_v45, %v4650_v2  ;;  %v4654_v50 = vmax.f32 %v4652_v29, %v4653_v36  ;;  %v4657_v3 = vmax.f32 %v4655_v7, %v4656_v42  ;;  %v1353_v34 = vpack.c.bf16 %v3917_v52, %v3914_v6 }
  0xb4   : > { %v3982_v8 = vmax.f32 %v4642_v1, %v1300_v41  ;;  %v3987_v26 = vmax.f32 %v4645_v19, %v1302_v38  ;;  %v3992_v61 = vmax.f32 %v4648_v27, %v1304_v48  ;;  %v1354_v60 = vpack.c.bf16 %v3928_v20, %v3923_v33  ;;  %1368 = sbr.rel (%p2238_p9) target bundleno = 197 (0xc5), region = 40 }
  0xb5   : > { %v3997_v30 = vmax.f32 %v4651_v16, %v1306_v55  ;;  %v4002_v25 = vmax.f32 %v4654_v50, %v1308_v31  ;;  %v4007_v21 = vmax.f32 %v4657_v3, %v1310_v63  ;;  %v1355_v12 = vpack.c.bf16 %v3934_v57, %v3931_v18 }
  0xb6   : > { %v1356_v24 = vpack.c.bf16 %v3937_v14, %v3937_v14  ;;  %v1357_v53 = vpack.c.bf16 %v3947_v10, %v3942_v62  ;;  %v1358_v59 = vpack.c.bf16 %v3957_v11, %v3952_v9  ;;  %v1359_v47 = vpack.c.bf16 %v3967_v49, %v3962_v39 }
  0xb7   : > { %v1360_v51 = vpack.c.bf16 %v3972_v0, %v3972_v0  ;;  %v1361_v41 = vpack.c.bf16 %v3982_v8, %v3977_v15  ;;  %v1362_v4 = vpack.c.bf16 %v3992_v61, %v3987_v26  ;;  %v1363_v56 = vpack.c.bf16 %v4002_v25, %v3997_v30 }
  0xb8   : > { %v1364_v40 = vpack.c.bf16 %v4007_v21, %v4007_v21 }
  0xb9   : > { %1369 = vst [vmem:[#allocation2] sm:$0xff] %v1353_v34  ;;  %vm1372_vm6 = vcmask 519168  }
  0xba   : > { %1370 = vst [vmem:[#allocation2 + $0x8] sm:$0xff] %v1354_v60 }
  0xbb   : > { %1371 = vst [vmem:[#allocation2 + $0x10] sm:$0xff] %v1355_v12 }
  0xbc   : > { %1373 = vst.msk [vmem:[#allocation2 + $0x18] sm:$0xf] %vm1372_vm6, %v1356_v24 }
  0xbd   : > { %1377 = vst.msk [vmem:[#allocation2 + $0x34] sm:$0xf] %vm1372_vm6, %v1360_v51 }
  0xbe   : > { %1381 = vst.msk [vmem:[#allocation2 + $0x50] sm:$0xf] %vm1372_vm6, %v1364_v40 }
  0xbf   : > { %1374 = vst [vmem:[#allocation2 + $0x1c] sm:$0xff] %v1357_v53 }
  0xc0   : > { %1375 = vst [vmem:[#allocation2 + $0x24] sm:$0xff] %v1358_v59 }
  0xc1   : > { %1376 = vst [vmem:[#allocation2 + $0x2c] sm:$0xff] %v1359_v47 }
  0xc2   : > { %1378 = vst [vmem:[#allocation2 + $0x38] sm:$0xff] %v1361_v41 }
  0xc3   : > { %1379 = vst [vmem:[#allocation2 + $0x40] sm:$0xff] %v1362_v4 }
  0xc4   : > { %1380 = vst [vmem:[#allocation2 + $0x48] sm:$0xff] %v1363_v56 }
  0xc5 PF: > { %p2239_p10 = scmp.le.s32.totalorder %s2640_s15, 0 }
  0xc7   : > { %1385 = sbr.rel (%p2239_p10) target bundleno = 224 (0xe0), region = 44 }
  0xcc   : > { %v1386_v58 = vld [vmem:[#allocation2] sm:$0xff]  ;;  %v1387_v17 = vld [vmem:[#allocation2 + $0x8] sm:$0xff]  ;;  %v1388_v38 = vld [vmem:[#allocation2 + $0x10] sm:$0xff]  ;;  %vm1476_vm7 = vcmask 519168  }
  0xcd   : > { %v1398_v48 = vunpack.c.l.bf16 %v1386_v58  ;;  %v1399_v55 = vunpack.c.h.bf16 %v1386_v58  ;;  %v1400_v31 = vunpack.c.l.bf16 %v1387_v17  ;;  %v1401_v63 = vunpack.c.h.bf16 %v1387_v17  ;;  %v1389_v54 = vld [vmem:[#allocation2 + $0x18] sm:$0xf]  ;;  %v1390_v46 = vld [vmem:[#allocation2 + $0x1c] sm:$0xff]  ;;  %v1391_v32 = vld [vmem:[#allocation2 + $0x24] sm:$0xff] }
  0xce   : > { %v1402_v22 = vunpack.c.l.bf16 %v1388_v38  ;;  %v1403_v35 = vunpack.c.h.bf16 %v1388_v38  ;;  %v1404_v44 = vunpack.c.l.bf16 %v1389_v54  ;;  %v1405_v28 = vunpack.c.l.bf16 %v1390_v46  ;;  %v1392_v45 = vld [vmem:[#allocation2 + $0x2c] sm:$0xff]  ;;  %v1393_v2 = vld [vmem:[#allocation2 + $0x34] sm:$0xf]  ;;  %v1394_v50 = vld [vmem:[#allocation2 + $0x38] sm:$0xff] }
  0xcf   : > { %v1440_v13 = vmax.f32 %v1398_v48, %v3914_v6  ;;  %v1441_v1 = vmax.f32 %v1399_v55, %v3917_v52  ;;  %v1442_v43 = vmax.f32 %v1400_v31, %v3923_v33  ;;  %v1443_v5 = vmax.f32 %v1401_v63, %v3928_v20  ;;  %v1395_v42 = vld [vmem:[#allocation2 + $0x40] sm:$0xff]  ;;  %v1396_v24 = vld [vmem:[#allocation2 + $0x48] sm:$0xff]  ;;  %v1397_v51 = vld [vmem:[#allocation2 + $0x50] sm:$0xf] }
  0xd0   : > { %v1444_v19 = vmax.f32 %v1402_v22, %v3931_v18  ;;  %v1445_v23 = vmax.f32 %v1403_v35, %v3934_v57  ;;  %v1446_v37 = vmax.f32 %v1404_v44, %v3937_v14  ;;  %v1406_v27 = vunpack.c.h.bf16 %v1390_v46 }
  0xd1   : > { %v1461_v16 = vpack.c.bf16 %v1441_v1, %v1440_v13  ;;  %v1462_v29 = vpack.c.bf16 %v1443_v5, %v1442_v43  ;;  %v1447_v36 = vmax.f32 %v1405_v28, %v3942_v62  ;;  %v1407_v6 = vunpack.c.l.bf16 %v1391_v32 }
  0xd2   : > { %v1463_v52 = vpack.c.bf16 %v1445_v23, %v1444_v19  ;;  %v1464_v7 = vpack.c.bf16 %v1446_v37, %v1446_v37  ;;  %v1448_v33 = vmax.f32 %v1406_v27, %v3947_v10  ;;  %v1408_v20 = vunpack.c.h.bf16 %v1391_v32 }
  0xd3   : > { %1473 = vst [vmem:[#allocation2] sm:$0xff] %v1461_v16  ;;  %v1449_v18 = vmax.f32 %v1407_v6, %v3952_v9  ;;  %v1409_v57 = vunpack.c.l.bf16 %v1392_v45  ;;  %v1410_v14 = vunpack.c.h.bf16 %v1392_v45  ;;  %v1411_v3 = vunpack.c.l.bf16 %v1393_v2 }
  0xd4   : > { %1474 = vst [vmem:[#allocation2 + $0x8] sm:$0xff] %v1462_v29  ;;  %v1465_v34 = vpack.c.bf16 %v1448_v33, %v1447_v36  ;;  %v1450_v60 = vmax.f32 %v1408_v20, %v3957_v11  ;;  %v1412_v12 = vunpack.c.l.bf16 %v1394_v50  ;;  %v1413_v62 = vunpack.c.h.bf16 %v1394_v50 }
  0xd5   : > { %1475 = vst [vmem:[#allocation2 + $0x10] sm:$0xff] %v1463_v52  ;;  %v1451_v53 = vmax.f32 %v1409_v57, %v3962_v39  ;;  %v1452_v10 = vmax.f32 %v1410_v14, %v3967_v49  ;;  %v1453_v59 = vmax.f32 %v1411_v3, %v3972_v0  ;;  %v1414_v47 = vunpack.c.l.bf16 %v1395_v42 }
  0xd6   : > { %1477 = vst.msk [vmem:[#allocation2 + $0x18] sm:$0xf] %vm1476_vm7, %v1464_v7  ;;  %v1466_v9 = vpack.c.bf16 %v1450_v60, %v1449_v18  ;;  %v1454_v41 = vmax.f32 %v1412_v12, %v3977_v15  ;;  %v1455_v4 = vmax.f32 %v1413_v62, %v3982_v8  ;;  %v1415_v11 = vunpack.c.h.bf16 %v1395_v42 }
  0xd7   : > { %1478 = vst [vmem:[#allocation2 + $0x1c] sm:$0xff] %v1465_v34  ;;  %v1467_v56 = vpack.c.bf16 %v1452_v10, %v1451_v53  ;;  %v1468_v40 = vpack.c.bf16 %v1453_v59, %v1453_v59  ;;  %v1456_v58 = vmax.f32 %v1414_v47, %v3987_v26  ;;  %v1416_v39 = vunpack.c.l.bf16 %v1396_v24 }
  0xd8   : > { %1479 = vst [vmem:[#allocation2 + $0x24] sm:$0xff] %v1466_v9  ;;  %v1469_v49 = vpack.c.bf16 %v1455_v4, %v1454_v41  ;;  %v1457_v0 = vmax.f32 %v1415_v11, %v3992_v61  ;;  %v1417_v17 = vunpack.c.h.bf16 %v1396_v24  ;;  %v1418_v38 = vunpack.c.l.bf16 %v1397_v51 }
  0xd9   : > { %1480 = vst [vmem:[#allocation2 + $0x2c] sm:$0xff] %v1467_v56  ;;  %v1458_v48 = vmax.f32 %v1416_v39, %v3997_v30 }
  0xda   : > { %1481 = vst.msk [vmem:[#allocation2 + $0x34] sm:$0xf] %vm1476_vm7, %v1468_v40  ;;  %v1470_v15 = vpack.c.bf16 %v1457_v0, %v1456_v58  ;;  %v1459_v8 = vmax.f32 %v1417_v17, %v4002_v25  ;;  %v1460_v55 = vmax.f32 %v1418_v38, %v4007_v21 }
  0xdb   : > { %1482 = vst [vmem:[#allocation2 + $0x38] sm:$0xff] %v1469_v49 }
  0xdc   : > { %1483 = vst [vmem:[#allocation2 + $0x40] sm:$0xff] %v1470_v15  ;;  %v1471_v26 = vpack.c.bf16 %v1459_v8, %v1458_v48  ;;  %v1472_v31 = vpack.c.bf16 %v1460_v55, %v1460_v55 }
  0xde   : > { %1484 = vst [vmem:[#allocation2 + $0x48] sm:$0xff] %v1471_v26 }
  0xdf   : > { %1485 = vst.msk [vmem:[#allocation2 + $0x50] sm:$0xf] %vm1476_vm7, %v1472_v31 }
  0xe0 PF: > { %p2240_p11 = scmp.ne.s32.totalorder %s2640_s15, 2 }
  0xe2   : > { %1489 = sbr.rel (%p2240_p11) target bundleno = 454 (0x1c6), region = 48 }
  0xe7   : > { %v2495_v61 = vld [vmem:[%s4247_s1 + $0x38] sm:$0xff]  ;;  %v2494_v63 = vld [vmem:[%s4247_s1 + $0x30] sm:$0xff]  ;;  %v2493_v35 = vld [vmem:[%s4247_s1 + $0x28] sm:$0xff]  ;;  %vm1977_vm8 = vcmask 523264  }
  0xe8   : > { %v2503_v30 = vld [vmem:[%s4247_s1 + $0x78] sm:$0xff]  ;;  %1984 = vmatpush.bf16.msra.mxu0 %v2495_v61  ;;  %v2502_v54 = vld [vmem:[%s4247_s1 + $0x70] sm:$0xff]  ;;  %v2501_v44 = vld [vmem:[%s4247_s1 + $0x68] sm:$0xff] }
  0xe9   : > { %v2511_v25 = vld [vmem:[%s4247_s1 + $0xb8] sm:$0xff]  ;;  %2002 = vmatpush.bf16.msra.mxu1 %v2503_v30  ;;  %v2510_v46 = vld [vmem:[%s4247_s1 + $0xb0] sm:$0xff]  ;;  %v2509_v28 = vld [vmem:[%s4247_s1 + $0xa8] sm:$0xff] }
  0xea   : > { %v2519_v21 = vld [vmem:[%s4247_s1 + $0xf8] sm:$0xff]  ;;  %2020 = vmatpush.bf16.msra.mxu2 %v2511_v25  ;;  %v2518_v22 = vld [vmem:[%s4247_s1 + $0xf0] sm:$0xff]  ;;  %v2517_v32 = vld [vmem:[%s4247_s1 + $0xe8] sm:$0xff] }
  0xeb   : > { %2038 = vmatpush.bf16.msra.mxu3 %v2519_v21  ;;  %v2492_v13 = vld [vmem:[%s4247_s1 + $0x20] sm:$0xff]  ;;  %v2491_v19 = vld [vmem:[%s4247_s1 + $0x18] sm:$0xff]  ;;  %v2490_v45 = vld [vmem:[%s4247_s1 + $0x10] sm:$0xff] }
  0xec   : > { %1985 = vmatpush.bf16.msra.mxu0 %v2494_v63  ;;  %v2500_v1 = vld [vmem:[%s4247_s1 + $0x60] sm:$0xff]  ;;  %v2499_v23 = vld [vmem:[%s4247_s1 + $0x58] sm:$0xff]  ;;  %v2498_v2 = vld [vmem:[%s4247_s1 + $0x50] sm:$0xff] }
  0xed   : > { %2003 = vmatpush.bf16.msra.mxu1 %v2502_v54  ;;  %v2508_v43 = vld [vmem:[%s4247_s1 + $0xa0] sm:$0xff]  ;;  %v2507_v37 = vld [vmem:[%s4247_s1 + $0x98] sm:$0xff]  ;;  %v2506_v16 = vld [vmem:[%s4247_s1 + $0x90] sm:$0xff] }
  0xee   : > { %2021 = vmatpush.bf16.msra.mxu2 %v2510_v46  ;;  %v2516_v5 = vld [vmem:[%s4247_s1 + $0xe0] sm:$0xff]  ;;  %v2515_v27 = vld [vmem:[%s4247_s1 + $0xd8] sm:$0xff]  ;;  %v2514_v29 = vld [vmem:[%s4247_s1 + $0xd0] sm:$0xff] }
  0xef   : > { %2039 = vmatpush.bf16.msra.mxu3 %v2518_v22  ;;  %v2489_v36 = vld [vmem:[%s4247_s1 + $0x8] sm:$0xff]  ;;  %v2488_v7 = vld [vmem:[%s4247_s1] sm:$0xff]  ;;  %v2484_v57 = vld [vmem:[#allocation2 + $0x18] sm:$0xf0] }
  0xf0   : > { %1986 = vmatpush.bf16.msra.mxu0 %v2493_v35  ;;  %v2497_v6 = vld [vmem:[%s4247_s1 + $0x48] sm:$0xff]  ;;  %v2496_v33 = vld [vmem:[%s4247_s1 + $0x40] sm:$0xff]  ;;  %v2539_v24 = vld [vmem:[%s4247_s1 + $0x198] sm:$0xff] }
  0xf1   : > { %2004 = vmatpush.bf16.msra.mxu1 %v2501_v44  ;;  %v2505_v50 = vld [vmem:[%s4247_s1 + $0x88] sm:$0xff]  ;;  %v2504_v20 = vld [vmem:[%s4247_s1 + $0x80] sm:$0xff]  ;;  %v2527_v53 = vld [vmem:[%s4247_s1 + $0x138] sm:$0xff] }
  0xf2   : > { %2022 = vmatpush.bf16.msra.mxu2 %v2509_v28  ;;  %v2513_v52 = vld [vmem:[%s4247_s1 + $0xc8] sm:$0xff]  ;;  %v2512_v42 = vld [vmem:[%s4247_s1 + $0xc0] sm:$0xff]  ;;  %v2535_v9 = vld [vmem:[%s4247_s1 + $0x178] sm:$0xff] }
  0xf3   : > { %2040 = vmatpush.bf16.msra.mxu3 %v2517_v32  ;;  %v2243_v18 = vld [vmem:[#allocation2] sm:$0xf]  ;;  %v2481_v14 = vld [vmem:[#allocation2 + $0x4] sm:$0xf]  ;;  %v2251_v34 = vld [vmem:[#allocation2 + $0x8] sm:$0xf] }
  0xf4   : > { %1987 = vmatpush.bf16.msra.mxu0 %v2492_v13  ;;  %v2245_v3 = vld [vmem:[#allocation2 + $0x1c] sm:$0xf0]  ;;  %v2485_v60 = vld [vmem:[#allocation2 + $0x20] sm:$0xf0]  ;;  %v2482_v12 = vld [vmem:[#allocation2 + $0xc] sm:$0xf]  ;;  %v2244_v10 = vor.u32 %v2484_v57, %v2243_v18 }
  0xf5   : > { %2005 = vmatpush.bf16.msra.mxu1 %v2500_v1  ;;  %v2253_v62 = vld [vmem:[#allocation2 + $0x24] sm:$0xf0]  ;;  %v2248_v59 = vor.u32 %v2481_v14, %v2245_v3  ;;  %v2252_v47 = vor.u32 %v2485_v60, %v2251_v34  ;;  %v2526_v41 = vld [vmem:[%s4247_s1 + $0x130] sm:$0xff]  ;;  %v1498_v58 = vld [vmem:[#allocation2 + $0x38] sm:$0xff] }
  0xf6   : > { %2023 = vmatpush.bf16.msra.mxu2 %v2508_v43  ;;  %v2256_v51 = vor.u32 %v2482_v12, %v2253_v62  ;;  %v2538_v4 = vld [vmem:[%s4247_s1 + $0x190] sm:$0xff]  ;;  %v2525_v56 = vld [vmem:[%s4247_s1 + $0x128] sm:$0xff]  ;;  %v1499_v49 = vld [vmem:[#allocation2 + $0x40] sm:$0xff]  ;;  %v1632_v38 = vunpack.c.l.b16 %v1498_v58  ;;  %v1633_v48 = vunpack.c.h.b16 %v1498_v58 }
  0xf7   : > { %2041 = vmatpush.bf16.msra.mxu3 %v2516_v5  ;;  %v2534_v11 = vld [vmem:[%s4247_s1 + $0x170] sm:$0xff]  ;;  %v2537_v40 = vld [vmem:[%s4247_s1 + $0x188] sm:$0xff]  ;;  %v2524_v0 = vld [vmem:[%s4247_s1 + $0x120] sm:$0xff]  ;;  %v1634_v15 = vunpack.c.l.b16 %v1499_v49  ;;  %v1635_v8 = vunpack.c.h.b16 %v1499_v49 }
  0xf8   : > { %1988 = vmatpush.bf16.msra.mxu0 %v2491_v19  ;;  %v2533_v39 = vld [vmem:[%s4247_s1 + $0x168] sm:$0xff]  ;;  %v2536_v17 = vld [vmem:[%s4247_s1 + $0x180] sm:$0xff]  ;;  %v2523_v26 = vld [vmem:[%s4247_s1 + $0x118] sm:$0xff]  ;;  %v1646_v31 = vpack.c.b16 %v1632_v38, %v1632_v38  ;;  %v1647_v61 = vpack.c.b16 %v1633_v48, %v1633_v48 }
  0xf9   : > { %2006 = vmatpush.bf16.msra.mxu1 %v2499_v23  ;;  %v2532_v55 = vld [vmem:[%s4247_s1 + $0x160] sm:$0xff]  ;;  %v1648_v30 = vpack.c.b16 %v1634_v15, %v1634_v15  ;;  %v1649_v25 = vpack.c.b16 %v1635_v8, %v1635_v8  ;;  %v2531_v21 = vld [vmem:[%s4247_s1 + $0x158] sm:$0xff]  ;;  %v2522_v63 = vld [vmem:[%s4247_s1 + $0x110] sm:$0xff] }
  0xfa   : > { %2024 = vmatpush.bf16.msra.mxu2 %v2507_v37  ;;  %v2530_v54 = vld [vmem:[%s4247_s1 + $0x150] sm:$0xff]  ;;  %v2521_v46 = vld [vmem:[%s4247_s1 + $0x108] sm:$0xff]  ;;  %v2520_v44 = vld [vmem:[%s4247_s1 + $0x100] sm:$0xff] }
  0xfb   : > { %2042 = vmatpush.bf16.msra.mxu3 %v2515_v27  ;;  %v2529_v22 = vld [vmem:[%s4247_s1 + $0x148] sm:$0xff]  ;;  %v2259_v28 = vld [vmem:[#allocation2 + $0x10] sm:$0xf]  ;;  %v2528_v1 = vld [vmem:[%s4247_s1 + $0x140] sm:$0xff] }
  0xfc   : > { %1989 = vmatpush.bf16.msra.mxu0 %v2490_v45  ;;  %v1500_v35 = vld [vmem:[#allocation2 + $0x48] sm:$0xff]  ;;  %v2483_v43 = vld [vmem:[#allocation2 + $0x14] sm:$0xf]  ;;  %v2261_v5 = vld [vmem:[#allocation2 + $0x2c] sm:$0xf0] }
  0xfd   : > { %2007 = vmatpush.bf16.msra.mxu1 %v2498_v2  ;;  %v2486_v32 = vld [vmem:[#allocation2 + $0x28] sm:$0xf0]  ;;  %v1636_v13 = vunpack.c.l.b16 %v1500_v35  ;;  %v2267_v19 = vld [vmem:[#allocation2 + $0x18] sm:$0xf]  ;;  %v2487_v23 = vld [vmem:[#allocation2 + $0x30] sm:$0xf0]  ;;  %v2264_v45 = vor.u32 %v2483_v43, %v2261_v5 }
  0xfe   : > { %2025 = vmatpush.bf16.msra.mxu2 %v2506_v16  ;;  %v2260_v37 = vor.u32 %v2486_v32, %v2259_v28  ;;  %v2268_v2 = vor.u32 %v2487_v23, %v2267_v19  ;;  %v1501_v16 = vld [vmem:[#allocation2 + $0x50] sm:$0xf]  ;;  %v2609_v48 = vld [vmem:[%s4249_s3] ss:$0 sm:$0xff] }
  0xff   : > { %2043 = vmatpush.bf16.msra.mxu3 %v2514_v29  ;;  %v1650_v27 = vpack.c.b16 %v1636_v13, %v1636_v13  ;;  %v1637_v29 = vunpack.c.h.b16 %v1500_v35 }
 0x100   : > { %1990 = vmatpush.bf16.msra.mxu0 %v2489_v36  ;;  %v1638_v36 = vunpack.c.l.b16 %v1501_v16 }
 0x101   : > { %2008 = vmatpush.bf16.msra.mxu1 %v2497_v6  ;;  %v1651_v6 = vpack.c.b16 %v1637_v29, %v1637_v29 }
 0x102   : > { %2026 = vmatpush.bf16.msra.mxu2 %v2505_v50  ;;  %v1652_v50 = vpack.c.b16 %v1638_v36, %v1638_v36 }
 0x103   : > { %2044 = vmatpush.bf16.msra.mxu3 %v2513_v52 }
 0x104   : > { %1991 = vmatpush.bf16.msra.mxu0 %v2488_v7 }
 0x105   : > { %2009 = vmatpush.bf16.msra.mxu1 %v2496_v33 }
 0x106   : > { %2027 = vmatpush.bf16.msra.mxu2 %v2504_v20 }
 0x107   : > { %2045 = vmatpush.bf16.msra.mxu3 %v2512_v42  ;;  %1992 = vmatmul.bf16.vlgmr.msra.gmra.mxu0 %v2244_v10 }
 0x108   : > { %2056 = vmatpush.bf16.msrb.mxu0 %v2527_v53  ;;  %2010 = vmatmul.bf16.vlgmr.msra.gmra.mxu1 %v2248_v59 }
 0x109   : > { %2028 = vmatmul.bf16.vlgmr.msra.gmra.mxu2 %v2252_v47  ;;  %2074 = vmatpush.bf16.msrb.mxu1 %v2535_v9 }
 0x10a   : > { %2096 = vmatpush.bf16.msrb.mxu2 %v2539_v24  ;;  %2046 = vmatmul.bf16.vlgmr.msra.gmra.mxu3 %v2256_v51 }
 0x10b   : > { %2540 = vmatpush.bf16.msrb.mxu3 %v2527_v53 }
 0x10c   : > { %2057 = vmatpush.bf16.msrb.mxu0 %v2526_v41 }
 0x10d   : > { %2075 = vmatpush.bf16.msrb.mxu1 %v2534_v11 }
 0x10e   : > { %2097 = vmatpush.bf16.msrb.mxu2 %v2538_v4 }
 0x10f   : > { %2541 = vmatpush.bf16.msrb.mxu3 %v2526_v41 }
 0x110   : > { %2058 = vmatpush.bf16.msrb.mxu0 %v2525_v56 }
 0x111   : > { %2076 = vmatpush.bf16.msrb.mxu1 %v2533_v39  ;;  %v2608_v39 = vld [vmem:[%s4248_s2] ss:$0 sm:$0xff] }
 0x112   : > { %2098 = vmatpush.bf16.msrb.mxu2 %v2537_v40 }
 0x113   : > { %2542 = vmatpush.bf16.msrb.mxu3 %v2525_v56 }
 0x114   : > { %2059 = vmatpush.bf16.msrb.mxu0 %v2524_v0 }
 0x115   : > { %2077 = vmatpush.bf16.msrb.mxu1 %v2532_v55 }
 0x116   : > { %2099 = vmatpush.bf16.msrb.mxu2 %v2536_v17 }
 0x117   : > { %2543 = vmatpush.bf16.msrb.mxu3 %v2524_v0  ;;  %1997 = vmatmul.bf16.gmra.mxu0 %v1646_v31 }
 0x118   : > { %2060 = vmatpush.bf16.msrb.mxu0 %v2523_v26  ;;  %2015 = vmatmul.bf16.gmra.mxu1 %v1647_v61 }
 0x119   : > { %2033 = vmatmul.bf16.gmra.mxu2 %v1648_v30  ;;  %2078 = vmatpush.bf16.msrb.mxu1 %v2531_v21 }
 0x11a   : > { %2051 = vmatmul.bf16.gmra.mxu3 %v1649_v25 }
 0x11b   : > { %2544 = vmatpush.bf16.msrb.mxu3 %v2523_v26 }
 0x11c   : > { %2061 = vmatpush.bf16.msrb.mxu0 %v2522_v63 }
 0x11d   : > { %2079 = vmatpush.bf16.msrb.mxu1 %v2530_v54 }
 0x11f   : > { %2545 = vmatpush.bf16.msrb.mxu3 %v2522_v63 }
 0x120   : > { %2062 = vmatpush.bf16.msrb.mxu0 %v2521_v46 }
 0x121   : > { %2080 = vmatpush.bf16.msrb.mxu1 %v2529_v22 }
 0x123   : > { %2546 = vmatpush.bf16.msrb.mxu3 %v2521_v46 }
 0x124   : > { %2063 = vmatpush.bf16.msrb.mxu0 %v2520_v44 }
 0x125   : > { %2081 = vmatpush.bf16.msrb.mxu1 %v2528_v1 }
 0x127   : > { %2547 = vmatpush.bf16.msrb.mxu3 %v2520_v44  ;;  %2064 = vmatmul.bf16.vlgmr.msrb.gmra.mxu0 %v2260_v37 }
 0x128   : > { %2082 = vmatmul.bf16.vlgmr.msrb.gmra.mxu1 %v2264_v45 }
 0x129   : > { %2477 = vmatmul.msk.bf16.vlgmr.msrb.gmra.mxu2 %vm1977_vm8, %v2268_v2 }
 0x12a   : > { %2069 = vmatmul.bf16.vlgmr.msrb.gmra.mxu3 %v1650_v27 }
 0x138   : > { %2087 = vmatmul.bf16.gmra.mxu1 %v1651_v6 }
 0x139   : > { %2478 = vmatmul.msk.bf16.gmra.mxu2 %vm1977_vm8, %v1652_v50 }
 0x184   : > { %v1993_v52 = vpop.f32.mrf.mxu0 }
 0x185   : > { %v2011_v7 = vpop.f32.mrf.mxu1 }
 0x186   : > { %v2012_v53 = vadd.f32 %v2011_v7, %v1993_v52 }
 0x18c   : > { %v2029_v33 = vpop.f32.mrf.mxu2  ;;  %v1995_v42 = vpop.f32.mrf.mxu0 }
 0x18d   : > { %v2047_v20 = vpop.f32.mrf.mxu3  ;;  %v2013_v18 = vpop.f32.mrf.mxu1  ;;  %v2030_v10 = vadd.f32 %v2029_v33, %v2012_v53 }
 0x18e   : > { %v2014_v4 = vadd.f32 %v2013_v18, %v1995_v42 }
 0x18f   : > { %v2048_v9 = vadd.f32 %v2047_v20, %v2030_v10 }
 0x194   : > { %v2031_v57 = vpop.f32.mrf.mxu2  ;;  %v1998_v3 = vpop.f32.mrf.mxu0 }
 0x195   : > { %v2049_v14 = vpop.f32.mrf.mxu3  ;;  %v2016_v34 = vpop.f32.mrf.mxu1  ;;  %v2032_v56 = vadd.f32 %v2031_v57, %v2014_v4 }
 0x196   : > { %v2017_v8 = vadd.f32 %v2016_v34, %v1998_v3 }
 0x197   : > { %v2050_v17 = vadd.f32 %v2049_v14, %v2032_v56 }
 0x19c   : > { %v2034_v60 = vpop.f32.mrf.mxu2  ;;  %v2000_v62 = vpop.f32.mrf.mxu0 }
 0x19d   : > { %v2052_v12 = vpop.f32.mrf.mxu3  ;;  %v2018_v24 = vpop.f32.mrf.mxu1  ;;  %v2035_v61 = vadd.f32 %v2034_v60, %v2017_v8 }
 0x19f   : > { %v2053_v22 = vadd.f32 %v2052_v12, %v2035_v61 }
 0x1a4   : > { %v2036_v59 = vpop.f32.mrf.mxu2  ;;  %v2065_v51 = vpop.f32.mrf.mxu0 }
 0x1a5   : > { %v2054_v47 = vpop.f32.mrf.mxu3  ;;  %v2083_v41 = vpop.f32.mrf.mxu1  ;;  %v2066_v11 = vadd.f32 %v2065_v51, %v2048_v9 }
 0x1a7   : > { %v2084_v40 = vadd.f32 %v2083_v41, %v2066_v11 }
 0x1ac   : > { %v2101_v49 = vpop.f32.mrf.mxu2  ;;  %v2067_v0 = vpop.f32.mrf.mxu0 }
 0x1ad   : > { %v2070_v58 = vpop.f32.mrf.mxu3  ;;  %v2102_v38 = vadd.f32 %v2101_v49, %v2084_v40  ;;  %v2085_v15 = vpop.f32.mrf.mxu1  ;;  %v2068_v26 = vadd.f32 %v2067_v0, %v2050_v17 }
 0x1ae   : > { %v2071_v44 = vadd.f32 %v2070_v58, %v2053_v22 }
 0x1af   : > { %v2114_v55 = vmul.f32 %v2608_v39, %v2102_v38  ;;  %v2086_v25 = vadd.f32 %v2085_v15, %v2068_v26 }
 0x1b1   : > { %v2121_v31 = vadd.f32 %v2609_v48, %v2114_v55 }
 0x1b3   : > { %v2124_v30 = vmax.f32 %v2121_v31, 0.0 }
 0x1b4   : > { %v2103_v63 = vpop.f32.mrf.mxu2 }
 0x1b5   : > { %v2072_v21 = vpop.f32.mrf.mxu3  ;;  %2127 = vst [vmem:[%s2762_s13] sm:$0xff] %v2124_v30  ;;  %v2104_v54 = vadd.f32 %v2103_v63, %v2086_v25  ;;  %v2088_v46 = vpop.f32.mrf.mxu1 }
 0x1b6   : > { %v2089_v13 = vadd.f32 %v2088_v46, %v2071_v44 }
 0x1b7   : > { %v2115_v35 = vmul.f32 %v2608_v39, %v2104_v54 }
 0x1b9   : > { %v2122_v28 = vadd.f32 %v2609_v48, %v2115_v35 }
 0x1bb   : > { %v2125_v32 = vmax.f32 %v2122_v28, 0.0 }
 0x1bc   : > { %v2106_v1 = vpop.f32.mrf.mxu2 }
 0x1bd   : > { %2128 = vst [vmem:[%s2762_s13 + $0x8] sm:$0xff] %v2125_v32  ;;  %v2107_v43 = vadd.f32 %v2106_v1, %v2089_v13  ;;  %v2090_v5 = vpop.f32.mrf.mxu1 }
 0x1bf   : > { %v2116_v19 = vmul.f32 %v2608_v39, %v2107_v43 }
 0x1c1   : > { %v2123_v23 = vadd.f32 %v2609_v48, %v2116_v19 }
 0x1c3   : > { %v2126_v37 = vmax.f32 %v2123_v23, 0.0 }
 0x1c4   : > { %v2108_v27 = vpop.f32.mrf.mxu2 }
 0x1c5   : > { %2129 = vst [vmem:[%s2762_s13 + $0x10] sm:$0xff] %v2126_v37 }
 0x1c6 PF: > { %s14_s21 = sadd.s32 1, %s2664_s21   ;;  %s4658_s15 = smov %s2652_s18 }
 0x1c7   : > { %p11_p12 = scmp.ge.s32.totalorder %s14_s21, 14   ;;  %s4659_s16 = smov %s2656_s19 }
 0x1c8   : > { %s4660_s17 = smov %s2660_s20  ;;  %s4661_s18 = smov %s4665_s22 }
 0x1c9   : > { %s4662_s19 = smov %s4669_s23  ;;  %s4663_s20 = smov %s4673_s24 }
 0x1ca   :  { %13 = sbr.rel (!%p11_p12) target bundleno = 4 (0x4), region = 78 }

// kernel: mixed_5c_forward.4
= control target key start
LH: loop header
LB: loop body
LE: loop exit
PB: predicated region body
PF: predicated region fallthrough
CT: control target
= control target key end

     0   :  { %vm1854_vm0 = vcmask 523264   ;;  %s7263_s1 = inlined_call_operand.vmem [shape: bf16[832,640], index: 1, kind: input, shape index: {}]   ;;  %s7264_s0 = inlined_call_operand.vmem [shape: bf16[64,832], index: 0, kind: input, shape index: {}]   ;;  %s7265_s2 = inlined_call_operand.vmem [shape: f32[1,640], index: 2, kind: input, shape index: {}]   ;;  %s7266_s3 = inlined_call_operand.vmem [shape: f32[1,640], index: 3, kind: input, shape index: {}]   ;;  %s7267_s4 = inlined_call_operand.vmem [shape: f32[64,640], index: 4, kind: output, shape index: {}]  }
   0x1   :  { %v3324_v0 = vld [vmem:[%s7263_s1 + $0x118] sm:$0xf]  ;;  %v4307_v1 = vld [vmem:[%s7263_s1 + $0x128] sm:$0xf0]  ;;  %v3304_v9 = vld [vmem:[%s7263_s1 + $0xf0] sm:$0xf] }
   0x2   :  { %v3484_v2 = vld [vmem:[%s7263_s1 + $0x258] sm:$0xf]  ;;  %v3325_v3 = vor.u32 %v4307_v1, %v3324_v0  ;;  %v4347_v4 = vld [vmem:[%s7263_s1 + $0x268] sm:$0xf0]  ;;  %v4302_v10 = vld [vmem:[%s7263_s1 + $0x100] sm:$0xf0] }
   0x3   :  { %v3644_v5 = vld [vmem:[%s7263_s1 + $0x398] sm:$0xf]  ;;  %v4387_v6 = vld [vmem:[%s7263_s1 + $0x3a8] sm:$0xf0]  ;;  %v3485_v7 = vor.u32 %v4347_v4, %v3484_v2  ;;  %v3464_v11 = vld [vmem:[%s7263_s1 + $0x230] sm:$0xf]  ;;  %v3305_v12 = vor.u32 %v4302_v10, %v3304_v9 }
   0x4   :  { %v3645_v8 = vor.u32 %v4387_v6, %v3644_v5  ;;  %1867 = vmatpush.bf16.msra.mxu0 %v3325_v3  ;;  %4530 = vmatpush.bf16.msra.mxu3 %v3325_v3  ;;  %v4342_v13 = vld [vmem:[%s7263_s1 + $0x240] sm:$0xf0]  ;;  %v3624_v14 = vld [vmem:[%s7263_s1 + $0x370] sm:$0xf]  ;;  %v3284_v18 = vld [vmem:[%s7263_s1 + $0xc8] sm:$0xf] }
   0x5   :  { %v4382_v15 = vld [vmem:[%s7263_s1 + $0x380] sm:$0xf0]  ;;  %1896 = vmatpush.bf16.msra.mxu1 %v3485_v7  ;;  %v3465_v16 = vor.u32 %v4342_v13, %v3464_v11  ;;  %v4297_v19 = vld [vmem:[%s7263_s1 + $0xd8] sm:$0xf0]  ;;  %v3444_v20 = vld [vmem:[%s7263_s1 + $0x208] sm:$0xf] }
   0x6   :  { %1925 = vmatpush.bf16.msra.mxu2 %v3645_v8  ;;  %v3625_v17 = vor.u32 %v4382_v15, %v3624_v14  ;;  %v4337_v21 = vld [vmem:[%s7263_s1 + $0x218] sm:$0xf0]  ;;  %v3604_v22 = vld [vmem:[%s7263_s1 + $0x348] sm:$0xf]  ;;  %v3285_v24 = vor.u32 %v4297_v19, %v3284_v18  ;;  %v3264_v27 = vld [vmem:[%s7263_s1 + $0xa0] sm:$0xf] }
   0x7   :  { %v4377_v23 = vld [vmem:[%s7263_s1 + $0x358] sm:$0xf0]  ;;  %v3445_v25 = vor.u32 %v4337_v21, %v3444_v20  ;;  %v4292_v28 = vld [vmem:[%s7263_s1 + $0xb0] sm:$0xf0]  ;;  %v3424_v29 = vld [vmem:[%s7263_s1 + $0x1e0] sm:$0xf] }
   0x8   :  { %1868 = vmatpush.bf16.msra.mxu0 %v3305_v12  ;;  %4531 = vmatpush.bf16.msra.mxu3 %v3305_v12  ;;  %v3605_v26 = vor.u32 %v4377_v23, %v3604_v22  ;;  %v4332_v30 = vld [vmem:[%s7263_s1 + $0x1f0] sm:$0xf0]  ;;  %v3584_v31 = vld [vmem:[%s7263_s1 + $0x320] sm:$0xf]  ;;  %v3265_v33 = vor.u32 %v4292_v28, %v3264_v27  ;;  %v3244_v36 = vld [vmem:[%s7263_s1 + $0x78] sm:$0xf] }
   0x9   :  { %1897 = vmatpush.bf16.msra.mxu1 %v3465_v16  ;;  %v4372_v32 = vld [vmem:[%s7263_s1 + $0x330] sm:$0xf0]  ;;  %v3425_v34 = vor.u32 %v4332_v30, %v3424_v29  ;;  %v4287_v37 = vld [vmem:[%s7263_s1 + $0x88] sm:$0xf0]  ;;  %v3404_v38 = vld [vmem:[%s7263_s1 + $0x1b8] sm:$0xf] }
   0xa   :  { %1926 = vmatpush.bf16.msra.mxu2 %v3625_v17  ;;  %v3585_v35 = vor.u32 %v4372_v32, %v3584_v31  ;;  %v4327_v39 = vld [vmem:[%s7263_s1 + $0x1c8] sm:$0xf0]  ;;  %v3564_v40 = vld [vmem:[%s7263_s1 + $0x2f8] sm:$0xf]  ;;  %v3245_v42 = vor.u32 %v4287_v37, %v3244_v36  ;;  %v3224_v45 = vld [vmem:[%s7263_s1 + $0x50] sm:$0xf] }
   0xb   :  { %v4367_v41 = vld [vmem:[%s7263_s1 + $0x308] sm:$0xf0]  ;;  %v3405_v43 = vor.u32 %v4327_v39, %v3404_v38  ;;  %v4282_v46 = vld [vmem:[%s7263_s1 + $0x60] sm:$0xf0]  ;;  %v3384_v47 = vld [vmem:[%s7263_s1 + $0x190] sm:$0xf] }
   0xc   :  { %1869 = vmatpush.bf16.msra.mxu0 %v3285_v24  ;;  %4532 = vmatpush.bf16.msra.mxu3 %v3285_v24  ;;  %v3565_v44 = vor.u32 %v4367_v41, %v3564_v40  ;;  %v4322_v48 = vld [vmem:[%s7263_s1 + $0x1a0] sm:$0xf0]  ;;  %v3544_v49 = vld [vmem:[%s7263_s1 + $0x2d0] sm:$0xf]  ;;  %v3225_v51 = vor.u32 %v4282_v46, %v3224_v45  ;;  %v3204_v54 = vld [vmem:[%s7263_s1 + $0x28] sm:$0xf] }
   0xd   :  { %1898 = vmatpush.bf16.msra.mxu1 %v3445_v25  ;;  %v4362_v50 = vld [vmem:[%s7263_s1 + $0x2e0] sm:$0xf0]  ;;  %v3385_v52 = vor.u32 %v4322_v48, %v3384_v47  ;;  %v4277_v55 = vld [vmem:[%s7263_s1 + $0x38] sm:$0xf0]  ;;  %v3364_v56 = vld [vmem:[%s7263_s1 + $0x168] sm:$0xf] }
   0xe   :  { %1927 = vmatpush.bf16.msra.mxu2 %v3605_v26  ;;  %v3545_v53 = vor.u32 %v4362_v50, %v3544_v49  ;;  %v4317_v57 = vld [vmem:[%s7263_s1 + $0x178] sm:$0xf0]  ;;  %v3524_v58 = vld [vmem:[%s7263_s1 + $0x2a8] sm:$0xf]  ;;  %v3205_v60 = vor.u32 %v4277_v55, %v3204_v54  ;;  %v3184_v61 = vld [vmem:[%s7263_s1] sm:$0xf] }
   0xf   :  { %v4357_v59 = vld [vmem:[%s7263_s1 + $0x2b8] sm:$0xf0]  ;;  %v4272_v62 = vld [vmem:[%s7263_s1 + $0x10] sm:$0xf0]  ;;  %v3344_v63 = vld [vmem:[%s7263_s1 + $0x140] sm:$0xf]  ;;  %v3365_v0 = vor.u32 %v4317_v57, %v3364_v56 }
  0x10   :  { %1870 = vmatpush.bf16.msra.mxu0 %v3265_v33  ;;  %4533 = vmatpush.bf16.msra.mxu3 %v3265_v33  ;;  %v3525_v1 = vor.u32 %v4357_v59, %v3524_v58  ;;  %v4312_v2 = vld [vmem:[%s7263_s1 + $0x150] sm:$0xf0]  ;;  %v3504_v3 = vld [vmem:[%s7263_s1 + $0x280] sm:$0xf]  ;;  %v4245_v6 = vld [vmem:[%s7264_s0 + $0x18] sm:$0xf0]  ;;  %v3185_v13 = vor.u32 %v4272_v62, %v3184_v61 }
  0x11   :  { %1899 = vmatpush.bf16.msra.mxu1 %v3425_v34  ;;  %v4352_v4 = vld [vmem:[%s7263_s1 + $0x290] sm:$0xf0]  ;;  %v3072_v5 = vld [vmem:[%s7264_s0] sm:$0xf]  ;;  %v3128_v7 = vld [vmem:[%s7264_s0 + $0x70] sm:$0xf]  ;;  %v3345_v17 = vor.u32 %v4312_v2, %v3344_v63 }
  0x12   :  { %1928 = vmatpush.bf16.msra.mxu2 %v3585_v35  ;;  %v4259_v8 = vld [vmem:[%s7264_s0 + $0x88] sm:$0xf0]  ;;  %v3804_v9 = vld [vmem:[%s7263_s1 + $0x4d8] sm:$0xf]  ;;  %v4242_v14 = vld [vmem:[%s7264_s0 + $0x4] sm:$0xf]  ;;  %v3505_v18 = vor.u32 %v4352_v4, %v3504_v3  ;;  %v4776_v27 = vor.u32 %v4245_v6, %v3072_v5 }
  0x13   :  { %v4427_v10 = vld [vmem:[%s7263_s1 + $0x4e8] sm:$0xf0]  ;;  %v3964_v11 = vld [vmem:[%s7263_s1 + $0x618] sm:$0xf]  ;;  %v3074_v15 = vld [vmem:[%s7264_s0 + $0x1c] sm:$0xf0]  ;;  %v4778_v28 = vor.u32 %v4259_v8, %v3128_v7 }
  0x14   :  { %1871 = vmatpush.bf16.msra.mxu0 %v3245_v42  ;;  %4534 = vmatpush.bf16.msra.mxu3 %v3245_v42  ;;  %v4467_v12 = vld [vmem:[%s7263_s1 + $0x628] sm:$0xf0]  ;;  %v3080_v16 = vld [vmem:[%s7264_s0 + $0x8] sm:$0xf]  ;;  %v4246_v19 = vld [vmem:[%s7264_s0 + $0x20] sm:$0xf0]  ;;  %v3805_v22 = vor.u32 %v4427_v10, %v3804_v9  ;;  %v4789_v32 = vor.u32 %v4242_v14, %v3074_v15 }
  0x15   :  { %1900 = vmatpush.bf16.msra.mxu1 %v3405_v43  ;;  %v3784_v20 = vld [vmem:[%s7263_s1 + $0x4b0] sm:$0xf]  ;;  %v4204_v21 = vld [vmem:[%s7263_s1 + $0x7f8] sm:$0xf]  ;;  %v3965_v23 = vor.u32 %v4467_v12, %v3964_v11  ;;  %v4527_v24 = vld [vmem:[%s7263_s1 + $0x808] sm:$0xf0]  ;;  %v4791_v33 = vor.u32 %v4246_v19, %v3080_v16 }
  0x16   :  { %1929 = vmatpush.bf16.msra.mxu2 %v3565_v44  ;;  %v4124_v25 = vld [vmem:[%s7263_s1 + $0x758] sm:$0xf]  ;;  %v4507_v26 = vld [vmem:[%s7263_s1 + $0x768] sm:$0xf0]  ;;  %7300 = vst [vmem:[#allocation2_spill] sm:$0xff] %v4776_v27  ;;  %v4205_v34 = vor.u32 %v4527_v24, %v4204_v21 }
  0x17   :  { %v4422_v29 = vld [vmem:[%s7263_s1 + $0x4c0] sm:$0xf0]  ;;  %v3944_v30 = vld [vmem:[%s7263_s1 + $0x5f0] sm:$0xf]  ;;  %v3764_v35 = vld [vmem:[%s7263_s1 + $0x488] sm:$0xf]  ;;  %v4125_v36 = vor.u32 %v4507_v26, %v4124_v25 }
  0x18   :  { %1872 = vmatpush.bf16.msra.mxu0 %v3225_v51  ;;  %4535 = vmatpush.bf16.msra.mxu3 %v3225_v51  ;;  %v4462_v31 = vld [vmem:[%s7263_s1 + $0x600] sm:$0xf0]  ;;  %v4104_v37 = vld [vmem:[%s7263_s1 + $0x730] sm:$0xf]  ;;  %v3785_v38 = vor.u32 %v4422_v29, %v3784_v20  ;;  %v4417_v43 = vld [vmem:[%s7263_s1 + $0x498] sm:$0xf0] }
  0x19   :  { %1901 = vmatpush.bf16.msra.mxu1 %v3385_v52  ;;  %v3945_v39 = vor.u32 %v4462_v31, %v3944_v30  ;;  %v4502_v40 = vld [vmem:[%s7263_s1 + $0x740] sm:$0xf0]  ;;  %v4184_v41 = vld [vmem:[%s7263_s1 + $0x7d0] sm:$0xf]  ;;  %v3924_v44 = vld [vmem:[%s7263_s1 + $0x5c8] sm:$0xf]  ;;  %v3765_v48 = vor.u32 %v4417_v43, %v3764_v35 }
  0x1a   :  { %1930 = vmatpush.bf16.msra.mxu2 %v3545_v53  ;;  %v4522_v42 = vld [vmem:[%s7263_s1 + $0x7e0] sm:$0xf0]  ;;  %v4457_v45 = vld [vmem:[%s7263_s1 + $0x5d8] sm:$0xf0]  ;;  %v4105_v46 = vor.u32 %v4502_v40, %v4104_v37  ;;  %v3744_v50 = vld [vmem:[%s7263_s1 + $0x460] sm:$0xf] }
  0x1b   :  { %v4185_v47 = vor.u32 %v4522_v42, %v4184_v41  ;;  %v3925_v49 = vor.u32 %v4457_v45, %v3924_v44  ;;  %v4084_v51 = vld [vmem:[%s7263_s1 + $0x708] sm:$0xf]  ;;  %v4497_v52 = vld [vmem:[%s7263_s1 + $0x718] sm:$0xf0]  ;;  %v4412_v53 = vld [vmem:[%s7263_s1 + $0x470] sm:$0xf0] }
  0x1c   :  { %1873 = vmatpush.bf16.msra.mxu0 %v3205_v60  ;;  %4536 = vmatpush.bf16.msra.mxu3 %v3205_v60  ;;  %v3904_v54 = vld [vmem:[%s7263_s1 + $0x5a0] sm:$0xf]  ;;  %v4452_v55 = vld [vmem:[%s7263_s1 + $0x5b0] sm:$0xf0]  ;;  %v4164_v56 = vld [vmem:[%s7263_s1 + $0x7a8] sm:$0xf]  ;;  %v4085_v58 = vor.u32 %v4497_v52, %v4084_v51  ;;  %v3745_v60 = vor.u32 %v4412_v53, %v3744_v50 }
  0x1d   :  { %1902 = vmatpush.bf16.msra.mxu1 %v3365_v0  ;;  %v4517_v57 = vld [vmem:[%s7263_s1 + $0x7b8] sm:$0xf0]  ;;  %v3905_v61 = vor.u32 %v4452_v55, %v3904_v54  ;;  %v3100_v62 = vld [vmem:[%s7264_s0 + $0x38] sm:$0xf]  ;;  %v4252_v63 = vld [vmem:[%s7264_s0 + $0x50] sm:$0xf0] }
  0x1e   :  { %1931 = vmatpush.bf16.msra.mxu2 %v3525_v1  ;;  %v4165_v59 = vor.u32 %v4517_v57, %v4164_v56  ;;  %v3724_v0 = vld [vmem:[%s7263_s1 + $0x438] sm:$0xf]  ;;  %v4064_v1 = vld [vmem:[%s7263_s1 + $0x6e0] sm:$0xf]  ;;  %v4492_v2 = vld [vmem:[%s7263_s1 + $0x6f0] sm:$0xf0] }
  0x1f   :  { %v4407_v3 = vld [vmem:[%s7263_s1 + $0x448] sm:$0xf0]  ;;  %v3884_v4 = vld [vmem:[%s7263_s1 + $0x578] sm:$0xf]  ;;  %v3156_v6 = vld [vmem:[%s7264_s0 + $0xa8] sm:$0xf]  ;;  %v4065_v12 = vor.u32 %v4492_v2, %v4064_v1 }
  0x20   :  { %1874 = vmatpush.bf16.msra.mxu0 %v3185_v13  ;;  %4537 = vmatpush.bf16.msra.mxu3 %v3185_v13  ;;  %v4447_v5 = vld [vmem:[%s7263_s1 + $0x588] sm:$0xf0]  ;;  %v4266_v7 = vld [vmem:[%s7264_s0 + $0xc0] sm:$0xf0]  ;;  %v4249_v8 = vld [vmem:[%s7264_s0 + $0x3c] sm:$0xf]  ;;  %v3725_v13 = vor.u32 %v4407_v3, %v3724_v0 }
  0x21   :  { %1903 = vmatpush.bf16.msra.mxu1 %v3345_v17  ;;  %v3102_v9 = vld [vmem:[%s7264_s0 + $0x54] sm:$0xf0]  ;;  %v3108_v10 = vld [vmem:[%s7264_s0 + $0x40] sm:$0xf]  ;;  %v4253_v11 = vld [vmem:[%s7264_s0 + $0x58] sm:$0xf0]  ;;  %v3885_v14 = vor.u32 %v4447_v5, %v3884_v4  ;;  %v4898_v19 = vor.u32 %v4266_v7, %v3156_v6 }
  0x22   :  { %1932 = vmatpush.bf16.msra.mxu2 %v3505_v18  ;;  %v3704_v15 = vld [vmem:[%s7263_s1 + $0x410] sm:$0xf]  ;;  %v4044_v16 = vld [vmem:[%s7263_s1 + $0x6b8] sm:$0xf]  ;;  %v4487_v17 = vld [vmem:[%s7263_s1 + $0x6c8] sm:$0xf0]  ;;  %v4896_v18 = vor.u32 %v4252_v63, %v3100_v62  ;;  %v4911_v24 = vor.u32 %v4253_v11, %v3108_v10 }
  0x23   :  { %1875 = vmatmul.bf16.vlgmr.msra.gmra.mxu0 %v4776_v27  ;;  %1885 = vmatmul.bf16.vlgmr.msra.gmra.mxu3 %v4778_v28  ;;  %v4402_v20 = vld [vmem:[%s7263_s1 + $0x420] sm:$0xf0]  ;;  %v3864_v21 = vld [vmem:[%s7263_s1 + $0x550] sm:$0xf]  ;;  %v4045_v25 = vor.u32 %v4487_v17, %v4044_v16  ;;  %v3684_v30 = vld [vmem:[%s7263_s1 + $0x3e8] sm:$0xf] }
  0x24   :  { %1954 = vmatpush.bf16.msrb.mxu3 %v3805_v22  ;;  %1983 = vmatpush.bf16.msrb.mxu0 %v3965_v23  ;;  %v4442_v22 = vld [vmem:[%s7263_s1 + $0x560] sm:$0xf0]  ;;  %v4909_v23 = vor.u32 %v4249_v8, %v3102_v9  ;;  %v3705_v26 = vor.u32 %v4402_v20, %v3704_v15  ;;  %v4397_v31 = vld [vmem:[%s7263_s1 + $0x3f8] sm:$0xf0]  ;;  %v4392_v37 = vld [vmem:[%s7263_s1 + $0x3d0] sm:$0xf0] }
  0x25   :  { %1904 = vmatmul.bf16.vlgmr.msra.gmra.mxu1 %v4789_v32  ;;  %1933 = vmatmul.bf16.vlgmr.msra.gmra.mxu2 %v4791_v33  ;;  %v3865_v29 = vor.u32 %v4442_v22, %v3864_v21  ;;  %v4437_v35 = vld [vmem:[%s7263_s1 + $0x538] sm:$0xf0]  ;;  %v4482_v40 = vld [vmem:[%s7263_s1 + $0x6a0] sm:$0xf0]  ;;  %v3685_v41 = vor.u32 %v4397_v31, %v3684_v30  ;;  %v4432_v43 = vld [vmem:[%s7263_s1 + $0x510] sm:$0xf0] }
  0x26   :  { %2045 = vmatpush.bf16.msrb.mxu2 %v4205_v34  ;;  %2012 = vmatpush.bf16.msrb.mxu1 %v4125_v36  ;;  %v3844_v34 = vld [vmem:[%s7263_s1 + $0x528] sm:$0xf]  ;;  %v3664_v36 = vld [vmem:[%s7263_s1 + $0x3c0] sm:$0xf]  ;;  %v3486_v51 = vld [vmem:[%s7263_s1 + $0x26c] sm:$0xf0] }
  0x27   :  { %v3845_v42 = vor.u32 %v4437_v35, %v3844_v34  ;;  %v4144_v45 = vld [vmem:[%s7263_s1 + $0x780] sm:$0xf]  ;;  %v4004_v52 = vld [vmem:[%s7263_s1 + $0x668] sm:$0xf]  ;;  %v4477_v53 = vld [vmem:[%s7263_s1 + $0x678] sm:$0xf0]  ;;  %v3665_v55 = vor.u32 %v4392_v37, %v3664_v36 }
  0x28   :  { %1955 = vmatpush.bf16.msrb.mxu3 %v3785_v38  ;;  %1984 = vmatpush.bf16.msrb.mxu0 %v3945_v39  ;;  %v3824_v38 = vld [vmem:[%s7263_s1 + $0x500] sm:$0xf]  ;;  %v4024_v39 = vld [vmem:[%s7263_s1 + $0x690] sm:$0xf]  ;;  %v4005_v54 = vor.u32 %v4477_v53, %v4004_v52  ;;  %v3082_v0 = vld [vmem:[%s7264_s0 + $0x24] sm:$0xf0] }
  0x29   :  { %v4025_v44 = vor.u32 %v4482_v40, %v4024_v39  ;;  %v3825_v56 = vor.u32 %v4432_v43, %v3824_v38  ;;  %v3984_v57 = vld [vmem:[%s7263_s1 + $0x640] sm:$0xf]  ;;  %v3088_v1 = vld [vmem:[%s7264_s0 + $0x10] sm:$0xf]  ;;  %v4247_v2 = vld [vmem:[%s7264_s0 + $0x28] sm:$0xf0] }
  0x2a   :  { %2013 = vmatpush.bf16.msrb.mxu1 %v4105_v46  ;;  %2046 = vmatpush.bf16.msrb.mxu2 %v4185_v47  ;;  %v4512_v46 = vld [vmem:[%s7263_s1 + $0x790] sm:$0xf0]  ;;  %v4305_v47 = vld [vmem:[%s7263_s1 + $0x11c] sm:$0xf]  ;;  %v3136_v3 = vld [vmem:[%s7264_s0 + $0x78] sm:$0xf]  ;;  %v5015_v11 = vor.u32 %v4247_v2, %v3088_v1 }
  0x2b   :  { %v4145_v50 = vor.u32 %v4512_v46, %v4144_v45  ;;  %v4260_v4 = vld [vmem:[%s7264_s0 + $0x90] sm:$0xf0]  ;;  %v3306_v7 = vld [vmem:[%s7263_s1 + $0x104] sm:$0xf0]  ;;  %v4295_v15 = vld [vmem:[%s7263_s1 + $0xcc] sm:$0xf] }
  0x2c   :  { %1956 = vmatpush.bf16.msrb.mxu3 %v3765_v48  ;;  %1985 = vmatpush.bf16.msrb.mxu0 %v3925_v49  ;;  %v3326_v48 = vld [vmem:[%s7263_s1 + $0x12c] sm:$0xf0]  ;;  %v4345_v49 = vld [vmem:[%s7263_s1 + $0x25c] sm:$0xf]  ;;  %v4300_v5 = vld [vmem:[%s7263_s1 + $0xf4] sm:$0xf] }
  0x2d   :  { %v3329_v62 = vor.u32 %v4305_v47, %v3326_v48  ;;  %v3489_v63 = vor.u32 %v4345_v49, %v3486_v51  ;;  %v4340_v8 = vld [vmem:[%s7263_s1 + $0x234] sm:$0xf]  ;;  %v3466_v9 = vld [vmem:[%s7263_s1 + $0x244] sm:$0xf0]  ;;  %7302 = vst [vmem:[#allocation4_spill] sm:$0xff] %v5015_v11 }
  0x2e   :  { %2014 = vmatpush.bf16.msrb.mxu1 %v4085_v58  ;;  %2047 = vmatpush.bf16.msrb.mxu2 %v4165_v59  ;;  %v4472_v58 = vld [vmem:[%s7263_s1 + $0x650] sm:$0xf0]  ;;  %v3469_v16 = vor.u32 %v4340_v8, %v3466_v9  ;;  %v3286_v17 = vld [vmem:[%s7263_s1 + $0xdc] sm:$0xf0]  ;;  %v4335_v20 = vld [vmem:[%s7263_s1 + $0x20c] sm:$0xf] }
  0x2f   :  { %v4256_v59 = vld [vmem:[%s7264_s0 + $0x74] sm:$0xf]  ;;  %v3985_v6 = vor.u32 %v4472_v58, %v3984_v57  ;;  %v3446_v21 = vld [vmem:[%s7263_s1 + $0x21c] sm:$0xf0]  ;;  %v3289_v22 = vor.u32 %v4295_v15, %v3286_v17  ;;  %v3806_v30 = vld [vmem:[%s7263_s1 + $0x4ec] sm:$0xf0] }
  0x30   :  { %1957 = vmatpush.bf16.msrb.mxu3 %v3745_v60  ;;  %1986 = vmatpush.bf16.msrb.mxu0 %v3905_v61  ;;  %v3130_v60 = vld [vmem:[%s7264_s0 + $0x8c] sm:$0xf0]  ;;  %v4243_v61 = vld [vmem:[%s7264_s0 + $0xc] sm:$0xf]  ;;  %v3266_v31 = vld [vmem:[%s7263_s1 + $0xb4] sm:$0xf0] }
  0x31   :  { %v5013_v10 = vor.u32 %v4243_v61, %v3082_v0  ;;  %v4330_v34 = vld [vmem:[%s7263_s1 + $0x1e4] sm:$0xf]  ;;  %v3426_v35 = vld [vmem:[%s7263_s1 + $0x1f4] sm:$0xf0]  ;;  %v4385_v37 = vld [vmem:[%s7263_s1 + $0x39c] sm:$0xf] }
  0x32   :  { %2015 = vmatpush.bf16.msrb.mxu1 %v4065_v12  ;;  %2048 = vmatpush.bf16.msrb.mxu2 %v4145_v50  ;;  %v5017_v12 = vor.u32 %v4256_v59, %v3130_v60  ;;  %v3646_v38 = vld [vmem:[%s7263_s1 + $0x3ac] sm:$0xf0]  ;;  %v4420_v40 = vld [vmem:[%s7263_s1 + $0x4b4] sm:$0xf]  ;;  %v4285_v43 = vld [vmem:[%s7263_s1 + $0x7c] sm:$0xf] }
  0x33   :  { %1880 = vmatmul.bf16.gmra.mxu0 %v4896_v18  ;;  %1890 = vmatmul.bf16.gmra.mxu3 %v4898_v19  ;;  %7301 = vst [vmem:[#allocation3_spill] sm:$0xff] %v5013_v10  ;;  %v3649_v39 = vor.u32 %v4385_v37, %v3646_v38  ;;  %v3246_v46 = vld [vmem:[%s7263_s1 + $0x8c] sm:$0xf0]  ;;  %v4325_v47 = vld [vmem:[%s7263_s1 + $0x1bc] sm:$0xf] }
  0x34   :  { %1958 = vmatpush.bf16.msrb.mxu3 %v3725_v13  ;;  %1987 = vmatpush.bf16.msrb.mxu0 %v3885_v14  ;;  %v5019_v13 = vor.u32 %v4260_v4, %v3136_v3  ;;  %v3309_v14 = vor.u32 %v4300_v5, %v3306_v7  ;;  %v3406_v48 = vld [vmem:[%s7263_s1 + $0x1cc] sm:$0xf0]  ;;  %v4263_v49 = vld [vmem:[%s7264_s0 + $0xac] sm:$0xf]  ;;  %v4250_v50 = vld [vmem:[%s7264_s0 + $0x44] sm:$0xf]  ;;  %v3249_v57 = vor.u32 %v4285_v43, %v3246_v46 }
  0x35   :  { %1909 = vmatmul.bf16.gmra.mxu1 %v4909_v23  ;;  %1938 = vmatmul.bf16.gmra.mxu2 %v4911_v24  ;;  %v3110_v51 = vld [vmem:[%s7264_s0 + $0x5c] sm:$0xf0]  ;;  %v3116_v52 = vld [vmem:[%s7264_s0 + $0x48] sm:$0xf]  ;;  %v4254_v53 = vld [vmem:[%s7264_s0 + $0x60] sm:$0xf0]  ;;  %v3409_v58 = vor.u32 %v4325_v47, %v3406_v48 }
  0x36   :  { %2016 = vmatpush.bf16.msrb.mxu1 %v4045_v25  ;;  %v4290_v25 = vld [vmem:[%s7263_s1 + $0xa4] sm:$0xf]  ;;  %v4280_v59 = vld [vmem:[%s7263_s1 + $0x54] sm:$0xf]  ;;  %v3226_v60 = vld [vmem:[%s7263_s1 + $0x64] sm:$0xf0]  ;;  %v5109_v61 = vor.u32 %v4250_v50, %v3110_v51 }
  0x37   :  { %v3229_v1 = vor.u32 %v4280_v59, %v3226_v60  ;;  %v4275_v2 = vld [vmem:[%s7263_s1 + $0x2c] sm:$0xf]  ;;  %v3206_v3 = vld [vmem:[%s7263_s1 + $0x3c] sm:$0xf0]  ;;  %v4320_v4 = vld [vmem:[%s7263_s1 + $0x194] sm:$0xf] }
  0x38   :  { %1959 = vmatpush.bf16.msrb.mxu3 %v3705_v26  ;;  %1988 = vmatpush.bf16.msrb.mxu0 %v3865_v29  ;;  %v3449_v26 = vor.u32 %v4335_v20, %v3446_v21  ;;  %v4425_v29 = vld [vmem:[%s7263_s1 + $0x4dc] sm:$0xf]  ;;  %v3209_v5 = vor.u32 %v4275_v2, %v3206_v3  ;;  %v4380_v7 = vld [vmem:[%s7263_s1 + $0x374] sm:$0xf]  ;;  %v3626_v8 = vld [vmem:[%s7263_s1 + $0x384] sm:$0xf0] }
  0x39   :  { %v3809_v36 = vor.u32 %v4425_v29, %v3806_v30  ;;  %v4415_v15 = vld [vmem:[%s7263_s1 + $0x48c] sm:$0xf]  ;;  %v4270_v17 = vld [vmem:[%s7263_s1 + $0x4] sm:$0xf]  ;;  %v3186_v21 = vld [vmem:[%s7263_s1 + $0x14] sm:$0xf0] }
  0x3a   :  { %2017 = vmatpush.bf16.msrb.mxu1 %v4025_v44  ;;  %v3429_v44 = vor.u32 %v4330_v34, %v3426_v35  ;;  %v4375_v29 = vld [vmem:[%s7263_s1 + $0x34c] sm:$0xf]  ;;  %v3606_v30 = vld [vmem:[%s7263_s1 + $0x35c] sm:$0xf0]  ;;  %v3189_v34 = vor.u32 %v4270_v17, %v3186_v21  ;;  %v4410_v37 = vld [vmem:[%s7263_s1 + $0x464] sm:$0xf] }
  0x3b   :  { %2157 = vmatpush.bf16.msra.mxu2 %v3809_v36  ;;  %v3609_v35 = vor.u32 %v4375_v29, %v3606_v30  ;;  %v3346_v36 = vld [vmem:[%s7263_s1 + $0x154] sm:$0xf0]  ;;  %v4261_v43 = vld [vmem:[%s7264_s0 + $0x98] sm:$0xf0]  ;;  %v3090_v46 = vld [vmem:[%s7264_s0 + $0x2c] sm:$0xf0] }
  0x3c   :  { %1960 = vmatpush.bf16.msrb.mxu3 %v3685_v41  ;;  %1989 = vmatpush.bf16.msrb.mxu0 %v3845_v42  ;;  %v3786_v41 = vld [vmem:[%s7263_s1 + $0x4c4] sm:$0xf0]  ;;  %v3269_v42 = vor.u32 %v4290_v25, %v3266_v31  ;;  %v3366_v25 = vld [vmem:[%s7263_s1 + $0x17c] sm:$0xf0]  ;;  %v4310_v31 = vld [vmem:[%s7263_s1 + $0x144] sm:$0xf] }
  0x3d   :  { %v3789_v45 = vor.u32 %v4420_v40, %v3786_v41  ;;  %v3746_v38 = vld [vmem:[%s7263_s1 + $0x474] sm:$0xf0]  ;;  %v4257_v40 = vld [vmem:[%s7264_s0 + $0x7c] sm:$0xf]  ;;  %v4248_v48 = vld [vmem:[%s7264_s0 + $0x30] sm:$0xf0] }
  0x3e   :  { %2018 = vmatpush.bf16.msrb.mxu1 %v4005_v54  ;;  %v3158_v54 = vld [vmem:[%s7264_s0 + $0xc4] sm:$0xf0]  ;;  %v3138_v41 = vld [vmem:[%s7264_s0 + $0x94] sm:$0xf0]  ;;  %v3726_v59 = vld [vmem:[%s7263_s1 + $0x44c] sm:$0xf0] }
  0x3f   :  { %2158 = vmatpush.bf16.msra.mxu2 %v3789_v45  ;;  %v3349_v45 = vor.u32 %v4310_v31, %v3346_v36  ;;  %v3096_v47 = vld [vmem:[%s7264_s0 + $0x18] sm:$0xf]  ;;  %v4460_v2 = vld [vmem:[%s7263_s1 + $0x5f4] sm:$0xf]  ;;  %v3946_v3 = vld [vmem:[%s7263_s1 + $0x604] sm:$0xf0] }
  0x40   :  { %1961 = vmatpush.bf16.msrb.mxu3 %v3665_v55  ;;  %1990 = vmatpush.bf16.msrb.mxu0 %v3825_v56  ;;  %v3164_v55 = vld [vmem:[%s7264_s0 + $0xb0] sm:$0xf]  ;;  %v4267_v56 = vld [vmem:[%s7264_s0 + $0xc8] sm:$0xf0]  ;;  %v3118_v29 = vld [vmem:[%s7264_s0 + $0x64] sm:$0xf0] }
  0x41   :  { %v5115_v0 = vor.u32 %v4267_v56, %v3164_v55  ;;  %v4370_v55 = vld [vmem:[%s7263_s1 + $0x324] sm:$0xf]  ;;  %v3166_v21 = vld [vmem:[%s7264_s0 + $0xcc] sm:$0xf0]  ;;  %v4255_v31 = vld [vmem:[%s7264_s0 + $0x68] sm:$0xf0] }
  0x42   :  { %2019 = vmatpush.bf16.msrb.mxu1 %v3985_v6  ;;  %v3386_v6 = vld [vmem:[%s7263_s1 + $0x1a4] sm:$0xf0]  ;;  %v3124_v30 = vld [vmem:[%s7264_s0 + $0x50] sm:$0xf] }
  0x43   :  { %1962 = vmatmul.bf16.vlgmr.msrb.gmra.mxu3 %v5013_v10  ;;  %1991 = vmatmul.bf16.vlgmr.msrb.gmra.mxu0 %v5015_v11  ;;  %7305 = vst [vmem:[#allocation7_spill] sm:$0xff] %v5115_v0  ;;  %v3389_v9 = vor.u32 %v4320_v4, %v3386_v6  ;;  %v4505_v4 = vld [vmem:[%s7263_s1 + $0x75c] sm:$0xf]  ;;  %v4126_v6 = vld [vmem:[%s7263_s1 + $0x76c] sm:$0xf0] }
  0x44   :  { %2070 = vmatpush.bf16.msra.mxu3 %v3329_v62  ;;  %2099 = vmatpush.bf16.msra.mxu0 %v3489_v63  ;;  %v5111_v62 = vor.u32 %v4254_v53, %v3116_v52  ;;  %v5113_v63 = vor.u32 %v4263_v49, %v3158_v54  ;;  %v5199_v49 = vor.u32 %v4257_v40, %v3138_v41  ;;  %v4465_v53 = vld [vmem:[%s7263_s1 + $0x61c] sm:$0xf]  ;;  %v3966_v54 = vld [vmem:[%s7263_s1 + $0x62c] sm:$0xf0]  ;;  %v4500_v40 = vld [vmem:[%s7263_s1 + $0x734] sm:$0xf] }
  0x45   :  { %1914 = vmatmul.bf16.gmra.mxu1 %v5017_v12  ;;  %1943 = vmatmul.bf16.gmra.mxu2 %v5019_v13  ;;  %v5205_v52 = vor.u32 %v4248_v48, %v3096_v47  ;;  %v3969_v56 = vor.u32 %v4465_v53, %v3966_v54  ;;  %v4395_v47 = vld [vmem:[%s7263_s1 + $0x3ec] sm:$0xf]  ;;  %v3686_v48 = vld [vmem:[%s7263_s1 + $0x3fc] sm:$0xf0]  ;;  %v4450_v53 = vld [vmem:[%s7263_s1 + $0x5a4] sm:$0xf] }
  0x46   :  { %2128 = vmatpush.bf16.msra.mxu1 %v3649_v39  ;;  %7303 = vst [vmem:[#allocation5_spill] sm:$0xff] %v5111_v62  ;;  %v3749_v39 = vor.u32 %v4410_v37, %v3746_v38  ;;  %v5284_v37 = vor.u32 %v4255_v31, %v3124_v30  ;;  %v4455_v38 = vld [vmem:[%s7263_s1 + $0x5cc] sm:$0xf]  ;;  %v3689_v54 = vor.u32 %v4395_v47, %v3686_v48  ;;  %v3332_v31 = vld [vmem:[%s7263_s1 + $0x120] sm:$0xf] }
  0x47   :  { %7304 = vst [vmem:[#allocation6_spill] sm:$0xff] %v5113_v63  ;;  %v4525_v47 = vld [vmem:[%s7263_s1 + $0x7fc] sm:$0xf]  ;;  %v4206_v48 = vld [vmem:[%s7263_s1 + $0x80c] sm:$0xf0] }
  0x48   :  { %2071 = vmatpush.bf16.msra.mxu3 %v3309_v14  ;;  %2100 = vmatpush.bf16.msra.mxu0 %v3469_v16  ;;  %v3629_v14 = vor.u32 %v4380_v7, %v3626_v8  ;;  %v3766_v16 = vld [vmem:[%s7263_s1 + $0x49c] sm:$0xf0]  ;;  %7306 = vst [vmem:[#allocation8_spill] sm:$0xff] %v5199_v49  ;;  %v4365_v7 = vld [vmem:[%s7263_s1 + $0x2fc] sm:$0xf] }
  0x49   :  { %v3769_v20 = vor.u32 %v4415_v15, %v3766_v16  ;;  %7309 = vst [vmem:[#allocation11_spill] sm:$0xff] %v5205_v52  ;;  %v3566_v8 = vld [vmem:[%s7263_s1 + $0x30c] sm:$0xf0]  ;;  %v4400_v15 = vld [vmem:[%s7263_s1 + $0x414] sm:$0xf] }
  0x4a   :  { %2129 = vmatpush.bf16.msra.mxu1 %v3629_v14  ;;  %v3569_v14 = vor.u32 %v4365_v7, %v3566_v8  ;;  %v3706_v16 = vld [vmem:[%s7263_s1 + $0x424] sm:$0xf0]  ;;  %v4350_v7 = vld [vmem:[%s7263_s1 + $0x284] sm:$0xf]  ;;  %v3506_v8 = vld [vmem:[%s7263_s1 + $0x294] sm:$0xf0] }
  0x4b   :  { %2159 = vmatpush.bf16.msra.mxu2 %v3769_v20  ;;  %v3709_v17 = vor.u32 %v4400_v15, %v3706_v16  ;;  %v4264_v20 = vld [vmem:[%s7264_s0 + $0xb4] sm:$0xf]  ;;  %v3666_v15 = vld [vmem:[%s7263_s1 + $0x3d4] sm:$0xf0] }
  0x4c   :  { %2072 = vmatpush.bf16.msra.mxu3 %v3289_v22  ;;  %2101 = vmatpush.bf16.msra.mxu0 %v3449_v26  ;;  %v4315_v22 = vld [vmem:[%s7263_s1 + $0x16c] sm:$0xf] }
  0x4d   :  { %v3369_v26 = vor.u32 %v4315_v22, %v3366_v25  ;;  %v3172_v22 = vld [vmem:[%s7264_s0 + $0xb8] sm:$0xf]  ;;  %v4268_v25 = vld [vmem:[%s7264_s0 + $0xd0] sm:$0xf0] }
  0x4e   :  { %2130 = vmatpush.bf16.msra.mxu1 %v3609_v35  ;;  %v5280_v35 = vor.u32 %v4268_v25, %v3172_v22  ;;  %v3886_v22 = vld [vmem:[%s7263_s1 + $0x58c] sm:$0xf0]  ;;  %v4490_v25 = vld [vmem:[%s7263_s1 + $0x6e4] sm:$0xf] }
  0x4f   :  { %2160 = vmatpush.bf16.msra.mxu2 %v3749_v39  ;;  %v3926_v39 = vld [vmem:[%s7263_s1 + $0x5dc] sm:$0xf0] }
  0x50   :  { %2073 = vmatpush.bf16.msra.mxu3 %v3269_v42  ;;  %2102 = vmatpush.bf16.msra.mxu0 %v3429_v44  ;;  %v3144_v42 = vld [vmem:[%s7264_s0 + $0x80] sm:$0xf]  ;;  %v4244_v44 = vld [vmem:[%s7264_s0 + $0x14] sm:$0xf]  ;;  %7311 = vst [vmem:[#allocation13_spill] sm:$0xff] %v5280_v35  ;;  %v3929_v41 = vor.u32 %v4455_v38, %v3926_v39 }
  0x51   :  { %v5201_v50 = vor.u32 %v4261_v43, %v3144_v42  ;;  %v5203_v51 = vor.u32 %v4244_v44, %v3090_v46  ;;  %v4106_v42 = vld [vmem:[%s7263_s1 + $0x744] sm:$0xf0]  ;;  %v4360_v43 = vld [vmem:[%s7263_s1 + $0x2d4] sm:$0xf] }
  0x52   :  { %v3546_v44 = vld [vmem:[%s7263_s1 + $0x2e4] sm:$0xf0]  ;;  %v4308_v38 = vld [vmem:[%s7263_s1 + $0x130] sm:$0xf0] }
  0x53   :  { %1967 = vmatmul.bf16.gmra.mxu3 %v5109_v61  ;;  %1996 = vmatmul.bf16.gmra.mxu0 %v5111_v62  ;;  %7307 = vst [vmem:[#allocation9_spill] sm:$0xff] %v5201_v50  ;;  %v3549_v46 = vor.u32 %v4360_v43, %v3546_v44  ;;  %v4440_v39 = vld [vmem:[%s7263_s1 + $0x554] sm:$0xf]  ;;  %v4046_v43 = vld [vmem:[%s7263_s1 + $0x6cc] sm:$0xf0] }
  0x54   :  { %2074 = vmatpush.bf16.msra.mxu3 %v3249_v57  ;;  %2103 = vmatpush.bf16.msra.mxu0 %v3409_v58  ;;  %7308 = vst [vmem:[#allocation10_spill] sm:$0xff] %v5203_v51  ;;  %v3586_v57 = vld [vmem:[%s7263_s1 + $0x334] sm:$0xf0]  ;;  %v4405_v58 = vld [vmem:[%s7263_s1 + $0x43c] sm:$0xf] }
  0x55   :  { %1919 = vmatmul.bf16.gmra.mxu1 %v5113_v63  ;;  %1948 = vmatmul.bf16.gmra.mxu2 %v5115_v0  ;;  %v3589_v60 = vor.u32 %v4370_v55, %v3586_v57  ;;  %v3906_v55 = vld [vmem:[%s7263_s1 + $0x5b4] sm:$0xf0]  ;;  %v4086_v57 = vld [vmem:[%s7263_s1 + $0x71c] sm:$0xf0]  ;;  %v4265_v44 = vld [vmem:[%s7264_s0 + $0xbc] sm:$0xf] }
  0x57   :  { %2131 = vmatpush.bf16.msra.mxu1 %v3589_v60  ;;  %v4355_v60 = vld [vmem:[%s7263_s1 + $0x2ac] sm:$0xf] }
  0x58   :  { %2075 = vmatpush.bf16.msra.mxu3 %v3229_v1  ;;  %2104 = vmatpush.bf16.msra.mxu0 %v3389_v9  ;;  %v3729_v1 = vor.u32 %v4405_v58, %v3726_v59  ;;  %v4129_v9 = vor.u32 %v4505_v4, %v4126_v6  ;;  %v3909_v58 = vor.u32 %v4450_v53, %v3906_v55  ;;  %v3146_v4 = vld [vmem:[%s7264_s0 + $0x9c] sm:$0xf0]  ;;  %v4262_v6 = vld [vmem:[%s7264_s0 + $0xa0] sm:$0xf0]  ;;  %v3174_v53 = vld [vmem:[%s7264_s0 + $0xd4] sm:$0xf0] }
  0x59   :  { %v4269_v55 = vld [vmem:[%s7264_s0 + $0xd8] sm:$0xf0] }
  0x5a   :  { %2161 = vmatpush.bf16.msra.mxu2 %v3729_v1  ;;  %v3526_v1 = vld [vmem:[%s7263_s1 + $0x2bc] sm:$0xf0] }
  0x5b   :  { %2132 = vmatpush.bf16.msra.mxu1 %v3569_v14  ;;  %v3509_v14 = vor.u32 %v4350_v7, %v3506_v8  ;;  %v3292_v8 = vld [vmem:[%s7263_s1 + $0xd0] sm:$0xf] }
  0x5c   :  { %2076 = vmatpush.bf16.msra.mxu3 %v3209_v5  ;;  %2105 = vmatpush.bf16.msra.mxu0 %v3369_v26  ;;  %v3949_v5 = vor.u32 %v4460_v2, %v3946_v3  ;;  %v4251_v26 = vld [vmem:[%s7264_s0 + $0x4c] sm:$0xf]  ;;  %v3529_v2 = vor.u32 %v4355_v60, %v3526_v1  ;;  %v4258_v3 = vld [vmem:[%s7264_s0 + $0x84] sm:$0xf] }
  0x5d   :  { %v5282_v36 = vor.u32 %v4251_v26, %v3118_v29  ;;  %v5357_v16 = vor.u32 %v4258_v3, %v3146_v4  ;;  %v4066_v29 = vld [vmem:[%s7263_s1 + $0x6f4] sm:$0xf0]  ;;  %v4303_v60 = vld [vmem:[%s7263_s1 + $0x108] sm:$0xf0]  ;;  %v3846_v3 = vld [vmem:[%s7263_s1 + $0x53c] sm:$0xf0] }
  0x5e   :  { %2162 = vmatpush.bf16.msra.mxu2 %v3709_v17  ;;  %v4069_v30 = vor.u32 %v4490_v25, %v4066_v29  ;;  %v4480_v4 = vld [vmem:[%s7263_s1 + $0x694] sm:$0xf] }
  0x5f   :  { %7312 = vst [vmem:[#allocation14_spill] sm:$0xff] %v5282_v36  ;;  %2133 = vmatpush.bf16.msra.mxu1 %v3549_v46  ;;  %v4520_v29 = vld [vmem:[%s7263_s1 + $0x7d4] sm:$0xf] }
  0x60   :  { %2077 = vmatpush.bf16.msra.mxu3 %v3189_v34  ;;  %2106 = vmatpush.bf16.msra.mxu0 %v3349_v45  ;;  %v5278_v34 = vor.u32 %v4264_v20, %v3166_v21  ;;  %v4109_v45 = vor.u32 %v4500_v40, %v4106_v42  ;;  %7313 = vst [vmem:[#allocation15_spill] sm:$0xff] %v5357_v16  ;;  %v4445_v21 = vld [vmem:[%s7263_s1 + $0x57c] sm:$0xf] }
  0x61   :  { %v3889_v26 = vor.u32 %v4445_v21, %v3886_v22  ;;  %v3333_v40 = vor.u32 %v4308_v38, %v3332_v31  ;;  %v4485_v42 = vld [vmem:[%s7263_s1 + $0x6bc] sm:$0xf]  ;;  %v4475_v21 = vld [vmem:[%s7263_s1 + $0x66c] sm:$0xf]  ;;  %v4006_v22 = vld [vmem:[%s7263_s1 + $0x67c] sm:$0xf0] }
  0x62   :  { %7310 = vst [vmem:[#allocation12_spill] sm:$0xff] %v5278_v34  ;;  %2163 = vmatpush.bf16.msra.mxu2 %v3689_v54  ;;  %v4049_v46 = vor.u32 %v4485_v42, %v4046_v43  ;;  %v3180_v54 = vld [vmem:[%s7264_s0 + $0xc0] sm:$0xf]  ;;  %v4470_v38 = vld [vmem:[%s7263_s1 + $0x644] sm:$0xf] }
  0x63   :  { %1972 = vmatmul.bf16.gmra.mxu3 %v5199_v49  ;;  %2001 = vmatmul.bf16.gmra.mxu0 %v5201_v50  ;;  %v3272_v43 = vld [vmem:[%s7263_s1 + $0xa8] sm:$0xf] }
  0x64   :  { %2186 = vmatpush.bf16.msrb.mxu3 %v3969_v56  ;;  %2215 = vmatpush.bf16.msrb.mxu0 %v4129_v9  ;;  %v4495_v56 = vld [vmem:[%s7263_s1 + $0x70c] sm:$0xf]  ;;  %v4390_v9 = vld [vmem:[%s7263_s1 + $0x3c4] sm:$0xf] }
  0x65   :  { %2020 = vmatmul.bf16.vlgmr.msrb.gmra.mxu1 %v5203_v51  ;;  %4222 = vmatmul.msk.bf16.vlgmr.msrb.gmra.mxu2 %vm1854_vm0, %v5205_v52  ;;  %v4089_v59 = vor.u32 %v4495_v56, %v4086_v57  ;;  %v3669_v20 = vor.u32 %v4390_v9, %v3666_v15  ;;  %v4209_v56 = vor.u32 %v4525_v47, %v4206_v48  ;;  %v4298_v9 = vld [vmem:[%s7263_s1 + $0xe0] sm:$0xf0]  ;;  %v4348_v47 = vld [vmem:[%s7263_s1 + $0x270] sm:$0xf0] }
  0x66   :  { %2134 = vmatpush.bf16.msra.mxu1 %v3529_v2  ;;  %v5414_v57 = vor.u32 %v4265_v44, %v3174_v53  ;;  %v4435_v2 = vld [vmem:[%s7263_s1 + $0x52c] sm:$0xf]  ;;  %v3293_v15 = vor.u32 %v4298_v9, %v3292_v8  ;;  %v4293_v44 = vld [vmem:[%s7263_s1 + $0xb8] sm:$0xf0]  ;;  %v4166_v9 = vld [vmem:[%s7263_s1 + $0x7bc] sm:$0xf0] }
  0x67   :  { %2164 = vmatpush.bf16.msra.mxu2 %v3669_v20  ;;  %v3826_v20 = vld [vmem:[%s7263_s1 + $0x514] sm:$0xf0]  ;;  %v4515_v8 = vld [vmem:[%s7263_s1 + $0x7ac] sm:$0xf] }
  0x68   :  { %2187 = vmatpush.bf16.msrb.mxu3 %v3949_v5  ;;  %2216 = vmatpush.bf16.msrb.mxu0 %v4109_v45  ;;  %v3152_v5 = vld [vmem:[%s7264_s0 + $0x88] sm:$0xf] }
  0x69   :  { %v5359_v17 = vor.u32 %v4262_v6, %v3152_v5  ;;  %v3849_v5 = vor.u32 %v4435_v2, %v3846_v3  ;;  %v4026_v6 = vld [vmem:[%s7263_s1 + $0x6a4] sm:$0xf0]  ;;  %v4343_v3 = vld [vmem:[%s7263_s1 + $0x248] sm:$0xf0] }
  0x6a   :  { %2135 = vmatpush.bf16.msra.mxu1 %v3509_v14  ;;  %v4029_v7 = vor.u32 %v4480_v4, %v4026_v6  ;;  %v4430_v14 = vld [vmem:[%s7263_s1 + $0x504] sm:$0xf]  ;;  %v3652_v4 = vld [vmem:[%s7263_s1 + $0x3a0] sm:$0xf] }
  0x6b   :  { %2273 = vmatpush.bf16.msrb.mxu2 %v3333_v40  ;;  %v3829_v25 = vor.u32 %v4430_v14, %v3826_v20  ;;  %v4169_v14 = vor.u32 %v4515_v8, %v4166_v9  ;;  %v4146_v8 = vld [vmem:[%s7263_s1 + $0x794] sm:$0xf0] }
  0x6c   :  { %2188 = vmatpush.bf16.msrb.mxu3 %v3929_v41  ;;  %2217 = vmatpush.bf16.msrb.mxu0 %v4089_v59  ;;  %v3866_v41 = vld [vmem:[%s7263_s1 + $0x564] sm:$0xf0]  ;;  %v3312_v59 = vld [vmem:[%s7263_s1 + $0xf8] sm:$0xf] }
  0x6d   :  { %v3869_v45 = vor.u32 %v4440_v39, %v3866_v41  ;;  %v3313_v1 = vor.u32 %v4303_v60, %v3312_v59  ;;  %v3986_v39 = vld [vmem:[%s7263_s1 + $0x654] sm:$0xf0]  ;;  %v3252_v59 = vld [vmem:[%s7263_s1 + $0x80] sm:$0xf]  ;;  %v4288_v60 = vld [vmem:[%s7263_s1 + $0x90] sm:$0xf0] }
  0x6e   :  { %2248 = vmatpush.bf16.msrb.mxu1 %v4209_v56  ;;  %v3989_v40 = vor.u32 %v4470_v38, %v3986_v39  ;;  %v3253_v2 = vor.u32 %v4288_v60, %v3252_v59  ;;  %v3632_v38 = vld [vmem:[%s7263_s1 + $0x378] sm:$0xf]  ;;  %v4278_v59 = vld [vmem:[%s7263_s1 + $0x40] sm:$0xf0]  ;;  %v3432_v60 = vld [vmem:[%s7263_s1 + $0x1e8] sm:$0xf] }
  0x6f   :  { %2274 = vmatpush.bf16.msrb.mxu2 %v3313_v1  ;;  %v3472_v1 = vld [vmem:[%s7263_s1 + $0x238] sm:$0xf] }
  0x70   :  { %2189 = vmatpush.bf16.msrb.mxu3 %v3909_v58  ;;  %2218 = vmatpush.bf16.msrb.mxu0 %v4069_v30  ;;  %v5416_v58 = vor.u32 %v4269_v55, %v3180_v54  ;;  %v4186_v30 = vld [vmem:[%s7263_s1 + $0x7e4] sm:$0xf0]  ;;  %v3473_v6 = vor.u32 %v4343_v3, %v3472_v1  ;;  %v3612_v3 = vld [vmem:[%s7263_s1 + $0x350] sm:$0xf] }
  0x71   :  { %v4189_v31 = vor.u32 %v4520_v29, %v4186_v30  ;;  %v3452_v30 = vld [vmem:[%s7263_s1 + $0x210] sm:$0xf] }
  0x73   :  { %1977 = vmatmul.bf16.gmra.mxu3 %v5278_v34  ;;  %2006 = vmatmul.bf16.gmra.mxu0 %v5280_v35 }
  0x74   :  { %2190 = vmatpush.bf16.msrb.mxu3 %v3889_v26  ;;  %2219 = vmatpush.bf16.msrb.mxu0 %v4049_v46  ;;  %v4009_v26 = vor.u32 %v4475_v21, %v4006_v22  ;;  %v3492_v46 = vld [vmem:[%s7263_s1 + $0x260] sm:$0xf] }
  0x75   :  { %2025 = vmatmul.bf16.gmra.mxu1 %v5282_v36  ;;  %4223 = vmatmul.msk.bf16.gmra.mxu2 %vm1854_vm0, %v5284_v37  ;;  %v3493_v48 = vor.u32 %v4348_v47, %v3492_v46 }
  0x76   :  { %2275 = vmatpush.bf16.msrb.mxu2 %v3293_v15  ;;  %2249 = vmatpush.bf16.msrb.mxu1 %v4189_v31  ;;  %v4338_v31 = vld [vmem:[%s7263_s1 + $0x220] sm:$0xf0] }
  0x77   :  { %v3453_v39 = vor.u32 %v4338_v31, %v3452_v30 }
  0x78   :  { %2191 = vmatpush.bf16.msrb.mxu3 %v3869_v45  ;;  %2220 = vmatpush.bf16.msrb.mxu0 %v4029_v7  ;;  %v3273_v45 = vor.u32 %v4293_v44, %v3272_v43 }
  0x7a   :  { %2276 = vmatpush.bf16.msrb.mxu2 %v3273_v45  ;;  %2250 = vmatpush.bf16.msrb.mxu1 %v4169_v14 }
  0x7c   :  { %2192 = vmatpush.bf16.msrb.mxu3 %v3849_v5  ;;  %2221 = vmatpush.bf16.msrb.mxu0 %v4009_v26  ;;  %v4388_v5 = vld [vmem:[%s7263_s1 + $0x3b0] sm:$0xf0]  ;;  %v4283_v26 = vld [vmem:[%s7263_s1 + $0x68] sm:$0xf0] }
  0x7d   :  { %v3653_v7 = vor.u32 %v4388_v5, %v3652_v4  ;;  %v4378_v4 = vld [vmem:[%s7263_s1 + $0x360] sm:$0xf0] }
  0x7e   :  { %2277 = vmatpush.bf16.msrb.mxu2 %v3253_v2  ;;  %v4333_v2 = vld [vmem:[%s7263_s1 + $0x1f8] sm:$0xf0] }
  0x7f   :  { %v3433_v5 = vor.u32 %v4333_v2, %v3432_v60 }
  0x80   :  { %2193 = vmatpush.bf16.msrb.mxu3 %v3829_v25  ;;  %2222 = vmatpush.bf16.msrb.mxu0 %v3989_v40  ;;  %v3232_v25 = vld [vmem:[%s7263_s1 + $0x58] sm:$0xf]  ;;  %v4383_v40 = vld [vmem:[%s7263_s1 + $0x388] sm:$0xf0] }
  0x81   :  { %v3233_v29 = vor.u32 %v4283_v26, %v3232_v25  ;;  %v3633_v44 = vor.u32 %v4383_v40, %v3632_v38  ;;  %v3192_v25 = vld [vmem:[%s7263_s1 + $0x8] sm:$0xf]  ;;  %v4273_v26 = vld [vmem:[%s7263_s1 + $0x18] sm:$0xf0]  ;;  %v4328_v40 = vld [vmem:[%s7263_s1 + $0x1d0] sm:$0xf0] }
  0x82   :  { %v3193_v30 = vor.u32 %v4273_v26, %v3192_v25  ;;  %v3392_v25 = vld [vmem:[%s7263_s1 + $0x198] sm:$0xf] }
  0x83   :  { %2078 = vmatmul.bf16.vlgmr.msra.gmra.mxu3 %v4776_v27  ;;  %2107 = vmatmul.bf16.vlgmr.msra.gmra.mxu0 %v4789_v32 }
  0x84   :  { %2302 = vmatpush.bf16.msra.mxu3 %v3493_v48  ;;  %2331 = vmatpush.bf16.msra.mxu0 %v3653_v7  ;;  %v3212_v48 = vld [vmem:[%s7263_s1 + $0x30] sm:$0xf]  ;;  %v4510_v7 = vld [vmem:[%s7263_s1 + $0x784] sm:$0xf] }
  0x85   :  { %2030 = vmatmul.bf16.gmra.mxu1 %v5357_v16  ;;  %4224 = vmatmul.msk.bf16.gmra.mxu2 %vm1854_vm0, %v5359_v17  ;;  %v3213_v1 = vor.u32 %v4278_v59, %v3212_v48  ;;  %v4149_v9 = vor.u32 %v4510_v7, %v4146_v8  ;;  %v4373_v59 = vld [vmem:[%s7263_s1 + $0x338] sm:$0xf0]  ;;  %v3972_v8 = vld [vmem:[%s7263_s1 + $0x620] sm:$0xf] }
  0x86   :  { %2278 = vmatpush.bf16.msrb.mxu2 %v3233_v29 }
  0x87   :  { %2251 = vmatpush.bf16.msrb.mxu1 %v4149_v9  ;;  %v4468_v9 = vld [vmem:[%s7263_s1 + $0x630] sm:$0xf0] }
  0x88   :  { %2303 = vmatpush.bf16.msra.mxu3 %v3473_v6  ;;  %2332 = vmatpush.bf16.msra.mxu0 %v3633_v44  ;;  %v3613_v6 = vor.u32 %v4378_v4, %v3612_v3  ;;  %v3592_v44 = vld [vmem:[%s7263_s1 + $0x328] sm:$0xf] }
  0x8a   :  { %2279 = vmatpush.bf16.msrb.mxu2 %v3213_v1  ;;  %v3593_v1 = vor.u32 %v4373_v59, %v3592_v44  ;;  %v4368_v44 = vld [vmem:[%s7263_s1 + $0x310] sm:$0xf0] }
  0x8c   :  { %2304 = vmatpush.bf16.msra.mxu3 %v3453_v39  ;;  %2333 = vmatpush.bf16.msra.mxu0 %v3613_v6  ;;  %v3412_v39 = vld [vmem:[%s7263_s1 + $0x1c0] sm:$0xf] }
  0x8d   :  { %v3413_v48 = vor.u32 %v4328_v40, %v3412_v39  ;;  %v4323_v39 = vld [vmem:[%s7263_s1 + $0x1a8] sm:$0xf0]  ;;  %v3572_v40 = vld [vmem:[%s7263_s1 + $0x300] sm:$0xf] }
  0x8e   :  { %2280 = vmatpush.bf16.msrb.mxu2 %v3193_v30  ;;  %v3973_v30 = vor.u32 %v4468_v9, %v3972_v8  ;;  %v3573_v59 = vor.u32 %v4368_v44, %v3572_v40  ;;  %v4428_v8 = vld [vmem:[%s7263_s1 + $0x4f0] sm:$0xf0]  ;;  %v4363_v40 = vld [vmem:[%s7263_s1 + $0x2e8] sm:$0xf0] }
  0x90   :  { %2305 = vmatpush.bf16.msra.mxu3 %v3433_v5  ;;  %2334 = vmatpush.bf16.msra.mxu0 %v3593_v1  ;;  %v3812_v1 = vld [vmem:[%s7263_s1 + $0x4e0] sm:$0xf] }
  0x91   :  { %v5657_v9 = vor.u32 %v4428_v8, %v3812_v1 }
  0x93   :  { %2083 = vmatmul.bf16.gmra.mxu3 %v4896_v18  ;;  %2112 = vmatmul.bf16.gmra.mxu0 %v4909_v23 }
  0x94   :  { %2306 = vmatpush.bf16.msra.mxu3 %v3413_v48  ;;  %v3393_v48 = vor.u32 %v4323_v39, %v3392_v25  ;;  %2335 = vmatpush.bf16.msra.mxu0 %v3573_v59  ;;  %v3552_v39 = vld [vmem:[%s7263_s1 + $0x2d8] sm:$0xf]  ;;  %v3372_v59 = vld [vmem:[%s7263_s1 + $0x170] sm:$0xf] }
  0x95   :  { %2035 = vmatmul.bf16.gmra.mxu1 %v5414_v57  ;;  %4225 = vmatmul.msk.bf16.gmra.mxu2 %vm1854_vm0, %v5416_v58  ;;  %v3553_v1 = vor.u32 %v4363_v40, %v3552_v39  ;;  %v4318_v39 = vld [vmem:[%s7263_s1 + $0x180] sm:$0xf0]  ;;  %v3792_v40 = vld [vmem:[%s7263_s1 + $0x4b8] sm:$0xf] }
  0x98   :  { %2307 = vmatpush.bf16.msra.mxu3 %v3393_v48  ;;  %v4463_v48 = vld [vmem:[%s7263_s1 + $0x608] sm:$0xf0]  ;;  %2336 = vmatpush.bf16.msra.mxu0 %v3553_v1 }
  0xa0   :  { %v5471_v41 = vpop.f32.mrf.mxu0 }
  0xa2   :  { %v5473_v42 = vpop.f32.mrf.mxu1 }
  0xa3   :  { %2088 = vmatmul.bf16.gmra.mxu3 %v4778_v28  ;;  %2117 = vmatmul.bf16.gmra.mxu0 %v5017_v12 }
  0xa5   :  { %2136 = vmatmul.bf16.vlgmr.msra.gmra.mxu1 %v4791_v33  ;;  %2165 = vmatmul.bf16.vlgmr.msra.gmra.mxu2 %v5013_v10  ;;  %v1906_v10 = vadd.f32 %v5473_v42, %v5471_v41  ;;  %v4313_v41 = vld [vmem:[%s7263_s1 + $0x158] sm:$0xf0] }
  0xa6   :  { %v5491_v53 = vpop.f32.mrf.mxu3  ;;  %2389 = vmatpush.bf16.msra.mxu2 %v3973_v30  ;;  %4538 = vmatpush.bf16.msra.mxu1 %v5657_v9  ;;  %v3952_v30 = vld [vmem:[%s7263_s1 + $0x5f8] sm:$0xf] }
  0xa8   :  { %v5493_v54 = vpop.f32.mrf.mxu2  ;;  %v5495_v55 = vpop.f32.mrf.mxu0 }
  0xaa   :  { %v5497_v56 = vpop.f32.mrf.mxu1 }
  0xae   :  { %v5523_v15 = vpop.f32.mrf.mxu3 }
  0xb0   :  { %v5525_v20 = vpop.f32.mrf.mxu2  ;;  %v5527_v21 = vpop.f32.mrf.mxu0 }
  0xb2   :  { %v5529_v22 = vpop.f32.mrf.mxu1 }
  0xb3   :  { %2093 = vmatmul.bf16.gmra.mxu3 %v4898_v19  ;;  %2122 = vmatmul.bf16.gmra.mxu0 %v5113_v63  ;;  %v1935_v63 = vadd.f32 %v5493_v54, %v1906_v10  ;;  %v4353_v10 = vld [vmem:[%s7263_s1 + $0x298] sm:$0xf0] }
  0xb5   :  { %2141 = vmatmul.bf16.gmra.mxu1 %v4911_v24  ;;  %2170 = vmatmul.bf16.gmra.mxu2 %v5109_v61 }
  0xb6   :  { %v5553_v43 = vpop.f32.mrf.mxu3 }
  0xb8   :  { %v5555_v45 = vpop.f32.mrf.mxu2  ;;  %v5557_v46 = vpop.f32.mrf.mxu0 }
  0xba   :  { %v5559_v47 = vpop.f32.mrf.mxu1 }
  0xbe   :  { %v5585_v14 = vpop.f32.mrf.mxu3 }
  0xc0   :  { %v5593_v29 = vpop.f32.mrf.mxu2  ;;  %v5595_v31 = vpop.f32.mrf.mxu0 }
  0xc2   :  { %v5597_v38 = vpop.f32.mrf.mxu1 }
  0xc3   :  { %2194 = vmatmul.bf16.vlgmr.msrb.gmra.mxu3 %v5015_v11  ;;  %2223 = vmatmul.bf16.vlgmr.msrb.gmra.mxu0 %v5203_v51  ;;  %v4423_v51 = vld [vmem:[%s7263_s1 + $0x4c8] sm:$0xf0] }
  0xc5   :  { %2146 = vmatmul.bf16.gmra.mxu1 %v5019_v13  ;;  %2175 = vmatmul.bf16.gmra.mxu2 %v5199_v49  ;;  %v3793_v49 = vor.u32 %v4423_v51, %v3792_v40  ;;  %v3352_v51 = vld [vmem:[%s7263_s1 + $0x148] sm:$0xf] }
  0xc6   :  { %v5615_v60 = vpop.f32.mrf.mxu3 }
  0xc7   :  { %4539 = vmatpush.bf16.msra.mxu1 %v3793_v49  ;;  %v1964_v54 = vadd.f32 %v5615_v60, %v1935_v63  ;;  %v4418_v63 = vld [vmem:[%s7263_s1 + $0x4a0] sm:$0xf0] }
  0xc8   :  { %v5617_v2 = vpop.f32.mrf.mxu2  ;;  %v5619_v3 = vpop.f32.mrf.mxu0 }
  0xca   :  { %v5621_v4 = vpop.f32.mrf.mxu1 }
  0xce   :  { %v5623_v5 = vpop.f32.mrf.mxu3 }
  0xd0   :  { %v5625_v6 = vpop.f32.mrf.mxu2  ;;  %v5627_v7 = vpop.f32.mrf.mxu0 }
  0xd2   :  { %v5638_v26 = vpop.f32.mrf.mxu1 }
  0xd3   :  { %2199 = vmatmul.bf16.gmra.mxu3 %v5111_v62  ;;  %2228 = vmatmul.bf16.gmra.mxu0 %v5282_v36  ;;  %v3373_v62 = vor.u32 %v4318_v39, %v3372_v59  ;;  %v3932_v59 = vld [vmem:[%s7263_s1 + $0x5d0] sm:$0xf] }
  0xd4   :  { %v3772_v39 = vld [vmem:[%s7263_s1 + $0x490] sm:$0xf] }
  0xd5   :  { %2151 = vmatmul.bf16.gmra.mxu1 %v5115_v0  ;;  %2180 = vmatmul.bf16.gmra.mxu2 %v5278_v34  ;;  %v3953_v34 = vor.u32 %v4463_v48, %v3952_v30  ;;  %v3532_v30 = vld [vmem:[%s7263_s1 + $0x2b0] sm:$0xf]  ;;  %v4358_v48 = vld [vmem:[%s7263_s1 + $0x2c0] sm:$0xf0]  ;;  %v3773_v60 = vor.u32 %v4418_v63, %v3772_v39 }
  0xd6   :  { %v5661_v25 = vpop.f32.mrf.mxu3  ;;  %v3533_v0 = vor.u32 %v4358_v48, %v3532_v30  ;;  %2308 = vmatpush.bf16.msra.mxu3 %v3373_v62  ;;  %v3353_v62 = vor.u32 %v4313_v41, %v3352_v51  ;;  %v5739_v51 = vld [vmem:[%s7265_s2] sm:$0x1f]  ;;  %v1908_v41 = vadd.f32 %v5497_v56, %v5495_v55 }
  0xd7   :  { %2390 = vmatpush.bf16.msra.mxu2 %v3953_v34  ;;  %v3512_v34 = vld [vmem:[%s7263_s1 + $0x288] sm:$0xf]  ;;  %7314 = vst [vmem:[#allocation16_spill] sm:$0xff] %v5739_v51  ;;  %4540 = vmatpush.bf16.msra.mxu1 %v3773_v60  ;;  %v5756_v55 = vperm.slane %v5739_v51, 0 }
  0xd8   :  { %v5670_v44 = vpop.f32.mrf.mxu2  ;;  %v5672_v8 = vpop.f32.mrf.mxu0  ;;  %2337 = vmatpush.bf16.msra.mxu0 %v3533_v0  ;;  %v4458_v0 = vld [vmem:[%s7263_s1 + $0x5e0] sm:$0xf0]  ;;  %v3513_v40 = vor.u32 %v4353_v10, %v3512_v34  ;;  %v1993_v34 = vadd.f32 %v5595_v31, %v1964_v54  ;;  %v1937_v10 = vadd.f32 %v5525_v20, %v1908_v41  ;;  %v3912_v20 = vld [vmem:[%s7263_s1 + $0x5a8] sm:$0xf] }
  0xd9   :  { %v3933_v48 = vor.u32 %v4458_v0, %v3932_v59  ;;  %v3752_v41 = vld [vmem:[%s7263_s1 + $0x468] sm:$0xf] }
  0xda   :  { %v5683_v36 = vpop.f32.mrf.mxu1  ;;  %2309 = vmatpush.bf16.msra.mxu3 %v3353_v62  ;;  %v5750_v62 = vld [vmem:[%s7266_s3] sm:$0x1f]  ;;  %v1966_v54 = vadd.f32 %v5623_v5, %v1937_v10  ;;  %v4508_v5 = vld [vmem:[%s7263_s1 + $0x770] sm:$0xf0]  ;;  %v1911_v10 = vadd.f32 %v5529_v22, %v5527_v21 }
  0xdb   :  { %7315 = vst [vmem:[#allocation17_spill] sm:$0xff] %v5750_v62  ;;  %2391 = vmatpush.bf16.msra.mxu2 %v3933_v48  ;;  %v5760_v31 = vperm.slane %v5750_v62, 0 }
  0xdc   :  { %2338 = vmatpush.bf16.msra.mxu0 %v3513_v40  ;;  %v1940_v62 = vadd.f32 %v5555_v45, %v1911_v10  ;;  %v4448_v45 = vld [vmem:[%s7263_s1 + $0x590] sm:$0xf0] }
  0xde   :  { %v5703_v11 = vpop.f32.mrf.mxu3  ;;  %v1969_v22 = vadd.f32 %v5661_v25, %v1940_v62 }
  0xe0   :  { %v5714_v42 = vpop.f32.mrf.mxu2  ;;  %v5720_v1 = vpop.f32.mrf.mxu0  ;;  %2360 = vmatpush.bf16.msrb.mxu0 %v5657_v9  ;;  %v4132_v9 = vld [vmem:[%s7263_s1 + $0x760] sm:$0xf] }
  0xe2   :  { %v2021_v30 = vpop.f32.mrf.mxu1 }
  0xe3   :  { %2204 = vmatmul.bf16.gmra.mxu3 %v5201_v50  ;;  %2233 = vmatmul.bf16.gmra.mxu0 %v5357_v16  ;;  %v2022_v59 = vadd.f32 %v2021_v30, %v1993_v34  ;;  %v4453_v30 = vld [vmem:[%s7263_s1 + $0x5b8] sm:$0xf0] }
  0xe4   :  { %v3913_v63 = vor.u32 %v4453_v30, %v3912_v20  ;;  %v4413_v34 = vld [vmem:[%s7263_s1 + $0x478] sm:$0xf0]  ;;  %2361 = vmatpush.bf16.msrb.mxu0 %v3793_v49  ;;  %v1995_v30 = vadd.f32 %v5619_v3, %v1966_v54  ;;  %v3892_v3 = vld [vmem:[%s7263_s1 + $0x580] sm:$0xf]  ;;  %v4408_v54 = vld [vmem:[%s7263_s1 + $0x450] sm:$0xf0] }
  0xe5   :  { %4226 = vmatmul.msk.bf16.vlgmr.msrb.gmra.mxu1 %vm1854_vm0, %v5205_v52  ;;  %2281 = vmatmul.bf16.vlgmr.msrb.gmra.mxu2 %v4776_v27  ;;  %v3753_v16 = vor.u32 %v4413_v34, %v3752_v41  ;;  %v3893_v62 = vor.u32 %v4448_v45, %v3892_v3  ;;  %v1998_v34 = vadd.f32 %v5627_v7, %v1969_v22  ;;  %v4092_v3 = vld [vmem:[%s7263_s1 + $0x710] sm:$0xf]  ;;  %v4498_v45 = vld [vmem:[%s7263_s1 + $0x720] sm:$0xf0] }
  0xe6   :  { %v5753_v0 = vpop.f32.mrf.mxu3  ;;  %2392 = vmatpush.bf16.msra.mxu2 %v3913_v63 }
  0xe7   :  { %4541 = vmatpush.bf16.msra.mxu1 %v3753_v16 }
  0xe8   :  { %v2050_v56 = vpop.f32.mrf.mxu2  ;;  %v5763_v40 = vpop.f32.mrf.mxu0  ;;  %2362 = vmatpush.bf16.msrb.mxu0 %v3773_v60  ;;  %v4112_v60 = vld [vmem:[%s7263_s1 + $0x738] sm:$0xf] }
  0xe9   :  { %v2051_v39 = vadd.f32 %v2050_v56, %v2022_v59  ;;  %v4133_v56 = vor.u32 %v4508_v5, %v4132_v9  ;;  %v1913_v5 = vadd.f32 %v5559_v47, %v5557_v46  ;;  %v3872_v46 = vld [vmem:[%s7263_s1 + $0x558] sm:$0xf]  ;;  %v4443_v47 = vld [vmem:[%s7263_s1 + $0x568] sm:$0xf0] }
  0xea   :  { %v2023_v48 = vpop.f32.mrf.mxu1  ;;  %2393 = vmatpush.bf16.msra.mxu2 %v3893_v62  ;;  %v4093_v62 = vor.u32 %v4498_v45, %v4092_v3 }
  0xeb   :  { %v2894_v59 = vmul.f32 %v5756_v55, %v2051_v39  ;;  %2418 = vmatpush.bf16.msrb.mxu3 %v4133_v56  ;;  %v2024_v27 = vadd.f32 %v2023_v48, %v1995_v30  ;;  %v4403_v30 = vld [vmem:[%s7263_s1 + $0x428] sm:$0xf0] }
  0xec   :  { %2363 = vmatpush.bf16.msrb.mxu0 %v3753_v16  ;;  %v1942_v16 = vadd.f32 %v5593_v29, %v1913_v5  ;;  %v3712_v29 = vld [vmem:[%s7263_s1 + $0x418] sm:$0xf] }
  0xed   :  { %v2946_v20 = vadd.f32 %v5760_v31, %v2894_v59 }
  0xee   :  { %v5789_v52 = vpop.f32.mrf.mxu3 }
  0xef   :  { %v2986_v51 = vmax.f32 %v2946_v20, 0.0  ;;  %v3873_v20 = vor.u32 %v4443_v47, %v3872_v46  ;;  %v3672_v47 = vld [vmem:[%s7263_s1 + $0x3c8] sm:$0xf] }
  0xf0   :  { %v2052_v21 = vpop.f32.mrf.mxu2  ;;  %v5795_v39 = vpop.f32.mrf.mxu0 }
  0xf1   :  { %3026 = vst [vmem:[%s7267_s4] sm:$0xff] %v2986_v51  ;;  %v2053_v49 = vadd.f32 %v2052_v21, %v2024_v27  ;;  %v4503_v27 = vld [vmem:[%s7263_s1 + $0x748] sm:$0xf0]  ;;  %v3732_v51 = vld [vmem:[%s7263_s1 + $0x440] sm:$0xf]  ;;  %v1971_v21 = vadd.f32 %v5703_v11, %v1942_v16  ;;  %2394 = vmatpush.bf16.msra.mxu2 %v3873_v20 }
  0xf2   :  { %v2026_v25 = vpop.f32.mrf.mxu1  ;;  %v4113_v48 = vor.u32 %v4503_v27, %v4112_v60  ;;  %v3733_v63 = vor.u32 %v4408_v54, %v3732_v51  ;;  %v3713_v60 = vor.u32 %v4403_v30, %v3712_v29  ;;  %v3852_v27 = vld [vmem:[%s7263_s1 + $0x530] sm:$0xf]  ;;  %v4438_v51 = vld [vmem:[%s7263_s1 + $0x540] sm:$0xf0] }
  0xf3   :  { %v2899_v9 = vmul.f32 %v5756_v55, %v2053_v49  ;;  %2209 = vmatmul.bf16.gmra.mxu3 %v5280_v35  ;;  %2238 = vmatmul.bf16.gmra.mxu0 %v5414_v57  ;;  %v2027_v59 = vadd.f32 %v2026_v25, %v1998_v34  ;;  %v3692_v54 = vld [vmem:[%s7263_s1 + $0x3f0] sm:$0xf] }
  0xf4   :  { %2419 = vmatpush.bf16.msrb.mxu3 %v4113_v48  ;;  %4542 = vmatpush.bf16.msra.mxu1 %v3733_v63  ;;  %v4398_v48 = vld [vmem:[%s7263_s1 + $0x400] sm:$0xf0] }
  0xf5   :  { %v2951_v41 = vadd.f32 %v5760_v31, %v2899_v9  ;;  %4227 = vmatmul.msk.bf16.gmra.mxu1 %vm1854_vm0, %v5284_v37  ;;  %2286 = vmatmul.bf16.gmra.mxu2 %v4896_v18  ;;  %v3853_v9 = vor.u32 %v4438_v51, %v3852_v27  ;;  %v3693_v34 = vor.u32 %v4398_v48, %v3692_v54 }
  0xf6   :  { %v5826_v56 = vpop.f32.mrf.mxu3  ;;  %2364 = vmatpush.bf16.msrb.mxu0 %v3733_v63  ;;  %v1916_v63 = vadd.f32 %v5597_v38, %v5491_v53  ;;  %v4393_v53 = vld [vmem:[%s7263_s1 + $0x3d8] sm:$0xf0] }
  0xf7   :  { %v2991_v10 = vmax.f32 %v2951_v41, 0.0  ;;  %v2000_v41 = vadd.f32 %v5672_v8, %v1971_v21  ;;  %2395 = vmatpush.bf16.msra.mxu2 %v3853_v9  ;;  %v3673_v8 = vor.u32 %v4393_v53, %v3672_v47  ;;  %v4072_v21 = vld [vmem:[%s7263_s1 + $0x6e8] sm:$0xf]  ;;  %v1921_v47 = vadd.f32 %v5638_v26, %v5553_v43 }
  0xf8   :  { %v2055_v7 = vpop.f32.mrf.mxu2  ;;  %v5844_v49 = vpop.f32.mrf.mxu0  ;;  %4543 = vmatpush.bf16.msra.mxu1 %v3713_v60  ;;  %2420 = vmatpush.bf16.msrb.mxu3 %v4093_v62  ;;  %v1945_v16 = vadd.f32 %v5617_v2, %v1916_v63  ;;  %v3832_v2 = vld [vmem:[%s7263_s1 + $0x508] sm:$0xf] }
  0xf9   :  { %3031 = vst [vmem:[%s7267_s4 + $0x28] sm:$0xff] %v2991_v10  ;;  %v2056_v22 = vadd.f32 %v2055_v7, %v2027_v59  ;;  %v4433_v7 = vld [vmem:[%s7263_s1 + $0x518] sm:$0xf0]  ;;  %v1950_v26 = vadd.f32 %v5670_v44, %v1921_v47  ;;  %v4296_v47 = vld [vmem:[%s7263_s1 + $0xd4] sm:$0xf] }
  0xfa   :  { %v2028_v25 = vpop.f32.mrf.mxu1  ;;  %2365 = vmatpush.bf16.msrb.mxu0 %v3713_v60  ;;  %v1974_v20 = vadd.f32 %v5753_v0, %v1945_v16  ;;  %v3833_v3 = vor.u32 %v4433_v7, %v3832_v2  ;;  %v1918_v0 = vadd.f32 %v5621_v4, %v5523_v15  ;;  %v3334_v2 = vld [vmem:[%s7263_s1 + $0x134] sm:$0xf0]  ;;  %v4341_v44 = vld [vmem:[%s7263_s1 + $0x23c] sm:$0xf] }
  0xfb   :  { %v2904_v11 = vmul.f32 %v5756_v55, %v2056_v22  ;;  %v2029_v59 = vadd.f32 %v2028_v25, %v2000_v41  ;;  %v4493_v22 = vld [vmem:[%s7263_s1 + $0x6f8] sm:$0xf0] }
  0xfc   :  { %4544 = vmatpush.bf16.msra.mxu1 %v3693_v34  ;;  %v4073_v60 = vor.u32 %v4493_v22, %v4072_v21  ;;  %2396 = vmatpush.bf16.msra.mxu2 %v3833_v3  ;;  %v1947_v27 = vadd.f32 %v5625_v6, %v1918_v0  ;;  %v4488_v6 = vld [vmem:[%s7263_s1 + $0x6d0] sm:$0xf0] }
  0xfd   :  { %v2956_v5 = vadd.f32 %v5760_v31, %v2904_v11  ;;  %v2003_v11 = vadd.f32 %v5720_v1, %v1974_v20 }
  0xfe   :  { %v5870_v46 = vpop.f32.mrf.mxu3  ;;  %2366 = vmatpush.bf16.msrb.mxu0 %v3693_v34  ;;  %2421 = vmatpush.bf16.msrb.mxu3 %v4073_v60  ;;  %v1976_v15 = vadd.f32 %v5789_v52, %v1947_v27  ;;  %v4346_v52 = vld [vmem:[%s7263_s1 + $0x264] sm:$0xf]  ;;  %v1979_v60 = vadd.f32 %v5826_v56, %v1950_v26  ;;  %v1923_v27 = vadd.f32 %v5683_v36, %v5585_v14  ;;  %v4301_v36 = vld [vmem:[%s7263_s1 + $0xfc] sm:$0xf] }
  0xff   :  { %v2996_v10 = vmax.f32 %v2956_v5, 0.0  ;;  %v4052_v5 = vld [vmem:[%s7263_s1 + $0x6c0] sm:$0xf] }
 0x100   :  { %v2057_v38 = vpop.f32.mrf.mxu2  ;;  %v2108_v30 = vpop.f32.mrf.mxu0  ;;  %4545 = vmatpush.bf16.msra.mxu1 %v3673_v8  ;;  %v4053_v34 = vor.u32 %v4488_v6, %v4052_v5  ;;  %v2005_v20 = vadd.f32 %v5763_v40, %v1976_v15  ;;  %v1952_v15 = vadd.f32 %v5714_v42, %v1923_v27  ;;  %v3434_v27 = vld [vmem:[%s7263_s1 + $0x1fc] sm:$0xf0] }
 0x101   :  { %3036 = vst [vmem:[%s7267_s4 + $0x50] sm:$0xff] %v2996_v10  ;;  %v2058_v29 = vadd.f32 %v2057_v38, %v2029_v59  ;;  %v3494_v10 = vld [vmem:[%s7263_s1 + $0x274] sm:$0xf0]  ;;  %v4483_v38 = vld [vmem:[%s7263_s1 + $0x6a8] sm:$0xf0] }
 0x102   :  { %v2031_v45 = vpop.f32.mrf.mxu1  ;;  %2367 = vmatpush.bf16.msrb.mxu0 %v3673_v8  ;;  %v4032_v59 = vld [vmem:[%s7263_s1 + $0x698] sm:$0xf]  ;;  %2422 = vmatpush.bf16.msrb.mxu3 %v4053_v34  ;;  %v3497_v53 = vor.u32 %v4346_v52, %v3494_v10  ;;  %v4306_v8 = vld [vmem:[%s7263_s1 + $0x124] sm:$0xf] }
 0x103   :  { %v2909_v25 = vmul.f32 %v5756_v55, %v2058_v29  ;;  %2310 = vmatmul.bf16.vlgmr.msra.gmra.mxu3 %v4789_v32  ;;  %2339 = vmatmul.bf16.vlgmr.msra.gmra.mxu0 %v4791_v33  ;;  %v2032_v54 = vadd.f32 %v2031_v45, %v2003_v11  ;;  %v4033_v29 = vor.u32 %v4483_v38, %v4032_v59  ;;  %v3474_v11 = vld [vmem:[%s7263_s1 + $0x24c] sm:$0xf0] }
 0x104   :  { %v3337_v43 = vor.u32 %v4306_v8, %v3334_v2  ;;  %2505 = vmatpush.bf16.msrb.mxu2 %v3497_v53  ;;  %v3477_v56 = vor.u32 %v4341_v44, %v3474_v11  ;;  %v3294_v53 = vld [vmem:[%s7263_s1 + $0xe4] sm:$0xf0] }
 0x105   :  { %v2961_v62 = vadd.f32 %v5760_v31, %v2909_v25  ;;  %4228 = vmatmul.msk.bf16.gmra.mxu1 %vm1854_vm0, %v5359_v17  ;;  %2291 = vmatmul.bf16.gmra.mxu2 %v4778_v28  ;;  %v3297_v38 = vor.u32 %v4296_v47, %v3294_v53  ;;  %v3454_v8 = vld [vmem:[%s7263_s1 + $0x224] sm:$0xf0]  ;;  %v3234_v47 = vld [vmem:[%s7263_s1 + $0x6c] sm:$0xf0] }
 0x106   :  { %v2079_v9 = vpop.f32.mrf.mxu3  ;;  %2476 = vmatpush.bf16.msrb.mxu1 %v3337_v43  ;;  %2423 = vmatpush.bf16.msrb.mxu3 %v4033_v29  ;;  %v3992_v2 = vld [vmem:[%s7263_s1 + $0x648] sm:$0xf] }
 0x107   :  { %v3001_v51 = vmax.f32 %v2961_v62, 0.0  ;;  %v5905_v63 = vadd.f32 %v2108_v30, %v2079_v9  ;;  %v4012_v9 = vld [vmem:[%s7263_s1 + $0x670] sm:$0xf] }
 0x108   :  { %v2060_v48 = vpop.f32.mrf.mxu2  ;;  %v2110_v1 = vpop.f32.mrf.mxu0  ;;  %2506 = vmatpush.bf16.msrb.mxu2 %v3477_v56  ;;  %v4331_v56 = vld [vmem:[%s7263_s1 + $0x1ec] sm:$0xf] }
 0x109   :  { %3041 = vst [vmem:[%s7267_s4 + $0x78] sm:$0xff] %v3001_v51  ;;  %v2061_v4 = vadd.f32 %v2060_v48, %v2032_v54  ;;  %v2008_v54 = vadd.f32 %v5795_v39, %v1979_v60  ;;  %v4478_v48 = vld [vmem:[%s7263_s1 + $0x680] sm:$0xf0]  ;;  %v3314_v39 = vld [vmem:[%s7263_s1 + $0x10c] sm:$0xf0] }
 0x10a   :  { %v2033_v41 = vpop.f32.mrf.mxu1  ;;  %v4013_v14 = vor.u32 %v4478_v48, %v4012_v9  ;;  %v3317_v6 = vor.u32 %v4301_v36, %v3314_v39  ;;  %v3274_v60 = vld [vmem:[%s7263_s1 + $0xbc] sm:$0xf0]  ;;  %v4286_v9 = vld [vmem:[%s7263_s1 + $0x84] sm:$0xf]  ;;  %v3254_v48 = vld [vmem:[%s7263_s1 + $0x94] sm:$0xf0] }
 0x10b   :  { %v2914_v16 = vmul.f32 %v5756_v55, %v2061_v4  ;;  %v2034_v21 = vadd.f32 %v2033_v41, %v2005_v20  ;;  %v4386_v39 = vld [vmem:[%s7263_s1 + $0x3a4] sm:$0xf] }
 0x10c   :  { %2424 = vmatpush.bf16.msrb.mxu3 %v4013_v14  ;;  %2477 = vmatpush.bf16.msrb.mxu1 %v3317_v6  ;;  %v7316_v14 = vld [vmem:[#allocation4_spill] sm:$0xff] }
 0x10d   :  { %v2966_v7 = vadd.f32 %v5760_v31, %v2914_v16  ;;  %v1981_v16 = vadd.f32 %v5870_v46, %v1952_v15  ;;  %v4336_v46 = vld [vmem:[%s7263_s1 + $0x214] sm:$0xf]  ;;  %v3654_v15 = vld [vmem:[%s7263_s1 + $0x3b4] sm:$0xf0] }
 0x10e   :  { %v2081_v22 = vpop.f32.mrf.mxu3  ;;  %v3457_v43 = vor.u32 %v4336_v46, %v3454_v8  ;;  %v4326_v8 = vld [vmem:[%s7263_s1 + $0x1c4] sm:$0xf] }
 0x10f   :  { %v3006_v30 = vmax.f32 %v2966_v7, 0.0  ;;  %v5941_v45 = vadd.f32 %v2110_v1, %v2081_v22  ;;  %v4473_v7 = vld [vmem:[%s7263_s1 + $0x658] sm:$0xf0]  ;;  %v2010_v29 = vadd.f32 %v5844_v49, %v1981_v16  ;;  %v4523_v16 = vld [vmem:[%s7263_s1 + $0x7e8] sm:$0xf0] }
 0x110   :  { %v2062_v3 = vpop.f32.mrf.mxu2  ;;  %v2113_v25 = vpop.f32.mrf.mxu0  ;;  %v3993_v26 = vor.u32 %v4473_v7, %v3992_v2  ;;  %2478 = vmatpush.bf16.msrb.mxu1 %v3297_v38  ;;  %2507 = vmatpush.bf16.msrb.mxu2 %v3457_v43  ;;  %v3414_v2 = vld [vmem:[%s7263_s1 + $0x1d4] sm:$0xf0]  ;;  %v4381_v7 = vld [vmem:[%s7263_s1 + $0x37c] sm:$0xf]  ;;  %v4172_v43 = vld [vmem:[%s7263_s1 + $0x7b0] sm:$0xf] }
 0x111   :  { %3046 = vst [vmem:[%s7267_s4 + $0xa0] sm:$0xff] %v3006_v30  ;;  %v2063_v40 = vadd.f32 %v2062_v3, %v2034_v21  ;;  %v4291_v3 = vld [vmem:[%s7263_s1 + $0xac] sm:$0xf] }
 0x112   :  { %v2036_v0 = vpop.f32.mrf.mxu1  ;;  %2425 = vmatpush.bf16.msrb.mxu3 %v3993_v26  ;;  %v3277_v49 = vor.u32 %v4291_v3, %v3274_v60  ;;  %v4518_v26 = vld [vmem:[%s7263_s1 + $0x7c0] sm:$0xf0]  ;;  %v3214_v3 = vld [vmem:[%s7263_s1 + $0x44] sm:$0xf0] }
 0x113   :  { %v2919_v62 = vmul.f32 %v5756_v55, %v2063_v40  ;;  %2315 = vmatmul.bf16.gmra.mxu3 %v4909_v23  ;;  %2344 = vmatmul.bf16.gmra.mxu0 %v4911_v24  ;;  %v2037_v1 = vadd.f32 %v2036_v0, %v2008_v54  ;;  %v3437_v54 = vor.u32 %v4331_v56, %v3434_v27 }
 0x114   :  { %2479 = vmatpush.bf16.msrb.mxu1 %v3277_v49  ;;  %v4152_v49 = vld [vmem:[%s7263_s1 + $0x788] sm:$0xf] }
 0x115   :  { %v2971_v51 = vadd.f32 %v5760_v31, %v2919_v62  ;;  %4229 = vmatmul.msk.bf16.gmra.mxu1 %vm1854_vm0, %v5416_v58  ;;  %2296 = vmatmul.bf16.gmra.mxu2 %v4898_v19 }
 0x116   :  { %v2084_v5 = vpop.f32.mrf.mxu3  ;;  %2508 = vmatpush.bf16.msrb.mxu2 %v3437_v54 }
 0x117   :  { %v3011_v4 = vmax.f32 %v2971_v51, 0.0  ;;  %v5976_v34 = vadd.f32 %v2113_v25, %v2084_v5  ;;  %v4212_v51 = vld [vmem:[%s7263_s1 + $0x800] sm:$0xf]  ;;  %v3657_v5 = vor.u32 %v4386_v39, %v3654_v15  ;;  %v7318_v15 = vld [vmem:[#allocation7_spill] sm:$0xff] }
 0x118   :  { %v2065_v41 = vpop.f32.mrf.mxu2  ;;  %v2115_v10 = vpop.f32.mrf.mxu0  ;;  %v7317_v39 = vld [vmem:[#allocation6_spill] sm:$0xff] }
 0x119   :  { %3051 = vst [vmem:[%s7267_s4 + $0xc8] sm:$0xff] %v3011_v4  ;;  %v2066_v52 = vadd.f32 %v2065_v41, %v2037_v1  ;;  %v3257_v1 = vor.u32 %v4286_v9, %v3254_v48  ;;  %2534 = vmatpush.bf16.msra.mxu3 %v3657_v5  ;;  %v4321_v48 = vld [vmem:[%s7263_s1 + $0x19c] sm:$0xf] }
 0x11a   :  { %v2038_v59 = vpop.f32.mrf.mxu1  ;;  %v7320_v5 = vld [vmem:[#allocation5_spill] sm:$0xff] }
 0x11b   :  { %v2924_v42 = vmul.f32 %v5756_v55, %v2066_v52  ;;  %v2039_v21 = vadd.f32 %v2038_v59, %v2010_v29  ;;  %2480 = vmatpush.bf16.msrb.mxu1 %v3257_v1  ;;  %v3634_v29 = vld [vmem:[%s7263_s1 + $0x38c] sm:$0xf0] }
 0x11c   :  { %v7319_v1 = vld [vmem:[#allocation8_spill] sm:$0xff] }
 0x11d   :  { %v2976_v20 = vadd.f32 %v5760_v31, %v2924_v42  ;;  %v4281_v42 = vld [vmem:[%s7263_s1 + $0x5c] sm:$0xf] }
 0x11e   :  { %v2086_v22 = vpop.f32.mrf.mxu3  ;;  %v3237_v46 = vor.u32 %v4281_v42, %v3234_v47 }
 0x11f   :  { %v3016_v30 = vmax.f32 %v2976_v20, 0.0  ;;  %v6009_v25 = vadd.f32 %v2115_v10, %v2086_v22  ;;  %v3417_v20 = vor.u32 %v4326_v8, %v3414_v2  ;;  %v4276_v22 = vld [vmem:[%s7263_s1 + $0x34] sm:$0xf]  ;;  %v3374_v8 = vld [vmem:[%s7263_s1 + $0x184] sm:$0xf0] }
 0x120   :  { %v2067_v40 = vpop.f32.mrf.mxu2  ;;  %v2118_v62 = vpop.f32.mrf.mxu0  ;;  %2481 = vmatpush.bf16.msrb.mxu1 %v3237_v46  ;;  %v3217_v60 = vor.u32 %v4276_v22, %v3214_v3  ;;  %v4316_v46 = vld [vmem:[%s7263_s1 + $0x174] sm:$0xf]  ;;  %v4371_v2 = vld [vmem:[%s7263_s1 + $0x32c] sm:$0xf]  ;;  %v3814_v3 = vld [vmem:[%s7263_s1 + $0x4f4] sm:$0xf0] }
 0x121   :  { %3056 = vst [vmem:[%s7267_s4 + $0xf0] sm:$0xff] %v3016_v30  ;;  %v2068_v0 = vadd.f32 %v2067_v40, %v2039_v21  ;;  %v3637_v30 = vor.u32 %v4381_v7, %v3634_v29  ;;  %v4173_v21 = vor.u32 %v4518_v26, %v4172_v43  ;;  %2509 = vmatpush.bf16.msrb.mxu2 %v3417_v20  ;;  %v3594_v20 = vld [vmem:[%s7263_s1 + $0x33c] sm:$0xf0]  ;;  %v4466_v43 = vld [vmem:[%s7263_s1 + $0x624] sm:$0xf] }
 0x122   :  { %v6014_v44 = vpop.f32.mrf.mxu1  ;;  %v3377_v7 = vor.u32 %v4316_v46, %v3374_v8  ;;  %v3597_v29 = vor.u32 %v4371_v2, %v3594_v20  ;;  %v3974_v26 = vld [vmem:[%s7263_s1 + $0x634] sm:$0xf0]  ;;  %v4421_v46 = vld [vmem:[%s7263_s1 + $0x4bc] sm:$0xf]  ;;  %v3794_v2 = vld [vmem:[%s7263_s1 + $0x4cc] sm:$0xf0] }
 0x123   :  { %v2929_v11 = vmul.f32 %v5756_v55, %v2068_v0  ;;  %2320 = vmatmul.bf16.gmra.mxu3 %v5017_v12  ;;  %2349 = vmatmul.bf16.gmra.mxu0 %v5019_v13  ;;  %v4528_v55 = vld [vmem:[%s7263_s1 + $0x810] sm:$0xf0]  ;;  %v4513_v0 = vld [vmem:[%s7263_s1 + $0x798] sm:$0xf0]  ;;  %v3954_v20 = vld [vmem:[%s7263_s1 + $0x60c] sm:$0xf0] }
 0x124   :  { %v4213_v4 = vor.u32 %v4528_v55, %v4212_v51  ;;  %2535 = vmatpush.bf16.msra.mxu3 %v3637_v30  ;;  %2482 = vmatpush.bf16.msrb.mxu1 %v3217_v60  ;;  %v4153_v27 = vor.u32 %v4513_v0, %v4152_v49  ;;  %v3194_v51 = vld [vmem:[%s7263_s1 + $0x1c] sm:$0xf0]  ;;  %v4426_v30 = vld [vmem:[%s7263_s1 + $0x4e4] sm:$0xf]  ;;  %v4311_v60 = vld [vmem:[%s7263_s1 + $0x14c] sm:$0xf] }
 0x125   :  { %v2981_v36 = vadd.f32 %v5760_v31, %v2929_v11  ;;  %2373 = vmatmul.bf16.vlgmr.msra.gmra.mxu1 %v5109_v61  ;;  %2397 = vmatmul.bf16.vlgmr.msra.gmra.mxu2 %v7316_v14  ;;  %v4192_v31 = vld [vmem:[%s7263_s1 + $0x7d8] sm:$0xf] }
 0x126   :  { %v2089_v41 = vpop.f32.mrf.mxu3  ;;  %2451 = vmatpush.bf16.msra.mxu0 %v4213_v4  ;;  %v4193_v59 = vor.u32 %v4523_v16, %v4192_v31 }
 0x127   :  { %v3021_v6 = vmax.f32 %v2981_v36, 0.0  ;;  %v6052_v52 = vadd.f32 %v2118_v62, %v2089_v41  ;;  %v4271_v62 = vld [vmem:[%s7263_s1 + $0xc] sm:$0xf]  ;;  %v3394_v36 = vld [vmem:[%s7263_s1 + $0x1ac] sm:$0xf0] }
 0x128   :  { %v6054_v10 = vpop.f32.mrf.mxu2  ;;  %v2120_v53 = vpop.f32.mrf.mxu0  ;;  %v3197_v9 = vor.u32 %v4271_v62, %v3194_v51  ;;  %v3397_v4 = vor.u32 %v4321_v48, %v3394_v36  ;;  %v3614_v41 = vld [vmem:[%s7263_s1 + $0x364] sm:$0xf0]  ;;  %v7322_v48 = vld [vmem:[#allocation10_spill] sm:$0xff]  ;;  %v7323_v36 = vld [vmem:[#allocation12_spill] sm:$0xff] }
 0x129   :  { %3061 = vst [vmem:[%s7267_s4 + $0x118] sm:$0xff] %v3021_v6  ;;  %v4376_v6 = vld [vmem:[%s7263_s1 + $0x354] sm:$0xf] }
 0x12a   :  { %v6065_v38 = vpop.f32.mrf.mxu1  ;;  %2452 = vmatpush.bf16.msra.mxu0 %v4193_v59  ;;  %2483 = vmatpush.bf16.msrb.mxu1 %v3197_v9  ;;  %v3617_v31 = vor.u32 %v4376_v6, %v3614_v41  ;;  %v7321_v9 = vld [vmem:[#allocation3_spill] sm:$0xff] }
 0x12b   :  { %2510 = vmatpush.bf16.msrb.mxu2 %v3397_v4 }
 0x12c   :  { %2536 = vmatpush.bf16.msra.mxu3 %v3617_v31 }
 0x12e   :  { %v2091_v40 = vpop.f32.mrf.mxu3  ;;  %2453 = vmatpush.bf16.msra.mxu0 %v4173_v21  ;;  %v3977_v21 = vor.u32 %v4466_v43, %v3974_v26 }
 0x12f   :  { %v6100_v11 = vadd.f32 %v2120_v53, %v2091_v40  ;;  %2511 = vmatpush.bf16.msrb.mxu2 %v3377_v7  ;;  %v3354_v40 = vld [vmem:[%s7263_s1 + $0x15c] sm:$0xf0]  ;;  %v4461_v7 = vld [vmem:[%s7263_s1 + $0x5fc] sm:$0xf] }
 0x130   :  { %v6102_v56 = vpop.f32.mrf.mxu2  ;;  %v2123_v54 = vpop.f32.mrf.mxu0  ;;  %2537 = vmatpush.bf16.msra.mxu3 %v3597_v29  ;;  %2592 = vmatpush.bf16.msra.mxu1 %v3977_v21  ;;  %v3357_v62 = vor.u32 %v4311_v60, %v3354_v40  ;;  %v3797_v29 = vor.u32 %v4421_v46, %v3794_v2  ;;  %v3957_v43 = vor.u32 %v4461_v7, %v3954_v20  ;;  %v4134_v60 = vld [vmem:[%s7263_s1 + $0x774] sm:$0xf0]  ;;  %v4361_v40 = vld [vmem:[%s7263_s1 + $0x2dc] sm:$0xf]  ;;  %v4416_v46 = vld [vmem:[%s7263_s1 + $0x494] sm:$0xf] }
 0x131   :  { %v7326_v2 = vld [vmem:[#allocation2_spill] sm:$0xff] }
 0x132   :  { %v6107_v55 = vpop.f32.mrf.mxu1  ;;  %2454 = vmatpush.bf16.msra.mxu0 %v4153_v27 }
 0x133   :  { %2325 = vmatmul.bf16.gmra.mxu3 %v7317_v39  ;;  %2354 = vmatmul.bf16.gmra.mxu0 %v7318_v15 }
 0x134   :  { %2512 = vmatpush.bf16.msrb.mxu2 %v3357_v62  ;;  %2593 = vmatpush.bf16.msra.mxu1 %v3957_v43  ;;  %v7324_v62 = vld [vmem:[#allocation14_spill] sm:$0xff]  ;;  %v3934_v43 = vld [vmem:[%s7263_s1 + $0x5e4] sm:$0xf0] }
 0x135   :  { %2378 = vmatmul.bf16.gmra.mxu1 %v7319_v1  ;;  %2402 = vmatmul.bf16.gmra.mxu2 %v7320_v5 }
 0x136   :  { %v2094_v16 = vpop.f32.mrf.mxu3 }
 0x137   :  { %v6125_v59 = vadd.f32 %v2123_v54, %v2094_v16  ;;  %v3817_v54 = vor.u32 %v4426_v30, %v3814_v3  ;;  %v4366_v16 = vld [vmem:[%s7263_s1 + $0x304] sm:$0xf] }
 0x138   :  { %v6127_v42 = vpop.f32.mrf.mxu2  ;;  %v2125_v47 = vpop.f32.mrf.mxu0  ;;  %v4506_v3 = vld [vmem:[%s7263_s1 + $0x764] sm:$0xf] }
 0x13a   :  { %v6129_v53 = vpop.f32.mrf.mxu1 }
 0x13e   :  { %v2096_v22 = vpop.f32.mrf.mxu3 }
 0x13f   :  { %v6161_v49 = vadd.f32 %v2125_v47, %v2096_v22  ;;  %v3574_v47 = vld [vmem:[%s7263_s1 + $0x314] sm:$0xf0] }
 0x140   :  { %v6163_v0 = vpop.f32.mrf.mxu2  ;;  %v6165_v27 = vpop.f32.mrf.mxu0  ;;  %v3577_v8 = vor.u32 %v4366_v16, %v3574_v47  ;;  %v6217_v16 = vor.u32 %v4506_v3, %v4134_v60  ;;  %v3554_v47 = vld [vmem:[%s7263_s1 + $0x2ec] sm:$0xf0] }
 0x141   :  { %v3557_v7 = vor.u32 %v4361_v40, %v3554_v47  ;;  %v2138_v40 = vadd.f32 %v6014_v44, %v5905_v63  ;;  %v3534_v63 = vld [vmem:[%s7263_s1 + $0x2c4] sm:$0xf0]  ;;  %v4411_v44 = vld [vmem:[%s7263_s1 + $0x46c] sm:$0xf] }
 0x142   :  { %v6167_v51 = vpop.f32.mrf.mxu1  ;;  %2538 = vmatpush.bf16.msra.mxu3 %v3577_v8  ;;  %v3774_v8 = vld [vmem:[%s7263_s1 + $0x4a4] sm:$0xf0]  ;;  %2621 = vmatpush.bf16.msra.mxu2 %v6217_v16 }
 0x143   :  { %2368 = vmatmul.bf16.vlgmr.msrb.gmra.mxu0 %v7321_v9  ;;  %2426 = vmatmul.bf16.vlgmr.msrb.gmra.mxu3 %v7322_v48  ;;  %v3777_v20 = vor.u32 %v4416_v46, %v3774_v8  ;;  %v2167_v8 = vadd.f32 %v6054_v10, %v2138_v40  ;;  %v3754_v10 = vld [vmem:[%s7263_s1 + $0x47c] sm:$0xf0] }
 0x144   :  { %2563 = vmatpush.bf16.msrb.mxu0 %v3817_v54  ;;  %v7325_v54 = vld [vmem:[#allocation11_spill] sm:$0xff] }
 0x145   :  { %2383 = vmatmul.bf16.gmra.mxu1 %v7323_v36  ;;  %2407 = vmatmul.bf16.gmra.mxu2 %v5201_v50  ;;  %v7328_v50 = vld [vmem:[#allocation17_spill] sm:$0xff] }
 0x146   :  { %v2195_v4 = vpop.f32.mrf.mxu3  ;;  %2539 = vmatpush.bf16.msra.mxu3 %v3557_v7  ;;  %v4114_v7 = vld [vmem:[%s7263_s1 + $0x74c] sm:$0xf0]  ;;  %v6292_v1 = vperm.slane %v7328_v50, 1 }
 0x148   :  { %v6173_v6 = vpop.f32.mrf.mxu2  ;;  %v6175_v41 = vpop.f32.mrf.mxu0  ;;  %2564 = vmatpush.bf16.msrb.mxu0 %v3797_v29  ;;  %v4456_v29 = vld [vmem:[%s7263_s1 + $0x5d4] sm:$0xf] }
 0x149   :  { %v3937_v3 = vor.u32 %v4456_v29, %v3934_v43  ;;  %v4501_v29 = vld [vmem:[%s7263_s1 + $0x73c] sm:$0xf] }
 0x14a   :  { %v6177_v31 = vpop.f32.mrf.mxu1  ;;  %v4117_v43 = vor.u32 %v4501_v29, %v4114_v7  ;;  %v3914_v29 = vld [vmem:[%s7263_s1 + $0x5bc] sm:$0xf0] }
 0x14b   :  { %2594 = vmatpush.bf16.msra.mxu1 %v3937_v3  ;;  %v2196_v3 = vadd.f32 %v2195_v4, %v2167_v8  ;;  %v4351_v4 = vld [vmem:[%s7263_s1 + $0x28c] sm:$0xf]  ;;  %v3514_v8 = vld [vmem:[%s7263_s1 + $0x29c] sm:$0xf0] }
 0x14c   :  { %2565 = vmatpush.bf16.msrb.mxu0 %v3777_v20  ;;  %v4356_v20 = vld [vmem:[%s7263_s1 + $0x2b4] sm:$0xf]  ;;  %2622 = vmatpush.bf16.msra.mxu2 %v4117_v43 }
 0x14d   :  { %v3537_v40 = vor.u32 %v4356_v20, %v3534_v63  ;;  %v2140_v20 = vadd.f32 %v6065_v38, %v5941_v45  ;;  %v4496_v45 = vld [vmem:[%s7263_s1 + $0x714] sm:$0xf]  ;;  %v4094_v38 = vld [vmem:[%s7263_s1 + $0x724] sm:$0xf0] }
 0x14e   :  { %v6197_v26 = vpop.f32.mrf.mxu3  ;;  %v4097_v50 = vor.u32 %v4496_v45, %v4094_v38  ;;  %v3874_v38 = vld [vmem:[%s7263_s1 + $0x56c] sm:$0xf0] }
 0x14f   :  { %2540 = vmatpush.bf16.msra.mxu3 %v3537_v40 }
 0x150   :  { %v6199_v30 = vpop.f32.mrf.mxu2  ;;  %v6201_v21 = vpop.f32.mrf.mxu0  ;;  %2623 = vmatpush.bf16.msra.mxu2 %v4097_v50 }
 0x152   :  { %v6203_v22 = vpop.f32.mrf.mxu1 }
 0x153   :  { %2431 = vmatmul.bf16.gmra.mxu3 %v7324_v62  ;;  %4230 = vmatmul.msk.bf16.vlgmr.msra.gmra.mxu0 %vm1854_vm0, %v7325_v54 }
 0x155   :  { %2412 = vmatmul.bf16.gmra.mxu2 %v5280_v35  ;;  %2484 = vmatmul.bf16.vlgmr.msrb.gmra.mxu1 %v7326_v2  ;;  %v3757_v2 = vor.u32 %v4411_v44, %v3754_v10  ;;  %v4451_v35 = vld [vmem:[%s7263_s1 + $0x5ac] sm:$0xf]  ;;  %v3517_v44 = vor.u32 %v4351_v4, %v3514_v8  ;;  %v2225_v10 = vadd.f32 %v6165_v27, %v2196_v3  ;;  %v4406_v27 = vld [vmem:[%s7263_s1 + $0x444] sm:$0xf]  ;;  %v3894_v4 = vld [vmem:[%s7263_s1 + $0x594] sm:$0xf0] }
 0x156   :  { %v6237_v60 = vpop.f32.mrf.mxu3  ;;  %v3917_v7 = vor.u32 %v4451_v35, %v3914_v29  ;;  %v2169_v29 = vadd.f32 %v6102_v56, %v2140_v20  ;;  %v7329_v3 = vld [vmem:[#allocation15_spill] sm:$0xff] }
 0x157   :  { %2566 = vmatpush.bf16.msrb.mxu0 %v3757_v2  ;;  %v7327_v2 = vld [vmem:[#allocation16_spill] sm:$0xff]  ;;  %2541 = vmatpush.bf16.msra.mxu3 %v3517_v44 }
 0x158   :  { %v6239_v54 = vpop.f32.mrf.mxu2  ;;  %v6243_v47 = vpop.f32.mrf.mxu0  ;;  %2595 = vmatpush.bf16.msra.mxu1 %v3917_v7  ;;  %v6288_v40 = vperm.slane %v7327_v2, 1  ;;  %v2198_v56 = vadd.f32 %v6197_v26, %v2169_v29  ;;  %v4446_v7 = vld [vmem:[%s7263_s1 + $0x584] sm:$0xf]  ;;  %v4401_v2 = vld [vmem:[%s7263_s1 + $0x41c] sm:$0xf] }
 0x159   :  { %v3897_v20 = vor.u32 %v4446_v7, %v3894_v4  ;;  %v4441_v29 = vld [vmem:[%s7263_s1 + $0x55c] sm:$0xf] }
 0x15a   :  { %v6245_v46 = vpop.f32.mrf.mxu1  ;;  %v2227_v4 = vadd.f32 %v6175_v41, %v2198_v56  ;;  %v3694_v41 = vld [vmem:[%s7263_s1 + $0x404] sm:$0xf0] }
 0x15b   :  { %4546 = vmatpush.bf16.msrb.mxu3 %v6217_v16 }
 0x15c   :  { %2596 = vmatpush.bf16.msra.mxu1 %v3897_v20 }
 0x15e   :  { %v6272_v36 = vpop.f32.mrf.mxu3 }
 0x15f   :  { %4547 = vmatpush.bf16.msrb.mxu3 %v4117_v43  ;;  %v4436_v43 = vld [vmem:[%s7263_s1 + $0x534] sm:$0xf] }
 0x160   :  { %v6282_v63 = vpop.f32.mrf.mxu2  ;;  %v6284_v35 = vpop.f32.mrf.mxu0 }
 0x162   :  { %v2253_v62 = vpop.f32.mrf.mxu1 }
 0x163   :  { %v2254_v15 = vadd.f32 %v2253_v62, %v2225_v10  ;;  %2436 = vmatmul.bf16.gmra.mxu3 %v7329_v3  ;;  %4231 = vmatmul.msk.bf16.gmra.mxu0 %vm1854_vm0, %v5284_v37  ;;  %v3734_v62 = vld [vmem:[%s7263_s1 + $0x454] sm:$0xf0] }
 0x164   :  { %v3737_v8 = vor.u32 %v4406_v27, %v3734_v62  ;;  %v2143_v27 = vadd.f32 %v6107_v55, %v5976_v34  ;;  %v4074_v34 = vld [vmem:[%s7263_s1 + $0x6fc] sm:$0xf0]  ;;  %4548 = vmatpush.bf16.msrb.mxu3 %v4097_v50 }
 0x165   :  { %v2895_v26 = vmul.f32 %v6288_v40, %v2254_v15  ;;  %2489 = vmatmul.bf16.gmra.mxu1 %v4896_v18  ;;  %2513 = vmatmul.bf16.vlgmr.msrb.gmra.mxu2 %v4789_v32  ;;  %v3714_v15 = vld [vmem:[%s7263_s1 + $0x42c] sm:$0xf0] }
 0x166   :  { %v6321_v10 = vpop.f32.mrf.mxu3  ;;  %2567 = vmatpush.bf16.msrb.mxu0 %v3737_v8  ;;  %v3717_v16 = vor.u32 %v4401_v2, %v3714_v15  ;;  %v2172_v20 = vadd.f32 %v6127_v42, %v2143_v27  ;;  %v4491_v15 = vld [vmem:[%s7263_s1 + $0x6ec] sm:$0xf]  ;;  %v4396_v42 = vld [vmem:[%s7263_s1 + $0x3f4] sm:$0xf] }
 0x167   :  { %v2947_v44 = vadd.f32 %v6292_v1, %v2895_v26  ;;  %v3877_v26 = vor.u32 %v4441_v29, %v3874_v38  ;;  %v4077_v55 = vor.u32 %v4491_v15, %v4074_v34  ;;  %v3697_v29 = vor.u32 %v4396_v42, %v3694_v41 }
 0x168   :  { %v6332_v45 = vpop.f32.mrf.mxu2  ;;  %v6339_v7 = vpop.f32.mrf.mxu0  ;;  %v2201_v56 = vadd.f32 %v6237_v60, %v2172_v20  ;;  %v3674_v60 = vld [vmem:[%s7263_s1 + $0x3dc] sm:$0xf0] }
 0x169   :  { %v2987_v62 = vmax.f32 %v2947_v44, 0.0  ;;  %2597 = vmatpush.bf16.msra.mxu1 %v3877_v26  ;;  %2624 = vmatpush.bf16.msra.mxu2 %v4077_v55  ;;  %v4431_v26 = vld [vmem:[%s7263_s1 + $0x50c] sm:$0xf]  ;;  %v3834_v20 = vld [vmem:[%s7263_s1 + $0x51c] sm:$0xf0] }
 0x16a   :  { %v2255_v8 = vpop.f32.mrf.mxu1  ;;  %2568 = vmatpush.bf16.msrb.mxu0 %v3717_v16  ;;  %v3854_v16 = vld [vmem:[%s7263_s1 + $0x544] sm:$0xf0]  ;;  %v2230_v42 = vadd.f32 %v6201_v21, %v2201_v56  ;;  %4549 = vmatpush.bf16.msrb.mxu3 %v4077_v55 }
 0x16b   :  { %3027 = vst [vmem:[%s7267_s4 + $0x8] sm:$0xff] %v2987_v62  ;;  %v2256_v2 = vadd.f32 %v2255_v8, %v2227_v4  ;;  %v3857_v38 = vor.u32 %v4436_v43, %v3854_v16  ;;  %v4391_v4 = vld [vmem:[%s7263_s1 + $0x3cc] sm:$0xf]  ;;  %v3837_v43 = vor.u32 %v4431_v26, %v3834_v20  ;;  %v4486_v16 = vld [vmem:[%s7263_s1 + $0x6c4] sm:$0xf] }
 0x16c   :  { %v3677_v50 = vor.u32 %v4391_v4, %v3674_v60  ;;  %v2148_v60 = vadd.f32 %v6167_v51, %v6052_v52  ;;  %v4014_v52 = vld [vmem:[%s7263_s1 + $0x684] sm:$0xf0] }
 0x16d   :  { %v2900_v44 = vmul.f32 %v6288_v40, %v2256_v2  ;;  %2598 = vmatpush.bf16.msra.mxu1 %v3857_v38  ;;  %v2145_v2 = vadd.f32 %v6129_v53, %v6009_v25  ;;  %v4054_v25 = vld [vmem:[%s7263_s1 + $0x6d4] sm:$0xf0]  ;;  %v4481_v38 = vld [vmem:[%s7263_s1 + $0x69c] sm:$0xf] }
 0x16e   :  { %v6367_v62 = vpop.f32.mrf.mxu3  ;;  %2569 = vmatpush.bf16.msrb.mxu0 %v3697_v29  ;;  %v4057_v53 = vor.u32 %v4486_v16, %v4054_v25  ;;  %v3994_v16 = vld [vmem:[%s7263_s1 + $0x65c] sm:$0xf0] }
 0x16f   :  { %v2952_v27 = vadd.f32 %v6292_v1, %v2900_v44  ;;  %v2174_v44 = vadd.f32 %v6163_v0, %v2145_v2 }
 0x170   :  { %v6378_v8 = vpop.f32.mrf.mxu2  ;;  %v6385_v34 = vpop.f32.mrf.mxu0  ;;  %2625 = vmatpush.bf16.msra.mxu2 %v4057_v53  ;;  %4550 = vmatpush.bf16.msrb.mxu3 %v4057_v53 }
 0x171   :  { %v2992_v15 = vmax.f32 %v2952_v27, 0.0  ;;  %v2203_v0 = vadd.f32 %v6272_v36, %v2174_v44  ;;  %2599 = vmatpush.bf16.msra.mxu1 %v3837_v43  ;;  %v4034_v36 = vld [vmem:[%s7263_s1 + $0x6ac] sm:$0xf0] }
 0x172   :  { %v2258_v41 = vpop.f32.mrf.mxu1  ;;  %2570 = vmatpush.bf16.msrb.mxu0 %v3677_v50  ;;  %v4037_v4 = vor.u32 %v4481_v38, %v4034_v36 }
 0x173   :  { %3032 = vst [vmem:[%s7267_s4 + $0x30] sm:$0xff] %v2992_v15  ;;  %v2259_v29 = vadd.f32 %v2258_v41, %v2230_v42  ;;  %2441 = vmatmul.bf16.gmra.mxu3 %v5414_v57  ;;  %4232 = vmatmul.msk.bf16.gmra.mxu0 %vm1854_vm0, %v5359_v17  ;;  %v2232_v20 = vadd.f32 %v6243_v47, %v2203_v0  ;;  %v4476_v41 = vld [vmem:[%s7263_s1 + $0x674] sm:$0xf] }
 0x174   :  { %2626 = vmatpush.bf16.msra.mxu2 %v4037_v4  ;;  %v2177_v15 = vadd.f32 %v6173_v6, %v2148_v60  ;;  %4551 = vmatpush.bf16.msrb.mxu3 %v4037_v4  ;;  %v4017_v51 = vor.u32 %v4476_v41, %v4014_v52  ;;  %v3340_v60 = vld [vmem:[%s7263_s1 + $0x128] sm:$0xf]  ;;  %v3480_v41 = vld [vmem:[%s7263_s1 + $0x240] sm:$0xf]  ;;  %v4344_v52 = vld [vmem:[%s7263_s1 + $0x250] sm:$0xf0] }
 0x175   :  { %v2905_v21 = vmul.f32 %v6288_v40, %v2259_v29  ;;  %2494 = vmatmul.bf16.gmra.mxu1 %v4778_v28  ;;  %2518 = vmatmul.bf16.gmra.mxu2 %v4909_v23  ;;  %v4471_v29 = vld [vmem:[%s7263_s1 + $0x64c] sm:$0xf] }
 0x176   :  { %v6406_v56 = vpop.f32.mrf.mxu3  ;;  %v2206_v47 = vadd.f32 %v6321_v10, %v2177_v15  ;;  %v3997_v53 = vor.u32 %v4471_v29, %v3994_v16  ;;  %v2150_v10 = vadd.f32 %v6177_v31, %v6100_v11  ;;  %v4309_v11 = vld [vmem:[%s7263_s1 + $0x138] sm:$0xf0]  ;;  %v3320_v15 = vld [vmem:[%s7263_s1 + $0x100] sm:$0xf]  ;;  %v2153_v16 = vadd.f32 %v6203_v22, %v6125_v59  ;;  %v3660_v59 = vld [vmem:[%s7263_s1 + $0x3a8] sm:$0xf] }
 0x177   :  { %v2957_v55 = vadd.f32 %v6292_v1, %v2905_v21  ;;  %v3341_v31 = vor.u32 %v4309_v11, %v3340_v60  ;;  %v4389_v22 = vld [vmem:[%s7263_s1 + $0x3b8] sm:$0xf0] }
 0x178   :  { %v6414_v27 = vpop.f32.mrf.mxu2  ;;  %v6418_v50 = vpop.f32.mrf.mxu0  ;;  %2627 = vmatpush.bf16.msra.mxu2 %v4017_v51  ;;  %4552 = vmatpush.bf16.msrb.mxu3 %v4017_v51  ;;  %v2235_v21 = vadd.f32 %v6284_v35, %v2206_v47  ;;  %v2179_v36 = vadd.f32 %v6199_v30, %v2150_v10  ;;  %v3500_v30 = vld [vmem:[%s7263_s1 + $0x268] sm:$0xf]  ;;  %v4349_v35 = vld [vmem:[%s7263_s1 + $0x278] sm:$0xf0] }
 0x179   :  { %v2997_v26 = vmax.f32 %v2957_v55, 0.0  ;;  %2679 = vmatpush.bf16.msra.mxu0 %v3341_v31 }
 0x17a   :  { %v2260_v2 = vpop.f32.mrf.mxu1 }
 0x17b   :  { %3037 = vst [vmem:[%s7267_s4 + $0x58] sm:$0xff] %v2997_v26  ;;  %v2261_v42 = vadd.f32 %v2260_v2, %v2232_v20  ;;  %v2208_v26 = vadd.f32 %v6367_v62, %v2179_v36  ;;  %v3501_v2 = vor.u32 %v4349_v35, %v3500_v30  ;;  %v2182_v36 = vadd.f32 %v6239_v54, %v2153_v16  ;;  %v4299_v54 = vld [vmem:[%s7263_s1 + $0xe8] sm:$0xf0] }
 0x17c   :  { %2628 = vmatpush.bf16.msra.mxu2 %v3997_v53  ;;  %4553 = vmatpush.bf16.msrb.mxu3 %v3997_v53  ;;  %v4339_v30 = vld [vmem:[%s7263_s1 + $0x228] sm:$0xf0] }
 0x17d   :  { %v2910_v43 = vmul.f32 %v6288_v40, %v2261_v42  ;;  %v4304_v42 = vld [vmem:[%s7263_s1 + $0x110] sm:$0xf0]  ;;  %2708 = vmatpush.bf16.msrb.mxu1 %v3501_v2  ;;  %v2237_v10 = vadd.f32 %v6339_v7, %v2208_v26  ;;  %v3300_v7 = vld [vmem:[%s7263_s1 + $0xd8] sm:$0xf]  ;;  %v2211_v60 = vadd.f32 %v6406_v56, %v2182_v36  ;;  %v3640_v56 = vld [vmem:[%s7263_s1 + $0x380] sm:$0xf] }
 0x17e   :  { %v6434_v44 = vpop.f32.mrf.mxu3  ;;  %v3321_v62 = vor.u32 %v4304_v42, %v3320_v15  ;;  %v3301_v31 = vor.u32 %v4299_v54, %v3300_v7  ;;  %v4384_v42 = vld [vmem:[%s7263_s1 + $0x390] sm:$0xf0] }
 0x17f   :  { %v2962_v6 = vadd.f32 %v6292_v1, %v2910_v43  ;;  %v3481_v43 = vor.u32 %v4344_v52, %v3480_v41  ;;  %v2155_v41 = vadd.f32 %v6245_v46, %v6161_v49  ;;  %v2240_v52 = vadd.f32 %v6385_v34, %v2211_v60  ;;  %v4294_v34 = vld [vmem:[%s7263_s1 + $0xc0] sm:$0xf0] }
 0x180   :  { %v6442_v25 = vpop.f32.mrf.mxu2  ;;  %v2340_v55 = vpop.f32.mrf.mxu0  ;;  %2680 = vmatpush.bf16.msra.mxu0 %v3321_v62 }
 0x181   :  { %v3002_v0 = vmax.f32 %v2962_v6, 0.0  ;;  %2709 = vmatpush.bf16.msrb.mxu1 %v3481_v43 }
 0x182   :  { %v2263_v38 = vpop.f32.mrf.mxu1 }
 0x183   :  { %3042 = vst [vmem:[%s7267_s4 + $0x80] sm:$0xff] %v3002_v0  ;;  %v2264_v4 = vadd.f32 %v2263_v38, %v2235_v21  ;;  %4233 = vmatmul.msk.bf16.gmra.mxu0 %vm1854_vm0, %v5416_v58  ;;  %2542 = vmatmul.bf16.vlgmr.msra.gmra.mxu3 %v4791_v33 }
 0x184   :  { %2681 = vmatpush.bf16.msra.mxu0 %v3301_v31 }
 0x185   :  { %v2915_v20 = vmul.f32 %v6288_v40, %v2264_v4  ;;  %2499 = vmatmul.bf16.gmra.mxu1 %v4898_v19  ;;  %2523 = vmatmul.bf16.gmra.mxu2 %v5017_v12 }
 0x186   :  { %v2311_v47 = vpop.f32.mrf.mxu3 }
 0x187   :  { %v2967_v51 = vadd.f32 %v6292_v1, %v2915_v20  ;;  %v2312_v29 = vadd.f32 %v2311_v47, %v6332_v45  ;;  %v3661_v45 = vor.u32 %v4389_v22, %v3660_v59  ;;  %v3641_v47 = vor.u32 %v4384_v42, %v3640_v56 }
 0x188   :  { %v6483_v6 = vpop.f32.mrf.mxu2  ;;  %v2342_v0 = vpop.f32.mrf.mxu0 }
 0x189   :  { %v3007_v53 = vmax.f32 %v2967_v51, 0.0  ;;  %v6489_v38 = vadd.f32 %v2340_v55, %v2312_v29  ;;  %v3460_v55 = vld [vmem:[%s7263_s1 + $0x218] sm:$0xf]  ;;  %2737 = vmatpush.bf16.msrb.mxu2 %v3661_v45 }
 0x18a   :  { %v2265_v21 = vpop.f32.mrf.mxu1  ;;  %v3461_v35 = vor.u32 %v4339_v30, %v3460_v55 }
 0x18b   :  { %3047 = vst [vmem:[%s7267_s4 + $0xa8] sm:$0xff] %v3007_v53  ;;  %v2266_v4 = vadd.f32 %v2265_v21, %v2237_v10  ;;  %v3440_v53 = vld [vmem:[%s7263_s1 + $0x1f0] sm:$0xf]  ;;  %v4379_v21 = vld [vmem:[%s7263_s1 + $0x368] sm:$0xf0] }
 0x18c   :  { %2710 = vmatpush.bf16.msrb.mxu1 %v3461_v35  ;;  %v3260_v35 = vld [vmem:[%s7263_s1 + $0x88] sm:$0xf] }
 0x18d   :  { %v2920_v11 = vmul.f32 %v6288_v40, %v2266_v4  ;;  %2738 = vmatpush.bf16.msrb.mxu2 %v3641_v47 }
 0x18e   :  { %v2313_v20 = vpop.f32.mrf.mxu3 }
 0x18f   :  { %v2972_v26 = vadd.f32 %v6292_v1, %v2920_v11  ;;  %v2314_v15 = vadd.f32 %v2313_v20, %v6378_v8  ;;  %v2184_v8 = vadd.f32 %v6282_v63, %v2155_v41  ;;  %v3280_v63 = vld [vmem:[%s7263_s1 + $0xb0] sm:$0xf]  ;;  %v4374_v20 = vld [vmem:[%s7263_s1 + $0x340] sm:$0xf0]  ;;  %v4329_v41 = vld [vmem:[%s7263_s1 + $0x1d8] sm:$0xf0] }
 0x190   :  { %v6516_v2 = vpop.f32.mrf.mxu2  ;;  %v2345_v51 = vpop.f32.mrf.mxu0  ;;  %v3281_v10 = vor.u32 %v4294_v34, %v3280_v63  ;;  %v4526_v63 = vld [vmem:[%s7263_s1 + $0x804] sm:$0xf]  ;;  %v4214_v34 = vld [vmem:[%s7263_s1 + $0x814] sm:$0xf0] }
 0x191   :  { %v3012_v62 = vmax.f32 %v2972_v26, 0.0  ;;  %v6528_v29 = vadd.f32 %v2342_v0, %v2314_v15  ;;  %v2213_v49 = vadd.f32 %v6434_v44, %v2184_v8  ;;  %v4334_v44 = vld [vmem:[%s7263_s1 + $0x200] sm:$0xf0]  ;;  %v3620_v0 = vld [vmem:[%s7263_s1 + $0x358] sm:$0xf] }
 0x192   :  { %v2268_v43 = vpop.f32.mrf.mxu1  ;;  %v3441_v59 = vor.u32 %v4334_v44, %v3440_v53  ;;  %v3621_v22 = vor.u32 %v4379_v21, %v3620_v0  ;;  %2682 = vmatpush.bf16.msra.mxu0 %v3281_v10  ;;  %v3600_v26 = vld [vmem:[%s7263_s1 + $0x330] sm:$0xf]  ;;  %v3420_v15 = vld [vmem:[%s7263_s1 + $0x1c8] sm:$0xf]  ;;  %v4217_v53 = vor.u32 %v4526_v63, %v4214_v34  ;;  %v3240_v10 = vld [vmem:[%s7263_s1 + $0x60] sm:$0xf] }
 0x193   :  { %3052 = vst [vmem:[%s7267_s4 + $0xd0] sm:$0xff] %v3012_v62  ;;  %v2269_v16 = vadd.f32 %v2268_v43, %v2240_v52  ;;  %2547 = vmatmul.bf16.gmra.mxu3 %v4911_v24  ;;  %2571 = vmatmul.bf16.vlgmr.msrb.gmra.mxu0 %v7321_v9  ;;  %v2242_v55 = vadd.f32 %v6418_v50, %v2213_v49  ;;  %v4284_v44 = vld [vmem:[%s7263_s1 + $0x70] sm:$0xf0]  ;;  %v3400_v0 = vld [vmem:[%s7263_s1 + $0x1a0] sm:$0xf] }
 0x194   :  { %2711 = vmatpush.bf16.msrb.mxu1 %v3441_v59  ;;  %2739 = vmatpush.bf16.msrb.mxu2 %v3621_v22  ;;  %v3601_v42 = vor.u32 %v4374_v20, %v3600_v26  ;;  %v3421_v62 = vor.u32 %v4329_v41, %v3420_v15  ;;  %v3241_v21 = vor.u32 %v4284_v44, %v3240_v10  ;;  %v4521_v22 = vld [vmem:[%s7263_s1 + $0x7dc] sm:$0xf]  ;;  %v4174_v20 = vld [vmem:[%s7263_s1 + $0x7c4] sm:$0xf0]  ;;  %v3220_v15 = vld [vmem:[%s7263_s1 + $0x38] sm:$0xf] }
 0x195   :  { %v2925_v46 = vmul.f32 %v6288_v40, %v2269_v16  ;;  %2528 = vmatmul.bf16.gmra.mxu2 %v7317_v39  ;;  %2600 = vmatmul.bf16.vlgmr.msra.gmra.mxu1 %v7316_v14  ;;  %v3380_v41 = vld [vmem:[%s7263_s1 + $0x178] sm:$0xf]  ;;  %v3200_v63 = vld [vmem:[%s7263_s1 + $0x10] sm:$0xf]  ;;  %v4274_v44 = vld [vmem:[%s7263_s1 + $0x20] sm:$0xf0] }
 0x196   :  { %v2316_v4 = vpop.f32.mrf.mxu3  ;;  %2654 = vmatpush.bf16.msra.mxu3 %v4217_v53 }
 0x197   :  { %v2977_v36 = vadd.f32 %v6292_v1, %v2925_v46  ;;  %v2317_v7 = vadd.f32 %v2316_v4, %v6414_v27  ;;  %v4289_v27 = vld [vmem:[%s7263_s1 + $0x98] sm:$0xf0] }
 0x198   :  { %v6559_v45 = vpop.f32.mrf.mxu2  ;;  %v2347_v60 = vpop.f32.mrf.mxu0  ;;  %v3261_v50 = vor.u32 %v4289_v27, %v3260_v35  ;;  %2740 = vmatpush.bf16.msrb.mxu2 %v3601_v42  ;;  %2712 = vmatpush.bf16.msrb.mxu1 %v3421_v62  ;;  %v4369_v46 = vld [vmem:[%s7263_s1 + $0x318] sm:$0xf0]  ;;  %v4279_v42 = vld [vmem:[%s7263_s1 + $0x48] sm:$0xf0] }
 0x199   :  { %v3017_v54 = vmax.f32 %v2977_v36, 0.0  ;;  %v6563_v31 = vadd.f32 %v2345_v51, %v2317_v7  ;;  %v4324_v36 = vld [vmem:[%s7263_s1 + $0x1b0] sm:$0xf0]  ;;  %v4194_v7 = vld [vmem:[%s7263_s1 + $0x7ec] sm:$0xf0] }
 0x19a   :  { %v2270_v11 = vpop.f32.mrf.mxu1  ;;  %2683 = vmatpush.bf16.msra.mxu0 %v3261_v50  ;;  %v3401_v59 = vor.u32 %v4324_v36, %v3400_v0  ;;  %v4319_v62 = vld [vmem:[%s7263_s1 + $0x188] sm:$0xf0]  ;;  %v3360_v0 = vld [vmem:[%s7263_s1 + $0x150] sm:$0xf] }
 0x19b   :  { %3057 = vst [vmem:[%s7267_s4 + $0xf8] sm:$0xff] %v3017_v54  ;;  %v2271_v30 = vadd.f32 %v2270_v11, %v2242_v55  ;;  %v3560_v54 = vld [vmem:[%s7263_s1 + $0x2e0] sm:$0xf]  ;;  %v4197_v11 = vor.u32 %v4521_v22, %v4194_v7 }
 0x19c   :  { %2713 = vmatpush.bf16.msrb.mxu1 %v3401_v59  ;;  %v4354_v59 = vld [vmem:[%s7263_s1 + $0x2a0] sm:$0xf0] }
 0x19d   :  { %v2930_v56 = vmul.f32 %v6288_v40, %v2271_v30  ;;  %v4364_v30 = vld [vmem:[%s7263_s1 + $0x2f0] sm:$0xf0]  ;;  %2655 = vmatpush.bf16.msra.mxu3 %v4197_v11  ;;  %v7330_v11 = vld [vmem:[#allocation7_spill] sm:$0xff] }
 0x19e   :  { %v2318_v51 = vpop.f32.mrf.mxu3  ;;  %2684 = vmatpush.bf16.msra.mxu0 %v3241_v21  ;;  %v3561_v27 = vor.u32 %v4364_v30, %v3560_v54  ;;  %v4314_v21 = vld [vmem:[%s7263_s1 + $0x160] sm:$0xf0]  ;;  %v7331_v30 = vld [vmem:[#allocation8_spill] sm:$0xff] }
 0x19f   :  { %v2982_v52 = vadd.f32 %v6292_v1, %v2930_v56  ;;  %v2319_v43 = vadd.f32 %v2318_v51, %v6442_v25  ;;  %v3580_v1 = vld [vmem:[%s7263_s1 + $0x308] sm:$0xf]  ;;  %v3381_v51 = vor.u32 %v4319_v62, %v3380_v41  ;;  %v3361_v54 = vor.u32 %v4314_v21, %v3360_v0  ;;  %v4469_v0 = vld [vmem:[%s7263_s1 + $0x638] sm:$0xf0]  ;;  %v7334_v21 = vld [vmem:[#allocation12_spill] sm:$0xff] }
 0x1a0   :  { %v6588_v47 = vpop.f32.mrf.mxu2  ;;  %v2350_v16 = vpop.f32.mrf.mxu0  ;;  %v3581_v25 = vor.u32 %v4369_v46, %v3580_v1  ;;  %v4511_v46 = vld [vmem:[%s7263_s1 + $0x78c] sm:$0xf] }
 0x1a1   :  { %v3022_v8 = vmax.f32 %v2982_v52, 0.0  ;;  %v6593_v40 = vadd.f32 %v2347_v60, %v2319_v43  ;;  %v3221_v52 = vor.u32 %v4279_v42, %v3220_v15  ;;  %v3540_v43 = vld [vmem:[%s7263_s1 + $0x2b8] sm:$0xf]  ;;  %2714 = vmatpush.bf16.msrb.mxu1 %v3381_v51  ;;  %v4429_v51 = vld [vmem:[%s7263_s1 + $0x4f8] sm:$0xf0] }
 0x1a2   :  { %v6591_v49 = vpop.f32.mrf.mxu1  ;;  %2741 = vmatpush.bf16.msrb.mxu2 %v3581_v25  ;;  %v4154_v25 = vld [vmem:[%s7263_s1 + $0x79c] sm:$0xf0] }
 0x1a3   :  { %3062 = vst [vmem:[%s7267_s4 + $0x120] sm:$0xff] %v3022_v8  ;;  %2552 = vmatmul.bf16.gmra.mxu3 %v5019_v13  ;;  %2576 = vmatmul.bf16.gmra.mxu0 %v5109_v61  ;;  %v4359_v8 = vld [vmem:[%s7263_s1 + $0x2c8] sm:$0xf0]  ;;  %v4157_v10 = vor.u32 %v4511_v46, %v4154_v25  ;;  %v4220_v25 = vld [vmem:[%s7263_s1 + $0x808] sm:$0xf] }
 0x1a4   :  { %2685 = vmatpush.bf16.msra.mxu0 %v3221_v52  ;;  %v3820_v52 = vld [vmem:[%s7263_s1 + $0x4e8] sm:$0xf] }
 0x1a5   :  { %2605 = vmatmul.bf16.gmra.mxu1 %v7320_v5  ;;  %2629 = vmatmul.bf16.vlgmr.msra.gmra.mxu2 %v7322_v48  ;;  %v3821_v46 = vor.u32 %v4429_v51, %v3820_v52  ;;  %v3780_v51 = vld [vmem:[%s7263_s1 + $0x498] sm:$0xf] }
 0x1a6   :  { %v2321_v4 = vpop.f32.mrf.mxu3  ;;  %2742 = vmatpush.bf16.msrb.mxu2 %v3561_v27  ;;  %v7332_v27 = vld [vmem:[#allocation9_spill] sm:$0xff]  ;;  %2715 = vmatpush.bf16.msrb.mxu1 %v3361_v54 }
 0x1a7   :  { %v2322_v55 = vadd.f32 %v2321_v4, %v6483_v6  ;;  %v4516_v6 = vld [vmem:[%s7263_s1 + $0x7b4] sm:$0xf]  ;;  %v3201_v4 = vor.u32 %v4274_v44, %v3200_v63  ;;  %v4529_v63 = vld [vmem:[%s7263_s1 + $0x818] sm:$0xf0]  ;;  %v3980_v44 = vld [vmem:[%s7263_s1 + $0x628] sm:$0xf] }
 0x1a8   :  { %v6636_v60 = vpop.f32.mrf.mxu2  ;;  %v2352_v35 = vpop.f32.mrf.mxu0  ;;  %v4177_v56 = vor.u32 %v4516_v6, %v4174_v20  ;;  %v7333_v6 = vld [vmem:[#allocation14_spill] sm:$0xff] }
 0x1a9   :  { %v6643_v26 = vadd.f32 %v2350_v16, %v2322_v55  ;;  %v3541_v16 = vor.u32 %v4359_v8, %v3540_v43  ;;  %2686 = vmatpush.bf16.msra.mxu0 %v3201_v4  ;;  %v4140_v4 = vld [vmem:[%s7263_s1 + $0x768] sm:$0xf] }
 0x1aa   :  { %v6641_v50 = vpop.f32.mrf.mxu1  ;;  %2656 = vmatpush.bf16.msra.mxu3 %v4177_v56 }
 0x1ab   :  { %2743 = vmatpush.bf16.msrb.mxu2 %v3541_v16 }
 0x1ae   :  { %v2323_v1 = vpop.f32.mrf.mxu3  ;;  %2657 = vmatpush.bf16.msra.mxu3 %v4157_v10  ;;  %v4424_v10 = vld [vmem:[%s7263_s1 + $0x4d0] sm:$0xf0] }
 0x1af   :  { %v2324_v34 = vadd.f32 %v2323_v1, %v6516_v2  ;;  %v3520_v2 = vld [vmem:[%s7263_s1 + $0x290] sm:$0xf] }
 0x1b0   :  { %v6679_v53 = vpop.f32.mrf.mxu2  ;;  %v2355_v36 = vpop.f32.mrf.mxu0  ;;  %v3521_v55 = vor.u32 %v4354_v59, %v3520_v2  ;;  %v4509_v2 = vld [vmem:[%s7263_s1 + $0x778] sm:$0xf0] }
 0x1b1   :  { %v6698_v7 = vadd.f32 %v2352_v35, %v2324_v34  ;;  %v4221_v34 = vor.u32 %v4529_v63, %v4220_v25  ;;  %v7335_v59 = vld [vmem:[#allocation13_spill] sm:$0xff]  ;;  %v4141_v54 = vor.u32 %v4509_v2, %v4140_v4  ;;  %v4504_v63 = vld [vmem:[%s7263_s1 + $0x750] sm:$0xf0]  ;;  %v6781_v4 = vld [vmem:[%s7265_s2] sm:$0x1f] }
 0x1b2   :  { %v6696_v22 = vpop.f32.mrf.mxu1  ;;  %2744 = vmatpush.bf16.msrb.mxu2 %v3521_v55  ;;  %v6784_v2 = vperm.slane %v6781_v4, 2 }
 0x1b3   :  { %2557 = vmatmul.bf16.gmra.mxu3 %v7330_v11  ;;  %2581 = vmatmul.bf16.gmra.mxu0 %v7331_v30 }
 0x1b4   :  { %2824 = vmatpush.bf16.msra.mxu1 %v4141_v54 }
 0x1b5   :  { %2610 = vmatmul.bf16.gmra.mxu1 %v7332_v27  ;;  %2634 = vmatmul.bf16.gmra.mxu2 %v7333_v6 }
 0x1b6   :  { %v2326_v20 = vpop.f32.mrf.mxu3  ;;  %2857 = vmatpush.bf16.msra.mxu2 %v4221_v34 }
 0x1b7   :  { %v2327_v15 = vadd.f32 %v2326_v20, %v6559_v45 }
 0x1b8   :  { %v6705_v56 = vpop.f32.mrf.mxu2  ;;  %v2357_v35 = vpop.f32.mrf.mxu0 }
 0x1b9   :  { %v6709_v41 = vadd.f32 %v2355_v36, %v2327_v15  ;;  %v3981_v36 = vor.u32 %v4469_v0, %v3980_v44 }
 0x1ba   :  { %v6707_v42 = vpop.f32.mrf.mxu1 }
 0x1bb   :  { %2795 = vmatpush.bf16.msrb.mxu0 %v3981_v36 }
 0x1be   :  { %v2328_v62 = vpop.f32.mrf.mxu3 }
 0x1bf   :  { %v2329_v43 = vadd.f32 %v2328_v62, %v6588_v47  ;;  %v3800_v47 = vld [vmem:[%s7263_s1 + $0x4c0] sm:$0xf] }
 0x1c0   :  { %v6718_v8 = vpop.f32.mrf.mxu2  ;;  %v2369_v45 = vpop.f32.mrf.mxu0  ;;  %v3801_v55 = vor.u32 %v4424_v10, %v3800_v47 }
 0x1c1   :  { %v6722_v1 = vadd.f32 %v2357_v35, %v2329_v43  ;;  %v2370_v62 = vadd.f32 %v2369_v45, %v6489_v38  ;;  %v4419_v43 = vld [vmem:[%s7263_s1 + $0x4a8] sm:$0xf0]  ;;  %v4464_v38 = vld [vmem:[%s7263_s1 + $0x610] sm:$0xf0]  ;;  %v4120_v45 = vld [vmem:[%s7263_s1 + $0x740] sm:$0xf] }
 0x1c2   :  { %v6720_v16 = vpop.f32.mrf.mxu1  ;;  %v3781_v25 = vor.u32 %v4419_v43, %v3780_v51  ;;  %v4121_v34 = vor.u32 %v4504_v63, %v4120_v45  ;;  %v4200_v43 = vld [vmem:[%s7263_s1 + $0x7e0] sm:$0xf]  ;;  %v4459_v45 = vld [vmem:[%s7263_s1 + $0x5e8] sm:$0xf0] }
 0x1c3   :  { %2586 = vmatmul.bf16.gmra.mxu0 %v7334_v21  ;;  %2644 = vmatmul.bf16.vlgmr.msrb.gmra.mxu3 %v5414_v57  ;;  %v2399_v10 = vadd.f32 %v6636_v60, %v2370_v62  ;;  %v6789_v60 = vld [vmem:[%s7266_s3] sm:$0x1f] }
 0x1c4   :  { %2766 = vmatpush.bf16.msrb.mxu3 %v3821_v46  ;;  %v3960_v46 = vld [vmem:[%s7263_s1 + $0x600] sm:$0xf]  ;;  %2825 = vmatpush.bf16.msra.mxu1 %v4121_v34  ;;  %7336 = vst [vmem:[#allocation4_spill] sm:$0xff] %v6789_v60 }
 0x1c5   :  { %2615 = vmatmul.bf16.gmra.mxu1 %v7335_v59  ;;  %2639 = vmatmul.bf16.gmra.mxu2 %v7329_v3  ;;  %v3961_v47 = vor.u32 %v4464_v38, %v3960_v46  ;;  %v4524_v46 = vld [vmem:[%s7263_s1 + $0x7f0] sm:$0xf0]  ;;  %v7338_v34 = vld [vmem:[#allocation2_spill] sm:$0xff] }
 0x1c6   :  { %v2427_v20 = vpop.f32.mrf.mxu3  ;;  %v4201_v38 = vor.u32 %v4524_v46, %v4200_v43  ;;  %v4499_v43 = vld [vmem:[%s7263_s1 + $0x728] sm:$0xf0] }
 0x1c7   :  { %2796 = vmatpush.bf16.msrb.mxu0 %v3961_v47  ;;  %v2428_v0 = vadd.f32 %v2427_v20, %v2399_v10  ;;  %v7337_v47 = vld [vmem:[#allocation11_spill] sm:$0xff] }
 0x1c8   :  { %v6752_v15 = vpop.f32.mrf.mxu2  ;;  %v2371_v35 = vpop.f32.mrf.mxu0  ;;  %2767 = vmatpush.bf16.msrb.mxu3 %v3801_v55  ;;  %v6792_v55 = vperm.slane %v6789_v60, 2  ;;  %2858 = vmatpush.bf16.msra.mxu2 %v4201_v38  ;;  %v4454_v38 = vld [vmem:[%s7263_s1 + $0x5c0] sm:$0xf0] }
 0x1c9   :  { %v2372_v20 = vadd.f32 %v2371_v35, %v6528_v29  ;;  %v4414_v29 = vld [vmem:[%s7263_s1 + $0x480] sm:$0xf0]  ;;  %v3940_v35 = vld [vmem:[%s7263_s1 + $0x5d8] sm:$0xf] }
 0x1ca   :  { %v6755_v52 = vpop.f32.mrf.mxu1 }
 0x1cb   :  { %v2401_v46 = vadd.f32 %v6679_v53, %v2372_v20  ;;  %v3740_v53 = vld [vmem:[%s7263_s1 + $0x448] sm:$0xf]  ;;  %v4409_v20 = vld [vmem:[%s7263_s1 + $0x458] sm:$0xf0] }
 0x1cc   :  { %2768 = vmatpush.bf16.msrb.mxu3 %v3781_v25  ;;  %v3760_v25 = vld [vmem:[%s7263_s1 + $0x470] sm:$0xf] }
 0x1cd   :  { %v3761_v10 = vor.u32 %v4414_v29, %v3760_v25 }
 0x1ce   :  { %v2429_v44 = vpop.f32.mrf.mxu3 }
 0x1cf   :  { %v2430_v29 = vadd.f32 %v2429_v44, %v2401_v46  ;;  %v3741_v44 = vor.u32 %v4409_v20, %v3740_v53 }
 0x1d0   :  { %v6776_v36 = vpop.f32.mrf.mxu2  ;;  %v2456_v54 = vpop.f32.mrf.mxu0  ;;  %2769 = vmatpush.bf16.msrb.mxu3 %v3761_v10  ;;  %v2375_v10 = vadd.f32 %v6591_v49, %v6563_v31 }
 0x1d1   :  { %v2457_v62 = vadd.f32 %v2456_v54, %v2428_v0  ;;  %v3941_v0 = vor.u32 %v4459_v45, %v3940_v35  ;;  %v4100_v54 = vld [vmem:[%s7263_s1 + $0x718] sm:$0xf] }
 0x1d2   :  { %v6795_v51 = vpop.f32.mrf.mxu1  ;;  %v2404_v46 = vadd.f32 %v6705_v56, %v2375_v10  ;;  %v4180_v56 = vld [vmem:[%s7263_s1 + $0x7b8] sm:$0xf]  ;;  %v2377_v10 = vadd.f32 %v6641_v50, %v6593_v40  ;;  %v4489_v40 = vld [vmem:[%s7263_s1 + $0x6d8] sm:$0xf0] }
 0x1d3   :  { %v2896_v63 = vmul.f32 %v6784_v2, %v2457_v62  ;;  %4234 = vmatmul.msk.bf16.vlgmr.msra.gmra.mxu3 %vm1854_vm0, %v7337_v47  ;;  %2687 = vmatmul.bf16.vlgmr.msra.gmra.mxu0 %v7338_v34  ;;  %v4101_v62 = vor.u32 %v4499_v43, %v4100_v54  ;;  %v4494_v43 = vld [vmem:[%s7263_s1 + $0x700] sm:$0xf0] }
 0x1d4   :  { %2797 = vmatpush.bf16.msrb.mxu0 %v3941_v0  ;;  %2770 = vmatpush.bf16.msrb.mxu3 %v3741_v44  ;;  %v4519_v44 = vld [vmem:[%s7263_s1 + $0x7c8] sm:$0xf0] }
 0x1d5   :  { %2716 = vmatmul.bf16.vlgmr.msrb.gmra.mxu1 %v4789_v32  ;;  %2745 = vmatmul.bf16.vlgmr.msrb.gmra.mxu2 %v4791_v33  ;;  %v2948_v60 = vadd.f32 %v6792_v55, %v2896_v63  ;;  %v4080_v63 = vld [vmem:[%s7263_s1 + $0x6f0] sm:$0xf] }
 0x1d6   :  { %v2432_v25 = vpop.f32.mrf.mxu3  ;;  %2826 = vmatpush.bf16.msra.mxu1 %v4101_v62  ;;  %v4081_v62 = vor.u32 %v4494_v43, %v4080_v63  ;;  %v3900_v63 = vld [vmem:[%s7263_s1 + $0x588] sm:$0xf]  ;;  %v4449_v43 = vld [vmem:[%s7263_s1 + $0x598] sm:$0xf0] }
 0x1d7   :  { %v2988_v35 = vmax.f32 %v2948_v60, 0.0  ;;  %v3920_v60 = vld [vmem:[%s7263_s1 + $0x5b0] sm:$0xf]  ;;  %v3901_v50 = vor.u32 %v4449_v43, %v3900_v63  ;;  %v4399_v63 = vld [vmem:[%s7263_s1 + $0x408] sm:$0xf0] }
 0x1d8   :  { %v6829_v45 = vpop.f32.mrf.mxu2  ;;  %v2458_v34 = vpop.f32.mrf.mxu0  ;;  %v3921_v54 = vor.u32 %v4454_v38, %v3920_v60  ;;  %v3720_v60 = vld [vmem:[%s7263_s1 + $0x420] sm:$0xf]  ;;  %v4404_v38 = vld [vmem:[%s7263_s1 + $0x430] sm:$0xf0]  ;;  %v4439_v43 = vld [vmem:[%s7263_s1 + $0x548] sm:$0xf0] }
 0x1d9   :  { %3028 = vst [vmem:[%s7267_s4 + $0x10] sm:$0xff] %v2988_v35  ;;  %v2459_v32 = vadd.f32 %v2458_v34, %v2430_v29  ;;  %v2433_v34 = vadd.f32 %v2432_v25, %v2404_v46  ;;  %v4181_v25 = vor.u32 %v4519_v44, %v4180_v56 }
 0x1da   :  { %v6834_v33 = vpop.f32.mrf.mxu1  ;;  %2798 = vmatpush.bf16.msrb.mxu0 %v3921_v54  ;;  %2827 = vmatpush.bf16.msra.mxu1 %v4081_v62  ;;  %v3721_v54 = vor.u32 %v4404_v38, %v3720_v60  ;;  %v4060_v62 = vld [vmem:[%s7263_s1 + $0x6c8] sm:$0xf]  ;;  %v4484_v60 = vld [vmem:[%s7263_s1 + $0x6b0] sm:$0xf0] }
 0x1db   :  { %v2901_v0 = vmul.f32 %v6784_v2, %v2459_v32  ;;  %v4061_v46 = vor.u32 %v4489_v40, %v4060_v62  ;;  %2859 = vmatpush.bf16.msra.mxu2 %v4181_v25  ;;  %v4040_v25 = vld [vmem:[%s7263_s1 + $0x6a0] sm:$0xf]  ;;  %v2380_v62 = vadd.f32 %v6696_v22, %v6643_v26  ;;  %v4160_v26 = vld [vmem:[%s7263_s1 + $0x790] sm:$0xf]  ;;  %v4514_v22 = vld [vmem:[%s7263_s1 + $0x7a0] sm:$0xf0] }
 0x1dc   :  { %2771 = vmatpush.bf16.msrb.mxu3 %v3721_v54  ;;  %v3860_v54 = vld [vmem:[%s7263_s1 + $0x538] sm:$0xf] }
 0x1dd   :  { %v2953_v29 = vadd.f32 %v6792_v55, %v2901_v0 }
 0x1de   :  { %v2434_v35 = vpop.f32.mrf.mxu3  ;;  %2799 = vmatpush.bf16.msrb.mxu0 %v3901_v50  ;;  %2828 = vmatpush.bf16.msra.mxu1 %v4061_v46  ;;  %v3861_v50 = vor.u32 %v4439_v43, %v3860_v54  ;;  %v4020_v46 = vld [vmem:[%s7263_s1 + $0x678] sm:$0xf] }
 0x1df   :  { %v2993_v53 = vmax.f32 %v2953_v29, 0.0 }
 0x1e0   :  { %v6859_v20 = vpop.f32.mrf.mxu2  ;;  %v2461_v31 = vpop.f32.mrf.mxu0 }
 0x1e1   :  { %3033 = vst [vmem:[%s7267_s4 + $0x38] sm:$0xff] %v2993_v53  ;;  %v2462_v49 = vadd.f32 %v2461_v31, %v2433_v34  ;;  %v3880_v53 = vld [vmem:[%s7263_s1 + $0x560] sm:$0xf] }
 0x1e2   :  { %v6864_v32 = vpop.f32.mrf.mxu1 }
 0x1e3   :  { %v2906_v0 = vmul.f32 %v6784_v2, %v2462_v49  ;;  %4235 = vmatmul.msk.bf16.gmra.mxu3 %vm1854_vm0, %v5284_v37  ;;  %2692 = vmatmul.bf16.gmra.mxu0 %v4896_v18  ;;  %v2406_v18 = vadd.f32 %v6718_v8, %v2377_v10  ;;  %v4041_v10 = vor.u32 %v4484_v60, %v4040_v25  ;;  %v4394_v25 = vld [vmem:[%s7263_s1 + $0x3e0] sm:$0xf0]  ;;  %v3840_v60 = vld [vmem:[%s7263_s1 + $0x510] sm:$0xf] }
 0x1e5   :  { %2721 = vmatmul.bf16.gmra.mxu1 %v4909_v23  ;;  %2750 = vmatmul.bf16.gmra.mxu2 %v4911_v24  ;;  %v2958_v29 = vadd.f32 %v6792_v55, %v2906_v0  ;;  %v4444_v23 = vld [vmem:[%s7263_s1 + $0x570] sm:$0xf0]  ;;  %v2435_v24 = vadd.f32 %v2434_v35, %v2406_v18  ;;  %v4479_v18 = vld [vmem:[%s7263_s1 + $0x688] sm:$0xf0] }
 0x1e6   :  { %v2437_v34 = vpop.f32.mrf.mxu3  ;;  %v3881_v56 = vor.u32 %v4444_v23, %v3880_v53  ;;  %2829 = vmatpush.bf16.msra.mxu1 %v4041_v10  ;;  %v4021_v23 = vor.u32 %v4479_v18, %v4020_v46  ;;  %v4000_v10 = vld [vmem:[%s7263_s1 + $0x650] sm:$0xf] }
 0x1e7   :  { %v2998_v31 = vmax.f32 %v2958_v29, 0.0  ;;  %v2409_v29 = vadd.f32 %v6752_v15, %v2380_v62 }
 0x1e8   :  { %v2514_v49 = vpop.f32.mrf.mxu2  ;;  %v2463_v44 = vpop.f32.mrf.mxu0  ;;  %2800 = vmatpush.bf16.msrb.mxu0 %v3881_v56 }
 0x1e9   :  { %v6907_v8 = vadd.f32 %v2514_v49, %v6795_v51  ;;  %3038 = vst [vmem:[%s7267_s4 + $0x60] sm:$0xff] %v2998_v31  ;;  %v2464_v35 = vadd.f32 %v2463_v44, %v2435_v24  ;;  %v3700_v51 = vld [vmem:[%s7263_s1 + $0x3f8] sm:$0xf]  ;;  %v3680_v31 = vld [vmem:[%s7263_s1 + $0x3d0] sm:$0xf]  ;;  %v2438_v49 = vadd.f32 %v2437_v34, %v2409_v29  ;;  %v4161_v44 = vor.u32 %v4514_v22, %v4160_v26 }
 0x1ea   :  { %v6918_v38 = vpop.f32.mrf.mxu1  ;;  %v3701_v0 = vor.u32 %v4399_v63, %v3700_v51  ;;  %2830 = vmatpush.bf16.msra.mxu1 %v4021_v23  ;;  %v3681_v63 = vor.u32 %v4394_v25, %v3680_v31  ;;  %v4434_v34 = vld [vmem:[%s7263_s1 + $0x520] sm:$0xf0] }
 0x1eb   :  { %v2911_v40 = vmul.f32 %v6784_v2, %v2464_v35  ;;  %2860 = vmatpush.bf16.msra.mxu2 %v4161_v44  ;;  %v3841_v43 = vor.u32 %v4434_v34, %v3840_v60 }
 0x1ec   :  { %2772 = vmatpush.bf16.msrb.mxu3 %v3701_v0  ;;  %2801 = vmatpush.bf16.msrb.mxu0 %v3861_v50  ;;  %v4474_v0 = vld [vmem:[%s7263_s1 + $0x660] sm:$0xf0] }
 0x1ed   :  { %v2963_v53 = vadd.f32 %v6792_v55, %v2911_v40  ;;  %v4001_v62 = vor.u32 %v4474_v0, %v4000_v10  ;;  %v2382_v40 = vadd.f32 %v6707_v42, %v6698_v7 }
 0x1ee   :  { %v2439_v24 = vpop.f32.mrf.mxu3 }
 0x1ef   :  { %v3003_v56 = vmax.f32 %v2963_v53, 0.0  ;;  %v2411_v46 = vadd.f32 %v6776_v36, %v2382_v40  ;;  %2831 = vmatpush.bf16.msra.mxu1 %v4001_v62 }
 0x1f0   :  { %v2516_v15 = vpop.f32.mrf.mxu2  ;;  %v2466_v51 = vpop.f32.mrf.mxu0  ;;  %2773 = vmatpush.bf16.msrb.mxu3 %v3681_v63  ;;  %2802 = vmatpush.bf16.msrb.mxu0 %v3841_v43 }
 0x1f1   :  { %v6959_v35 = vadd.f32 %v2516_v15, %v6834_v33  ;;  %3043 = vst [vmem:[%s7267_s4 + $0x88] sm:$0xff] %v3003_v56  ;;  %v2467_v33 = vadd.f32 %v2466_v51, %v2438_v49  ;;  %v2440_v53 = vadd.f32 %v2439_v24, %v2411_v46 }
 0x1f2   :  { %v2495_v54 = vpop.f32.mrf.mxu1 }
 0x1f3   :  { %v2916_v50 = vmul.f32 %v6784_v2, %v2467_v33  ;;  %4236 = vmatmul.msk.bf16.gmra.mxu3 %vm1854_vm0, %v5359_v17  ;;  %2697 = vmatmul.bf16.gmra.mxu0 %v4778_v28 }
 0x1f5   :  { %2726 = vmatmul.bf16.gmra.mxu1 %v5017_v12  ;;  %2755 = vmatmul.bf16.gmra.mxu2 %v5019_v13  ;;  %v2968_v18 = vadd.f32 %v6792_v55, %v2916_v50  ;;  %v2385_v13 = vadd.f32 %v6720_v16, %v6709_v41  ;;  %v2387_v41 = vadd.f32 %v6755_v52, %v6722_v1 }
 0x1f6   :  { %v2442_v29 = vpop.f32.mrf.mxu3 }
 0x1f7   :  { %v3008_v7 = vmax.f32 %v2968_v18, 0.0  ;;  %v2414_v22 = vadd.f32 %v6829_v45, %v2385_v13  ;;  %v2416_v45 = vadd.f32 %v6859_v20, %v2387_v41 }
 0x1f8   :  { %v2519_v42 = vpop.f32.mrf.mxu2  ;;  %v2468_v26 = vpop.f32.mrf.mxu0 }
 0x1f9   :  { %v2520_v23 = vadd.f32 %v2519_v42, %v6864_v32  ;;  %3048 = vst [vmem:[%s7267_s4 + $0xb0] sm:$0xff] %v3008_v7  ;;  %v2469_v28 = vadd.f32 %v2468_v26, %v2440_v53  ;;  %v2443_v49 = vadd.f32 %v2442_v29, %v2414_v22 }
 0x1fa   :  { %v2497_v12 = vpop.f32.mrf.mxu1 }
 0x1fb   :  { %v2921_v36 = vmul.f32 %v6784_v2, %v2469_v28 }
 0x1fd   :  { %v2973_v24 = vadd.f32 %v6792_v55, %v2921_v36 }
 0x1fe   :  { %v2444_v31 = vpop.f32.mrf.mxu3 }
 0x1ff   :  { %v3013_v56 = vmax.f32 %v2973_v24, 0.0  ;;  %v2445_v63 = vadd.f32 %v2444_v31, %v2416_v45 }
 0x200   :  { %v2521_v32 = vpop.f32.mrf.mxu2  ;;  %v2471_v44 = vpop.f32.mrf.mxu0 }
 0x201   :  { %v2522_v15 = vadd.f32 %v2521_v32, %v6918_v38  ;;  %3053 = vst [vmem:[%s7267_s4 + $0xd8] sm:$0xff] %v3013_v56  ;;  %v2472_v25 = vadd.f32 %v2471_v44, %v2443_v49 }
 0x202   :  { %v2500_v60 = vpop.f32.mrf.mxu1 }
 0x203   :  { %v2926_v16 = vmul.f32 %v6784_v2, %v2472_v25  ;;  %4237 = vmatmul.msk.bf16.gmra.mxu3 %vm1854_vm0, %v5416_v58  ;;  %2702 = vmatmul.bf16.gmra.mxu0 %v4898_v19 }
 0x205   :  { %2731 = vmatmul.bf16.gmra.mxu1 %v7317_v39  ;;  %2760 = vmatmul.bf16.gmra.mxu2 %v7330_v11  ;;  %v2978_v38 = vadd.f32 %v6792_v55, %v2926_v16 }
 0x206   :  { %v2543_v51 = vpop.f32.mrf.mxu3 }
 0x207   :  { %v3018_v34 = vmax.f32 %v2978_v38, 0.0  ;;  %v7007_v1 = vadd.f32 %v2543_v51, %v6907_v8 }
 0x208   :  { %v2524_v10 = vpop.f32.mrf.mxu2  ;;  %v2473_v0 = vpop.f32.mrf.mxu0 }
 0x209   :  { %v2525_v52 = vadd.f32 %v2524_v10, %v2495_v54  ;;  %3058 = vst [vmem:[%s7267_s4 + $0x100] sm:$0xff] %v3018_v34  ;;  %v2474_v19 = vadd.f32 %v2473_v0, %v2445_v63  ;;  %v7339_v34 = vld [vmem:[#allocation4_spill] sm:$0xff] }
 0x20a   :  { %v2502_v39 = vpop.f32.mrf.mxu1  ;;  %v7088_v10 = vperm.slane %v7339_v34, 3 }
 0x20b   :  { %v2931_v11 = vmul.f32 %v6784_v2, %v2474_v19 }
 0x20d   :  { %v2983_v20 = vadd.f32 %v6792_v55, %v2931_v11 }
 0x20e   :  { %v2545_v33 = vpop.f32.mrf.mxu3 }
 0x20f   :  { %v3023_v43 = vmax.f32 %v2983_v20, 0.0  ;;  %v7015_v40 = vadd.f32 %v2545_v33, %v6959_v35 }
 0x210   :  { %v2526_v62 = vpop.f32.mrf.mxu2  ;;  %v2572_v50 = vpop.f32.mrf.mxu0 }
 0x211   :  { %v2527_v8 = vadd.f32 %v2526_v62, %v2497_v12  ;;  %3063 = vst [vmem:[%s7267_s4 + $0x128] sm:$0xff] %v3023_v43  ;;  %v2573_v41 = vadd.f32 %v2572_v50, %v7007_v1 }
 0x212   :  { %v2601_v54 = vpop.f32.mrf.mxu1 }
 0x213   :  { %2774 = vmatmul.bf16.vlgmr.msrb.gmra.mxu3 %v7321_v9  ;;  %2803 = vmatmul.bf16.vlgmr.msrb.gmra.mxu0 %v7316_v14 }
 0x215   :  { %4238 = vmatmul.msk.bf16.vlgmr.msra.gmra.mxu2 %vm1854_vm0, %v7337_v47  ;;  %2832 = vmatmul.bf16.vlgmr.msra.gmra.mxu1 %v7322_v48 }
 0x216   :  { %v2548_v2 = vpop.f32.mrf.mxu3 }
 0x217   :  { %v7025_v35 = vadd.f32 %v2548_v2, %v2520_v23 }
 0x218   :  { %v2529_v55 = vpop.f32.mrf.mxu2  ;;  %v2574_v18 = vpop.f32.mrf.mxu0 }
 0x219   :  { %v2530_v46 = vadd.f32 %v2529_v55, %v2500_v60  ;;  %v2575_v51 = vadd.f32 %v2574_v18, %v7015_v40 }
 0x21a   :  { %v2603_v29 = vpop.f32.mrf.mxu1 }
 0x21e   :  { %v2550_v53 = vpop.f32.mrf.mxu3 }
 0x21f   :  { %v7027_v42 = vadd.f32 %v2550_v53, %v2522_v15 }
 0x220   :  { %v2531_v7 = vpop.f32.mrf.mxu2  ;;  %v2577_v9 = vpop.f32.mrf.mxu0 }
 0x221   :  { %v2532_v26 = vadd.f32 %v2531_v7, %v2502_v39  ;;  %v2604_v39 = vadd.f32 %v2603_v29, %v2575_v51  ;;  %v2578_v62 = vadd.f32 %v2577_v9, %v7025_v35 }
 0x222   :  { %v7029_v28 = vpop.f32.mrf.mxu1 }
 0x223   :  { %2779 = vmatmul.bf16.gmra.mxu3 %v5109_v61  ;;  %2808 = vmatmul.bf16.gmra.mxu0 %v7320_v5  ;;  %v2607_v55 = vadd.f32 %v7029_v28, %v2578_v62 }
 0x225   :  { %4239 = vmatmul.msk.bf16.gmra.mxu2 %vm1854_vm0, %v5284_v37  ;;  %2837 = vmatmul.bf16.gmra.mxu1 %v7333_v6 }
 0x226   :  { %v2553_v14 = vpop.f32.mrf.mxu3 }
 0x227   :  { %v7036_v48 = vadd.f32 %v2553_v14, %v2525_v52 }
 0x228   :  { %v2630_v47 = vpop.f32.mrf.mxu2  ;;  %v2579_v23 = vpop.f32.mrf.mxu0 }
 0x229   :  { %v2580_v53 = vadd.f32 %v2579_v23, %v7027_v42 }
 0x22a   :  { %v7038_v12 = vpop.f32.mrf.mxu1 }
 0x22b   :  { %v2609_v28 = vadd.f32 %v7038_v12, %v2580_v53 }
 0x22e   :  { %v2555_v13 = vpop.f32.mrf.mxu3 }
 0x22f   :  { %v7040_v36 = vadd.f32 %v2555_v13, %v2527_v8 }
 0x230   :  { %v2632_v22 = vpop.f32.mrf.mxu2  ;;  %v7042_v24 = vpop.f32.mrf.mxu0 }
 0x231   :  { %v2633_v20 = vadd.f32 %v2632_v22, %v2604_v39  ;;  %v2583_v23 = vadd.f32 %v7042_v24, %v7036_v48 }
 0x232   :  { %v7044_v61 = vpop.f32.mrf.mxu1 }
 0x233   :  { %2784 = vmatmul.bf16.gmra.mxu3 %v7331_v30  ;;  %2813 = vmatmul.bf16.gmra.mxu0 %v7332_v27 }
 0x235   :  { %4240 = vmatmul.msk.bf16.gmra.mxu2 %vm1854_vm0, %v5359_v17  ;;  %2842 = vmatmul.bf16.gmra.mxu1 %v7329_v3 }
 0x236   :  { %v2558_v37 = vpop.f32.mrf.mxu3 }
 0x237   :  { %v7051_v5 = vadd.f32 %v2558_v37, %v2530_v46 }
 0x238   :  { %v2635_v6 = vpop.f32.mrf.mxu2  ;;  %v7053_v31 = vpop.f32.mrf.mxu0 }
 0x239   :  { %v2636_v18 = vadd.f32 %v2635_v6, %v2607_v55  ;;  %v2585_v24 = vadd.f32 %v7053_v31, %v7040_v36 }
 0x23a   :  { %v7055_v49 = vpop.f32.mrf.mxu1 }
 0x23e   :  { %v2560_v56 = vpop.f32.mrf.mxu3 }
 0x23f   :  { %v7057_v32 = vadd.f32 %v2560_v56, %v2532_v26 }
 0x240   :  { %v2637_v15 = vpop.f32.mrf.mxu2  ;;  %v7059_v30 = vpop.f32.mrf.mxu0 }
 0x241   :  { %v2638_v22 = vadd.f32 %v2637_v15, %v2609_v28  ;;  %v2612_v15 = vadd.f32 %v7044_v61, %v2583_v23 }
 0x242   :  { %v7061_v27 = vpop.f32.mrf.mxu1 }
 0x243   :  { %2789 = vmatmul.bf16.gmra.mxu3 %v7334_v21  ;;  %2818 = vmatmul.bf16.gmra.mxu0 %v7335_v59 }
 0x245   :  { %4241 = vmatmul.msk.bf16.gmra.mxu2 %vm1854_vm0, %v5416_v58  ;;  %2847 = vmatmul.bf16.gmra.mxu1 %v5414_v57  ;;  %v2602_v58 = vadd.f32 %v2601_v54, %v2573_v41  ;;  %v7084_v57 = vperm.slane %v6781_v4, 3 }
 0x246   :  { %v7068_v17 = vpop.f32.mrf.mxu3 }
 0x247   :  { %v2631_v45 = vadd.f32 %v2630_v47, %v2602_v58 }
 0x248   :  { %v2640_v3 = vpop.f32.mrf.mxu2  ;;  %v7070_v44 = vpop.f32.mrf.mxu0 }
 0x24a   :  { %v7072_v25 = vpop.f32.mrf.mxu1 }
 0x24e   :  { %v7074_v60 = vpop.f32.mrf.mxu3 }
 0x250   :  { %v7077_v16 = vpop.f32.mrf.mxu2  ;;  %v7079_v21 = vpop.f32.mrf.mxu0 }
 0x252   :  { %v7081_v59 = vpop.f32.mrf.mxu1 }
 0x253   :  { %v2718_v23 = vadd.f32 %v7081_v59, %v7079_v21 }
 0x256   :  { %v2659_v38 = vpop.f32.mrf.mxu3 }
 0x257   :  { %v2660_v63 = vadd.f32 %v2659_v38, %v2631_v45  ;;  %v2641_v38 = vadd.f32 %v2640_v3, %v2612_v15  ;;  %v2614_v3 = vadd.f32 %v7055_v49, %v2585_v24 }
 0x258   :  { %v7090_v52 = vpop.f32.mrf.mxu2  ;;  %v7092_v1 = vpop.f32.mrf.mxu0 }
 0x259   :  { %v2897_v0 = vmul.f32 %v7084_v57, %v2660_v63 }
 0x25a   :  { %v7095_v19 = vpop.f32.mrf.mxu1 }
 0x25b   :  { %v2949_v11 = vadd.f32 %v7088_v10, %v2897_v0  ;;  %v2720_v21 = vadd.f32 %v7095_v19, %v7092_v1 }
 0x25d   :  { %v2989_v33 = vmax.f32 %v2949_v11, 0.0 }
 0x25e   :  { %v2661_v43 = vpop.f32.mrf.mxu3 }
 0x25f   :  { %3029 = vst [vmem:[%s7267_s4 + $0x18] sm:$0xff] %v2989_v33  ;;  %v2662_v40 = vadd.f32 %v2661_v43, %v2633_v20  ;;  %v2643_v33 = vadd.f32 %v7077_v16, %v2614_v3  ;;  %v2588_v43 = vadd.f32 %v7059_v30, %v7051_v5 }
 0x260   :  { %v7102_v8 = vpop.f32.mrf.mxu2  ;;  %v7104_v50 = vpop.f32.mrf.mxu0 }
 0x261   :  { %v2902_v54 = vmul.f32 %v7084_v57, %v2662_v40  ;;  %v2617_v16 = vadd.f32 %v7061_v27, %v2588_v43 }
 0x262   :  { %v7107_v2 = vpop.f32.mrf.mxu1 }
 0x263   :  { %v2954_v46 = vadd.f32 %v7088_v10, %v2902_v54  ;;  %v2723_v43 = vadd.f32 %v7107_v2, %v7104_v50 }
 0x265   :  { %v2994_v29 = vmax.f32 %v2954_v46, 0.0 }
 0x266   :  { %v2664_v35 = vpop.f32.mrf.mxu3 }
 0x267   :  { %3034 = vst [vmem:[%s7267_s4 + $0x40] sm:$0xff] %v2994_v29  ;;  %v2665_v7 = vadd.f32 %v2664_v35, %v2636_v18  ;;  %v2646_v18 = vadd.f32 %v7068_v17, %v2617_v16  ;;  %v2590_v29 = vadd.f32 %v7070_v44, %v7057_v32 }
 0x268   :  { %v7115_v26 = vpop.f32.mrf.mxu2  ;;  %v7117_v9 = vpop.f32.mrf.mxu0 }
 0x269   :  { %v2907_v14 = vmul.f32 %v7084_v57, %v2665_v7  ;;  %v2619_v17 = vadd.f32 %v7072_v25, %v2590_v29 }
 0x26a   :  { %v7120_v47 = vpop.f32.mrf.mxu1 }
 0x26b   :  { %v2959_v13 = vadd.f32 %v7088_v10, %v2907_v14 }
 0x26d   :  { %v2999_v37 = vmax.f32 %v2959_v13, 0.0  ;;  %v2648_v13 = vadd.f32 %v7074_v60, %v2619_v17  ;;  %v2747_v60 = vadd.f32 %v7090_v52, %v2718_v23 }
 0x26e   :  { %v2666_v42 = vpop.f32.mrf.mxu3 }
 0x26f   :  { %3039 = vst [vmem:[%s7267_s4 + $0x68] sm:$0xff] %v2999_v37  ;;  %v2667_v6 = vadd.f32 %v2666_v42, %v2638_v22 }
 0x270   :  { %v7129_v56 = vpop.f32.mrf.mxu2  ;;  %v7131_v41 = vpop.f32.mrf.mxu0 }
 0x271   :  { %v2912_v58 = vmul.f32 %v7084_v57, %v2667_v6 }
 0x272   :  { %v7134_v12 = vpop.f32.mrf.mxu1 }
 0x273   :  { %v2964_v45 = vadd.f32 %v7088_v10, %v2912_v58 }
 0x275   :  { %v3004_v51 = vmax.f32 %v2964_v45, 0.0 }
 0x276   :  { %v2669_v48 = vpop.f32.mrf.mxu3 }
 0x277   :  { %3044 = vst [vmem:[%s7267_s4 + $0x90] sm:$0xff] %v3004_v51  ;;  %v2670_v63 = vadd.f32 %v2669_v48, %v2641_v38 }
 0x278   :  { %v7143_v0 = vpop.f32.mrf.mxu2  ;;  %v7145_v39 = vpop.f32.mrf.mxu0 }
 0x279   :  { %v2917_v11 = vmul.f32 %v7084_v57, %v2670_v63 }
 0x27a   :  { %v7148_v61 = vpop.f32.mrf.mxu1 }
 0x27b   :  { %v2969_v20 = vadd.f32 %v7088_v10, %v2917_v11  ;;  %v7203_v11 = vperm.slane %v7339_v34, 4 }
 0x27d   :  { %v3009_v36 = vmax.f32 %v2969_v20, 0.0 }
 0x27e   :  { %v2671_v31 = vpop.f32.mrf.mxu3 }
 0x27f   :  { %3049 = vst [vmem:[%s7267_s4 + $0xb8] sm:$0xff] %v3009_v36  ;;  %v2672_v62 = vadd.f32 %v2671_v31, %v2643_v33 }
 0x280   :  { %v7158_v40 = vpop.f32.mrf.mxu2  ;;  %v7160_v54 = vpop.f32.mrf.mxu0 }
 0x281   :  { %v2922_v49 = vmul.f32 %v7084_v57, %v2672_v62 }
 0x282   :  { %v7163_v55 = vpop.f32.mrf.mxu1 }
 0x283   :  { %v2974_v46 = vadd.f32 %v7088_v10, %v2922_v49 }
 0x285   :  { %v3014_v5 = vmax.f32 %v2974_v46, 0.0 }
 0x286   :  { %v2674_v30 = vpop.f32.mrf.mxu3 }
 0x287   :  { %3054 = vst [vmem:[%s7267_s4 + $0xe0] sm:$0xff] %v3014_v5  ;;  %v2675_v35 = vadd.f32 %v2674_v30, %v2646_v18 }
 0x288   :  { %v7173_v53 = vpop.f32.mrf.mxu2  ;;  %v7175_v7 = vpop.f32.mrf.mxu0 }
 0x289   :  { %v2927_v27 = vmul.f32 %v7084_v57, %v2675_v35  ;;  %v2725_v35 = vadd.f32 %v7120_v47, %v7117_v9 }
 0x28a   :  { %v7178_v14 = vpop.f32.mrf.mxu1 }
 0x28b   :  { %v2979_v28 = vadd.f32 %v7088_v10, %v2927_v27  ;;  %v2754_v17 = vadd.f32 %v7129_v56, %v2725_v35 }
 0x28d   :  { %v3019_v32 = vmax.f32 %v2979_v28, 0.0 }
 0x28e   :  { %v2676_v44 = vpop.f32.mrf.mxu3 }
 0x28f   :  { %3059 = vst [vmem:[%s7267_s4 + $0x108] sm:$0xff] %v3019_v32  ;;  %v2677_v22 = vadd.f32 %v2676_v44, %v2648_v13 }
 0x290   :  { %v7186_v37 = vpop.f32.mrf.mxu2  ;;  %v2804_v42 = vpop.f32.mrf.mxu0 }
 0x291   :  { %v2932_v6 = vmul.f32 %v7084_v57, %v2677_v22  ;;  %v7199_v57 = vperm.slane %v6781_v4, 4 }
 0x292   :  { %v2833_v25 = vpop.f32.mrf.mxu1 }
 0x293   :  { %v2984_v58 = vadd.f32 %v7088_v10, %v2932_v6  ;;  %v2749_v10 = vadd.f32 %v7102_v8, %v2720_v21  ;;  %v2752_v8 = vadd.f32 %v7115_v26, %v2723_v43 }
 0x295   :  { %v3024_v15 = vmax.f32 %v2984_v58, 0.0 }
 0x296   :  { %v2775_v45 = vpop.f32.mrf.mxu3 }
 0x297   :  { %3064 = vst [vmem:[%s7267_s4 + $0x130] sm:$0xff] %v3024_v15  ;;  %v2776_v38 = vadd.f32 %v2775_v45, %v2747_v60 }
 0x298   :  { %v2862_v51 = vpop.f32.mrf.mxu2  ;;  %v2806_v48 = vpop.f32.mrf.mxu0 }
 0x299   :  { %v2805_v24 = vadd.f32 %v2804_v42, %v2776_v38  ;;  %v2728_v42 = vadd.f32 %v7134_v12, %v7131_v41 }
 0x29a   :  { %v2835_v63 = vpop.f32.mrf.mxu1 }
 0x29b   :  { %v2834_v59 = vadd.f32 %v2833_v25, %v2805_v24  ;;  %v2757_v58 = vadd.f32 %v7143_v0, %v2728_v42 }
 0x29d   :  { %v2863_v52 = vadd.f32 %v2862_v51, %v2834_v59 }
 0x29e   :  { %v2777_v3 = vpop.f32.mrf.mxu3 }
 0x29f   :  { %v2898_v20 = vmul.f32 %v7199_v57, %v2863_v52  ;;  %v2778_v33 = vadd.f32 %v2777_v3, %v2749_v10 }
 0x2a0   :  { %v2864_v36 = vpop.f32.mrf.mxu2  ;;  %v2809_v31 = vpop.f32.mrf.mxu0 }
 0x2a1   :  { %v2950_v1 = vadd.f32 %v7203_v11, %v2898_v20  ;;  %v2807_v19 = vadd.f32 %v2806_v48, %v2778_v33  ;;  %v2730_v48 = vadd.f32 %v7148_v61, %v7145_v39 }
 0x2a2   :  { %v2838_v4 = vpop.f32.mrf.mxu1 }
 0x2a3   :  { %v2990_v62 = vmax.f32 %v2950_v1, 0.0  ;;  %v2836_v49 = vadd.f32 %v2835_v63, %v2807_v19  ;;  %v2759_v0 = vadd.f32 %v7158_v40, %v2730_v48 }
 0x2a5   :  { %3030 = vst [vmem:[%s7267_s4 + $0x20] sm:$0xff] %v2990_v62  ;;  %v2865_v34 = vadd.f32 %v2864_v36, %v2836_v49  ;;  %v2733_v36 = vadd.f32 %v7163_v55, %v7160_v54 }
 0x2a6   :  { %v2780_v16 = vpop.f32.mrf.mxu3 }
 0x2a7   :  { %v2903_v46 = vmul.f32 %v7199_v57, %v2865_v34  ;;  %v2781_v18 = vadd.f32 %v2780_v16, %v2752_v8  ;;  %v2762_v40 = vadd.f32 %v7173_v53, %v2733_v36  ;;  %v2735_v16 = vadd.f32 %v7178_v14, %v7175_v7 }
 0x2a8   :  { %v2867_v5 = vpop.f32.mrf.mxu2  ;;  %v2811_v30 = vpop.f32.mrf.mxu0 }
 0x2a9   :  { %v2955_v50 = vadd.f32 %v7203_v11, %v2903_v46  ;;  %v2810_v2 = vadd.f32 %v2809_v31, %v2781_v18  ;;  %v2764_v18 = vadd.f32 %v7186_v37, %v2735_v16 }
 0x2aa   :  { %v2840_v29 = vpop.f32.mrf.mxu1 }
 0x2ab   :  { %v2995_v27 = vmax.f32 %v2955_v50, 0.0  ;;  %v2839_v26 = vadd.f32 %v2838_v4, %v2810_v2 }
 0x2ad   :  { %3035 = vst [vmem:[%s7267_s4 + $0x48] sm:$0xff] %v2995_v27  ;;  %v2868_v28 = vadd.f32 %v2867_v5, %v2839_v26 }
 0x2ae   :  { %v2782_v13 = vpop.f32.mrf.mxu3 }
 0x2af   :  { %v2908_v32 = vmul.f32 %v7199_v57, %v2868_v28  ;;  %v2783_v44 = vadd.f32 %v2782_v13, %v2754_v17 }
 0x2b0   :  { %v2869_v22 = vpop.f32.mrf.mxu2  ;;  %v2814_v47 = vpop.f32.mrf.mxu0 }
 0x2b1   :  { %v2960_v23 = vadd.f32 %v7203_v11, %v2908_v32  ;;  %v2812_v9 = vadd.f32 %v2811_v30, %v2783_v44 }
 0x2b2   :  { %v2843_v56 = vpop.f32.mrf.mxu1 }
 0x2b3   :  { %v3000_v6 = vmax.f32 %v2960_v23, 0.0  ;;  %v2841_v25 = vadd.f32 %v2840_v29, %v2812_v9 }
 0x2b5   :  { %3040 = vst [vmem:[%s7267_s4 + $0x70] sm:$0xff] %v3000_v6  ;;  %v2870_v60 = vadd.f32 %v2869_v22, %v2841_v25 }
 0x2b6   :  { %v2785_v15 = vpop.f32.mrf.mxu3 }
 0x2b7   :  { %v2913_v45 = vmul.f32 %v7199_v57, %v2870_v60  ;;  %v2786_v38 = vadd.f32 %v2785_v15, %v2757_v58 }
 0x2b8   :  { %v2872_v51 = vpop.f32.mrf.mxu2  ;;  %v2816_v21 = vpop.f32.mrf.mxu0 }
 0x2b9   :  { %v2965_v41 = vadd.f32 %v7203_v11, %v2913_v45  ;;  %v2815_v12 = vadd.f32 %v2814_v47, %v2786_v38 }
 0x2ba   :  { %v2845_v10 = vpop.f32.mrf.mxu1 }
 0x2bb   :  { %v3005_v24 = vmax.f32 %v2965_v41, 0.0  ;;  %v2844_v63 = vadd.f32 %v2843_v56, %v2815_v12 }
 0x2bd   :  { %3045 = vst [vmem:[%s7267_s4 + $0x98] sm:$0xff] %v3005_v24  ;;  %v2873_v59 = vadd.f32 %v2872_v51, %v2844_v63 }
 0x2be   :  { %v2787_v52 = vpop.f32.mrf.mxu3 }
 0x2bf   :  { %v2918_v3 = vmul.f32 %v7199_v57, %v2873_v59  ;;  %v2788_v20 = vadd.f32 %v2787_v52, %v2759_v0 }
 0x2c0   :  { %v2874_v33 = vpop.f32.mrf.mxu2  ;;  %v2819_v19 = vpop.f32.mrf.mxu0 }
 0x2c1   :  { %v2970_v39 = vadd.f32 %v7203_v11, %v2918_v3  ;;  %v2817_v61 = vadd.f32 %v2816_v21, %v2788_v20 }
 0x2c2   :  { %v2848_v8 = vpop.f32.mrf.mxu1 }
 0x2c3   :  { %v3010_v31 = vmax.f32 %v2970_v39, 0.0  ;;  %v2846_v43 = vadd.f32 %v2845_v10, %v2817_v61 }
 0x2c5   :  { %3050 = vst [vmem:[%s7267_s4 + $0xc0] sm:$0xff] %v3010_v31  ;;  %v2875_v1 = vadd.f32 %v2874_v33, %v2846_v43 }
 0x2c6   :  { %v2790_v4 = vpop.f32.mrf.mxu3 }
 0x2c7   :  { %v2923_v62 = vmul.f32 %v7199_v57, %v2875_v1  ;;  %v2791_v49 = vadd.f32 %v2790_v4, %v2762_v40 }
 0x2c8   :  { %v2877_v34 = vpop.f32.mrf.mxu2  ;;  %v2821_v29 = vpop.f32.mrf.mxu0 }
 0x2c9   :  { %v2975_v54 = vadd.f32 %v7203_v11, %v2923_v62  ;;  %v2820_v55 = vadd.f32 %v2819_v19, %v2791_v49 }
 0x2ca   :  { %v2850_v26 = vpop.f32.mrf.mxu1 }
 0x2cb   :  { %v3015_v46 = vmax.f32 %v2975_v54, 0.0  ;;  %v2849_v53 = vadd.f32 %v2848_v8, %v2820_v55 }
 0x2cd   :  { %3055 = vst [vmem:[%s7267_s4 + $0xe8] sm:$0xff] %v3015_v46  ;;  %v2878_v5 = vadd.f32 %v2877_v34, %v2849_v53 }
 0x2ce   :  { %v2792_v30 = vpop.f32.mrf.mxu3 }
 0x2cf   :  { %v2928_v50 = vmul.f32 %v7199_v57, %v2878_v5  ;;  %v2793_v2 = vadd.f32 %v2792_v30, %v2764_v18 }
 0x2d0   :  { %v2879_v14 = vpop.f32.mrf.mxu2 }
 0x2d1   :  { %v2980_v35 = vadd.f32 %v7203_v11, %v2928_v50  ;;  %v2822_v27 = vadd.f32 %v2821_v29, %v2793_v2 }
 0x2d3   :  { %v3020_v17 = vmax.f32 %v2980_v35, 0.0  ;;  %v2851_v7 = vadd.f32 %v2850_v26, %v2822_v27 }
 0x2d5   :  { %3060 = vst [vmem:[%s7267_s4 + $0x110] sm:$0xff] %v3020_v17  ;;  %v2880_v37 = vadd.f32 %v2879_v14, %v2851_v7 }
 0x2d7   :  { %v2933_v28 = vmul.f32 %v7199_v57, %v2880_v37 }
 0x2d9   :  { %v2985_v13 = vadd.f32 %v7203_v11, %v2933_v28 }
 0x2db   :  { %v3025_v32 = vmax.f32 %v2985_v13, 0.0 }
 0x2dd   :  { %3065 = vst [vmem:[%s7267_s4 + $0x138] sm:$0xff] %v3025_v32 }

// kernel: mixed_5c_forward.6
= control target key start
LH: loop header
LB: loop body
LE: loop exit
PB: predicated region body
PF: predicated region fallthrough
CT: control target
= control target key end

     0   :  { %s1329_s15 = smov 0   ;;  %s1331_s16 = smov 0   ;;  %s1544_s0 = inlined_call_operand.vmem [shape: bf16[2,4,44,48], index: 0, kind: input, shape index: {}]   ;;  %s1545_s1 = inlined_call_operand.vmem [shape: bf16[3,432,128], index: 1, kind: input, shape index: {}]   ;;  %s1546_s2 = inlined_call_operand.vmem [shape: f32[1,128], index: 2, kind: input, shape index: {}]   ;;  %s1547_s3 = inlined_call_operand.vmem [shape: f32[1,128], index: 3, kind: input, shape index: {}]   ;;  %s1548_s4 = inlined_call_operand.vmem [shape: f32[2,2,24,128], index: 4, kind: output, shape index: {}]  }
   0x1   :  { %s1333_s17 = smov 0   ;;  %s1335_s18 = smov 0  }
   0x2   :  { %s1337_s19 = smov 0   ;;  %s1339_s20 = smov 0  }
   0x3   :  { %s1341_s21 = smov 0  }
   0x4 LB: > { %s26_s22 = sadd.s32 1, %s1290_s18  ;;  %s29_s23 = sadd.s32 1, %s1294_s19  ;;  %s1302_s21 = sphi %s1341_s21, %s14_s21   ;;  %s1298_s20 = sphi %s1339_s20, %s1554_s20   ;;  %s1294_s19 = sphi %s1337_s19, %s1553_s19   ;;  %s1290_s18 = sphi %s1335_s18, %s1552_s18   ;;  %s1286_s17 = sphi %s1333_s17, %s1551_s17   ;;  %s1282_s16 = sphi %s1331_s16, %s1550_s16   ;;  %s1278_s15 = sphi %s1329_s15, %s1549_s15  }
   0x5   : > { %p27_p0 = scmp.ge.s32.totalorder %s26_s22, 3  ;;  %p1011_p1 = scmp.ge.s32.totalorder %s1302_s21, 1 }
   0x6   : > { %p203_p2 = scmp.lt.s32.totalorder %s1302_s21, 13  ;;  %s33_s24 = sadd.s32 1, %s1298_s20 }
   0x7   : > { %s1556_s22 = smov (%p27_p0, %s26_s22), 0  ;;  %s1558_s23 = smov (!%p27_p0, %s29_s23), %s1294_s19 }
   0x8   : > { %p204_p3 = pnand %p1011_p1, %p203_p2  ;;  %p31_p4 = scmp.ge.s32.totalorder %s1558_s23, 2 }
   0x9   : > { %p254_p6 = scmp.lt.s32.totalorder (!%p204_p3), %s1278_s15, 2  ;;  %s243_s25 = sadd.s32 (!%p204_p3), %s1278_s15, %s1282_s16 }
   0xa   : > { %s1560_s23 = smov (%p31_p4, %s1558_s23), 0  ;;  %s1562_s24 = smov (!%p31_p4, %s33_s24), %s1298_s20 }
   0xb   : > { %p35_p5 = scmp.ge.s32.totalorder %s1562_s24, 2  ;;  %207 = sbr.rel (%p204_p3) target bundleno = 270 (0x10e), region = 36 }
   0xc   : > { %p244_p7 = scmp.lt.s32.totalorder (!%p204_p3), %s1286_s17, 1  ;;  %p246_p8 = scmp.lt.s32.totalorder (!%p204_p3), %s243_s25, 3 }
   0xd   : > { %s1564_s24 = smov (%p35_p5, %s1562_s24), 0  ;;  %p261_p9 = scmp.lt.s32.totalorder (!%p204_p3), %s1282_s16, 1 }
   0xe   : > { %p1141_p10 = scmp.ne.s32.totalorder (!%p204_p3), %s1278_s15, 0 }
  0x10   : > { %s255_s26 = scalar_select %p254_p6, %s1278_s15, 2  ;;  %vm406_vm0 = vcmask 1046528   ;;  %vm295_vm1 = vsmask.f32 7424  ;;  %vm329_vm2 = vcmask 392192   ;;  %vm469_vm3 = vcmask 1044480  }
  0x11   : > { %s1566_s17 = smov (!%p244_p7, %s1286_s17), 1  ;;  %s1568_s25 = smov (!%p246_p8, %s243_s25), 3  ;;  %vm528_vm4 = vsmask.f32 4352  ;;  %vm664_vm5 = vcmask 1045504  }
  0x12   : > { %s1187_s27 = smul.u32 216, %s255_s26  ;;  %s1570_s16 = smov (!%p261_p9, %s1282_s16), 1  ;;  %vm723_vm6 = vsmask.f32 5376 }
  0x13   : > { %s1186_s5 = smul.u32 24, %s1566_s17 }
  0x14   : > { %s1383_s30 = scalar_lea.vmem %s1545_s1, %s1187_s27  ;;  %s1185_s6 = smul.u32 6, %s1568_s25 }
  0x15   : > { %v1151_v0 = vld [vmem:[%s1383_s30 + $0x28] sm:$0xff]  ;;  %v1154_v1 = vld [vmem:[%s1383_s30 + $0x40] sm:$0xff]  ;;  %v1157_v2 = vld [vmem:[%s1383_s30 + $0x58] sm:$0xff]  ;;  %s1189_s8 = smul.u32 6, %s1566_s17 }
  0x16   : > { %341 = vmatpush.bf16.msra.mxu0 %v1151_v0  ;;  %1182 = vmatpush.bf16.msra.mxu1 %v1151_v0  ;;  %v1150_v3 = vld [vmem:[%s1383_s30 + $0x20] sm:$0xff]  ;;  %s250_s7 = sadd.s32 %s1186_s5, %s1185_s6  ;;  %v1153_v4 = vld [vmem:[%s1383_s30 + $0x38] sm:$0xff]  ;;  %v1156_v5 = vld [vmem:[%s1383_s30 + $0x50] sm:$0xff]  ;;  %s1188_s10 = smul.u32 3, %s1570_s16 }
  0x17   : > { %439 = vmatpush.bf16.msra.mxu2 %v1154_v1  ;;  %502 = vmatpush.bf16.msra.mxu3 %v1157_v2  ;;  %s1012_s9 = sshll.u32 %s250_s7, 2  ;;  %v1149_v6 = vld [vmem:[%s1383_s30 + $0x18] sm:$0xff]  ;;  %v1152_v10 = vld [vmem:[%s1383_s30 + $0x30] sm:$0xff]  ;;  %v1155_v16 = vld [vmem:[%s1383_s30 + $0x48] sm:$0xff] }
  0x18   : > { %s1396_s13 = scalar_lea.vmem %s1544_s0, %s1012_s9  ;;  %s265_s14 = sadd.s32 %s1189_s8, %s1188_s10  ;;  %v1148_v24 = vld [vmem:[%s1383_s30 + $0x10] sm:$0xff]  ;;  %v1166_v29 = vld [vmem:[%s1383_s30 + $0xa0] sm:$0xff]  ;;  %v1169_v30 = vld [vmem:[%s1383_s30 + $0xb8] sm:$0xff] }
  0x19   : > { %v1399_v7 = vld [vmem:[%s1396_s13] sm:$0xff]   ;;  %v1402_v8 = vld [vmem:[%s1396_s13 + $0x8] sm:$0xff]   ;;  %s1014_s16 = sshll.u32 %s265_s14, 3  ;;  %v1160_v25 = vld [vmem:[%s1383_s30 + $0x70] sm:$0xff] }
  0x1a   : > { %v278_v9 = vld [vmem:[%s1396_s13 + $0xc] sm:$0x1]  ;;  %342 = vmatpush.bf16.msra.mxu0 %v1150_v3  ;;  %1183 = vmatpush.bf16.msra.mxu1 %v1150_v3  ;;  %v1407_v11 = vunpack.c.l.b16 %v1402_v8  ;;  %v297_v13 = vshrl.u32 %v1399_v7, 16  ;;  %v299_v14 = vshll.u32 %v1399_v7, 16  ;;  %v396_v15 = vld [vmem:[%s1396_s13] sm:$0xe]  ;;  %s1416_s26 = scalar_lea.vmem %s1548_s4, %s1014_s16  ;;  %v1419_v17 = vunpack.c.h.b16 %v1399_v7 }
  0x1b   : > { %v292_v12 = vunpack.c.l.b16 %v278_v9  ;;  %440 = vmatpush.bf16.msra.mxu2 %v1153_v4  ;;  %503 = vmatpush.bf16.msra.mxu3 %v1156_v5  ;;  %v404_v18 = vunpack.c.l.b16 %v396_v15  ;;  %v455_v19 = vld [vmem:[%s1396_s13] sm:$0x8]  ;;  %v456_v20 = vld [vmem:[%s1396_s13 + $0xc] sm:$0x7]  ;;  %v526_v21 = vunpack.c.h.b16 %v1402_v8  ;;  %v1165_v46 = vld [vmem:[%s1383_s30 + $0x98] sm:$0xff]  ;;  %v538_v51 = vshrl.u32 %v1402_v8, 16 }
  0x1c   : > { %v301_v23 = vrot.slane %v299_v14, 1  ;;  %v465_v26 = vunpack.c.l.b16 %v455_v19  ;;  %v466_v27 = vunpack.c.l.b16 %v456_v20  ;;  %v1147_v42 = vld [vmem:[%s1383_s30 + $0x8] sm:$0xff]  ;;  %v1168_v47 = vld [vmem:[%s1383_s30 + $0xb0] sm:$0xff]  ;;  %v541_v52 = vshll.u32 %v1402_v8, 16  ;;  %v1146_v53 = vld [vmem:[%s1383_s30] sm:$0xff] }
  0x1d   : > { %v1425_v22 = vpack.c.b16 %v292_v12, %v1407_v11  ;;  %v405_v28 = vpack.c.b16 %v1419_v17, %v404_v18  ;;  %v1159_v43 = vld [vmem:[%s1383_s30 + $0x68] sm:$0xff]  ;;  %v1158_v54 = vld [vmem:[%s1383_s30 + $0x60] sm:$0xff]  ;;  %v1172_v56 = vld [vmem:[%s1383_s30 + $0xd0] sm:$0xff]  ;;  %v540_v61 = vrot.slane %v538_v51, 3 }
  0x1e   : > { %343 = vmatpush.bf16.msra.mxu0 %v1149_v6  ;;  %1184 = vmatpush.bf16.msra.mxu1 %v1149_v6  ;;  %v302_v31 = vor.u32 %v301_v23, %v297_v13  ;;  %v467_v36 = vpack.c.b16 %v1419_v17, %v465_v26  ;;  %v1437_v37 = vpack.c.b16 %v466_v27, %v1407_v11  ;;  %v1163_v55 = vld [vmem:[%s1383_s30 + $0x88] sm:$0xff]  ;;  %v1164_v57 = vld [vmem:[%s1383_s30 + $0x90] sm:$0xff]  ;;  %v543_v62 = vrot.slane %v541_v52, 4  ;;  %v1162_v63 = vld [vmem:[%s1383_s30 + $0x80] sm:$0xff] }
  0x1f   : > { %v304_v32 = vshll.u32 %v1425_v22, 16  ;;  %v308_v33 = vshrl.u32 %v1425_v22, 16  ;;  %v408_v34 = vrot.slane %v1425_v22, 1  ;;  %441 = vmatpush.bf16.msra.mxu2 %v1152_v10  ;;  %504 = vmatpush.bf16.msra.mxu3 %v1155_v16  ;;  %v407_v35 = vrot.slane %v405_v28, 1  ;;  %v1167_v58 = vld [vmem:[%s1383_s30 + $0xa8] sm:$0xff]  ;;  %v1161_v13 = vld [vmem:[%s1383_s30 + $0x78] sm:$0xff] }
  0x20   : > { %v470_v40 = vrot.slane %v467_v36, 3  ;;  %v471_v41 = vrot.slane %v1437_v37, 3  ;;  %v530_v49 = vshrl.u32 %v467_v36, 16  ;;  %v533_v50 = vshll.u32 %v467_v36, 16  ;;  %v1171_v0 = vld [vmem:[%s1383_s30 + $0xc8] sm:$0xff]  ;;  %v1170_v19 = vld [vmem:[%s1383_s30 + $0xc0] sm:$0xff] }
  0x21   : > { %v306_v38 = vrot.slane %v304_v32, 1  ;;  %v409_v39 = vsel %vm406_vm0, %v407_v35, %v408_v34  ;;  %v644_v1 = vld [vmem:[%s1396_s13 + $0x4] sm:$0xc]  ;;  %v1181_v2 = vld [vmem:[%s1396_s13 + $0x8] sm:$0xff]   ;;  %v713_v3 = vld [vmem:[%s1396_s13 + $0x10] sm:$0x7]  ;;  %v544_v5 = vor.u32 %v543_v62, %v540_v61  ;;  %v354_v35 = vpack.c.b16 %v1407_v11, %v1407_v11 }
  0x22   : > { %383 = vmatpush.bf16.msrb.mxu1 %v1148_v24  ;;  %575 = vmatpush.bf16.msrb.mxu0 %v1160_v25  ;;  %v472_v48 = vsel %vm469_vm3, %v470_v40, %v471_v41  ;;  %v532_v59 = vrot.slane %v530_v49, 3  ;;  %v535_v60 = vrot.slane %v533_v50, 4  ;;  %v1179_v6 = vunpack.c.l.b16 %v1181_v2  ;;  %v647_v15 = vld [vmem:[%s1396_s13 + $0x10] sm:$0x3]  ;;  %v786_v37 = vld [vmem:[%s1396_s13 + $0x4] sm:$0x8] }
  0x23   : > { %697 = vmatpush.bf16.msrb.mxu2 %v1166_v29  ;;  %770 = vmatpush.bf16.msrb.mxu3 %v1169_v30  ;;  %v307_v44 = vsel %vm295_vm1, %v302_v31, %v306_v38  ;;  %v310_v45 = vor.u32 %v308_v33, %v306_v38  ;;  %v1180_v9 = vunpack.c.h.b16 %v1181_v2  ;;  %v658_v10 = vunpack.c.l.b16 %v644_v1 }
  0x24   : > { %1055 = vmatmul.msk.bf16.vlgmr.msra.gmra.mxu2 %vm329_vm2, %v409_v39  ;;  %1027 = vmatmul.msk.bf16.vlgmr.msra.gmra.mxu0 %vm329_vm2, %v307_v44  ;;  %v536_v4 = vor.u32 %v535_v60, %v532_v59  ;;  %v721_v12 = vunpack.c.l.b16 %v713_v3  ;;  %v661_v20 = vunpack.c.l.b16 %v647_v15  ;;  %v794_v38 = vunpack.c.l.b16 %v786_v37 }
  0x25   : > { %1028 = vmatmul.msk.bf16.vlgmr.msra.gmra.mxu1 %vm329_vm2, %v310_v45  ;;  %1069 = vmatmul.msk.bf16.vlgmr.msra.gmra.mxu3 %vm329_vm2, %v472_v48  ;;  %v662_v16 = vpack.c.b16 %v1179_v6, %v658_v10  ;;  %v598_v44 = vpack.c.b16 %v526_v21, %v526_v21 }
  0x26   : > { %384 = vmatpush.bf16.msrb.mxu1 %v1147_v42  ;;  %576 = vmatpush.bf16.msrb.mxu0 %v1159_v43  ;;  %v545_v14 = vsel %vm528_vm4, %v536_v4, %v544_v5  ;;  %v722_v18 = vpack.c.b16 %v721_v12, %v1180_v9  ;;  %v663_v22 = vpack.c.b16 %v661_v20, %v1180_v9 }
  0x27   : > { %698 = vmatpush.bf16.msrb.mxu2 %v1165_v46  ;;  %771 = vmatpush.bf16.msrb.mxu3 %v1168_v47  ;;  %v725_v23 = vshrl.u32 %v662_v16, 16  ;;  %v728_v24 = vshll.u32 %v662_v16, 16  ;;  %v665_v31 = vrot.slane %v662_v16, 2  ;;  %v795_v39 = vpack.c.b16 %v1179_v6, %v794_v38 }
  0x28   : > { %v733_v25 = vshrl.u32 %v722_v18, 16  ;;  %v736_v26 = vshll.u32 %v722_v18, 16  ;;  %v666_v32 = vrot.slane %v663_v22, 2  ;;  %v597_v42 = vpack.c.b16 %v1407_v11, %v1419_v17 }
  0x29   : > { %v727_v27 = vrot.slane %v725_v23, 2  ;;  %v730_v28 = vrot.slane %v728_v24, 3  ;;  %v796_v40 = vrot.slane %v795_v39, 3 }
  0x2a   : > { %385 = vmatpush.bf16.msrb.mxu1 %v1146_v53  ;;  %577 = vmatpush.bf16.msrb.mxu0 %v1158_v54  ;;  %v735_v29 = vrot.slane %v733_v25, 2  ;;  %v738_v30 = vrot.slane %v736_v26, 3 }
  0x2b   : > { %699 = vmatpush.bf16.msrb.mxu2 %v1164_v57  ;;  %772 = vmatpush.bf16.msrb.mxu3 %v1167_v58  ;;  %v731_v33 = vor.u32 %v730_v28, %v727_v27 }
  0x2e   : > { %628 = vmatpush.bf16.msra.mxu1 %v1163_v55  ;;  %828 = vmatpush.bf16.msra.mxu0 %v1172_v56 }
  0x32   : > { %629 = vmatpush.bf16.msra.mxu1 %v1162_v63  ;;  %829 = vmatpush.bf16.msra.mxu0 %v1171_v0 }
  0x34   : > { %1056 = vmatmul.msk.bf16.gmra.mxu2 %vm329_vm2, %v408_v34  ;;  %1083 = vmatmul.msk.bf16.vlgmr.msrb.gmra.mxu0 %vm329_vm2, %v545_v14  ;;  %v667_v34 = vsel %vm664_vm5, %v665_v31, %v666_v32 }
  0x35   : > { %1041 = vmatmul.msk.bf16.vlgmr.msrb.gmra.mxu1 %vm329_vm2, %v1399_v7  ;;  %1070 = vmatmul.msk.bf16.gmra.mxu3 %vm329_vm2, %v471_v41  ;;  %v739_v7 = vor.u32 %v738_v30, %v735_v29  ;;  %v797_v41 = vrot.slane %v722_v18, 3 }
  0x36   : > { %630 = vmatpush.bf16.msra.mxu1 %v1161_v13  ;;  %830 = vmatpush.bf16.msra.mxu0 %v1170_v19 }
  0x37   : > { %v740_v36 = vsel %vm723_vm6, %v731_v33, %v739_v7  ;;  %v798_v43 = vsel %vm469_vm3, %v796_v40, %v797_v41 }
  0x44   : > { %1111 = vmatmul.msk.bf16.vlgmr.msrb.gmra.mxu2 %vm329_vm2, %v667_v34  ;;  %1084 = vmatmul.msk.bf16.gmra.mxu0 %vm329_vm2, %v544_v5 }
  0x45   : > { %1042 = vmatmul.msk.bf16.gmra.mxu1 %vm329_vm2, %v354_v35  ;;  %1125 = vmatmul.msk.bf16.vlgmr.msrb.gmra.mxu3 %vm329_vm2, %v740_v36 }
  0x54   : > { %1112 = vmatmul.msk.bf16.gmra.mxu2 %vm329_vm2, %v666_v32  ;;  %1139 = vmatmul.msk.bf16.vlgmr.msra.gmra.mxu0 %vm329_vm2, %v798_v43 }
  0x55   : > { %1097 = vmatmul.msk.bf16.vlgmr.msra.gmra.mxu1 %vm329_vm2, %v597_v42  ;;  %1126 = vmatmul.msk.bf16.gmra.mxu3 %vm329_vm2, %v739_v7 }
  0x64   : > { %1140 = vmatmul.msk.bf16.gmra.mxu0 %vm329_vm2, %v797_v41 }
  0x65   : > { %1098 = vmatmul.msk.bf16.gmra.mxu1 %vm329_vm2, %v598_v44 }
  0xa1   : > { %v345_v45 = vpop.f32.mrf.mxu0 }
  0xa2   : > { %v350_v11 = vpop.f32.mrf.mxu1 }
  0xa7   : > { %v443_v17 = vpop.f32.mrf.mxu2 }
  0xa8   : > { %v506_v46 = vpop.f32.mrf.mxu3 }
  0xa9   : > { %v347_v47 = vpop.f32.mrf.mxu0 }
  0xaa   : > { %v352_v48 = vpop.f32.mrf.mxu1 }
  0xaf   : > { %v445_v49 = vpop.f32.mrf.mxu2 }
  0xb0   : > { %v508_v50 = vpop.f32.mrf.mxu3 }
  0xb1   : > { %v579_v51 = vpop.f32.mrf.mxu0 }
  0xb2   : > { %v387_v52 = vpop.f32.mrf.mxu1 }
  0xb3   : > { %v388_v59 = vadd.f32 %v387_v52, %v345_v45 }
  0xb5   : > { %v452_v62 = vadd.f32 %v443_v17, %v388_v59 }
  0xb7   : > { %v448_v53 = vpop.f32.mrf.mxu2  ;;  %v515_v1 = vadd.f32 %v506_v46, %v452_v62 }
  0xb8   : > { %v511_v54 = vpop.f32.mrf.mxu3 }
  0xb9   : > { %v581_v55 = vpop.f32.mrf.mxu0  ;;  %v588_v5 = vadd.f32 %v579_v51, %v515_v1 }
  0xba   : > { %v389_v8 = vpop.f32.mrf.mxu1 }
  0xbb   : > { %v390_v2 = vadd.f32 %v389_v8, %v347_v47 }
  0xbd   : > { %v453_v6 = vadd.f32 %v445_v49, %v390_v2 }
  0xbf   : > { %v450_v56 = vpop.f32.mrf.mxu2  ;;  %v516_v13 = vadd.f32 %v508_v50, %v453_v6 }
  0xc0   : > { %v513_v21 = vpop.f32.mrf.mxu3 }
  0xc1   : > { %v584_v57 = vpop.f32.mrf.mxu0  ;;  %v589_v20 = vadd.f32 %v581_v55, %v516_v13 }
  0xc2   : > { %v392_v58 = vpop.f32.mrf.mxu1 }
  0xc3   : > { %v393_v14 = vadd.f32 %v392_v58, %v350_v11 }
  0xc5   : > { %v454_v23 = vadd.f32 %v448_v53, %v393_v14 }
  0xc7   : > { %v701_v60 = vpop.f32.mrf.mxu2  ;;  %v517_v27 = vadd.f32 %v511_v54, %v454_v23 }
  0xc8   : > { %v774_v61 = vpop.f32.mrf.mxu3 }
  0xc9   : > { %v586_v63 = vpop.f32.mrf.mxu0  ;;  %v590_v32 = vadd.f32 %v584_v57, %v517_v27 }
  0xca   : > { %v394_v0 = vpop.f32.mrf.mxu1 }
  0xcf   : > { %v703_v3 = vpop.f32.mrf.mxu2 }
  0xd0   : > { %v776_v4 = vpop.f32.mrf.mxu3 }
  0xd1   : > { %v832_v9 = vpop.f32.mrf.mxu0 }
  0xd2   : > { %v632_v10 = vpop.f32.mrf.mxu1 }
  0xd3   : > { %v641_v12 = vadd.f32 %v632_v10, %v588_v5 }
  0xd5   : > { %v710_v15 = vadd.f32 %v701_v60, %v641_v12 }
  0xd7   : > { %v706_v16 = vpop.f32.mrf.mxu2  ;;  %v783_v18 = vadd.f32 %v774_v61, %v710_v15 }
  0xd8   : > { %v779_v19 = vpop.f32.mrf.mxu3 }
  0xd9   : > { %v841_v24 = vadd.f32 %v832_v9, %v783_v18  ;;  %v834_v25 = vpop.f32.mrf.mxu0 }
  0xda   : > { %v634_v26 = vpop.f32.mrf.mxu1 }
  0xdb   : > { %v642_v22 = vadd.f32 %v634_v26, %v589_v20 }
  0xdd   : > { %v711_v28 = vadd.f32 %v703_v3, %v642_v22 }
  0xdf   : > { %v708_v29 = vpop.f32.mrf.mxu2  ;;  %v784_v30 = vadd.f32 %v776_v4, %v711_v28 }
  0xe0   : > { %v781_v31 = vpop.f32.mrf.mxu3 }
  0xe1   : > { %v842_v33 = vadd.f32 %v834_v25, %v784_v30  ;;  %v837_v7 = vpop.f32.mrf.mxu0 }
  0xe2   : > { %v637_v34 = vpop.f32.mrf.mxu1 }
  0xe3   : > { %v643_v35 = vadd.f32 %v637_v34, %v590_v32 }
  0xe5   : > { %v712_v36 = vadd.f32 %v706_v16, %v643_v35 }
  0xe6   : > { %847 = sbr.rel (%p1141_p10) target bundleno = 238 (0xee), region = 40 }
  0xe7   : > { %v785_v37 = vadd.f32 %v779_v19, %v712_v36 }
  0xe9   : > { %v843_v38 = vadd.f32 %v837_v7, %v785_v37  ;;  %v839_v39 = vpop.f32.mrf.mxu0 }
  0xea   : > { %v639_v40 = vpop.f32.mrf.mxu1 }
  0xeb   : > { %848 = vst [vmem:[%s1416_s26] sm:$0xff] %v841_v24 }
  0xec   : > { %849 = vst [vmem:[%s1416_s26 + $0x8] sm:$0xff] %v842_v33 }
  0xed   : > { %850 = vst [vmem:[%s1416_s26 + $0x10] sm:$0xff] %v843_v38 }
  0xee PF: > { %p1142_p11 = scmp.ne.s32.totalorder %s1278_s15, 1 }
  0xf0   : > { %854 = sbr.rel (%p1142_p11) target bundleno = 251 (0xfb), region = 44 }
  0xf5   : > { %v855_v41 = vld [vmem:[%s1416_s26] sm:$0xff]  ;;  %v856_v42 = vld [vmem:[%s1416_s26 + $0x8] sm:$0xff]  ;;  %v857_v43 = vld [vmem:[%s1416_s26 + $0x10] sm:$0xff] }
  0xf6   : > { %v858_v44 = vadd.f32 %v855_v41, %v841_v24  ;;  %v859_v45 = vadd.f32 %v856_v42, %v842_v33  ;;  %v860_v11 = vadd.f32 %v857_v43, %v843_v38 }
  0xf8   : > { %861 = vst [vmem:[%s1416_s26] sm:$0xff] %v858_v44 }
  0xf9   : > { %862 = vst [vmem:[%s1416_s26 + $0x8] sm:$0xff] %v859_v45 }
  0xfa   : > { %863 = vst [vmem:[%s1416_s26 + $0x10] sm:$0xff] %v860_v11 }
  0xfb PF: > { %p1143_p12 = scmp.ne.s32.totalorder %s1278_s15, 2 }
  0xfd   : > { %867 = sbr.rel (%p1143_p12) target bundleno = 270 (0x10e), region = 48 }
 0x102   : > { %v868_v17 = vld [vmem:[%s1416_s26] sm:$0xff]  ;;  %v869_v49 = vld [vmem:[%s1416_s26 + $0x8] sm:$0xff]  ;;  %v870_v51 = vld [vmem:[%s1416_s26 + $0x10] sm:$0xff] }
 0x103   : > { %v1246_v46 = vld [vmem:[%s1546_s2] ss:$0 sm:$0xff]  ;;  %v871_v47 = vadd.f32 %v868_v17, %v841_v24  ;;  %v872_v50 = vadd.f32 %v869_v49, %v842_v33  ;;  %v873_v53 = vadd.f32 %v870_v51, %v843_v38 }
 0x104   : > { %v1247_v48 = vld [vmem:[%s1547_s3] ss:$0 sm:$0xff] }
 0x105   : > { %v878_v52 = vmul.f32 %v1246_v46, %v871_v47  ;;  %v879_v54 = vmul.f32 %v1246_v46, %v872_v50  ;;  %v880_v8 = vmul.f32 %v1246_v46, %v873_v53 }
 0x107   : > { %v885_v55 = vadd.f32 %v1247_v48, %v878_v52  ;;  %v886_v56 = vadd.f32 %v1247_v48, %v879_v54  ;;  %v887_v57 = vadd.f32 %v1247_v48, %v880_v8 }
 0x109   : > { %v888_v21 = vmax.f32 %v885_v55, 0.0  ;;  %v889_v58 = vmax.f32 %v886_v56, 0.0  ;;  %v890_v59 = vmax.f32 %v887_v57, 0.0 }
 0x10b   : > { %891 = vst [vmem:[%s1416_s26] sm:$0xff] %v888_v21 }
 0x10c   : > { %892 = vst [vmem:[%s1416_s26 + $0x8] sm:$0xff] %v889_v58 }
 0x10d   : > { %893 = vst [vmem:[%s1416_s26 + $0x10] sm:$0xff] %v890_v59 }
 0x10e PF: > { %s14_s21 = sadd.s32 1, %s1302_s21   ;;  %s1549_s15 = smov %s1290_s18 }
 0x10f   : > { %p11_p13 = scmp.ge.s32.totalorder %s14_s21, 14   ;;  %s1550_s16 = smov %s1294_s19 }
 0x110   : > { %s1551_s17 = smov %s1298_s20  ;;  %s1552_s18 = smov %s1556_s22 }
 0x111   : > { %s1553_s19 = smov %s1560_s23  ;;  %s1554_s20 = smov %s1564_s24 }
 0x112   :  { %13 = sbr.rel (!%p11_p13) target bundleno = 4 (0x4), region = 81 }

// kernel: mixed_5c_forward.5
= control target key start
LH: loop header
LB: loop body
LE: loop exit
PB: predicated region body
PF: predicated region fallthrough
CT: control target
= control target key end

     0   :  { %s5806_s15 = smov 0   ;;  %s5808_s16 = smov 0   ;;  %s7156_s0 = inlined_call_operand.vmem [shape: bf16[2,4,44,192], index: 0, kind: input, shape index: {}]   ;;  %s7157_s1 = inlined_call_operand.vmem [shape: bf16[3,1728,384], index: 1, kind: input, shape index: {}]   ;;  %s7158_s2 = inlined_call_operand.vmem [shape: f32[1,384], index: 2, kind: input, shape index: {}]   ;;  %s7159_s3 = inlined_call_operand.vmem [shape: f32[1,384], index: 3, kind: input, shape index: {}]   ;;  %s7160_s4 = inlined_call_operand.vmem [shape: f32[2,2,24,384], index: 4, kind: output, shape index: {}]  }
   0x1   :  { %s5810_s17 = smov 0   ;;  %s5812_s18 = smov 0  }
   0x2   :  { %s5814_s19 = smov 0   ;;  %s5816_s20 = smov 0  }
   0x3   :  { %s5818_s21 = smov 0  }
   0x4 LB: > { %s26_s22 = sadd.s32 1, %s5767_s18  ;;  %s29_s23 = sadd.s32 1, %s5771_s19  ;;  %s5779_s21 = sphi %s5818_s21, %s14_s21   ;;  %s5775_s20 = sphi %s5816_s20, %s7166_s20   ;;  %s5771_s19 = sphi %s5814_s19, %s7165_s19   ;;  %s5767_s18 = sphi %s5812_s18, %s7164_s18   ;;  %s5763_s17 = sphi %s5810_s17, %s7163_s17   ;;  %s5759_s16 = sphi %s5808_s16, %s7162_s16   ;;  %s5755_s15 = sphi %s5806_s15, %s7161_s15  }
   0x5   : > { %p27_p0 = scmp.ge.s32.totalorder %s26_s22, 3  ;;  %p3981_p1 = scmp.ge.s32.totalorder %s5779_s21, 1 }
   0x6   : > { %p203_p2 = scmp.lt.s32.totalorder %s5779_s21, 13  ;;  %s33_s24 = sadd.s32 1, %s5775_s20 }
   0x7   : > { %s7168_s22 = smov (%p27_p0, %s26_s22), 0  ;;  %s7170_s23 = smov (!%p27_p0, %s29_s23), %s5771_s19 }
   0x8   : > { %p204_p3 = pnand %p3981_p1, %p203_p2  ;;  %p31_p4 = scmp.ge.s32.totalorder %s7170_s23, 2 }
   0x9   : > { %p254_p6 = scmp.lt.s32.totalorder (!%p204_p3), %s5755_s15, 2  ;;  %s243_s25 = sadd.s32 (!%p204_p3), %s5755_s15, %s5759_s16 }
   0xa   : > { %s7172_s23 = smov (%p31_p4, %s7170_s23), 0  ;;  %s7174_s24 = smov (!%p31_p4, %s33_s24), %s5775_s20 }
   0xb   : > { %p35_p5 = scmp.ge.s32.totalorder %s7174_s24, 2  ;;  %207 = sbr.rel (%p204_p3) target bundleno = 684 (0x2ac), region = 36 }
   0xc   : > { %p244_p7 = scmp.lt.s32.totalorder (!%p204_p3), %s5763_s17, 1  ;;  %p246_p8 = scmp.lt.s32.totalorder (!%p204_p3), %s243_s25, 3 }
   0xd   : > { %s7176_s24 = smov (%p35_p5, %s7174_s24), 0  ;;  %p261_p9 = scmp.lt.s32.totalorder (!%p204_p3), %s5759_s16, 1 }
   0xe   : > { %p5335_p10 = scmp.ne.s32.totalorder (!%p204_p3), %s5755_s15, 0 }
  0x10   : > { %s255_s26 = scalar_select %p254_p6, %s5755_s15, 2  ;;  %vm385_vm0 = vsmask.f32 7424  ;;  %vm610_vm1 = vcmask 523264   ;;  %vm1088_vm2 = vcmask 1046528   ;;  %vm1472_vm3 = vcmask 1044480  }
  0x11   : > { %s7178_s17 = smov (!%p244_p7, %s5763_s17), 1  ;;  %s7180_s25 = smov (!%p246_p8, %s243_s25), 3  ;;  %vm1850_vm4 = vsmask.f32 4352  ;;  %vm2639_vm5 = vcmask 1045504  }
  0x12   : > { %s5666_s27 = smul.u32 2592, %s255_s26  ;;  %s7182_s16 = smov (!%p261_p9, %s5759_s16), 1  ;;  %vm3017_vm6 = vsmask.f32 5376 }
  0x13   : > { %s5665_s5 = smul.u32 48, %s7178_s17 }
  0x14   : > { %s5864_s30 = scalar_lea.vmem %s7157_s1, %s5666_s27  ;;  %s5664_s6 = smul.u32 12, %s7180_s25 }
  0x15   : > { %v4071_v0 = vld [vmem:[%s5864_s30 + $0x1c8] sm:$0xf]  ;;  %v5398_v1 = vld [vmem:[%s5864_s30 + $0x1d0] sm:$0xf0]  ;;  %v5397_v5 = vld [vmem:[%s5864_s30 + $0x1cc] sm:$0xf] }
  0x16   : > { %v4119_v2 = vld [vmem:[%s5864_s30 + $0x228] sm:$0xf]  ;;  %v4072_v3 = vor.u32 %v5398_v1, %v4071_v0  ;;  %v5410_v4 = vld [vmem:[%s5864_s30 + $0x230] sm:$0xf0]  ;;  %v4073_v6 = vld [vmem:[%s5864_s30 + $0x1d4] sm:$0xf0]  ;;  %s250_s7 = sadd.s32 %s5665_s5, %s5664_s6 }
  0x17   : > { %v4120_v7 = vor.u32 %v5410_v4, %v4119_v2  ;;  %v4076_v8 = vor.u32 %v5397_v5, %v4073_v6  ;;  %v5409_v9 = vld [vmem:[%s5864_s30 + $0x22c] sm:$0xf]  ;;  %v4121_v10 = vld [vmem:[%s5864_s30 + $0x234] sm:$0xf0]  ;;  %v4059_v11 = vld [vmem:[%s5864_s30 + $0x1b0] sm:$0xf] }
  0x18   : > { %617 = vmatpush.bf16.msra.mxu0 %v4072_v3  ;;  %v4124_v12 = vor.u32 %v5409_v9, %v4121_v10  ;;  %v5395_v13 = vld [vmem:[%s5864_s30 + $0x1b8] sm:$0xf0]  ;;  %v4107_v14 = vld [vmem:[%s5864_s30 + $0x210] sm:$0xf]  ;;  %v5394_v18 = vld [vmem:[%s5864_s30 + $0x1b4] sm:$0xf] }
  0x19   : > { %v5407_v15 = vld [vmem:[%s5864_s30 + $0x218] sm:$0xf0]  ;;  %639 = vmatpush.bf16.msra.mxu1 %v4120_v7  ;;  %653 = vmatpush.bf16.msra.mxu2 %v4076_v8  ;;  %v4060_v16 = vor.u32 %v5395_v13, %v4059_v11  ;;  %v4061_v19 = vld [vmem:[%s5864_s30 + $0x1bc] sm:$0xf0]  ;;  %v5406_v20 = vld [vmem:[%s5864_s30 + $0x214] sm:$0xf] }
  0x1a   : > { %v4108_v17 = vor.u32 %v5407_v15, %v4107_v14  ;;  %675 = vmatpush.bf16.msra.mxu3 %v4124_v12  ;;  %v4064_v21 = vor.u32 %v5394_v18, %v4061_v19  ;;  %v4109_v22 = vld [vmem:[%s5864_s30 + $0x21c] sm:$0xf0]  ;;  %v4047_v23 = vld [vmem:[%s5864_s30 + $0x198] sm:$0xf]  ;;  %v5392_v24 = vld [vmem:[%s5864_s30 + $0x1a0] sm:$0xf0] }
  0x1b   : > { %v4112_v25 = vor.u32 %v5406_v20, %v4109_v22  ;;  %v4095_v26 = vld [vmem:[%s5864_s30 + $0x1f8] sm:$0xf]  ;;  %v5404_v27 = vld [vmem:[%s5864_s30 + $0x200] sm:$0xf0]  ;;  %v5391_v28 = vld [vmem:[%s5864_s30 + $0x19c] sm:$0xf]  ;;  %v4048_v29 = vor.u32 %v5392_v24, %v4047_v23 }
  0x1c   : > { %618 = vmatpush.bf16.msra.mxu0 %v4060_v16  ;;  %v4049_v30 = vld [vmem:[%s5864_s30 + $0x1a4] sm:$0xf0]  ;;  %v5403_v31 = vld [vmem:[%s5864_s30 + $0x1fc] sm:$0xf]  ;;  %v4096_v33 = vor.u32 %v5404_v27, %v4095_v26  ;;  %v4035_v35 = vld [vmem:[%s5864_s30 + $0x180] sm:$0xf] }
  0x1d   : > { %v4097_v32 = vld [vmem:[%s5864_s30 + $0x204] sm:$0xf0]  ;;  %640 = vmatpush.bf16.msra.mxu1 %v4108_v17  ;;  %654 = vmatpush.bf16.msra.mxu2 %v4064_v21  ;;  %v4052_v34 = vor.u32 %v5391_v28, %v4049_v30  ;;  %v5389_v36 = vld [vmem:[%s5864_s30 + $0x188] sm:$0xf0]  ;;  %v4083_v37 = vld [vmem:[%s5864_s30 + $0x1e0] sm:$0xf] }
  0x1e   : > { %676 = vmatpush.bf16.msra.mxu3 %v4112_v25  ;;  %v4100_v38 = vor.u32 %v5403_v31, %v4097_v32  ;;  %v5401_v39 = vld [vmem:[%s5864_s30 + $0x1e8] sm:$0xf0]  ;;  %v5388_v40 = vld [vmem:[%s5864_s30 + $0x184] sm:$0xf]  ;;  %v4037_v41 = vld [vmem:[%s5864_s30 + $0x18c] sm:$0xf0]  ;;  %v4036_v44 = vor.u32 %v5389_v36, %v4035_v35 }
  0x1f   : > { %v5400_v42 = vld [vmem:[%s5864_s30 + $0x1e4] sm:$0xf]  ;;  %v4085_v43 = vld [vmem:[%s5864_s30 + $0x1ec] sm:$0xf0]  ;;  %v5411_v46 = vld [vmem:[%s5864_s30 + $0x238] sm:$0xf0]  ;;  %v4084_v47 = vor.u32 %v5401_v39, %v4083_v37  ;;  %v4040_v48 = vor.u32 %v5388_v40, %v4037_v41 }
  0x20   : > { %619 = vmatpush.bf16.msra.mxu0 %v4048_v29  ;;  %v4127_v45 = vld [vmem:[%s5864_s30 + $0x230] sm:$0xf]  ;;  %s5668_s8 = smul.u32 18, %s7178_s17  ;;  %v4023_v49 = vld [vmem:[%s5864_s30 + $0x168] sm:$0xf]  ;;  %v4088_v51 = vor.u32 %v5400_v42, %v4085_v43  ;;  %s3982_s9 = sshll.u32 %s250_s7, 2 }
  0x21   : > { %641 = vmatpush.bf16.msra.mxu1 %v4096_v33  ;;  %655 = vmatpush.bf16.msra.mxu2 %v4052_v34  ;;  %v5386_v50 = vld [vmem:[%s5864_s30 + $0x170] sm:$0xf0]  ;;  %s5667_s10 = smul.u32 9, %s7182_s16  ;;  %v5385_v52 = vld [vmem:[%s5864_s30 + $0x16c] sm:$0xf]  ;;  %s5915_s13 = scalar_lea.vmem %s7156_s0, %s3982_s9  ;;  %v4128_v54 = vor.u32 %v5411_v46, %v4127_v45 }
  0x22   : > { %677 = vmatpush.bf16.msra.mxu3 %v4100_v38  ;;  %v4025_v53 = vld [vmem:[%s5864_s30 + $0x174] sm:$0xf0]  ;;  %v4079_v55 = vld [vmem:[%s5864_s30 + $0x1d0] sm:$0xf]  ;;  %v5399_v56 = vld [vmem:[%s5864_s30 + $0x1d8] sm:$0xf0]  ;;  %v4024_v61 = vor.u32 %v5386_v50, %v4023_v49 }
  0x23   : > { %v4011_v57 = vld [vmem:[%s5864_s30 + $0x150] sm:$0xf]  ;;  %s265_s14 = sadd.s32 %s5668_s8, %s5667_s10  ;;  %v269_v58 = vld [vmem:[%s5915_s13] sm:$0xff]  ;;  %v270_v59 = vld [vmem:[%s5915_s13 + $0x8] sm:$0xff]  ;;  %v4028_v62 = vor.u32 %v5385_v52, %v4025_v53  ;;  %v4080_v63 = vor.u32 %v5399_v56, %v4079_v55 }
  0x24   : > { %620 = vmatpush.bf16.msra.mxu0 %v4036_v44  ;;  %v271_v60 = vld [vmem:[%s5915_s13 + $0x10] sm:$0xff]  ;;  %s3984_s16 = sshll.u32 %s265_s14, 3  ;;  %v320_v0 = vld [vmem:[%s5915_s13 + $0x18] sm:$0x11]  ;;  %v374_v1 = vunpack.c.h.b16 %v269_v58  ;;  %v5924_v2 = vunpack.c.h.b16 %v270_v59  ;;  %v373_v5 = vunpack.c.l.b16 %v269_v58  ;;  %v4013_v8 = vld [vmem:[%s5864_s30 + $0x15c] sm:$0xf0]  ;;  %v5937_v10 = vunpack.c.l.b16 %v270_v59 }
  0x25   : > { %642 = vmatpush.bf16.msra.mxu1 %v4084_v47  ;;  %656 = vmatpush.bf16.msra.mxu2 %v4040_v48  ;;  %v5926_v3 = vunpack.c.h.b16 %v271_v60  ;;  %v5383_v4 = vld [vmem:[%s5864_s30 + $0x158] sm:$0xf0]  ;;  %s5932_s26 = scalar_lea.vmem %s7160_s4, %s3984_s16  ;;  %v380_v6 = vunpack.c.h.b16 %v320_v0  ;;  %v5382_v7 = vld [vmem:[%s5864_s30 + $0x154] sm:$0xf]  ;;  %v4067_v9 = vld [vmem:[%s5864_s30 + $0x1b8] sm:$0xf]  ;;  %v5939_v11 = vunpack.c.l.b16 %v271_v60  ;;  %v379_v17 = vunpack.c.l.b16 %v320_v0 }
  0x26   : > { %678 = vmatpush.bf16.msra.mxu3 %v4088_v51  ;;  %v5942_v12 = vpack.c.b16 %v5924_v2, %v374_v1  ;;  %v4012_v13 = vor.u32 %v5383_v4, %v4011_v57  ;;  %v5396_v14 = vld [vmem:[%s5864_s30 + $0x1c0] sm:$0xf0]  ;;  %v4115_v15 = vld [vmem:[%s5864_s30 + $0x218] sm:$0xf]  ;;  %v5953_v23 = vpack.c.b16 %v5937_v10, %v373_v5  ;;  %v4016_v26 = vor.u32 %v5382_v7, %v4013_v8  ;;  %v5379_v27 = vld [vmem:[%s5864_s30 + $0x13c] sm:$0xf] }
  0x27   : > { %v5408_v16 = vld [vmem:[%s5864_s30 + $0x220] sm:$0xf0]  ;;  %v5948_v18 = vpack.c.b16 %v380_v6, %v5926_v3  ;;  %v4068_v19 = vor.u32 %v5396_v14, %v4067_v9  ;;  %v3999_v21 = vld [vmem:[%s5864_s30 + $0x138] sm:$0xf]  ;;  %v4055_v28 = vld [vmem:[%s5864_s30 + $0x1a0] sm:$0xf]  ;;  %v5960_v29 = vpack.c.b16 %v379_v17, %v5939_v11 }
  0x28   : > { %621 = vmatpush.bf16.msra.mxu0 %v4024_v61  ;;  %v4116_v20 = vor.u32 %v5408_v16, %v4115_v15  ;;  %v5380_v22 = vld [vmem:[%s5864_s30 + $0x140] sm:$0xf0]  ;;  %v399_v24 = vshrl.u32 %v5942_v12, 16  ;;  %v401_v25 = vshll.u32 %v5942_v12, 16  ;;  %v4001_v31 = vld [vmem:[%s5864_s30 + $0x144] sm:$0xf0] }
  0x29   : > { %689 = vmatpush.bf16.msrb.mxu1 %v4080_v63  ;;  %657 = vmatpush.bf16.msra.mxu2 %v4028_v62  ;;  %v406_v30 = vshll.u32 %v5948_v18, 16  ;;  %v5393_v32 = vld [vmem:[%s5864_s30 + $0x1a8] sm:$0xf0]  ;;  %v389_v35 = vshll.u32 %v5953_v23, 16  ;;  %v4000_v37 = vor.u32 %v5380_v22, %v3999_v21  ;;  %v3987_v38 = vld [vmem:[%s5864_s30 + $0x120] sm:$0xf]  ;;  %v4004_v44 = vor.u32 %v5379_v27, %v4001_v31 }
  0x2a   : > { %711 = vmatpush.bf16.msrb.mxu3 %v4128_v54  ;;  %v403_v33 = vrot.slane %v401_v25, 1  ;;  %v4056_v34 = vor.u32 %v5393_v32, %v4055_v28  ;;  %v5377_v39 = vld [vmem:[%s5864_s30 + $0x128] sm:$0xf0]  ;;  %v5376_v40 = vld [vmem:[%s5864_s30 + $0x124] sm:$0xf]  ;;  %v387_v42 = vshrl.u32 %v5953_v23, 16 }
  0x2b   : > { %v5966_v36 = vrot.slane %v406_v30, 1  ;;  %v4043_v41 = vld [vmem:[%s5864_s30 + $0x188] sm:$0xf]  ;;  %v5390_v45 = vld [vmem:[%s5864_s30 + $0x190] sm:$0xf0]  ;;  %v391_v46 = vrot.slane %v389_v35, 1  ;;  %v3988_v58 = vor.u32 %v5377_v39, %v3987_v38 }
  0x2c   : > { %622 = vmatpush.bf16.msra.mxu0 %v4012_v13  ;;  %v404_v43 = vor.u32 %v403_v33, %v399_v24  ;;  %v394_v47 = vshll.u32 %v5960_v29, 16  ;;  %v4103_v48 = vld [vmem:[%s5864_s30 + $0x200] sm:$0xf]  ;;  %v3989_v49 = vld [vmem:[%s5864_s30 + $0x12c] sm:$0xf0]  ;;  %v4044_v50 = vor.u32 %v5390_v45, %v4043_v41  ;;  %v413_v27 = vshrl.u32 %v5948_v18, 16 }
  0x2d   : > { %690 = vmatpush.bf16.msrb.mxu1 %v4068_v19  ;;  %658 = vmatpush.bf16.msra.mxu2 %v4016_v26  ;;  %v5405_v51 = vld [vmem:[%s5864_s30 + $0x208] sm:$0xf0]  ;;  %v4031_v52 = vld [vmem:[%s5864_s30 + $0x170] sm:$0xf]  ;;  %v5387_v55 = vld [vmem:[%s5864_s30 + $0x178] sm:$0xf0]  ;;  %v3992_v59 = vor.u32 %v5376_v40, %v3989_v49  ;;  %v392_v60 = vor.u32 %v391_v46, %v387_v42 }
  0x2e   : > { %712 = vmatpush.bf16.msrb.mxu3 %v4116_v20  ;;  %v5981_v53 = vsel %vm385_vm0, %v404_v43, %v5966_v36  ;;  %v4104_v54 = vor.u32 %v5405_v51, %v4103_v48  ;;  %v4221_v56 = vld [vmem:[%s5864_s30 + $0xa8] sm:$0xf]  ;;  %v5362_v57 = vld [vmem:[%s5864_s30 + $0xb0] sm:$0xf0]  ;;  %v5990_v61 = vrot.slane %v394_v47, 1  ;;  %v4032_v0 = vor.u32 %v5387_v55, %v4031_v52 }
  0x2f   : > { %4129 = vmatmul.msk.bf16.vlgmr.msra.gmra.mxu1 %vm610_vm1, %v5981_v53  ;;  %4131 = vmatmul.msk.bf16.vlgmr.msra.gmra.mxu3 %vm610_vm1, %v5981_v53  ;;  %v4091_v62 = vld [vmem:[%s5864_s30 + $0x1e8] sm:$0xf]  ;;  %v5402_v63 = vld [vmem:[%s5864_s30 + $0x1f0] sm:$0xf0]  ;;  %v4222_v1 = vor.u32 %v5362_v57, %v4221_v56  ;;  %v4019_v4 = vld [vmem:[%s5864_s30 + $0x158] sm:$0xf] }
  0x30   : > { %623 = vmatpush.bf16.msra.mxu0 %v4000_v37  ;;  %v5384_v5 = vld [vmem:[%s5864_s30 + $0x160] sm:$0xf0]  ;;  %v4209_v6 = vld [vmem:[%s5864_s30 + $0x90] sm:$0xf]  ;;  %v5359_v7 = vld [vmem:[%s5864_s30 + $0x98] sm:$0xf0]  ;;  %v4092_v8 = vor.u32 %v5402_v63, %v4091_v62  ;;  %v6001_v13 = vsel %vm385_vm0, %v392_v60, %v5990_v61 }
  0x31   : > { %691 = vmatpush.bf16.msrb.mxu1 %v4056_v34  ;;  %659 = vmatpush.bf16.msra.mxu2 %v4004_v44  ;;  %v4269_v9 = vld [vmem:[%s5864_s30 + $0x108] sm:$0xf]  ;;  %v4020_v14 = vor.u32 %v5384_v5, %v4019_v4  ;;  %v5374_v15 = vld [vmem:[%s5864_s30 + $0x110] sm:$0xf0]  ;;  %v5373_v16 = vld [vmem:[%s5864_s30 + $0x10c] sm:$0xf]  ;;  %v4210_v19 = vor.u32 %v5359_v7, %v4209_v6  ;;  %v6024_v44 = vor.u32 %v413_v27, %v5966_v36 }
  0x32   : > { %713 = vmatpush.bf16.msrb.mxu3 %v4104_v54  ;;  %v4271_v17 = vld [vmem:[%s5864_s30 + $0x114] sm:$0xf0]  ;;  %v4007_v20 = vld [vmem:[%s5864_s30 + $0x140] sm:$0xf]  ;;  %v4270_v21 = vor.u32 %v5374_v15, %v4269_v9  ;;  %v5381_v24 = vld [vmem:[%s5864_s30 + $0x148] sm:$0xf0] }
  0x33   : > { %v4274_v22 = vor.u32 %v5373_v16, %v4271_v17  ;;  %v4197_v25 = vld [vmem:[%s5864_s30 + $0x78] sm:$0xf]  ;;  %v5356_v26 = vld [vmem:[%s5864_s30 + $0x80] sm:$0xf0]  ;;  %v4257_v28 = vld [vmem:[%s5864_s30 + $0xf0] sm:$0xf]  ;;  %v4008_v34 = vor.u32 %v5381_v24, %v4007_v20 }
  0x34   : > { %624 = vmatpush.bf16.msra.mxu0 %v3988_v58  ;;  %v5371_v30 = vld [vmem:[%s5864_s30 + $0xf8] sm:$0xf0]  ;;  %v5370_v32 = vld [vmem:[%s5864_s30 + $0xf4] sm:$0xf]  ;;  %v4259_v33 = vld [vmem:[%s5864_s30 + $0xfc] sm:$0xf0]  ;;  %v4198_v35 = vor.u32 %v5356_v26, %v4197_v25 }
  0x35   : > { %692 = vmatpush.bf16.msrb.mxu1 %v4044_v50  ;;  %660 = vmatpush.bf16.msra.mxu2 %v3992_v59  ;;  %v4258_v31 = vor.u32 %v5371_v30, %v4257_v28  ;;  %v3995_v37 = vld [vmem:[%s5864_s30 + $0x128] sm:$0xf]  ;;  %v5378_v38 = vld [vmem:[%s5864_s30 + $0x130] sm:$0xf0]  ;;  %v4262_v39 = vor.u32 %v5370_v32, %v4259_v33  ;;  %v4245_v40 = vld [vmem:[%s5864_s30 + $0xd8] sm:$0xf] }
  0x36   : > { %714 = vmatpush.bf16.msrb.mxu3 %v4092_v8  ;;  %v4185_v41 = vld [vmem:[%s5864_s30 + $0x60] sm:$0xf]  ;;  %v5353_v42 = vld [vmem:[%s5864_s30 + $0x68] sm:$0xf0]  ;;  %v5368_v43 = vld [vmem:[%s5864_s30 + $0xe0] sm:$0xf0]  ;;  %v3996_v48 = vor.u32 %v5378_v38, %v3995_v37 }
  0x37   : > { %625 = vmatmul.bf16.vlgmr.msra.gmra.mxu0 %v6001_v13  ;;  %v5361_v45 = vld [vmem:[%s5864_s30 + $0xac] sm:$0xf]  ;;  %v4223_v46 = vld [vmem:[%s5864_s30 + $0xb4] sm:$0xf0]  ;;  %v4246_v47 = vor.u32 %v5368_v43, %v4245_v40  ;;  %v4186_v49 = vor.u32 %v5353_v42, %v4185_v41  ;;  %v410_v50 = vshrl.u32 %v5960_v29, 16 }
  0x38   : > { %926 = vmatpush.bf16.msrb.mxu0 %v4222_v1  ;;  %661 = vmatmul.bf16.vlgmr.msra.gmra.mxu2 %v6001_v13  ;;  %v4233_v51 = vld [vmem:[%s5864_s30 + $0xc0] sm:$0xf]  ;;  %v5365_v52 = vld [vmem:[%s5864_s30 + $0xc8] sm:$0xf0]  ;;  %v4173_v36 = vld [vmem:[%s5864_s30 + $0x48] sm:$0xf]  ;;  %v4226_v55 = vor.u32 %v5361_v45, %v4223_v46 }
  0x39   : > { %693 = vmatpush.bf16.msrb.mxu1 %v4032_v0  ;;  %948 = vmatpush.bf16.msrb.mxu2 %v4270_v21  ;;  %v5350_v54 = vld [vmem:[%s5864_s30 + $0x50] sm:$0xf0]  ;;  %v4211_v57 = vld [vmem:[%s5864_s30 + $0x9c] sm:$0xf0]  ;;  %v5367_v58 = vld [vmem:[%s5864_s30 + $0xdc] sm:$0xf]  ;;  %v4234_v60 = vor.u32 %v5365_v52, %v4233_v51  ;;  %v6046_v8 = vor.u32 %v410_v50, %v5990_v61 }
  0x3a   : > { %984 = vmatpush.bf16.msra.mxu3 %v4274_v22  ;;  %v5358_v56 = vld [vmem:[%s5864_s30 + $0x94] sm:$0xf]  ;;  %v4247_v59 = vld [vmem:[%s5864_s30 + $0xe4] sm:$0xf0]  ;;  %v4174_v63 = vor.u32 %v5350_v54, %v4173_v36  ;;  %v5364_v0 = vld [vmem:[%s5864_s30 + $0xc4] sm:$0xf] }
  0x3b   : > { %v4250_v62 = vor.u32 %v5367_v58, %v4247_v59  ;;  %v4235_v1 = vld [vmem:[%s5864_s30 + $0xcc] sm:$0xf0]  ;;  %v5347_v5 = vld [vmem:[%s5864_s30 + $0x38] sm:$0xf0]  ;;  %v4214_v6 = vor.u32 %v5358_v56, %v4211_v57  ;;  %v4149_v16 = vld [vmem:[%s5864_s30 + $0x18] sm:$0xf] }
  0x3c   : > { %927 = vmatpush.bf16.msrb.mxu0 %v4210_v19  ;;  %v4161_v4 = vld [vmem:[%s5864_s30 + $0x30] sm:$0xf]  ;;  %v4238_v7 = vor.u32 %v5364_v0, %v4235_v1  ;;  %v5355_v9 = vld [vmem:[%s5864_s30 + $0x7c] sm:$0xf]  ;;  %v5344_v17 = vld [vmem:[%s5864_s30 + $0x20] sm:$0xf0] }
  0x3d   : > { %694 = vmatpush.bf16.msrb.mxu1 %v4020_v14  ;;  %949 = vmatpush.bf16.msrb.mxu2 %v4258_v31  ;;  %v4199_v14 = vld [vmem:[%s5864_s30 + $0x84] sm:$0xf0]  ;;  %v4162_v15 = vor.u32 %v5347_v5, %v4161_v4  ;;  %v5352_v61 = vld [vmem:[%s5864_s30 + $0x64] sm:$0xf]  ;;  %v4187_v20 = vld [vmem:[%s5864_s30 + $0x6c] sm:$0xf0]  ;;  %v4150_v21 = vor.u32 %v5344_v17, %v4149_v16 }
  0x3e   : > { %985 = vmatpush.bf16.msra.mxu3 %v4262_v39  ;;  %v4202_v19 = vor.u32 %v5355_v9, %v4199_v14  ;;  %v4137_v22 = vld [vmem:[%s5864_s30] sm:$0xf]  ;;  %v5341_v24 = vld [vmem:[%s5864_s30 + $0x8] sm:$0xf0]  ;;  %v4190_v25 = vor.u32 %v5352_v61, %v4187_v20  ;;  %v4175_v27 = vld [vmem:[%s5864_s30 + $0x54] sm:$0xf0] }
  0x3f   : > { %4130 = vmatmul.msk.bf16.gmra.mxu1 %vm610_vm1, %v6024_v44  ;;  %4132 = vmatmul.msk.bf16.gmra.mxu3 %vm610_vm1, %v6024_v44  ;;  %v5349_v26 = vld [vmem:[%s5864_s30 + $0x4c] sm:$0xf]  ;;  %v4229_v28 = vld [vmem:[%s5864_s30 + $0xb0] sm:$0xf]  ;;  %v5363_v30 = vld [vmem:[%s5864_s30 + $0xb8] sm:$0xf0]  ;;  %v4138_v31 = vor.u32 %v5341_v24, %v4137_v22 }
  0x40   : > { %928 = vmatpush.bf16.msrb.mxu0 %v4198_v35  ;;  %v4277_v32 = vld [vmem:[%s5864_s30 + $0x110] sm:$0xf]  ;;  %v5375_v33 = vld [vmem:[%s5864_s30 + $0x118] sm:$0xf0]  ;;  %v4230_v35 = vor.u32 %v5363_v30, %v4229_v28  ;;  %v5346_v37 = vld [vmem:[%s5864_s30 + $0x34] sm:$0xf] }
  0x41   : > { %695 = vmatpush.bf16.msrb.mxu1 %v4008_v34  ;;  %950 = vmatpush.bf16.msrb.mxu2 %v4246_v47  ;;  %v4178_v34 = vor.u32 %v5349_v26, %v4175_v27  ;;  %v4163_v38 = vld [vmem:[%s5864_s30 + $0x3c] sm:$0xf0]  ;;  %v4217_v39 = vld [vmem:[%s5864_s30 + $0x98] sm:$0xf]  ;;  %v4278_v40 = vor.u32 %v5375_v33, %v4277_v32  ;;  %v5360_v41 = vld [vmem:[%s5864_s30 + $0xa0] sm:$0xf0] }
  0x42   : > { %986 = vmatpush.bf16.msra.mxu3 %v4250_v62  ;;  %v4419_v42 = vld [vmem:[%s5864_s30 + $0x348] sm:$0xf]  ;;  %v5446_v43 = vld [vmem:[%s5864_s30 + $0x350] sm:$0xf0]  ;;  %v4265_v46 = vld [vmem:[%s5864_s30 + $0xf8] sm:$0xf]  ;;  %v4218_v50 = vor.u32 %v5360_v41, %v4217_v39 }
  0x43   : > { %v4420_v45 = vor.u32 %v5446_v43, %v4419_v42  ;;  %v5372_v47 = vld [vmem:[%s5864_s30 + $0x100] sm:$0xf0]  ;;  %v4151_v51 = vld [vmem:[%s5864_s30 + $0x24] sm:$0xf0]  ;;  %v4205_v52 = vld [vmem:[%s5864_s30 + $0x80] sm:$0xf] }
  0x44   : > { %929 = vmatpush.bf16.msrb.mxu0 %v4186_v49  ;;  %v4266_v49 = vor.u32 %v5372_v47, %v4265_v46  ;;  %v5443_v36 = vld [vmem:[%s5864_s30 + $0x338] sm:$0xf0]  ;;  %v5357_v54 = vld [vmem:[%s5864_s30 + $0x88] sm:$0xf0]  ;;  %v4241_v59 = vld [vmem:[%s5864_s30 + $0xc8] sm:$0xf] }
  0x45   : > { %696 = vmatpush.bf16.msrb.mxu1 %v3996_v48  ;;  %951 = vmatpush.bf16.msrb.mxu2 %v4234_v60  ;;  %v5343_v48 = vld [vmem:[%s5864_s30 + $0x1c] sm:$0xf]  ;;  %v5369_v56 = vld [vmem:[%s5864_s30 + $0xe8] sm:$0xf0]  ;;  %v5366_v60 = vld [vmem:[%s5864_s30 + $0xd0] sm:$0xf0] }
  0x46   : > { %987 = vmatpush.bf16.msra.mxu3 %v4238_v7  ;;  %v4154_v62 = vor.u32 %v5343_v48, %v4151_v51  ;;  %v5340_v0 = vld [vmem:[%s5864_s30 + $0x4] sm:$0xf]  ;;  %v4139_v1 = vld [vmem:[%s5864_s30 + $0xc] sm:$0xf0]  ;;  %v4193_v4 = vld [vmem:[%s5864_s30 + $0x68] sm:$0xf] }
  0x47   : > { %630 = vmatmul.bf16.gmra.mxu0 %v6046_v8  ;;  %v5354_v5 = vld [vmem:[%s5864_s30 + $0x70] sm:$0xf0]  ;;  %v4371_v7 = vld [vmem:[%s5864_s30 + $0x2e8] sm:$0xf]  ;;  %v4142_v14 = vor.u32 %v5340_v0, %v4139_v1  ;;  %v4181_v16 = vld [vmem:[%s5864_s30 + $0x50] sm:$0xf] }
  0x48   : > { %930 = vmatpush.bf16.msrb.mxu0 %v4174_v63  ;;  %666 = vmatmul.bf16.gmra.mxu2 %v6046_v8  ;;  %v4206_v63 = vor.u32 %v5357_v54, %v4205_v52  ;;  %v5434_v9 = vld [vmem:[%s5864_s30 + $0x2f0] sm:$0xf0]  ;;  %v5351_v17 = vld [vmem:[%s5864_s30 + $0x58] sm:$0xf0]  ;;  %v4359_v61 = vld [vmem:[%s5864_s30 + $0x2d0] sm:$0xf] }
  0x49   : > { %962 = vmatpush.bf16.msra.mxu1 %v4226_v55  ;;  %1020 = vmatpush.bf16.msra.mxu2 %v4278_v40  ;;  %v4253_v55 = vld [vmem:[%s5864_s30 + $0xe0] sm:$0xf]  ;;  %v5431_v20 = vld [vmem:[%s5864_s30 + $0x2d8] sm:$0xf0]  ;;  %v4169_v22 = vld [vmem:[%s5864_s30 + $0x38] sm:$0xf] }
  0x4a   : > { %v4254_v58 = vor.u32 %v5369_v56, %v4253_v55  ;;  %v5348_v24 = vld [vmem:[%s5864_s30 + $0x40] sm:$0xf0]  ;;  %v4360_v27 = vor.u32 %v5431_v20, %v4359_v61  ;;  %v4347_v28 = vld [vmem:[%s5864_s30 + $0x2b8] sm:$0xf]  ;;  %v4383_v32 = vld [vmem:[%s5864_s30 + $0x300] sm:$0xf] }
  0x4b   : > { %v5440_v26 = vld [vmem:[%s5864_s30 + $0x320] sm:$0xf0]  ;;  %v5437_v33 = vld [vmem:[%s5864_s30 + $0x308] sm:$0xf0]  ;;  %v4335_v40 = vld [vmem:[%s5864_s30 + $0x2a0] sm:$0xf] }
  0x4c   : > { %931 = vmatpush.bf16.msrb.mxu0 %v4162_v15  ;;  %v4194_v15 = vor.u32 %v5354_v5, %v4193_v4  ;;  %v5425_v41 = vld [vmem:[%s5864_s30 + $0x2a8] sm:$0xf0]  ;;  %v4145_v43 = vld [vmem:[%s5864_s30 + $0x8] sm:$0xf]  ;;  %v5422_v48 = vld [vmem:[%s5864_s30 + $0x290] sm:$0xf0] }
  0x4d   : > { %963 = vmatpush.bf16.msra.mxu1 %v4214_v6  ;;  %1021 = vmatpush.bf16.msra.mxu2 %v4266_v49  ;;  %v4242_v6 = vor.u32 %v5366_v60, %v4241_v59  ;;  %v4336_v46 = vor.u32 %v5425_v41, %v4335_v40  ;;  %v4323_v47 = vld [vmem:[%s5864_s30 + $0x288] sm:$0xf]  ;;  %v5433_v49 = vld [vmem:[%s5864_s30 + $0x2ec] sm:$0xf]  ;;  %v4311_v51 = vld [vmem:[%s5864_s30 + $0x270] sm:$0xf] }
  0x4e   : > { %v5419_v52 = vld [vmem:[%s5864_s30 + $0x278] sm:$0xf0]  ;;  %v5430_v54 = vld [vmem:[%s5864_s30 + $0x2d4] sm:$0xf]  ;;  %v4361_v55 = vld [vmem:[%s5864_s30 + $0x2dc] sm:$0xf0] }
  0x4f   : > { %697 = vmatmul.bf16.vlgmr.msrb.gmra.mxu1 %v6001_v13  ;;  %4133 = vmatmul.msk.bf16.vlgmr.msrb.gmra.mxu3 %vm610_vm1, %v5981_v53  ;;  %v4407_v13 = vld [vmem:[%s5864_s30 + $0x330] sm:$0xf]  ;;  %v4166_v53 = vor.u32 %v5346_v37, %v4163_v38  ;;  %v4157_v37 = vld [vmem:[%s5864_s30 + $0x20] sm:$0xf]  ;;  %v5345_v38 = vld [vmem:[%s5864_s30 + $0x28] sm:$0xf0]  ;;  %v4364_v0 = vor.u32 %v5430_v54, %v4361_v55 }
  0x50   : > { %932 = vmatpush.bf16.msrb.mxu0 %v4150_v21  ;;  %1317 = vmatpush.bf16.msrb.mxu3 %v4420_v45  ;;  %v4408_v57 = vor.u32 %v5443_v36, %v4407_v13  ;;  %v4182_v21 = vor.u32 %v5351_v17, %v4181_v16  ;;  %v4158_v42 = vor.u32 %v5345_v38, %v4157_v37  ;;  %v5342_v45 = vld [vmem:[%s5864_s30 + $0x10] sm:$0xf0]  ;;  %v4373_v13 = vld [vmem:[%s5864_s30 + $0x2f4] sm:$0xf0]  ;;  %v5445_v56 = vld [vmem:[%s5864_s30 + $0x34c] sm:$0xf] }
  0x51   : > { %964 = vmatpush.bf16.msra.mxu1 %v4202_v19  ;;  %1022 = vmatpush.bf16.msra.mxu2 %v4254_v58  ;;  %v4372_v19 = vor.u32 %v5434_v9, %v4371_v7  ;;  %v4376_v36 = vor.u32 %v5433_v49, %v4373_v13  ;;  %v4427_v59 = vld [vmem:[%s5864_s30 + $0x350] sm:$0xf]  ;;  %v5447_v60 = vld [vmem:[%s5864_s30 + $0x358] sm:$0xf0]  ;;  %v5442_v4 = vld [vmem:[%s5864_s30 + $0x334] sm:$0xf] }
  0x52   : > { %v4428_v1 = vor.u32 %v5447_v60, %v4427_v59  ;;  %v4409_v5 = vld [vmem:[%s5864_s30 + $0x33c] sm:$0xf0]  ;;  %v5427_v7 = vld [vmem:[%s5864_s30 + $0x2bc] sm:$0xf]  ;;  %v4349_v9 = vld [vmem:[%s5864_s30 + $0x2c4] sm:$0xf0] }
  0x53   : > { %v5444_v16 = vld [vmem:[%s5864_s30 + $0x340] sm:$0xf0]  ;;  %v4397_v61 = vld [vmem:[%s5864_s30 + $0x324] sm:$0xf0]  ;;  %v5421_v37 = vld [vmem:[%s5864_s30 + $0x28c] sm:$0xf] }
  0x54   : > { %933 = vmatpush.bf16.msrb.mxu0 %v4138_v31  ;;  %1318 = vmatpush.bf16.msrb.mxu3 %v4408_v57  ;;  %v5428_v31 = vld [vmem:[%s5864_s30 + $0x2c0] sm:$0xf0]  ;;  %v4421_v57 = vld [vmem:[%s5864_s30 + $0x354] sm:$0xf0]  ;;  %v5441_v49 = vld [vmem:[%s5864_s30 + $0x328] sm:$0xf0] }
  0x55   : > { %965 = vmatpush.bf16.msra.mxu1 %v4190_v25  ;;  %1023 = vmatpush.bf16.msra.mxu2 %v4242_v6  ;;  %v4395_v25 = vld [vmem:[%s5864_s30 + $0x318] sm:$0xf]  ;;  %v4348_v39 = vor.u32 %v5428_v31, %v4347_v28  ;;  %v4424_v58 = vor.u32 %v5445_v56, %v4421_v57  ;;  %v5416_v6 = vld [vmem:[%s5864_s30 + $0x260] sm:$0xf0]  ;;  %v4301_v54 = vld [vmem:[%s5864_s30 + $0x264] sm:$0xf0] }
  0x56   : > { %v4396_v30 = vor.u32 %v5440_v26, %v4395_v25  ;;  %v4379_v25 = vld [vmem:[%s5864_s30 + $0x2f0] sm:$0xf]  ;;  %v5424_v26 = vld [vmem:[%s5864_s30 + $0x2a4] sm:$0xf]  ;;  %v4325_v38 = vld [vmem:[%s5864_s30 + $0x294] sm:$0xf0] }
  0x57   : > { %934 = vmatmul.bf16.vlgmr.msrb.gmra.mxu0 %v5953_v23  ;;  %v5436_v31 = vld [vmem:[%s5864_s30 + $0x304] sm:$0xf]  ;;  %v4367_v40 = vld [vmem:[%s5864_s30 + $0x2d8] sm:$0xf]  ;;  %v4391_v55 = vld [vmem:[%s5864_s30 + $0x308] sm:$0xf] }
  0x58   : > { %998 = vmatpush.bf16.msra.mxu0 %v4230_v35  ;;  %4279 = vmatmul.msk.bf16.vlgmr.msrb.gmra.mxu2 %vm610_vm1, %v5942_v12  ;;  %v6115_v35 = vpack.c.b16 %v5926_v3, %v5926_v3  ;;  %v1034_v41 = vld [vmem:[%s5915_s13] sm:$0xee]  ;;  %v4343_v56 = vld [vmem:[%s5864_s30 + $0x2a8] sm:$0xf]  ;;  %v5426_v57 = vld [vmem:[%s5864_s30 + $0x2b0] sm:$0xf0] }
  0x59   : > { %966 = vmatpush.bf16.msra.mxu1 %v4178_v34  ;;  %v4170_v34 = vor.u32 %v5348_v24, %v4169_v22  ;;  %1319 = vmatpush.bf16.msrb.mxu3 %v4396_v30  ;;  %v5413_v22 = vld [vmem:[%s5864_s30 + $0x248] sm:$0xf0]  ;;  %v4352_v24 = vor.u32 %v5427_v7, %v4349_v9  ;;  %v5435_v30 = vld [vmem:[%s5864_s30 + $0x2f8] sm:$0xf0]  ;;  %v1084_v13 = vunpack.c.l.b16 %v1034_v41  ;;  %v4521_v7 = vld [vmem:[%s5864_s30 + $0x408] sm:$0xf] }
  0x5a   : > { %1353 = vmatpush.bf16.msrb.mxu2 %v4424_v58  ;;  %v5438_v58 = vld [vmem:[%s5864_s30 + $0x310] sm:$0xf0] }
  0x5b   : > { %v4392_v59 = vor.u32 %v5438_v58, %v4391_v55  ;;  %v1086_v60 = vpack.c.b16 %v5937_v10, %v1084_v13  ;;  %v5470_v9 = vld [vmem:[%s5864_s30 + $0x410] sm:$0xf0]  ;;  %v4545_v13 = vld [vmem:[%s5864_s30 + $0x438] sm:$0xf]  ;;  %v4511_v58 = vld [vmem:[%s5864_s30 + $0x3fc] sm:$0xf0] }
  0x5c   : > { %999 = vmatpush.bf16.msra.mxu0 %v4218_v50  ;;  %v4324_v50 = vor.u32 %v5422_v48, %v4323_v47  ;;  %v5429_v47 = vld [vmem:[%s5864_s30 + $0x2c8] sm:$0xf0]  ;;  %v4403_v48 = vld [vmem:[%s5864_s30 + $0x320] sm:$0xf]  ;;  %v5458_v55 = vld [vmem:[%s5864_s30 + $0x3b0] sm:$0xf0] }
  0x5d   : > { %967 = vmatpush.bf16.msra.mxu1 %v4166_v53  ;;  %v4146_v53 = vor.u32 %v5342_v45, %v4145_v43  ;;  %v5418_v43 = vld [vmem:[%s5864_s30 + $0x274] sm:$0xf]  ;;  %v4313_v45 = vld [vmem:[%s5864_s30 + $0x27c] sm:$0xf0] }
  0x5f   : > { %702 = vmatmul.bf16.gmra.mxu1 %v6046_v8  ;;  %4134 = vmatmul.msk.bf16.gmra.mxu3 %vm610_vm1, %v6024_v44  ;;  %v4384_v44 = vor.u32 %v5437_v33, %v4383_v32  ;;  %v6111_v8 = vpack.c.b16 %v5939_v11, %v5939_v11  ;;  %v4385_v32 = vld [vmem:[%s5864_s30 + $0x30c] sm:$0xf0] }
  0x60   : > { %1000 = vmatpush.bf16.msra.mxu0 %v4206_v63  ;;  %v4299_v63 = vld [vmem:[%s5864_s30 + $0x258] sm:$0xf] }
  0x61   : > { %968 = vmatpush.bf16.msra.mxu1 %v4154_v62  ;;  %1320 = vmatpush.bf16.msrb.mxu3 %v4384_v44  ;;  %v4312_v62 = vor.u32 %v5419_v52, %v4311_v51  ;;  %v4300_v20 = vor.u32 %v5416_v6, %v4299_v63  ;;  %v4380_v44 = vor.u32 %v5435_v30, %v4379_v25  ;;  %v5423_v6 = vld [vmem:[%s5864_s30 + $0x298] sm:$0xf0]  ;;  %v4307_v25 = vld [vmem:[%s5864_s30 + $0x260] sm:$0xf]  ;;  %v5417_v30 = vld [vmem:[%s5864_s30 + $0x268] sm:$0xf0] }
  0x62   : > { %v4404_v51 = vor.u32 %v5441_v49, %v4403_v48  ;;  %v5478_v48 = vld [vmem:[%s5864_s30 + $0x454] sm:$0xf]  ;;  %v4559_v49 = vld [vmem:[%s5864_s30 + $0x45c] sm:$0xf0] }
  0x64   : > { %1001 = vmatpush.bf16.msra.mxu0 %v4194_v15  ;;  %v4415_v15 = vld [vmem:[%s5864_s30 + $0x338] sm:$0xf] }
  0x65   : > { %969 = vmatpush.bf16.msra.mxu1 %v4142_v14  ;;  %v4412_v14 = vor.u32 %v5442_v4, %v4409_v5  ;;  %v4416_v17 = vor.u32 %v5444_v16, %v4415_v15  ;;  %v5412_v4 = vld [vmem:[%s5864_s30 + $0x244] sm:$0xf]  ;;  %v4289_v5 = vld [vmem:[%s5864_s30 + $0x24c] sm:$0xf0]  ;;  %v1089_v15 = vrot.slane %v1086_v60, 1 }
  0x66   : > { %v4533_v60 = vld [vmem:[%s5864_s30 + $0x420] sm:$0xf] }
  0x67   : > { %939 = vmatmul.bf16.gmra.mxu0 %v6111_v8  ;;  %1354 = vmatpush.bf16.msrb.mxu2 %v4412_v14  ;;  %v6194_v14 = vrot.slane %v5960_v29, 1  ;;  %v5420_v29 = vld [vmem:[%s5864_s30 + $0x280] sm:$0xf0] }
  0x68   : > { %1002 = vmatpush.bf16.msra.mxu0 %v4182_v21  ;;  %4280 = vmatmul.msk.bf16.gmra.mxu2 %vm610_vm1, %v6115_v35  ;;  %v4287_v21 = vld [vmem:[%s5864_s30 + $0x240] sm:$0xf] }
  0x69   : > { %1295 = vmatpush.bf16.msrb.mxu1 %v4372_v19  ;;  %v5439_v19 = vld [vmem:[%s5864_s30 + $0x31c] sm:$0xf]  ;;  %v4288_v33 = vor.u32 %v5413_v22, %v4287_v21  ;;  %v6204_v22 = vsel %vm1088_vm2, %v1089_v15, %v6194_v14  ;;  %v5460_v15 = vld [vmem:[%s5864_s30 + $0x3c4] sm:$0xf] }
  0x6a   : > { %v4400_v28 = vor.u32 %v5439_v19, %v4397_v61  ;;  %v4292_v19 = vor.u32 %v5412_v4, %v4289_v5  ;;  %v5467_v21 = vld [vmem:[%s5864_s30 + $0x3f8] sm:$0xf0] }
  0x6b   : > { %v5463_v5 = vld [vmem:[%s5864_s30 + $0x3dc] sm:$0xf] }
  0x6c   : > { %1003 = vmatpush.bf16.msra.mxu0 %v4170_v34  ;;  %1355 = vmatpush.bf16.msrb.mxu2 %v4400_v28  ;;  %v5482_v28 = vld [vmem:[%s5864_s30 + $0x470] sm:$0xf0] }
  0x6d   : > { %1296 = vmatpush.bf16.msrb.mxu1 %v4360_v27  ;;  %v4337_v27 = vld [vmem:[%s5864_s30 + $0x2ac] sm:$0xf0] }
  0x6e   : > { %v4340_v34 = vor.u32 %v5424_v26, %v4337_v27  ;;  %v4569_v27 = vld [vmem:[%s5864_s30 + $0x468] sm:$0xf] }
  0x6f   : > { %970 = vmatmul.bf16.vlgmr.msra.gmra.mxu1 %v5953_v23  ;;  %4281 = vmatmul.msk.bf16.vlgmr.msra.gmra.mxu3 %vm610_vm1, %v5942_v12 }
  0x70   : > { %1004 = vmatpush.bf16.msra.mxu0 %v4158_v42  ;;  %1389 = vmatpush.bf16.msra.mxu3 %v4428_v1  ;;  %v4331_v1 = vld [vmem:[%s5864_s30 + $0x290] sm:$0xf] }
  0x71   : > { %1297 = vmatpush.bf16.msrb.mxu1 %v4348_v39  ;;  %v4388_v39 = vor.u32 %v5436_v31, %v4385_v32  ;;  %v4332_v61 = vor.u32 %v5423_v6, %v4331_v1  ;;  %v4497_v31 = vld [vmem:[%s5864_s30 + $0x3d8] sm:$0xf]  ;;  %v5464_v32 = vld [vmem:[%s5864_s30 + $0x3e0] sm:$0xf0]  ;;  %v5455_v1 = vld [vmem:[%s5864_s30 + $0x398] sm:$0xf0] }
  0x72   : > { %v4499_v6 = vld [vmem:[%s5864_s30 + $0x3e4] sm:$0xf0] }
  0x73   : > { %1356 = vmatpush.bf16.msrb.mxu2 %v4388_v39  ;;  %v4295_v39 = vld [vmem:[%s5864_s30 + $0x248] sm:$0xf] }
  0x74   : > { %1005 = vmatpush.bf16.msra.mxu0 %v4146_v53  ;;  %1390 = vmatpush.bf16.msra.mxu3 %v4416_v17  ;;  %v1085_v53 = vunpack.c.h.b16 %v1034_v41  ;;  %v6197_v17 = vrot.slane %v5948_v18, 1  ;;  %v5414_v41 = vld [vmem:[%s5864_s30 + $0x250] sm:$0xf0] }
  0x75   : > { %1298 = vmatpush.bf16.msrb.mxu1 %v4336_v46  ;;  %v4355_v46 = vld [vmem:[%s5864_s30 + $0x2c0] sm:$0xf] }
  0x76   : > { %v4356_v52 = vor.u32 %v5429_v47, %v4355_v46  ;;  %v5469_v46 = vld [vmem:[%s5864_s30 + $0x40c] sm:$0xf]  ;;  %v4523_v47 = vld [vmem:[%s5864_s30 + $0x414] sm:$0xf0] }
  0x77   : > { %1006 = vmatmul.bf16.vlgmr.msra.gmra.mxu0 %v5953_v23  ;;  %v5432_v23 = vld [vmem:[%s5864_s30 + $0x2e0] sm:$0xf0] }
  0x78   : > { %1331 = vmatpush.bf16.msrb.mxu0 %v4376_v36  ;;  %4283 = vmatmul.msk.bf16.vlgmr.msra.gmra.mxu2 %vm610_vm1, %v5942_v12  ;;  %v4328_v12 = vor.u32 %v5421_v37, %v4325_v38  ;;  %v4368_v42 = vor.u32 %v5432_v23, %v4367_v40  ;;  %v5415_v36 = vld [vmem:[%s5864_s30 + $0x25c] sm:$0xf]  ;;  %v4308_v38 = vor.u32 %v5417_v30, %v4307_v25  ;;  %v4557_v23 = vld [vmem:[%s5864_s30 + $0x450] sm:$0xf]  ;;  %v4475_v30 = vld [vmem:[%s5864_s30 + $0x3b4] sm:$0xf0] }
  0x79   : > { %1299 = vmatpush.bf16.msrb.mxu1 %v4324_v50  ;;  %v4316_v50 = vor.u32 %v5418_v43, %v4313_v45  ;;  %1391 = vmatpush.bf16.msra.mxu3 %v4404_v51  ;;  %v4304_v63 = vor.u32 %v5415_v36, %v4301_v54  ;;  %v4498_v40 = vor.u32 %v5464_v32, %v4497_v31  ;;  %v5461_v43 = vld [vmem:[%s5864_s30 + $0x3c8] sm:$0xf0]  ;;  %v4473_v54 = vld [vmem:[%s5864_s30 + $0x3a8] sm:$0xf]  ;;  %v4529_v31 = vld [vmem:[%s5864_s30 + $0x410] sm:$0xf] }
  0x7a   : > { %v4562_v51 = vor.u32 %v5478_v48, %v4559_v49  ;;  %v4526_v36 = vor.u32 %v5469_v46, %v4523_v47  ;;  %v5471_v32 = vld [vmem:[%s5864_s30 + $0x418] sm:$0xf0] }
  0x7c   : > { %1332 = vmatpush.bf16.msrb.mxu0 %v4364_v0  ;;  %v4344_v0 = vor.u32 %v5426_v57, %v4343_v56  ;;  %v5466_v57 = vld [vmem:[%s5864_s30 + $0x3f4] sm:$0xf] }
  0x7d   : > { %1300 = vmatpush.bf16.msrb.mxu1 %v4312_v62  ;;  %v1087_v62 = vpack.c.b16 %v5924_v2, %v1085_v53  ;;  %1392 = vmatpush.bf16.msra.mxu3 %v4392_v59  ;;  %v4296_v53 = vor.u32 %v5414_v41, %v4295_v39  ;;  %v4474_v59 = vor.u32 %v5458_v55, %v4473_v54  ;;  %v4463_v41 = vld [vmem:[%s5864_s30 + $0x39c] sm:$0xf0] }
  0x7f   : > { %975 = vmatmul.bf16.gmra.mxu1 %v6111_v8  ;;  %4282 = vmatmul.msk.bf16.gmra.mxu3 %vm610_vm1, %v6115_v35  ;;  %v1092_v16 = vrot.slane %v1087_v62, 1  ;;  %v5473_v62 = vld [vmem:[%s5864_s30 + $0x428] sm:$0xf0] }
  0x80   : > { %1333 = vmatpush.bf16.msrb.mxu0 %v4352_v24  ;;  %v4534_v4 = vor.u32 %v5473_v62, %v4533_v60  ;;  %v5448_v62 = vld [vmem:[%s5864_s30 + $0x364] sm:$0xf] }
  0x81   : > { %1301 = vmatpush.bf16.msrb.mxu1 %v4300_v20  ;;  %v4509_v20 = vld [vmem:[%s5864_s30 + $0x3f0] sm:$0xf]  ;;  %v6207_v18 = vsel %vm1088_vm2, %v1092_v16, %v6197_v17  ;;  %v4449_v16 = vld [vmem:[%s5864_s30 + $0x378] sm:$0xf] }
  0x82   : > { %v4510_v26 = vor.u32 %v5467_v21, %v4509_v20  ;;  %v1412_v21 = vld [vmem:[%s5915_s13] sm:$0x88] }
  0x84   : > { %1334 = vmatpush.bf16.msrb.mxu0 %v4340_v34  ;;  %v5481_v34 = vld [vmem:[%s5864_s30 + $0x46c] sm:$0xf] }
  0x85   : > { %1302 = vmatpush.bf16.msrb.mxu1 %v4288_v33  ;;  %v4570_v33 = vor.u32 %v5482_v28, %v4569_v27  ;;  %v4437_v27 = vld [vmem:[%s5864_s30 + $0x360] sm:$0xf]  ;;  %v5449_v28 = vld [vmem:[%s5864_s30 + $0x368] sm:$0xf0] }
  0x87   : > { %1011 = vmatmul.bf16.gmra.mxu0 %v6111_v8  ;;  %v4319_v8 = vld [vmem:[%s5864_s30 + $0x278] sm:$0xf]  ;;  %1701 = vmatpush.bf16.msra.mxu2 %v4570_v33  ;;  %v5472_v33 = vld [vmem:[%s5864_s30 + $0x424] sm:$0xf] }
  0x88   : > { %1335 = vmatpush.bf16.msrb.mxu0 %v4328_v12  ;;  %4284 = vmatmul.msk.bf16.gmra.mxu2 %vm610_vm1, %v6115_v35  ;;  %v4522_v35 = vor.u32 %v5470_v9, %v4521_v7  ;;  %v4320_v24 = vor.u32 %v5420_v29, %v4319_v8  ;;  %v5479_v12 = vld [vmem:[%s5864_s30 + $0x458] sm:$0xf0]  ;;  %v4502_v9 = vor.u32 %v5463_v5, %v4499_v6  ;;  %v5518_v5 = vld [vmem:[%s5864_s30 + $0x590] sm:$0xf0]  ;;  %v4493_v6 = vld [vmem:[%s5864_s30 + $0x3c8] sm:$0xf] }
  0x89   : > { %1367 = vmatpush.bf16.msra.mxu1 %v4380_v44  ;;  %v4571_v44 = vld [vmem:[%s5864_s30 + $0x474] sm:$0xf0]  ;;  %v4558_v45 = vor.u32 %v5479_v12, %v4557_v23  ;;  %v5475_v8 = vld [vmem:[%s5864_s30 + $0x43c] sm:$0xf]  ;;  %v5454_v23 = vld [vmem:[%s5864_s30 + $0x394] sm:$0xf]  ;;  %v4530_v12 = vor.u32 %v5471_v32, %v4529_v31 }
  0x8a   : > { %v4574_v37 = vor.u32 %v5481_v34, %v4571_v44  ;;  %v4535_v34 = vld [vmem:[%s5864_s30 + $0x42c] sm:$0xf0]  ;;  %v1465_v44 = vunpack.c.h.b16 %v1412_v21  ;;  %v4466_v49 = vor.u32 %v5454_v23, %v4463_v41  ;;  %v5515_v32 = vld [vmem:[%s5864_s30 + $0x578] sm:$0xf0]  ;;  %v5456_v41 = vld [vmem:[%s5864_s30 + $0x3a0] sm:$0xf0] }
  0x8b   : > { %1702 = vmatpush.bf16.msra.mxu2 %v4558_v45  ;;  %v1464_v45 = vunpack.c.l.b16 %v1412_v21  ;;  %v4481_v21 = vld [vmem:[%s5864_s30 + $0x3b0] sm:$0xf] }
  0x8c   : > { %1336 = vmatpush.bf16.msrb.mxu0 %v4316_v50  ;;  %v6272_v47 = vpack.c.b16 %v5924_v2, %v1465_v44  ;;  %v4707_v31 = vld [vmem:[%s5864_s30 + $0x570] sm:$0xf] }
  0x8d   : > { %1368 = vmatpush.bf16.msra.mxu1 %v4368_v42  ;;  %v4485_v42 = vld [vmem:[%s5864_s30 + $0x3c0] sm:$0xf]  ;;  %v6280_v54 = vpack.c.b16 %v5937_v10, %v1464_v45  ;;  %v4659_v44 = vld [vmem:[%s5864_s30 + $0x510] sm:$0xf]  ;;  %v5500_v45 = vld [vmem:[%s5864_s30 + $0x500] sm:$0xf0] }
  0x8e   : > { %v4486_v50 = vor.u32 %v5461_v43, %v4485_v42  ;;  %v4517_v42 = vld [vmem:[%s5864_s30 + $0x3f8] sm:$0xf]  ;;  %v5468_v43 = vld [vmem:[%s5864_s30 + $0x400] sm:$0xf0] }
  0x8f   : > { %1303 = vmatmul.bf16.vlgmr.msrb.gmra.mxu1 %v6204_v22  ;;  %4429 = vmatmul.msk.bf16.vlgmr.msrb.gmra.mxu3 %vm610_vm1, %v6207_v18 }
  0x90   : > { %1337 = vmatpush.bf16.msrb.mxu0 %v4304_v63  ;;  %1737 = vmatpush.bf16.msrb.mxu3 %v4574_v37  ;;  %v4514_v63 = vor.u32 %v5466_v57, %v4511_v58  ;;  %v4438_v37 = vor.u32 %v5449_v28, %v4437_v27  ;;  %v4577_v57 = vld [vmem:[%s5864_s30 + $0x470] sm:$0xf]  ;;  %v5483_v58 = vld [vmem:[%s5864_s30 + $0x478] sm:$0xf0] }
  0x91   : > { %1369 = vmatpush.bf16.msra.mxu1 %v4356_v52  ;;  %v5476_v52 = vld [vmem:[%s5864_s30 + $0x440] sm:$0xf0] }
  0x92   : > { %v4546_v56 = vor.u32 %v5476_v52, %v4545_v13  ;;  %v5451_v13 = vld [vmem:[%s5864_s30 + $0x37c] sm:$0xf]  ;;  %v5465_v52 = vld [vmem:[%s5864_s30 + $0x3e8] sm:$0xf0] }
  0x94   : > { %1338 = vmatpush.bf16.msrb.mxu0 %v4292_v19  ;;  %1738 = vmatpush.bf16.msrb.mxu3 %v4562_v51  ;;  %v5452_v19 = vld [vmem:[%s5864_s30 + $0x380] sm:$0xf0]  ;;  %v4505_v51 = vld [vmem:[%s5864_s30 + $0x3e0] sm:$0xf] }
  0x95   : > { %1370 = vmatpush.bf16.msra.mxu1 %v4344_v0  ;;  %1703 = vmatpush.bf16.msra.mxu2 %v4546_v56  ;;  %v4461_v0 = vld [vmem:[%s5864_s30 + $0x390] sm:$0xf]  ;;  %v4450_v20 = vor.u32 %v5452_v19, %v4449_v16  ;;  %v1476_v56 = vrot.slane %v6272_v47, 3  ;;  %v4671_v16 = vld [vmem:[%s5864_s30 + $0x528] sm:$0xf] }
  0x96   : > { %v4462_v7 = vor.u32 %v5455_v1, %v4461_v0  ;;  %v4506_v0 = vor.u32 %v5465_v52, %v4505_v51  ;;  %v4578_v1 = vor.u32 %v5483_v58, %v4577_v57  ;;  %v5462_v19 = vld [vmem:[%s5864_s30 + $0x3d0] sm:$0xf0]  ;;  %v4457_v52 = vld [vmem:[%s5864_s30 + $0x380] sm:$0xf] }
  0x97   : > { %1339 = vmatmul.bf16.vlgmr.msrb.gmra.mxu0 %v6204_v22 }
  0x98   : > { %1679 = vmatpush.bf16.msra.mxu0 %v4522_v35  ;;  %4431 = vmatmul.msk.bf16.vlgmr.msrb.gmra.mxu2 %vm610_vm1, %v6207_v18  ;;  %v4547_v35 = vld [vmem:[%s5864_s30 + $0x444] sm:$0xf0] }
  0x99   : > { %1371 = vmatpush.bf16.msra.mxu1 %v4332_v61  ;;  %1704 = vmatpush.bf16.msra.mxu2 %v4534_v4  ;;  %v4487_v61 = vld [vmem:[%s5864_s30 + $0x3cc] sm:$0xf0]  ;;  %v4550_v29 = vor.u32 %v5475_v8, %v4547_v35  ;;  %v4719_v4 = vld [vmem:[%s5864_s30 + $0x588] sm:$0xf]  ;;  %v4565_v8 = vld [vmem:[%s5864_s30 + $0x458] sm:$0xf] }
  0x9a   : > { %v4490_v25 = vor.u32 %v5460_v15, %v4487_v61  ;;  %v4720_v15 = vor.u32 %v5518_v5, %v4719_v4  ;;  %v5506_v61 = vld [vmem:[%s5864_s30 + $0x530] sm:$0xf0]  ;;  %v5480_v35 = vld [vmem:[%s5864_s30 + $0x460] sm:$0xf0]  ;;  %v4445_v4 = vld [vmem:[%s5864_s30 + $0x368] sm:$0xf] }
  0x9b   : > { %1739 = vmatpush.bf16.msrb.mxu3 %v4550_v29  ;;  %v4494_v29 = vor.u32 %v5462_v19, %v4493_v6 }
  0x9c   : > { %1680 = vmatpush.bf16.msra.mxu0 %v4510_v26  ;;  %v5457_v26 = vld [vmem:[%s5864_s30 + $0x3ac] sm:$0xf] }
  0x9d   : > { %1372 = vmatpush.bf16.msra.mxu1 %v4320_v24  ;;  %v1413_v24 = vld [vmem:[%s5915_s13 + $0x18] sm:$0x77]  ;;  %1773 = vmatpush.bf16.msrb.mxu2 %v4578_v1  ;;  %v5512_v1 = vld [vmem:[%s5864_s30 + $0x560] sm:$0xf0] }
  0x9e   : > { %v1467_v39 = vunpack.c.h.b16 %v1413_v24  ;;  %v1466_v46 = vunpack.c.l.b16 %v1413_v24  ;;  %v5459_v24 = vld [vmem:[%s5864_s30 + $0x3b8] sm:$0xf0] }
  0x9f   : > { %1308 = vmatmul.bf16.gmra.mxu1 %v6194_v14  ;;  %4430 = vmatmul.msk.bf16.gmra.mxu3 %vm610_vm1, %v6197_v17 }
  0xa0   : > { %1681 = vmatpush.bf16.msra.mxu0 %v4498_v40  ;;  %v4478_v40 = vor.u32 %v5457_v26, %v4475_v30  ;;  %v1471_v48 = vpack.c.b16 %v1467_v39, %v5926_v3  ;;  %v1470_v55 = vpack.c.b16 %v1466_v46, %v5939_v11  ;;  %v4672_v30 = vor.u32 %v5506_v61, %v4671_v16  ;;  %v5477_v39 = vld [vmem:[%s5864_s30 + $0x448] sm:$0xf0]  ;;  %v4541_v46 = vld [vmem:[%s5864_s30 + $0x428] sm:$0xf]  ;;  %v5494_v16 = vld [vmem:[%s5864_s30 + $0x4d0] sm:$0xf0] }
  0xa1   : > { %1373 = vmatpush.bf16.msra.mxu1 %v4308_v38  ;;  %v4538_v38 = vor.u32 %v5472_v33, %v4535_v34  ;;  %v4553_v33 = vld [vmem:[%s5864_s30 + $0x440] sm:$0xf] }
  0xa2   : > { %v4554_v23 = vor.u32 %v5477_v39, %v4553_v33  ;;  %v4661_v33 = vld [vmem:[%s5864_s30 + $0x51c] sm:$0xf0]  ;;  %v5488_v39 = vld [vmem:[%s5864_s30 + $0x4a0] sm:$0xf0] }
  0xa3   : > { %1740 = vmatpush.bf16.msrb.mxu3 %v4538_v38  ;;  %v4708_v38 = vor.u32 %v5515_v32, %v4707_v31  ;;  %v5502_v32 = vld [vmem:[%s5864_s30 + $0x514] sm:$0xf] }
  0xa4   : > { %1682 = vmatpush.bf16.msra.mxu0 %v4486_v50  ;;  %v4451_v50 = vld [vmem:[%s5864_s30 + $0x384] sm:$0xf0] }
  0xa5   : > { %1374 = vmatpush.bf16.msra.mxu1 %v4296_v53  ;;  %v4518_v53 = vor.u32 %v5468_v43, %v4517_v42  ;;  %v4454_v60 = vor.u32 %v5451_v13, %v4451_v50  ;;  %v4647_v43 = vld [vmem:[%s5864_s30 + $0x4f8] sm:$0xf] }
  0xa6   : > { %v4648_v57 = vor.u32 %v5500_v45, %v4647_v43 }
  0xa7   : > { %1344 = vmatmul.bf16.gmra.mxu0 %v6194_v14 }
  0xa8   : > { %1683 = vmatpush.bf16.msra.mxu0 %v4474_v59  ;;  %4432 = vmatmul.msk.bf16.gmra.mxu2 %vm610_vm1, %v6197_v17  ;;  %v6286_v59 = vrot.slane %v1471_v48, 3  ;;  %v5474_v48 = vld [vmem:[%s5864_s30 + $0x430] sm:$0xf0] }
  0xa9   : > { %1715 = vmatpush.bf16.msrb.mxu1 %v4526_v36  ;;  %v4542_v50 = vor.u32 %v5474_v48, %v4541_v46 }
  0xaa   : > { %v6308_v27 = vsel %vm1472_vm3, %v1476_v56, %v6286_v59 }
  0xac   : > { %1684 = vmatpush.bf16.msra.mxu0 %v4462_v7  ;;  %v644_v36 = vpop.f32.mrf.mxu1  ;;  %v1473_v7 = vrot.slane %v6280_v54, 3 }
  0xad   : > { %1716 = vmatpush.bf16.msrb.mxu1 %v4514_v63  ;;  %v4439_v63 = vld [vmem:[%s5864_s30 + $0x36c] sm:$0xf0] }
  0xaf   : > { %1375 = vmatmul.bf16.vlgmr.msra.gmra.mxu1 %v6204_v22  ;;  %4433 = vmatmul.msk.bf16.vlgmr.msra.gmra.mxu3 %vm610_vm1, %v6207_v18  ;;  %v4442_v18 = vor.u32 %v5448_v62, %v4439_v63  ;;  %v5497_v62 = vld [vmem:[%s5864_s30 + $0x4e8] sm:$0xf0] }
  0xb0   : > { %1685 = vmatpush.bf16.msra.mxu0 %v4450_v20  ;;  %v4566_v20 = vor.u32 %v5480_v35, %v4565_v8  ;;  %2107 = vmatpush.bf16.msra.mxu3 %v4720_v15  ;;  %v4623_v15 = vld [vmem:[%s5864_s30 + $0x4c8] sm:$0xf]  ;;  %v5505_v8 = vld [vmem:[%s5864_s30 + $0x52c] sm:$0xf]  ;;  %v4673_v35 = vld [vmem:[%s5864_s30 + $0x534] sm:$0xf0] }
  0xb1   : > { %1717 = vmatpush.bf16.msrb.mxu1 %v4502_v9  ;;  %v6297_v9 = vrot.slane %v1470_v55, 3 }
  0xb2   : > { %v680_v22 = vpop.f32.mrf.mxu3  ;;  %1774 = vmatpush.bf16.msrb.mxu2 %v4566_v20  ;;  %v4676_v20 = vor.u32 %v5505_v8, %v4673_v35  ;;  %v5493_v35 = vld [vmem:[%s5864_s30 + $0x4cc] sm:$0xf] }
  0xb3   : > { %v6312_v28 = vsel %vm1472_vm3, %v1473_v7, %v6297_v9  ;;  %v5450_v7 = vld [vmem:[%s5864_s30 + $0x370] sm:$0xf0] }
  0xb4   : > { %1686 = vmatpush.bf16.msra.mxu0 %v4438_v37  ;;  %v626_v26 = vpop.f32.mrf.mxu0  ;;  %v5503_v37 = vld [vmem:[%s5864_s30 + $0x518] sm:$0xf0]  ;;  %2108 = vmatpush.bf16.msra.mxu3 %v4708_v38  ;;  %v4599_v38 = vld [vmem:[%s5864_s30 + $0x498] sm:$0xf] }
  0xb5   : > { %1718 = vmatpush.bf16.msrb.mxu1 %v4490_v25  ;;  %v646_v25 = vpop.f32.mrf.mxu1  ;;  %v6317_v34 = vadd.f32 %v644_v36, %v626_v26  ;;  %v4660_v42 = vor.u32 %v5503_v37, %v4659_v44  ;;  %v5453_v36 = vld [vmem:[%s5864_s30 + $0x388] sm:$0xf0]  ;;  %v4611_v26 = vld [vmem:[%s5864_s30 + $0x4b0] sm:$0xf]  ;;  %v4664_v37 = vor.u32 %v5502_v32, %v4661_v33  ;;  %v4600_v46 = vor.u32 %v5488_v39, %v4599_v38  ;;  %v5511_v32 = vld [vmem:[%s5864_s30 + $0x55c] sm:$0xf] }
  0xb6   : > { %1775 = vmatpush.bf16.msrb.mxu2 %v4554_v23  ;;  %v4458_v63 = vor.u32 %v5453_v36, %v4457_v52  ;;  %v4679_v52 = vld [vmem:[%s5864_s30 + $0x530] sm:$0xf]  ;;  %v5501_v38 = vld [vmem:[%s5864_s30 + $0x508] sm:$0xf0]  ;;  %v5490_v39 = vld [vmem:[%s5864_s30 + $0x4b4] sm:$0xf] }
  0xb7   : > { %1687 = vmatmul.bf16.vlgmr.msra.gmra.mxu0 %v6312_v28 }
  0xb8   : > { %1751 = vmatpush.bf16.msrb.mxu0 %v4530_v12  ;;  %4579 = vmatmul.msk.bf16.vlgmr.msra.gmra.mxu2 %vm610_vm1, %v6308_v27  ;;  %v4469_v12 = vld [vmem:[%s5864_s30 + $0x398] sm:$0xf] }
  0xb9   : > { %1719 = vmatpush.bf16.msrb.mxu1 %v4478_v40  ;;  %v4482_v40 = vor.u32 %v5459_v24, %v4481_v21  ;;  %v4683_v21 = vld [vmem:[%s5864_s30 + $0x540] sm:$0xf]  ;;  %v5509_v24 = vld [vmem:[%s5864_s30 + $0x548] sm:$0xf0] }
  0xba   : > { %1776 = vmatpush.bf16.msrb.mxu2 %v4542_v50  ;;  %v4684_v31 = vor.u32 %v5509_v24, %v4683_v21  ;;  %v4721_v50 = vld [vmem:[%s5864_s30 + $0x594] sm:$0xf0] }
  0xbb   : > { %v662_v13 = vpop.f32.mrf.mxu2 }
  0xbc   : > { %1752 = vmatpush.bf16.msrb.mxu0 %v4518_v53  ;;  %v4470_v53 = vor.u32 %v5456_v41, %v4469_v12  ;;  %v6331_v51 = vadd.f32 %v680_v22, %v662_v13  ;;  %v628_v56 = vpop.f32.mrf.mxu0  ;;  %v5499_v41 = vld [vmem:[%s5864_s30 + $0x4fc] sm:$0xf]  ;;  %v5485_v13 = vld [vmem:[%s5864_s30 + $0x488] sm:$0xf0] }
  0xbd   : > { %1720 = vmatpush.bf16.msrb.mxu1 %v4466_v49  ;;  %v682_v49 = vpop.f32.mrf.mxu3  ;;  %v649_v55 = vpop.f32.mrf.mxu1  ;;  %v6335_v58 = vadd.f32 %v646_v25, %v628_v56  ;;  %v5519_v56 = vld [vmem:[%s5864_s30 + $0x598] sm:$0xf0] }
  0xbf   : > { %1380 = vmatmul.bf16.gmra.mxu1 %v6194_v14  ;;  %4434 = vmatmul.msk.bf16.gmra.mxu3 %vm610_vm1, %v6197_v17  ;;  %v4446_v14 = vor.u32 %v5450_v7, %v4445_v4 }
  0xc0   : > { %1753 = vmatpush.bf16.msrb.mxu0 %v4506_v0  ;;  %v4695_v0 = vld [vmem:[%s5864_s30 + $0x558] sm:$0xf] }
  0xc1   : > { %1721 = vmatpush.bf16.msrb.mxu1 %v4454_v60  ;;  %v4635_v60 = vld [vmem:[%s5864_s30 + $0x4e0] sm:$0xf]  ;;  %v4696_v6 = vor.u32 %v5512_v1, %v4695_v0  ;;  %v4637_v0 = vld [vmem:[%s5864_s30 + $0x4ec] sm:$0xf0] }
  0xc2   : > { %v4636_v5 = vor.u32 %v5497_v62, %v4635_v60  ;;  %v5507_v62 = vld [vmem:[%s5864_s30 + $0x538] sm:$0xf0] }
  0xc3   : > { %v664_v61 = vpop.f32.mrf.mxu2  ;;  %2109 = vmatpush.bf16.msra.mxu3 %v4696_v6  ;;  %v4680_v1 = vor.u32 %v5507_v62, %v4679_v52  ;;  %v4709_v6 = vld [vmem:[%s5864_s30 + $0x57c] sm:$0xf0]  ;;  %v5487_v52 = vld [vmem:[%s5864_s30 + $0x49c] sm:$0xf] }
  0xc4   : > { %1754 = vmatpush.bf16.msrb.mxu0 %v4494_v29  ;;  %v6348_v17 = vadd.f32 %v682_v49, %v664_v61  ;;  %v4624_v29 = vor.u32 %v5494_v16, %v4623_v15  ;;  %v4587_v49 = vld [vmem:[%s5864_s30 + $0x480] sm:$0xf]  ;;  %v1796_v16 = vld [vmem:[%s5915_s13 + $0x18] sm:$0xff] }
  0xc5   : > { %1722 = vmatpush.bf16.msrb.mxu1 %v4442_v18  ;;  %v685_v19 = vpop.f32.mrf.mxu3  ;;  %v651_v22 = vpop.f32.mrf.mxu1  ;;  %v4667_v61 = vld [vmem:[%s5864_s30 + $0x518] sm:$0xf]  ;;  %v6392_v24 = vunpack.c.l.b16 %v1796_v16 }
  0xc6   : > { %v631_v18 = vpop.f32.mrf.mxu0  ;;  %v4625_v22 = vld [vmem:[%s5864_s30 + $0x4d4] sm:$0xf0] }
  0xc7   : > { %v6354_v25 = vadd.f32 %v649_v55, %v631_v18  ;;  %1692 = vmatmul.bf16.gmra.mxu0 %v6297_v9  ;;  %2110 = vmatpush.bf16.msra.mxu3 %v4684_v31  ;;  %v4727_v55 = vld [vmem:[%s5864_s30 + $0x590] sm:$0xf]  ;;  %v5516_v31 = vld [vmem:[%s5864_s30 + $0x580] sm:$0xf0] }
  0xc8   : > { %1755 = vmatpush.bf16.msrb.mxu0 %v4482_v40  ;;  %4580 = vmatmul.msk.bf16.gmra.mxu2 %vm610_vm1, %v6286_v59  ;;  %v4728_v60 = vor.u32 %v5519_v56, %v4727_v55 }
  0xc9   : > { %2085 = vmatpush.bf16.msra.mxu1 %v4672_v30  ;;  %v5491_v30 = vld [vmem:[%s5864_s30 + $0x4b8] sm:$0xf0] }
  0xca   : > { %v4612_v44 = vor.u32 %v5491_v30, %v4611_v26  ;;  %v4715_v30 = vld [vmem:[%s5864_s30 + $0x578] sm:$0xf] }
  0xcb   : > { %v667_v23 = vpop.f32.mrf.mxu2  ;;  %v4716_v33 = vor.u32 %v5516_v31, %v4715_v30 }
  0xcc   : > { %1756 = vmatpush.bf16.msrb.mxu0 %v4470_v53  ;;  %v6365_v12 = vadd.f32 %v685_v19, %v667_v23  ;;  %v5517_v53 = vld [vmem:[%s5864_s30 + $0x58c] sm:$0xf]  ;;  %v6405_v23 = vunpack.c.h.b16 %v1796_v16  ;;  %v4703_v16 = vld [vmem:[%s5864_s30 + $0x560] sm:$0xf] }
  0xcd   : > { %2086 = vmatpush.bf16.msra.mxu1 %v4660_v42  ;;  %v687_v40 = vpop.f32.mrf.mxu3  ;;  %v4649_v42 = vld [vmem:[%s5864_s30 + $0x504] sm:$0xf0]  ;;  %v698_v43 = vpop.f32.mrf.mxu1  ;;  %v4724_v36 = vor.u32 %v5517_v53, %v4721_v50 }
  0xce   : > { %v633_v45 = vpop.f32.mrf.mxu0  ;;  %v4652_v48 = vor.u32 %v5499_v41, %v4649_v42  ;;  %v4613_v40 = vld [vmem:[%s5864_s30 + $0x4bc] sm:$0xf0]  ;;  %v1848_v42 = vpack.c.b16 %v6392_v24, %v5939_v11  ;;  %v1849_v62 = vpack.c.b16 %v6405_v23, %v5926_v3 }
  0xcf   : > { %1723 = vmatmul.bf16.vlgmr.msrb.gmra.mxu1 %v6312_v28  ;;  %4581 = vmatmul.msk.bf16.vlgmr.msrb.gmra.mxu3 %vm610_vm1, %v6308_v27  ;;  %v4616_v41 = vor.u32 %v5490_v39, %v4613_v40  ;;  %v4821_v39 = vld [vmem:[%s5864_s30 + $0x648] sm:$0xf]  ;;  %v5542_v40 = vld [vmem:[%s5864_s30 + $0x650] sm:$0xf0] }
  0xd0   : > { %1757 = vmatpush.bf16.msrb.mxu0 %v4458_v63  ;;  %v5496_v63 = vld [vmem:[%s5864_s30 + $0x4e4] sm:$0xf]  ;;  %2143 = vmatpush.bf16.msra.mxu2 %v4724_v36  ;;  %v4601_v36 = vld [vmem:[%s5864_s30 + $0x4a4] sm:$0xf0] }
  0xd1   : > { %2087 = vmatpush.bf16.msra.mxu1 %v4648_v57  ;;  %v4588_v57 = vor.u32 %v5485_v13, %v4587_v49  ;;  %v4640_v4 = vor.u32 %v5496_v63, %v4637_v0  ;;  %2179 = vmatpush.bf16.msrb.mxu3 %v4728_v60  ;;  %v4643_v49 = vld [vmem:[%s5864_s30 + $0x4e8] sm:$0xf]  ;;  %v5498_v13 = vld [vmem:[%s5864_s30 + $0x4f0] sm:$0xf0]  ;;  %v1855_v60 = vshll.u32 %v6280_v54, 16  ;;  %v4604_v63 = vor.u32 %v5487_v52, %v4601_v36 }
  0xd2   : > { %v4607_v52 = vld [vmem:[%s5864_s30 + $0x4a0] sm:$0xf]  ;;  %v5489_v36 = vld [vmem:[%s5864_s30 + $0x4a8] sm:$0xf0] }
  0xd3   : > { %v669_v15 = vpop.f32.mrf.mxu2 }
  0xd4   : > { %1758 = vmatpush.bf16.msrb.mxu0 %v4446_v14  ;;  %v5504_v14 = vld [vmem:[%s5864_s30 + $0x520] sm:$0xf0]  ;;  %v5495_v15 = vld [vmem:[%s5864_s30 + $0x4d8] sm:$0xf0] }
  0xd5   : > { %2088 = vmatpush.bf16.msra.mxu1 %v4636_v5  ;;  %v5514_v5 = vld [vmem:[%s5864_s30 + $0x574] sm:$0xf]  ;;  %v716_v7 = vpop.f32.mrf.mxu3  ;;  %v700_v18 = vpop.f32.mrf.mxu1  ;;  %v4668_v26 = vor.u32 %v5504_v14, %v4667_v61  ;;  %2180 = vmatpush.bf16.msrb.mxu3 %v4716_v33  ;;  %v1877_v61 = vshrl.u32 %v1849_v62, 16  ;;  %v1880_v14 = vshll.u32 %v1849_v62, 16  ;;  %v5492_v33 = vld [vmem:[%s5864_s30 + $0x4c0] sm:$0xf0] }
  0xd6   : > { %v4712_v19 = vor.u32 %v5514_v5, %v4709_v6  ;;  %v6387_v8 = vadd.f32 %v716_v7, %v698_v43  ;;  %v5508_v43 = vld [vmem:[%s5864_s30 + $0x544] sm:$0xf]  ;;  %v4644_v5 = vor.u32 %v5498_v13, %v4643_v49  ;;  %v1869_v6 = vshrl.u32 %v6272_v47, 16  ;;  %v4631_v7 = vld [vmem:[%s5864_s30 + $0x4d0] sm:$0xf] }
  0xd7   : > { %1759 = vmatmul.bf16.vlgmr.msrb.gmra.mxu0 %v6312_v28  ;;  %v4685_v28 = vld [vmem:[%s5864_s30 + $0x54c] sm:$0xf0] }
  0xd8   : > { %2121 = vmatpush.bf16.msra.mxu0 %v4676_v20  ;;  %v4628_v20 = vor.u32 %v5493_v35, %v4625_v22  ;;  %2144 = vmatpush.bf16.msra.mxu2 %v4712_v19  ;;  %v5513_v19 = vld [vmem:[%s5864_s30 + $0x568] sm:$0xf0]  ;;  %v4589_v22 = vld [vmem:[%s5864_s30 + $0x48c] sm:$0xf0] }
  0xd9   : > { %2089 = vmatpush.bf16.msra.mxu1 %v4624_v29  ;;  %v935_v29 = vpop.f32.mrf.mxu0  ;;  %4583 = vmatmul.msk.bf16.vlgmr.msrb.gmra.mxu2 %vm610_vm1, %v6308_v27  ;;  %v4704_v35 = vor.u32 %v5513_v19, %v4703_v16 }
  0xda   : > { %v936_v21 = vadd.f32 %v935_v29, %v6317_v34  ;;  %v4632_v29 = vor.u32 %v5495_v15, %v4631_v7 }
  0xdb   : > { %2181 = vmatpush.bf16.msrb.mxu3 %v4704_v35  ;;  %v4869_v35 = vld [vmem:[%s5864_s30 + $0x6a8] sm:$0xf] }
  0xdc   : > { %2122 = vmatpush.bf16.msra.mxu0 %v4664_v37  ;;  %v4655_v37 = vld [vmem:[%s5864_s30 + $0x500] sm:$0xf] }
  0xdd   : > { %2090 = vmatpush.bf16.msra.mxu1 %v4612_v44  ;;  %v4697_v44 = vld [vmem:[%s5864_s30 + $0x564] sm:$0xf0]  ;;  %v4656_v27 = vor.u32 %v5501_v38, %v4655_v37  ;;  %v718_v45 = vpop.f32.mrf.mxu3  ;;  %v703_v55 = vpop.f32.mrf.mxu1  ;;  %v1871_v38 = vrot.slane %v1869_v6, 3  ;;  %v4797_v6 = vld [vmem:[%s5864_s30 + $0x618] sm:$0xf] }
  0xde   : > { %v4700_v34 = vor.u32 %v5511_v32, %v4697_v44  ;;  %v6413_v53 = vadd.f32 %v718_v45, %v700_v18  ;;  %v4619_v32 = vld [vmem:[%s5864_s30 + $0x4b8] sm:$0xf]  ;;  %v4691_v45 = vld [vmem:[%s5864_s30 + $0x548] sm:$0xf] }
  0xdf   : > { %1728 = vmatmul.bf16.gmra.mxu1 %v6297_v9  ;;  %4582 = vmatmul.msk.bf16.gmra.mxu3 %vm610_vm1, %v6286_v59  ;;  %v4620_v49 = vor.u32 %v5492_v33, %v4619_v32  ;;  %v4857_v33 = vld [vmem:[%s5864_s30 + $0x690] sm:$0xf] }
  0xe0   : > { %2123 = vmatpush.bf16.msra.mxu0 %v4652_v48  ;;  %2145 = vmatpush.bf16.msra.mxu2 %v4700_v34  ;;  %v4688_v48 = vor.u32 %v5508_v43, %v4685_v28  ;;  %v1882_v43 = vrot.slane %v1880_v14, 4  ;;  %v4822_v28 = vor.u32 %v5542_v40, %v4821_v39 }
  0xe1   : > { %2091 = vmatpush.bf16.msra.mxu1 %v4600_v46  ;;  %v953_v46 = vpop.f32.mrf.mxu2  ;;  %v937_v56 = vpop.f32.mrf.mxu0 }
  0xe2   : > { %v6415_v50 = vadd.f32 %v953_v46, %v936_v21  ;;  %v938_v0 = vadd.f32 %v937_v56, %v6335_v58  ;;  %v5484_v58 = vld [vmem:[%s5864_s30 + $0x484] sm:$0xf]  ;;  %v5510_v46 = vld [vmem:[%s5864_s30 + $0x550] sm:$0xf0]  ;;  %v4809_v56 = vld [vmem:[%s5864_s30 + $0x630] sm:$0xf] }
  0xe3   : > { %v4692_v13 = vor.u32 %v5510_v46, %v4691_v45  ;;  %v5530_v45 = vld [vmem:[%s5864_s30 + $0x5f0] sm:$0xf0] }
  0xe4   : > { %2124 = vmatpush.bf16.msra.mxu0 %v4640_v4  ;;  %v1863_v4 = vshll.u32 %v1848_v42, 16  ;;  %2146 = vmatpush.bf16.msra.mxu2 %v4688_v48 }
  0xe5   : > { %2092 = vmatpush.bf16.msra.mxu1 %v4588_v57  ;;  %v1852_v57 = vshrl.u32 %v6280_v54, 16  ;;  %v1872_v54 = vshll.u32 %v6272_v47, 16  ;;  %v1857_v47 = vrot.slane %v1855_v60, 4  ;;  %v721_v21 = vpop.f32.mrf.mxu3  ;;  %2182 = vmatpush.bf16.msrb.mxu3 %v4692_v13 }
  0xe6   : > { %v1865_v31 = vrot.slane %v1863_v4, 4  ;;  %v6437_v44 = vadd.f32 %v721_v21, %v703_v55  ;;  %v5486_v4 = vld [vmem:[%s5864_s30 + $0x490] sm:$0xf0]  ;;  %v4871_v21 = vld [vmem:[%s5864_s30 + $0x6b4] sm:$0xf0] }
  0xe7   : > { %v1854_v18 = vrot.slane %v1852_v57, 3  ;;  %v1874_v34 = vrot.slane %v1872_v54, 4  ;;  %1764 = vmatmul.bf16.gmra.mxu0 %v6297_v9  ;;  %v5539_v57 = vld [vmem:[%s5864_s30 + $0x638] sm:$0xf0]  ;;  %v4595_v9 = vld [vmem:[%s5864_s30 + $0x488] sm:$0xf] }
  0xe8   : > { %2125 = vmatpush.bf16.msra.mxu0 %v4628_v20  ;;  %v4592_v20 = vor.u32 %v5484_v58, %v4589_v22  ;;  %v5536_v54 = vld [vmem:[%s5864_s30 + $0x620] sm:$0xf0]  ;;  %v4596_v14 = vor.u32 %v5486_v4, %v4595_v9  ;;  %v5554_v22 = vld [vmem:[%s5864_s30 + $0x6b0] sm:$0xf0]  ;;  %v4833_v4 = vld [vmem:[%s5864_s30 + $0x660] sm:$0xf] }
  0xe9   : > { %2157 = vmatpush.bf16.msrb.mxu1 %v4680_v1  ;;  %v1860_v1 = vshrl.u32 %v1848_v42, 16  ;;  %v940_v42 = vpop.f32.mrf.mxu0  ;;  %4584 = vmatmul.msk.bf16.gmra.mxu2 %vm610_vm1, %v6286_v59  ;;  %v1858_v55 = vor.u32 %v1857_v47, %v1854_v18  ;;  %v4798_v58 = vor.u32 %v5536_v54, %v4797_v6  ;;  %v5541_v18 = vld [vmem:[%s5864_s30 + $0x64c] sm:$0xf]  ;;  %v4870_v47 = vor.u32 %v5554_v22, %v4869_v35  ;;  %v5532_v54 = vld [vmem:[%s5864_s30 + $0x604] sm:$0xf] }
  0xea   : > { %v941_v48 = vadd.f32 %v940_v42, %v6354_v25  ;;  %v1875_v25 = vor.u32 %v1874_v34, %v1871_v38  ;;  %v5551_v38 = vld [vmem:[%s5864_s30 + $0x698] sm:$0xf0]  ;;  %v5538_v34 = vld [vmem:[%s5864_s30 + $0x634] sm:$0xf]  ;;  %v4811_v42 = vld [vmem:[%s5864_s30 + $0x63c] sm:$0xf0] }
  0xeb   : > { %v1862_v30 = vrot.slane %v1860_v1, 3  ;;  %2476 = vmatpush.bf16.msrb.mxu2 %v4870_v47  ;;  %v5545_v6 = vld [vmem:[%s5864_s30 + $0x668] sm:$0xf0]  ;;  %v5524_v47 = vld [vmem:[%s5864_s30 + $0x5c0] sm:$0xf0] }
  0xec   : > { %2126 = vmatpush.bf16.msra.mxu0 %v4616_v41  ;;  %v705_v41 = vpop.f32.mrf.mxu1 }
  0xed   : > { %2158 = vmatpush.bf16.msrb.mxu1 %v4668_v26  ;;  %v955_v26 = vpop.f32.mrf.mxu2  ;;  %v6453_v60 = vor.u32 %v1865_v31, %v1862_v30  ;;  %v723_v59 = vpop.f32.mrf.mxu3  ;;  %v5533_v31 = vld [vmem:[%s5864_s30 + $0x608] sm:$0xf0]  ;;  %v4858_v41 = vor.u32 %v5551_v38, %v4857_v33  ;;  %v5547_v33 = vld [vmem:[%s5864_s30 + $0x67c] sm:$0xf]  ;;  %v4847_v38 = vld [vmem:[%s5864_s30 + $0x684] sm:$0xf0] }
  0xee   : > { %v6439_v37 = vadd.f32 %v955_v26, %v938_v0  ;;  %v4608_v0 = vor.u32 %v5489_v36, %v4607_v52  ;;  %v4785_v26 = vld [vmem:[%s5864_s30 + $0x600] sm:$0xf]  ;;  %v5550_v36 = vld [vmem:[%s5864_s30 + $0x694] sm:$0xf] }
  0xef   : > { %v6464_v15 = vsel %vm1850_vm4, %v1858_v55, %v6453_v60  ;;  %v4786_v32 = vor.u32 %v5533_v31, %v4785_v26  ;;  %2477 = vmatpush.bf16.msrb.mxu2 %v4858_v41  ;;  %v4859_v55 = vld [vmem:[%s5864_s30 + $0x69c] sm:$0xf0]  ;;  %v4775_v31 = vld [vmem:[%s5864_s30 + $0x5f4] sm:$0xf0] }
  0xf0   : > { %2127 = vmatpush.bf16.msra.mxu0 %v4604_v63  ;;  %v4810_v63 = vor.u32 %v5539_v57, %v4809_v56  ;;  %2093 = vmatmul.bf16.vlgmr.msra.gmra.mxu1 %v6464_v15  ;;  %v4845_v56 = vld [vmem:[%s5864_s30 + $0x678] sm:$0xf]  ;;  %v4862_v57 = vor.u32 %v5550_v36, %v4859_v55  ;;  %v4763_v41 = vld [vmem:[%s5864_s30 + $0x5dc] sm:$0xf0] }
  0xf1   : > { %2159 = vmatpush.bf16.msrb.mxu1 %v4656_v27  ;;  %v1879_v27 = vrot.slane %v1877_v61, 3  ;;  %v942_v19 = vpop.f32.mrf.mxu0 }
  0xf3   : > { %v6455_v62 = vor.u32 %v1882_v43, %v1879_v27  ;;  %v4814_v43 = vor.u32 %v5538_v34, %v4811_v42  ;;  %v4737_v34 = vld [vmem:[%s5864_s30 + $0x5a0] sm:$0xf] }
  0xf4   : > { %2128 = vmatpush.bf16.msra.mxu0 %v4592_v20  ;;  %v971_v7 = vpop.f32.mrf.mxu1  ;;  %v5553_v20 = vld [vmem:[%s5864_s30 + $0x6ac] sm:$0xf] }
  0xf5   : > { %2160 = vmatpush.bf16.msrb.mxu1 %v4644_v5  ;;  %v958_v1 = vpop.f32.mrf.mxu2  ;;  %v6467_v16 = vsel %vm1850_vm4, %v1875_v25, %v6455_v62  ;;  %v972_v61 = vadd.f32 %v971_v7, %v6331_v51  ;;  %v4874_v30 = vor.u32 %v5553_v20, %v4871_v21  ;;  %v989_v39 = vpop.f32.mrf.mxu3  ;;  %v5548_v25 = vld [vmem:[%s5864_s30 + $0x680] sm:$0xf0] }
  0xf6   : > { %v6459_v5 = vadd.f32 %v958_v1, %v941_v48  ;;  %4729 = vmatmul.msk.bf16.vlgmr.msra.gmra.mxu3 %vm610_vm1, %v6467_v16  ;;  %v5527_v1 = vld [vmem:[%s5864_s30 + $0x5d8] sm:$0xf0] }
  0xf7   : > { %2512 = vmatpush.bf16.msra.mxu3 %v4874_v30  ;;  %v6485_v27 = vadd.f32 %v989_v39, %v972_v61  ;;  %2129 = vmatmul.bf16.vlgmr.msra.gmra.mxu0 %v6464_v15  ;;  %v4787_v61 = vld [vmem:[%s5864_s30 + $0x60c] sm:$0xf0]  ;;  %v5529_v30 = vld [vmem:[%s5864_s30 + $0x5ec] sm:$0xf] }
  0xf8   : > { %2454 = vmatpush.bf16.msrb.mxu0 %v4822_v28  ;;  %v4773_v28 = vld [vmem:[%s5864_s30 + $0x5e8] sm:$0xf]  ;;  %v4790_v22 = vor.u32 %v5532_v54, %v4787_v61  ;;  %v5521_v39 = vld [vmem:[%s5864_s30 + $0x5a8] sm:$0xf0] }
  0xf9   : > { %2161 = vmatpush.bf16.msrb.mxu1 %v4632_v29  ;;  %v4823_v29 = vld [vmem:[%s5864_s30 + $0x654] sm:$0xf0]  ;;  %v1007_v48 = vpop.f32.mrf.mxu0  ;;  %4731 = vmatmul.msk.bf16.vlgmr.msra.gmra.mxu2 %vm610_vm1, %v6467_v16 }
  0xfa   : > { %v4826_v51 = vor.u32 %v5541_v18, %v4823_v29  ;;  %v1008_v52 = vadd.f32 %v1007_v48, %v6387_v8  ;;  %v4761_v8 = vld [vmem:[%s5864_s30 + $0x5d0] sm:$0xf]  ;;  %v4749_v18 = vld [vmem:[%s5864_s30 + $0x5b8] sm:$0xf] }
  0xfb   : > { %2513 = vmatpush.bf16.msra.mxu3 %v4862_v57  ;;  %v4762_v9 = vor.u32 %v5527_v1, %v4761_v8  ;;  %v4750_v21 = vor.u32 %v5524_v47, %v4749_v18  ;;  %v4829_v48 = vld [vmem:[%s5864_s30 + $0x650] sm:$0xf]  ;;  %v5540_v8 = vld [vmem:[%s5864_s30 + $0x640] sm:$0xf0] }
  0xfc   : > { %2455 = vmatpush.bf16.msrb.mxu0 %v4810_v63  ;;  %v973_v46 = vpop.f32.mrf.mxu1  ;;  %v5535_v63 = vld [vmem:[%s5864_s30 + $0x61c] sm:$0xf]  ;;  %v4835_v57 = vld [vmem:[%s5864_s30 + $0x66c] sm:$0xf0]  ;;  %v5520_v1 = vld [vmem:[%s5864_s30 + $0x5a4] sm:$0xf] }
  0xfd   : > { %2162 = vmatpush.bf16.msrb.mxu1 %v4620_v49  ;;  %v960_v40 = vpop.f32.mrf.mxu2  ;;  %v4774_v49 = vor.u32 %v5530_v45, %v4773_v28  ;;  %v974_v13 = vadd.f32 %v973_v46, %v6348_v17  ;;  %v4846_v17 = vor.u32 %v5548_v25, %v4845_v56  ;;  %v991_v7 = vpop.f32.mrf.mxu3  ;;  %v5544_v56 = vld [vmem:[%s5864_s30 + $0x664] sm:$0xf]  ;;  %v5523_v25 = vld [vmem:[%s5864_s30 + $0x5bc] sm:$0xf]  ;;  %v4877_v47 = vld [vmem:[%s5864_s30 + $0x6b0] sm:$0xf] }
  0xfe   : > { %v5526_v40 = vld [vmem:[%s5864_s30 + $0x5d4] sm:$0xf] }
  0xff   : > { %2478 = vmatpush.bf16.msrb.mxu2 %v4846_v17  ;;  %v4766_v28 = vor.u32 %v5526_v40, %v4763_v41  ;;  %v5575_v41 = vld [vmem:[%s5864_s30 + $0x758] sm:$0xf0] }
 0x100   : > { %2456 = vmatpush.bf16.msrb.mxu0 %v4798_v58  ;;  %v4834_v58 = vor.u32 %v5545_v6, %v4833_v4  ;;  %2098 = vmatmul.bf16.gmra.mxu1 %v6453_v60 }
 0x101   : > { %2163 = vmatpush.bf16.msrb.mxu1 %v4608_v0  ;;  %v4799_v0 = vld [vmem:[%s5864_s30 + $0x624] sm:$0xf0]  ;;  %v1009_v20 = vpop.f32.mrf.mxu0 }
 0x102   : > { %v4802_v59 = vor.u32 %v5535_v63, %v4799_v0  ;;  %v1010_v26 = vadd.f32 %v1009_v20, %v6413_v53  ;;  %v4738_v53 = vor.u32 %v5521_v39, %v4737_v34  ;;  %v4838_v63 = vor.u32 %v5544_v56, %v4835_v57  ;;  %v4751_v0 = vld [vmem:[%s5864_s30 + $0x5c4] sm:$0xf0]  ;;  %v5552_v39 = vld [vmem:[%s5864_s30 + $0x6a0] sm:$0xf0]  ;;  %v5587_v56 = vld [vmem:[%s5864_s30 + $0x7b8] sm:$0xf0] }
 0x103   : > { %2479 = vmatpush.bf16.msrb.mxu2 %v4834_v58  ;;  %v4754_v17 = vor.u32 %v5523_v25, %v4751_v0  ;;  %v5537_v58 = vld [vmem:[%s5864_s30 + $0x628] sm:$0xf0]  ;;  %v4971_v20 = vld [vmem:[%s5864_s30 + $0x768] sm:$0xf]  ;;  %v4947_v25 = vld [vmem:[%s5864_s30 + $0x738] sm:$0xf] }
 0x104   : > { %2457 = vmatpush.bf16.msrb.mxu0 %v4786_v32  ;;  %v976_v29 = vpop.f32.mrf.mxu1  ;;  %v4778_v32 = vor.u32 %v5529_v30, %v4775_v31  ;;  %v5590_v30 = vld [vmem:[%s5864_s30 + $0x7d0] sm:$0xf0]  ;;  %v5549_v57 = vld [vmem:[%s5864_s30 + $0x688] sm:$0xf0] }
 0x105   : > { %2164 = vmatpush.bf16.msrb.mxu1 %v4596_v14  ;;  %v1025_v19 = vpop.f32.mrf.mxu2  ;;  %v6506_v14 = vadd.f32 %v991_v7, %v974_v13  ;;  %v994_v42 = vpop.f32.mrf.mxu3 }
 0x106   : > { %v6508_v35 = vadd.f32 %v1025_v19, %v1008_v52  ;;  %4730 = vmatmul.msk.bf16.gmra.mxu3 %vm610_vm1, %v6455_v62  ;;  %v4805_v19 = vld [vmem:[%s5864_s30 + $0x620] sm:$0xf] }
 0x107   : > { %2134 = vmatmul.bf16.gmra.mxu0 %v6453_v60  ;;  %v4806_v18 = vor.u32 %v5537_v58, %v4805_v19  ;;  %v5569_v19 = vld [vmem:[%s5864_s30 + $0x728] sm:$0xf0] }
 0x108   : > { %2458 = vmatpush.bf16.msrb.mxu0 %v4774_v49  ;;  %v5543_v49 = vld [vmem:[%s5864_s30 + $0x658] sm:$0xf0] }
 0x109   : > { %2490 = vmatpush.bf16.msra.mxu1 %v4826_v51  ;;  %v977_v51 = vadd.f32 %v976_v29, %v6365_v12  ;;  %v4850_v12 = vor.u32 %v5547_v33, %v4847_v38  ;;  %v1012_v52 = vpop.f32.mrf.mxu0  ;;  %v4830_v36 = vor.u32 %v5543_v49, %v4829_v48  ;;  %4732 = vmatmul.msk.bf16.gmra.mxu2 %vm610_vm1, %v6455_v62  ;;  %v5555_v29 = vld [vmem:[%s5864_s30 + $0x6b8] sm:$0xf0]  ;;  %v5534_v38 = vld [vmem:[%s5864_s30 + $0x610] sm:$0xf0]  ;;  %v4781_v49 = vld [vmem:[%s5864_s30 + $0x5f0] sm:$0xf] }
 0x10a   : > { %v1013_v55 = vadd.f32 %v1012_v52, %v6437_v44 }
 0x10b   : > { %2514 = vmatpush.bf16.msra.mxu3 %v4850_v12  ;;  %v6525_v45 = vadd.f32 %v994_v42, %v977_v51  ;;  %v5578_v51 = vld [vmem:[%s5864_s30 + $0x770] sm:$0xf0]  ;;  %v4865_v12 = vld [vmem:[%s5864_s30 + $0x698] sm:$0xf] }
 0x10c   : > { %2459 = vmatpush.bf16.msrb.mxu0 %v4762_v9  ;;  %v978_v13 = vpop.f32.mrf.mxu1  ;;  %v4739_v9 = vld [vmem:[%s5864_s30 + $0x5ac] sm:$0xf0]  ;;  %v4972_v31 = vor.u32 %v5578_v51, %v4971_v20 }
 0x10d   : > { %2491 = vmatpush.bf16.msra.mxu1 %v4814_v43  ;;  %v1027_v43 = vpop.f32.mrf.mxu2  ;;  %v996_v4 = vpop.f32.mrf.mxu3  ;;  %v4742_v54 = vor.u32 %v5520_v1, %v4739_v9  ;;  %v5531_v13 = vld [vmem:[%s5864_s30 + $0x5f8] sm:$0xf0]  ;;  %v5546_v1 = vld [vmem:[%s5864_s30 + $0x670] sm:$0xf0]  ;;  %v4935_v9 = vld [vmem:[%s5864_s30 + $0x720] sm:$0xf] }
 0x10e   : > { %v6527_v46 = vadd.f32 %v1027_v43, %v1010_v26  ;;  %v5019_v26 = vld [vmem:[%s5864_s30 + $0x7c8] sm:$0xf]  ;;  %v6564_v43 = vpack.c.b16 %v5926_v3, %v5924_v2  ;;  %v5007_v3 = vld [vmem:[%s5864_s30 + $0x7b0] sm:$0xf] }
 0x10f   : > { %2515 = vmatpush.bf16.msra.mxu3 %v4838_v63  ;;  %v5020_v33 = vor.u32 %v5590_v30, %v5019_v26  ;;  %v5572_v63 = vld [vmem:[%s5864_s30 + $0x740] sm:$0xf0]  ;;  %v4923_v30 = vld [vmem:[%s5864_s30 + $0x708] sm:$0xf] }
 0x110   : > { %2460 = vmatpush.bf16.msrb.mxu0 %v4750_v21  ;;  %v4878_v21 = vor.u32 %v5555_v29, %v4877_v47  ;;  %2165 = vmatmul.bf16.vlgmr.msrb.gmra.mxu1 %v6464_v15  ;;  %v5525_v47 = vld [vmem:[%s5864_s30 + $0x5c8] sm:$0xf0] }
 0x111   : > { %2492 = vmatpush.bf16.msra.mxu1 %v4802_v59  ;;  %v4817_v59 = vld [vmem:[%s5864_s30 + $0x638] sm:$0xf] }
 0x112   : > { %v4818_v44 = vor.u32 %v5540_v8, %v4817_v59  ;;  %2548 = vmatpush.bf16.msra.mxu2 %v4878_v21  ;;  %v5528_v59 = vld [vmem:[%s5864_s30 + $0x5e0] sm:$0xf0] }
 0x114   : > { %2461 = vmatpush.bf16.msrb.mxu0 %v4738_v53  ;;  %v1304_v61 = vpop.f32.mrf.mxu1  ;;  %v4959_v53 = vld [vmem:[%s5864_s30 + $0x750] sm:$0xf] }
 0x115   : > { %2493 = vmatpush.bf16.msra.mxu1 %v4790_v22  ;;  %v1030_v6 = vpop.f32.mrf.mxu2  ;;  %v1014_v22 = vpop.f32.mrf.mxu0  ;;  %v4960_v48 = vor.u32 %v5575_v41, %v4959_v53  ;;  %v5563_v53 = vld [vmem:[%s5864_s30 + $0x6f8] sm:$0xf0]  ;;  %v6611_v41 = vpack.c.b16 %v6405_v23, %v6405_v23 }
 0x116   : > { %v6543_v7 = vadd.f32 %v1030_v6, %v1013_v55  ;;  %4733 = vmatmul.msk.bf16.vlgmr.msrb.gmra.mxu3 %vm610_vm1, %v6467_v16  ;;  %v1322_v40 = vpop.f32.mrf.mxu3  ;;  %v4866_v16 = vor.u32 %v5552_v39, %v4865_v12  ;;  %v4782_v55 = vor.u32 %v5531_v13, %v4781_v49  ;;  %v4936_v22 = vor.u32 %v5569_v19, %v4935_v9  ;;  %v4911_v39 = vld [vmem:[%s5864_s30 + $0x6f0] sm:$0xf]  ;;  %v4973_v49 = vld [vmem:[%s5864_s30 + $0x774] sm:$0xf0]  ;;  %v5571_v9 = vld [vmem:[%s5864_s30 + $0x73c] sm:$0xf] }
 0x117   : > { %2868 = vmatpush.bf16.msrb.mxu3 %v5020_v33  ;;  %v1323_v42 = vadd.f32 %v1322_v40, %v1304_v61  ;;  %v4995_v33 = vld [vmem:[%s5864_s30 + $0x798] sm:$0xf] }
 0x118   : > { %2526 = vmatpush.bf16.msra.mxu0 %v4830_v36  ;;  %2549 = vmatpush.bf16.msra.mxu2 %v4866_v16 }
 0x119   : > { %2494 = vmatpush.bf16.msra.mxu1 %v4778_v32  ;;  %v4793_v32 = vld [vmem:[%s5864_s30 + $0x608] sm:$0xf]  ;;  %v6573_v2 = vadd.f32 %v1323_v42, %v6415_v50  ;;  %4879 = vmatmul.msk.bf16.vlgmr.msrb.gmra.mxu2 %vm610_vm1, %v6564_v43  ;;  %v4948_v50 = vor.u32 %v5572_v63, %v4947_v25  ;;  %v6615_v42 = vpack.c.b16 %v6392_v24, %v6392_v24  ;;  %v5560_v25 = vld [vmem:[%s5864_s30 + $0x6e0] sm:$0xf0]  ;;  %v5574_v63 = vld [vmem:[%s5864_s30 + $0x754] sm:$0xf] }
 0x11a   : > { %v4794_v34 = vor.u32 %v5534_v38, %v4793_v32  ;;  %v5584_v38 = vld [vmem:[%s5864_s30 + $0x7a0] sm:$0xf0] }
 0x11c   : > { %2527 = vmatpush.bf16.msra.mxu0 %v4818_v44  ;;  %v1306_v52 = vpop.f32.mrf.mxu1  ;;  %v4841_v44 = vld [vmem:[%s5864_s30 + $0x668] sm:$0xf] }
 0x11d   : > { %2495 = vmatpush.bf16.msra.mxu1 %v4766_v28  ;;  %v1032_v15 = vpop.f32.mrf.mxu2  ;;  %v6568_v28 = vpack.c.b16 %v5939_v11, %v5937_v10  ;;  %v1340_v36 = vpop.f32.mrf.mxu0  ;;  %v4853_v10 = vld [vmem:[%s5864_s30 + $0x680] sm:$0xf]  ;;  %v5008_v11 = vor.u32 %v5587_v56, %v5007_v3 }
 0x11e   : > { %v4854_v0 = vor.u32 %v5549_v57, %v4853_v10  ;;  %v1324_v4 = vpop.f32.mrf.mxu3  ;;  %v4983_v56 = vld [vmem:[%s5864_s30 + $0x780] sm:$0xf]  ;;  %v5581_v10 = vld [vmem:[%s5864_s30 + $0x788] sm:$0xf0] }
 0x11f   : > { %2462 = vmatmul.bf16.vlgmr.msrb.gmra.mxu0 %v6568_v28  ;;  %2869 = vmatpush.bf16.msrb.mxu3 %v5008_v11  ;;  %v1325_v58 = vadd.f32 %v1324_v4, %v1306_v52  ;;  %v4899_v11 = vld [vmem:[%s5864_s30 + $0x6d8] sm:$0xf]  ;;  %v4984_v57 = vor.u32 %v5581_v10, %v4983_v56  ;;  %v4949_v4 = vld [vmem:[%s5864_s30 + $0x744] sm:$0xf0]  ;;  %v5583_v56 = vld [vmem:[%s5864_s30 + $0x79c] sm:$0xf] }
 0x120   : > { %2528 = vmatpush.bf16.msra.mxu0 %v4806_v18  ;;  %2550 = vmatpush.bf16.msra.mxu2 %v4854_v0  ;;  %v4757_v18 = vld [vmem:[%s5864_s30 + $0x5c0] sm:$0xf]  ;;  %v4952_v19 = vor.u32 %v5571_v9, %v4949_v4 }
 0x121   : > { %2496 = vmatpush.bf16.msra.mxu1 %v4754_v17  ;;  %v4769_v17 = vld [vmem:[%s5864_s30 + $0x5d8] sm:$0xf]  ;;  %v4758_v21 = vor.u32 %v5525_v47, %v4757_v18  ;;  %v6593_v51 = vadd.f32 %v1325_v58, %v6439_v37  ;;  %v4996_v37 = vor.u32 %v5584_v38, %v4995_v33  ;;  %v4979_v18 = vld [vmem:[%s5864_s30 + $0x770] sm:$0xf]  ;;  %v5586_v38 = vld [vmem:[%s5864_s30 + $0x7b4] sm:$0xf] }
 0x122   : > { %v4770_v8 = vor.u32 %v5528_v59, %v4769_v17  ;;  %2170 = vmatmul.bf16.gmra.mxu1 %v6453_v60  ;;  %v4912_v60 = vor.u32 %v5563_v53, %v4911_v39  ;;  %v5557_v17 = vld [vmem:[%s5864_s30 + $0x6c8] sm:$0xf0]  ;;  %v5576_v53 = vld [vmem:[%s5864_s30 + $0x760] sm:$0xf0] }
 0x123   : > { %2870 = vmatpush.bf16.msrb.mxu3 %v4996_v37  ;;  %v4967_v37 = vld [vmem:[%s5864_s30 + $0x758] sm:$0xf] }
 0x124   : > { %2529 = vmatpush.bf16.msra.mxu0 %v4794_v34  ;;  %v1309_v29 = vpop.f32.mrf.mxu1  ;;  %v4745_v34 = vld [vmem:[%s5864_s30 + $0x5a8] sm:$0xf] }
 0x125   : > { %2497 = vmatpush.bf16.msra.mxu1 %v4742_v54  ;;  %v1358_v6 = vpop.f32.mrf.mxu2  ;;  %v4842_v54 = vor.u32 %v5546_v1, %v4841_v44  ;;  %v1342_v20 = vpop.f32.mrf.mxu0 }
 0x126   : > { %v1359_v61 = vadd.f32 %v1358_v6, %v1340_v36  ;;  %4734 = vmatmul.msk.bf16.gmra.mxu3 %vm610_vm1, %v6455_v62  ;;  %v1327_v40 = vpop.f32.mrf.mxu3 }
 0x127   : > { %2551 = vmatpush.bf16.msra.mxu2 %v4842_v54  ;;  %v1328_v62 = vadd.f32 %v1327_v40, %v1309_v29  ;;  %2871 = vmatpush.bf16.msrb.mxu3 %v4984_v57  ;;  %v5027_v29 = vld [vmem:[%s5864_s30 + $0x7d0] sm:$0xf]  ;;  %v4955_v57 = vld [vmem:[%s5864_s30 + $0x740] sm:$0xf] }
 0x128   : > { %2530 = vmatpush.bf16.msra.mxu0 %v4782_v55  ;;  %v6596_v26 = vadd.f32 %v1359_v61, %v6485_v27  ;;  %v5522_v27 = vld [vmem:[%s5864_s30 + $0x5b0] sm:$0xf0]  ;;  %v5589_v61 = vld [vmem:[%s5864_s30 + $0x7cc] sm:$0xf] }
 0x129   : > { %2846 = vmatpush.bf16.msrb.mxu1 %v4972_v31  ;;  %v5566_v31 = vld [vmem:[%s5864_s30 + $0x710] sm:$0xf0]  ;;  %v4746_v12 = vor.u32 %v5522_v27, %v4745_v34  ;;  %v6620_v55 = vadd.f32 %v1328_v62, %v6459_v5  ;;  %4880 = vmatmul.msk.bf16.gmra.mxu2 %vm610_vm1, %v6611_v41  ;;  %v4900_v5 = vor.u32 %v5560_v25, %v4899_v11  ;;  %v5009_v34 = vld [vmem:[%s5864_s30 + $0x7bc] sm:$0xf0]  ;;  %v4997_v11 = vld [vmem:[%s5864_s30 + $0x7a4] sm:$0xf0] }
 0x12a   : > { %v4924_v32 = vor.u32 %v5566_v31, %v4923_v30  ;;  %v5568_v30 = vld [vmem:[%s5864_s30 + $0x724] sm:$0xf]  ;;  %v4937_v31 = vld [vmem:[%s5864_s30 + $0x72c] sm:$0xf0]  ;;  %v5012_v39 = vor.u32 %v5586_v38, %v5009_v34  ;;  %v5573_v25 = vld [vmem:[%s5864_s30 + $0x748] sm:$0xf0] }
 0x12b   : > { %v4940_v33 = vor.u32 %v5568_v30, %v4937_v31  ;;  %v5567_v30 = vld [vmem:[%s5864_s30 + $0x718] sm:$0xf0]  ;;  %v5585_v34 = vld [vmem:[%s5864_s30 + $0x7a8] sm:$0xf0] }
 0x12c   : > { %2531 = vmatpush.bf16.msra.mxu0 %v4770_v8  ;;  %v1311_v13 = vpop.f32.mrf.mxu1 }
 0x12d   : > { %2847 = vmatpush.bf16.msrb.mxu1 %v4960_v48  ;;  %v1360_v15 = vpop.f32.mrf.mxu2  ;;  %v5577_v48 = vld [vmem:[%s5864_s30 + $0x76c] sm:$0xf]  ;;  %v1345_v52 = vpop.f32.mrf.mxu0 }
 0x12e   : > { %v1361_v16 = vadd.f32 %v1360_v15, %v1342_v20  ;;  %v4976_v36 = vor.u32 %v5577_v48, %v4973_v49  ;;  %v1329_v59 = vpop.f32.mrf.mxu3  ;;  %v5591_v20 = vld [vmem:[%s5864_s30 + $0x7d8] sm:$0xf0]  ;;  %v5565_v15 = vld [vmem:[%s5864_s30 + $0x70c] sm:$0xf]  ;;  %v4968_v48 = vor.u32 %v5576_v53, %v4967_v37  ;;  %v5556_v37 = vld [vmem:[%s5864_s30 + $0x6c4] sm:$0xf] }
 0x12f   : > { %2467 = vmatmul.bf16.gmra.mxu0 %v6615_v42  ;;  %v4889_v53 = vld [vmem:[%s5864_s30 + $0x6cc] sm:$0xf0] }
 0x130   : > { %2532 = vmatpush.bf16.msra.mxu0 %v4758_v21  ;;  %v6623_v3 = vadd.f32 %v1361_v16, %v6506_v14  ;;  %v4961_v14 = vld [vmem:[%s5864_s30 + $0x75c] sm:$0xf0]  ;;  %v5028_v21 = vor.u32 %v5591_v20, %v5027_v29 }
 0x131   : > { %2848 = vmatpush.bf16.msrb.mxu1 %v4948_v50  ;;  %v4964_v0 = vor.u32 %v5574_v63, %v4961_v14  ;;  %v4887_v50 = vld [vmem:[%s5864_s30 + $0x6c0] sm:$0xf]  ;;  %v4956_v14 = vor.u32 %v5573_v25, %v4955_v57 }
 0x132   : > { %v4888_v44 = vor.u32 %v5557_v17, %v4887_v50  ;;  %2498 = vmatmul.bf16.vlgmr.msra.gmra.mxu1 %v6568_v28  ;;  %v4913_v63 = vld [vmem:[%s5864_s30 + $0x6fc] sm:$0xf0]  ;;  %v5580_v50 = vld [vmem:[%s5864_s30 + $0x784] sm:$0xf]  ;;  %v4985_v17 = vld [vmem:[%s5864_s30 + $0x78c] sm:$0xf0] }
 0x134   : > { %2533 = vmatpush.bf16.msra.mxu0 %v4746_v12  ;;  %v1376_v6 = vpop.f32.mrf.mxu1 }
 0x135   : > { %2849 = vmatpush.bf16.msrb.mxu1 %v4936_v22  ;;  %v1363_v8 = vpop.f32.mrf.mxu2  ;;  %v1347_v54 = vpop.f32.mrf.mxu0  ;;  %v5021_v22 = vld [vmem:[%s5864_s30 + $0x7d4] sm:$0xf0] }
 0x136   : > { %v1364_v1 = vadd.f32 %v1363_v8, %v1345_v52  ;;  %4881 = vmatmul.msk.bf16.vlgmr.msra.gmra.mxu3 %vm610_vm1, %v6564_v43  ;;  %v5024_v47 = vor.u32 %v5589_v61, %v5021_v22  ;;  %v1394_v27 = vpop.f32.mrf.mxu3  ;;  %v5015_v52 = vld [vmem:[%s5864_s30 + $0x7b8] sm:$0xf]  ;;  %v5559_v54 = vld [vmem:[%s5864_s30 + $0x6dc] sm:$0xf] }
 0x137   : > { %2940 = vmatpush.bf16.msra.mxu3 %v5028_v21  ;;  %v1395_v40 = vadd.f32 %v1394_v27, %v1376_v6  ;;  %v6678_v6 = vld [vmem:[%s5915_s13 + $0x10] sm:$0xff] }
 0x138   : > { %2882 = vmatpush.bf16.msrb.mxu0 %v4976_v36  ;;  %v6639_v58 = vadd.f32 %v1364_v1, %v6525_v45  ;;  %v5579_v45 = vld [vmem:[%s5864_s30 + $0x778] sm:$0xf0]  ;;  %2904 = vmatpush.bf16.msrb.mxu2 %v5024_v47  ;;  %v5588_v36 = vld [vmem:[%s5864_s30 + $0x7c0] sm:$0xf0]  ;;  %v5570_v1 = vld [vmem:[%s5864_s30 + $0x730] sm:$0xf0] }
 0x139   : > { %2850 = vmatpush.bf16.msrb.mxu1 %v4924_v32  ;;  %v4980_v32 = vor.u32 %v5579_v45, %v4979_v18  ;;  %v6659_v13 = vadd.f32 %v1395_v40, %v6508_v35  ;;  %v5016_v10 = vor.u32 %v5588_v36, %v5015_v52  ;;  %4883 = vmatmul.msk.bf16.vlgmr.msra.gmra.mxu2 %vm610_vm1, %v6564_v43  ;;  %v5562_v35 = vld [vmem:[%s5864_s30 + $0x6f4] sm:$0xf]  ;;  %v4943_v43 = vld [vmem:[%s5864_s30 + $0x728] sm:$0xf]  ;;  %v2574_v18 = vld [vmem:[%s5915_s13 + $0x20] sm:$0x33] }
 0x13a   : > { %v4944_v47 = vor.u32 %v5570_v1, %v4943_v43  ;;  %v4931_v45 = vld [vmem:[%s5864_s30 + $0x710] sm:$0xf]  ;;  %v2633_v38 = vunpack.c.l.b16 %v2574_v18  ;;  %v2634_v27 = vunpack.c.h.b16 %v2574_v18  ;;  %v4892_v40 = vor.u32 %v5556_v37, %v4889_v53  ;;  %v4907_v43 = vld [vmem:[%s5864_s30 + $0x6e0] sm:$0xf]  ;;  %v5097_v18 = vld [vmem:[%s5864_s30 + $0x858] sm:$0xf] }
 0x13b   : > { %2941 = vmatpush.bf16.msra.mxu3 %v5016_v10  ;;  %v5121_v10 = vld [vmem:[%s5864_s30 + $0x888] sm:$0xf]  ;;  %v5626_v37 = vld [vmem:[%s5864_s30 + $0x8f0] sm:$0xf0]  ;;  %v5625_v53 = vld [vmem:[%s5864_s30 + $0x8ec] sm:$0xf] }
 0x13c   : > { %2883 = vmatpush.bf16.msrb.mxu0 %v4964_v0  ;;  %v1378_v62 = vpop.f32.mrf.mxu1  ;;  %2905 = vmatpush.bf16.msrb.mxu2 %v5012_v39  ;;  %v4916_v0 = vor.u32 %v5562_v35, %v4913_v63  ;;  %v4932_v39 = vor.u32 %v5567_v30, %v4931_v45  ;;  %v2637_v36 = vpack.c.b16 %v2633_v38, %v6392_v24 }
 0x13d   : > { %2851 = vmatpush.bf16.msrb.mxu1 %v4912_v60  ;;  %v1365_v12 = vpop.f32.mrf.mxu2  ;;  %v4925_v60 = vld [vmem:[%s5864_s30 + $0x714] sm:$0xf0]  ;;  %v1688_v16 = vpop.f32.mrf.mxu0  ;;  %v2638_v25 = vpack.c.b16 %v2634_v27, %v6405_v23  ;;  %v5613_v27 = vld [vmem:[%s5864_s30 + $0x88c] sm:$0xf] }
 0x13e   : > { %v4928_v49 = vor.u32 %v5565_v15, %v4925_v60  ;;  %v1396_v59 = vpop.f32.mrf.mxu3  ;;  %v4919_v15 = vld [vmem:[%s5864_s30 + $0x6f8] sm:$0xf]  ;;  %v5564_v60 = vld [vmem:[%s5864_s30 + $0x700] sm:$0xf0] }
 0x13f   : > { %2534 = vmatmul.bf16.vlgmr.msra.gmra.mxu0 %v6568_v28  ;;  %v2571_v28 = vld [vmem:[%s5915_s13 + $0x8] sm:$0xcc]  ;;  %v1397_v9 = vadd.f32 %v1396_v59, %v1378_v62  ;;  %v4920_v35 = vor.u32 %v5564_v60, %v4919_v15  ;;  %v5085_v15 = vld [vmem:[%s5864_s30 + $0x840] sm:$0xf] }
 0x140   : > { %2884 = vmatpush.bf16.msrb.mxu0 %v4952_v19  ;;  %v4901_v19 = vld [vmem:[%s5864_s30 + $0x6e4] sm:$0xf0]  ;;  %v2627_v31 = vunpack.c.l.b16 %v2571_v28 }
 0x141   : > { %2852 = vmatpush.bf16.msrb.mxu1 %v4900_v5  ;;  %v5000_v5 = vor.u32 %v5583_v56, %v4997_v11  ;;  %v4904_v29 = vor.u32 %v5559_v54, %v4901_v19  ;;  %v6684_v20 = vadd.f32 %v1397_v9, %v6527_v46  ;;  %v2630_v46 = vunpack.c.h.b16 %v6678_v6  ;;  %v5614_v11 = vld [vmem:[%s5864_s30 + $0x890] sm:$0xf0] }
 0x142   : > { %2503 = vmatmul.bf16.gmra.mxu1 %v6615_v42  ;;  %v5122_v63 = vor.u32 %v5614_v11, %v5121_v10  ;;  %v6733_v9 = vrot.slane %v2638_v25, 2  ;;  %v5558_v19 = vld [vmem:[%s5864_s30 + $0x6d0] sm:$0xf0]  ;;  %v5111_v25 = vld [vmem:[%s5864_s30 + $0x87c] sm:$0xf0] }
 0x143   : > { %2906 = vmatpush.bf16.msrb.mxu2 %v5000_v5 }
 0x144   : > { %2885 = vmatpush.bf16.msrb.mxu0 %v4940_v33  ;;  %v1381_v61 = vpop.f32.mrf.mxu1  ;;  %v2628_v33 = vunpack.c.h.b16 %v2571_v28 }
 0x145   : > { %2853 = vmatpush.bf16.msrb.mxu1 %v4888_v44  ;;  %v1706_v8 = vpop.f32.mrf.mxu2  ;;  %v4988_v44 = vor.u32 %v5580_v50, %v4985_v17  ;;  %v1690_v22 = vpop.f32.mrf.mxu0  ;;  %v4991_v50 = vld [vmem:[%s5864_s30 + $0x788] sm:$0xf]  ;;  %v5582_v17 = vld [vmem:[%s5864_s30 + $0x790] sm:$0xf0] }
 0x146   : > { %v1707_v4 = vadd.f32 %v1706_v8, %v1688_v16  ;;  %4882 = vmatmul.msk.bf16.gmra.mxu3 %vm610_vm1, %v6611_v41  ;;  %v1399_v62 = vpop.f32.mrf.mxu3  ;;  %v6709_v56 = vpack.c.b16 %v2630_v46, %v2628_v33  ;;  %v4992_v59 = vor.u32 %v5582_v17, %v4991_v50  ;;  %v5561_v8 = vld [vmem:[%s5864_s30 + $0x6e8] sm:$0xf0]  ;;  %v5602_v50 = vld [vmem:[%s5864_s30 + $0x830] sm:$0xf0] }
 0x147   : > { %2907 = vmatpush.bf16.msrb.mxu2 %v4988_v44  ;;  %v6727_v44 = vrot.slane %v2637_v36, 2  ;;  %v5610_v36 = vld [vmem:[%s5864_s30 + $0x874] sm:$0xf] }
 0x148   : > { %2886 = vmatpush.bf16.msrb.mxu0 %v4928_v49  ;;  %v6687_v21 = vadd.f32 %v1707_v4, %v6573_v2  ;;  %v5003_v2 = vld [vmem:[%s5864_s30 + $0x7a0] sm:$0xf]  ;;  %v1400_v49 = vadd.f32 %v1399_v62, %v1381_v61  ;;  %v2643_v1 = vrot.slane %v6709_v56, 2  ;;  %v4908_v4 = vor.u32 %v5561_v8, %v4907_v43  ;;  %v5605_v62 = vld [vmem:[%s5864_s30 + $0x848] sm:$0xf0] }
 0x149   : > { %2918 = vmatpush.bf16.msra.mxu1 %v4980_v32  ;;  %v2629_v32 = vunpack.c.l.b16 %v6678_v6  ;;  %v5004_v12 = vor.u32 %v5585_v34, %v5003_v2  ;;  %4884 = vmatmul.msk.bf16.gmra.mxu2 %vm610_vm1, %v6611_v41  ;;  %v4895_v41 = vld [vmem:[%s5864_s30 + $0x6c8] sm:$0xf] }
 0x14a   : > { %v6743_v30 = vsel %vm2639_vm5, %v2643_v1, %v6733_v9  ;;  %v4896_v33 = vor.u32 %v5558_v19, %v4895_v41  ;;  %v5169_v34 = vld [vmem:[%s5864_s30 + $0x8e8] sm:$0xf] }
 0x14b   : > { %2942 = vmatpush.bf16.msra.mxu3 %v5004_v12  ;;  %v5170_v12 = vor.u32 %v5626_v37, %v5169_v34  ;;  %v5099_v41 = vld [vmem:[%s5864_s30 + $0x864] sm:$0xf0]  ;;  %v5087_v34 = vld [vmem:[%s5864_s30 + $0x84c] sm:$0xf0]  ;;  %v2963_v37 = vld [vmem:[%s5915_s13 + $0x20] sm:$0x77] }
 0x14c   : > { %2887 = vmatpush.bf16.msrb.mxu0 %v4916_v0  ;;  %v1383_v57 = vpop.f32.mrf.mxu1 }
 0x14d   : > { %2919 = vmatpush.bf16.msra.mxu1 %v4968_v48  ;;  %v1708_v16 = vpop.f32.mrf.mxu2  ;;  %v6704_v48 = vpack.c.b16 %v2629_v32, %v2627_v31  ;;  %v1693_v5 = vpop.f32.mrf.mxu0  ;;  %3274 = vmatpush.bf16.msra.mxu2 %v5170_v12 }
 0x14e   : > { %v1709_v52 = vadd.f32 %v1708_v16, %v1690_v22  ;;  %v1401_v61 = vpop.f32.mrf.mxu3  ;;  %v5086_v16 = vor.u32 %v5605_v62, %v5085_v15 }
 0x14f   : > { %v2640_v28 = vrot.slane %v6704_v48, 2  ;;  %2539 = vmatmul.bf16.gmra.mxu0 %v6615_v42  ;;  %2943 = vmatpush.bf16.msra.mxu3 %v4992_v59  ;;  %v5061_v61 = vld [vmem:[%s5864_s30 + $0x810] sm:$0xf] }
 0x150   : > { %2888 = vmatpush.bf16.msrb.mxu0 %v4904_v29  ;;  %v6718_v0 = vadd.f32 %v1709_v52, %v6593_v51  ;;  %v5611_v51 = vld [vmem:[%s5864_s30 + $0x878] sm:$0xf0] }
 0x151   : > { %2920 = vmatpush.bf16.msra.mxu1 %v4956_v14  ;;  %v6715_v14 = vadd.f32 %v1400_v49, %v6543_v7  ;;  %v5109_v7 = vld [vmem:[%s5864_s30 + $0x870] sm:$0xf]  ;;  %v6740_v45 = vsel %vm2639_vm5, %v2640_v28, %v6727_v44  ;;  %v5623_v52 = vld [vmem:[%s5864_s30 + $0x8d8] sm:$0xf0]  ;;  %v5622_v28 = vld [vmem:[%s5864_s30 + $0x8d4] sm:$0xf] }
 0x152   : > { %v5110_v54 = vor.u32 %v5611_v51, %v5109_v7  ;;  %2854 = vmatmul.bf16.vlgmr.msrb.gmra.mxu1 %v6740_v45  ;;  %v5157_v49 = vld [vmem:[%s5864_s30 + $0x8d0] sm:$0xf]  ;;  %v5159_v7 = vld [vmem:[%s5864_s30 + $0x8dc] sm:$0xf0]  ;;  %v5145_v51 = vld [vmem:[%s5864_s30 + $0x8b8] sm:$0xf] }
 0x153   : > { %v5158_v57 = vor.u32 %v5623_v52, %v5157_v49  ;;  %v5162_v1 = vor.u32 %v5622_v28, %v5159_v7  ;;  %v5601_v49 = vld [vmem:[%s5864_s30 + $0x82c] sm:$0xf]  ;;  %v3014_v52 = vunpack.c.h.b16 %v2963_v37 }
 0x154   : > { %2889 = vmatpush.bf16.msrb.mxu0 %v4892_v40  ;;  %v1724_v29 = vpop.f32.mrf.mxu1  ;;  %v5171_v40 = vld [vmem:[%s5864_s30 + $0x8f4] sm:$0xf0] }
 0x155   : > { %2921 = vmatpush.bf16.msra.mxu1 %v4944_v47  ;;  %v1711_v42 = vpop.f32.mrf.mxu2  ;;  %v5608_v47 = vld [vmem:[%s5864_s30 + $0x860] sm:$0xf0]  ;;  %v1695_v31 = vpop.f32.mrf.mxu0  ;;  %v5174_v60 = vor.u32 %v5625_v53, %v5171_v40  ;;  %3275 = vmatpush.bf16.msra.mxu2 %v5158_v57  ;;  %v5049_v53 = vld [vmem:[%s5864_s30 + $0x7f8] sm:$0xf]  ;;  %v5037_v57 = vld [vmem:[%s5864_s30 + $0x7e0] sm:$0xf] }
 0x156   : > { %v1712_v22 = vadd.f32 %v1711_v42, %v1693_v5  ;;  %v5098_v38 = vor.u32 %v5608_v47, %v5097_v18  ;;  %5029 = vmatmul.msk.bf16.vlgmr.msrb.gmra.mxu3 %vm610_vm1, %v6743_v30  ;;  %v1742_v10 = vpop.f32.mrf.mxu3  ;;  %v5599_v42 = vld [vmem:[%s5864_s30 + $0x818] sm:$0xf0]  ;;  %v5133_v18 = vld [vmem:[%s5864_s30 + $0x8a0] sm:$0xf]  ;;  %v5617_v47 = vld [vmem:[%s5864_s30 + $0x8a8] sm:$0xf0] }
 0x157   : > { %3310 = vmatpush.bf16.msrb.mxu3 %v5174_v60  ;;  %v1743_v5 = vadd.f32 %v1742_v10, %v1724_v29  ;;  %v5604_v29 = vld [vmem:[%s5864_s30 + $0x844] sm:$0xf]  ;;  %v5619_v10 = vld [vmem:[%s5864_s30 + $0x8bc] sm:$0xf] }
 0x158   : > { %3252 = vmatpush.bf16.msra.mxu0 %v5122_v63  ;;  %v6746_v2 = vadd.f32 %v1712_v22, %v6620_v55  ;;  %v5073_v63 = vld [vmem:[%s5864_s30 + $0x828] sm:$0xf]  ;;  %v5062_v22 = vor.u32 %v5599_v42, %v5061_v61  ;;  %v5596_v40 = vld [vmem:[%s5864_s30 + $0x800] sm:$0xf0] }
 0x159   : > { %2922 = vmatpush.bf16.msra.mxu1 %v4932_v39  ;;  %v5123_v39 = vld [vmem:[%s5864_s30 + $0x894] sm:$0xf0]  ;;  %v5074_v59 = vor.u32 %v5602_v50, %v5073_v63  ;;  %v6766_v8 = vadd.f32 %v1743_v5, %v6596_v26  ;;  %5031 = vmatmul.msk.bf16.vlgmr.msrb.gmra.mxu2 %vm610_vm1, %v6743_v30  ;;  %v5050_v60 = vor.u32 %v5596_v40, %v5049_v53  ;;  %v5593_v5 = vld [vmem:[%s5864_s30 + $0x7e8] sm:$0xf0]  ;;  %v5598_v63 = vld [vmem:[%s5864_s30 + $0x814] sm:$0xf] }
 0x15a   : > { %v5126_v55 = vor.u32 %v5613_v27, %v5123_v39  ;;  %v5090_v39 = vor.u32 %v5604_v29, %v5087_v34  ;;  %v5063_v50 = vld [vmem:[%s5864_s30 + $0x81c] sm:$0xf0]  ;;  %v5616_v42 = vld [vmem:[%s5864_s30 + $0x8a4] sm:$0xf]  ;;  %v5117_v34 = vld [vmem:[%s5864_s30 + $0x878] sm:$0xf] }
 0x15b   : > { %3311 = vmatpush.bf16.msrb.mxu3 %v5162_v1  ;;  %v5066_v28 = vor.u32 %v5598_v63, %v5063_v50  ;;  %v5129_v1 = vld [vmem:[%s5864_s30 + $0x890] sm:$0xf]  ;;  %v5592_v53 = vld [vmem:[%s5864_s30 + $0x7e4] sm:$0xf] }
 0x15c   : > { %3253 = vmatpush.bf16.msra.mxu0 %v5110_v54  ;;  %v1726_v17 = vpop.f32.mrf.mxu1  ;;  %v5607_v54 = vld [vmem:[%s5864_s30 + $0x85c] sm:$0xf]  ;;  %v5039_v40 = vld [vmem:[%s5864_s30 + $0x7ec] sm:$0xf0] }
 0x15d   : > { %2923 = vmatpush.bf16.msra.mxu1 %v4920_v35  ;;  %v1713_v11 = vpop.f32.mrf.mxu2  ;;  %v5114_v35 = vor.u32 %v5610_v36, %v5111_v25  ;;  %v1760_v43 = vpop.f32.mrf.mxu0  ;;  %v5102_v26 = vor.u32 %v5607_v54, %v5099_v41  ;;  %v5075_v36 = vld [vmem:[%s5864_s30 + $0x834] sm:$0xf0]  ;;  %v3013_v25 = vunpack.c.l.b16 %v2963_v37  ;;  %v5612_v37 = vld [vmem:[%s5864_s30 + $0x880] sm:$0xf0] }
 0x15e   : > { %v1744_v31 = vpop.f32.mrf.mxu3  ;;  %v5147_v11 = vld [vmem:[%s5864_s30 + $0x8c4] sm:$0xf0] }
 0x15f   : > { %2890 = vmatmul.bf16.vlgmr.msrb.gmra.mxu0 %v6740_v45  ;;  %v1745_v27 = vadd.f32 %v1744_v31, %v1726_v17  ;;  %v6804_v17 = vpack.c.b16 %v3014_v52, %v6405_v23  ;;  %v6809_v54 = vpack.c.b16 %v3013_v25, %v6392_v24  ;;  %v3036_v24 = vshrl.u32 %v6709_v56, 16 }
 0x160   : > { %3254 = vmatpush.bf16.msra.mxu0 %v5098_v38  ;;  %v5134_v38 = vor.u32 %v5617_v47, %v5133_v18  ;;  %v5595_v18 = vld [vmem:[%s5864_s30 + $0x7fc] sm:$0xf]  ;;  %v3039_v47 = vshll.u32 %v6709_v56, 16  ;;  %v3022_v56 = vshll.u32 %v6704_v48, 16 }
 0x161   : > { %2924 = vmatpush.bf16.msra.mxu1 %v4908_v4  ;;  %v5620_v4 = vld [vmem:[%s5864_s30 + $0x8c0] sm:$0xf0]  ;;  %v6787_v62 = vadd.f32 %v1745_v27, %v6623_v3  ;;  %v5078_v3 = vor.u32 %v5601_v49, %v5075_v36  ;;  %v3044_v29 = vshrl.u32 %v6804_v17, 16  ;;  %v3027_v27 = vshrl.u32 %v6809_v54, 16 }
 0x162   : > { %v5146_v19 = vor.u32 %v5620_v4, %v5145_v51  ;;  %2859 = vmatmul.bf16.gmra.mxu1 %v6727_v44  ;;  %v5615_v4 = vld [vmem:[%s5864_s30 + $0x898] sm:$0xf0]  ;;  %v3041_v49 = vrot.slane %v3039_v47, 3 }
 0x163   : > { %v5130_v23 = vor.u32 %v5615_v4, %v5129_v1  ;;  %v3046_v52 = vrot.slane %v3044_v29, 2  ;;  %v5650_v1 = vld [vmem:[%s5864_s30 + $0x9b0] sm:$0xf0]  ;;  %v5624_v29 = vld [vmem:[%s5864_s30 + $0x8e0] sm:$0xf0] }
 0x164   : > { %3255 = vmatpush.bf16.msra.mxu0 %v5086_v16  ;;  %3276 = vmatpush.bf16.msra.mxu2 %v5146_v19 }
 0x165   : > { %2925 = vmatpush.bf16.msra.mxu1 %v4896_v33  ;;  %v1778_v33 = vpop.f32.mrf.mxu2  ;;  %v1762_v15 = vpop.f32.mrf.mxu0 }
 0x166   : > { %v1779_v12 = vadd.f32 %v1778_v33, %v1760_v43  ;;  %5030 = vmatmul.msk.bf16.gmra.mxu3 %vm610_vm1, %v6733_v9  ;;  %v1747_v43 = vpop.f32.mrf.mxu3  ;;  %v3019_v33 = vshrl.u32 %v6704_v48, 16  ;;  %v5042_v48 = vor.u32 %v5592_v53, %v5039_v40 }
 0x168   : > { %3256 = vmatpush.bf16.msra.mxu0 %v5074_v59  ;;  %v6790_v16 = vadd.f32 %v1779_v12, %v6659_v13  ;;  %3277 = vmatpush.bf16.msra.mxu2 %v5134_v38  ;;  %v5150_v13 = vor.u32 %v5619_v10, %v5147_v11  ;;  %v3030_v12 = vshll.u32 %v6809_v54, 16  ;;  %v3021_v11 = vrot.slane %v3019_v33, 2 }
 0x169   : > { %3288 = vmatpush.bf16.msrb.mxu1 %v5126_v55  ;;  %v1729_v55 = vpop.f32.mrf.mxu1  ;;  %5032 = vmatmul.msk.bf16.gmra.mxu2 %vm610_vm1, %v6733_v9 }
 0x16a   : > { %3312 = vmatpush.bf16.msrb.mxu3 %v5150_v13  ;;  %v1748_v7 = vadd.f32 %v1747_v43, %v1729_v55  ;;  %v3032_v63 = vrot.slane %v3030_v12, 3 }
 0x16c   : > { %3257 = vmatpush.bf16.msra.mxu0 %v5062_v22  ;;  %v5135_v22 = vld [vmem:[%s5864_s30 + $0x8ac] sm:$0xf0] }
 0x16d   : > { %3289 = vmatpush.bf16.msrb.mxu1 %v5114_v35  ;;  %v5038_v35 = vor.u32 %v5593_v5, %v5037_v57  ;;  %v1780_v59 = vpop.f32.mrf.mxu2  ;;  %v1765_v19 = vpop.f32.mrf.mxu0  ;;  %v5138_v31 = vor.u32 %v5616_v42, %v5135_v22  ;;  %v5609_v57 = vld [vmem:[%s5864_s30 + $0x868] sm:$0xf0]  ;;  %v3024_v5 = vrot.slane %v3022_v56, 3  ;;  %v5081_v56 = vld [vmem:[%s5864_s30 + $0x830] sm:$0xf] }
 0x16e   : > { %v1781_v51 = vadd.f32 %v1780_v59, %v1762_v15  ;;  %v1749_v55 = vpop.f32.mrf.mxu3  ;;  %v5177_v59 = vld [vmem:[%s5864_s30 + $0x8f0] sm:$0xf] }
 0x16f   : > { %2895 = vmatmul.bf16.gmra.mxu0 %v6727_v44  ;;  %3313 = vmatpush.bf16.msrb.mxu3 %v5138_v31  ;;  %v3025_v22 = vor.u32 %v3024_v5, %v3021_v11  ;;  %v5259_v31 = vld [vmem:[%s5864_s30 + $0x990] sm:$0xf]  ;;  %v5644_v11 = vld [vmem:[%s5864_s30 + $0x980] sm:$0xf0]  ;;  %v5141_v5 = vld [vmem:[%s5864_s30 + $0x8a8] sm:$0xf] }
 0x170   : > { %3258 = vmatpush.bf16.msra.mxu0 %v5050_v60  ;;  %v6815_v61 = vadd.f32 %v1781_v51, %v6684_v20  ;;  %v3047_v20 = vshll.u32 %v6804_v17, 16  ;;  %v3038_v60 = vrot.slane %v3036_v24, 2 }
 0x171   : > { %3290 = vmatpush.bf16.msrb.mxu1 %v5102_v26  ;;  %v1731_v41 = vpop.f32.mrf.mxu1  ;;  %v6812_v26 = vadd.f32 %v1748_v7, %v6639_v58  ;;  %v5051_v58 = vld [vmem:[%s5864_s30 + $0x804] sm:$0xf0] }
 0x172   : > { %v5054_v38 = vor.u32 %v5595_v18, %v5051_v58  ;;  %v3049_v10 = vrot.slane %v3047_v20, 3  ;;  %v5271_v7 = vld [vmem:[%s5864_s30 + $0x9a8] sm:$0xf]  ;;  %2926 = vmatmul.bf16.vlgmr.msra.gmra.mxu1 %v6740_v45  ;;  %v3042_v4 = vor.u32 %v3041_v49, %v3038_v60  ;;  %v5662_v41 = vld [vmem:[%s5864_s30 + $0xa10] sm:$0xf0] }
 0x173   : > { %v5606_v45 = vld [vmem:[%s5864_s30 + $0x850] sm:$0xf0]  ;;  %v5307_v60 = vld [vmem:[%s5864_s30 + $0x9f0] sm:$0xf]  ;;  %v5659_v49 = vld [vmem:[%s5864_s30 + $0x9f8] sm:$0xf0] }
 0x174   : > { %3259 = vmatpush.bf16.msra.mxu0 %v5038_v35  ;;  %v3029_v35 = vrot.slane %v3027_v27, 2  ;;  %v6851_v42 = vor.u32 %v3049_v10, %v3046_v52  ;;  %v5603_v27 = vld [vmem:[%s5864_s30 + $0x838] sm:$0xf0]  ;;  %v5153_v52 = vld [vmem:[%s5864_s30 + $0x8c0] sm:$0xf] }
 0x175   : > { %3291 = vmatpush.bf16.msrb.mxu1 %v5090_v39  ;;  %v5118_v39 = vor.u32 %v5612_v37, %v5117_v34  ;;  %v1783_v15 = vpop.f32.mrf.mxu2  ;;  %v1767_v13 = vpop.f32.mrf.mxu0  ;;  %v5082_v55 = vor.u32 %v5603_v27, %v5081_v56  ;;  %v5247_v10 = vld [vmem:[%s5864_s30 + $0x978] sm:$0xf] }
 0x176   : > { %v1784_v36 = vadd.f32 %v1783_v15, %v1765_v19  ;;  %5033 = vmatmul.msk.bf16.vlgmr.msra.gmra.mxu3 %vm610_vm1, %v6743_v30  ;;  %v5272_v19 = vor.u32 %v5650_v1, %v5271_v7  ;;  %v6853_v18 = vor.u32 %v3032_v63, %v3029_v35  ;;  %v5165_v30 = vld [vmem:[%s5864_s30 + $0x8d8] sm:$0xf]  ;;  %v5618_v35 = vld [vmem:[%s5864_s30 + $0x8b0] sm:$0xf0]  ;;  %v5235_v63 = vld [vmem:[%s5864_s30 + $0x960] sm:$0xf] }
 0x177   : > { %v5166_v33 = vor.u32 %v5624_v29, %v5165_v30  ;;  %v5641_v7 = vld [vmem:[%s5864_s30 + $0x968] sm:$0xf0]  ;;  %v5638_v30 = vld [vmem:[%s5864_s30 + $0x950] sm:$0xf0] }
 0x178   : > { %3324 = vmatpush.bf16.msrb.mxu0 %v5130_v23  ;;  %v6839_v43 = vadd.f32 %v1784_v36, %v6715_v14  ;;  %v5319_v14 = vld [vmem:[%s5864_s30 + $0xa08] sm:$0xf]  ;;  %v6868_v40 = vsel %vm3017_vm6, %v3025_v22, %v6853_v18  ;;  %v5621_v36 = vld [vmem:[%s5864_s30 + $0x8c8] sm:$0xf0] }
 0x179   : > { %3292 = vmatpush.bf16.msrb.mxu1 %v5078_v3  ;;  %v5105_v3 = vld [vmem:[%s5864_s30 + $0x860] sm:$0xf]  ;;  %v2094_v25 = vpop.f32.mrf.mxu1  ;;  %v5093_v23 = vld [vmem:[%s5864_s30 + $0x848] sm:$0xf]  ;;  %v5320_v24 = vor.u32 %v5662_v41, %v5319_v14  ;;  %v2112_v58 = vpop.f32.mrf.mxu3  ;;  %v5597_v41 = vld [vmem:[%s5864_s30 + $0x808] sm:$0xf0] }
 0x17a   : > { %v5106_v50 = vor.u32 %v5609_v57, %v5105_v3  ;;  %v5094_v47 = vor.u32 %v5606_v45, %v5093_v23  ;;  %v2113_v34 = vadd.f32 %v2112_v58, %v2094_v25  ;;  %v5154_v3 = vor.u32 %v5621_v36, %v5153_v52  ;;  %v5069_v57 = vld [vmem:[%s5864_s30 + $0x818] sm:$0xf]  ;;  %v5600_v25 = vld [vmem:[%s5864_s30 + $0x820] sm:$0xf0]  ;;  %v5057_v14 = vld [vmem:[%s5864_s30 + $0x800] sm:$0xf] }
 0x17b   : > { %3651 = vmatpush.bf16.msra.mxu3 %v5320_v24  ;;  %v5070_v13 = vor.u32 %v5600_v25, %v5069_v57  ;;  %v5058_v22 = vor.u32 %v5597_v41, %v5057_v14  ;;  %v5656_v58 = vld [vmem:[%s5864_s30 + $0x9e0] sm:$0xf0]  ;;  %v5283_v36 = vld [vmem:[%s5864_s30 + $0x9c0] sm:$0xf]  ;;  %v5646_v57 = vld [vmem:[%s5864_s30 + $0x994] sm:$0xf] }
 0x17c   : > { %3325 = vmatpush.bf16.msrb.mxu0 %v5118_v39  ;;  %v6864_v39 = vsel %vm3017_vm6, %v3042_v4, %v6851_v42  ;;  %v6871_v15 = vadd.f32 %v2113_v34, %v6687_v21  ;;  %v5248_v21 = vor.u32 %v5644_v11, %v5247_v10  ;;  %v5236_v4 = vor.u32 %v5641_v7, %v5235_v63  ;;  %v5635_v34 = vld [vmem:[%s5864_s30 + $0x938] sm:$0xf0]  ;;  %v5653_v10 = vld [vmem:[%s5864_s30 + $0x9c8] sm:$0xf0]  ;;  %v5199_v11 = vld [vmem:[%s5864_s30 + $0x918] sm:$0xf] }
 0x17d   : > { %3293 = vmatpush.bf16.msrb.mxu1 %v5066_v28  ;;  %v5627_v28 = vld [vmem:[%s5864_s30 + $0x8f8] sm:$0xf0]  ;;  %v1785_v20 = vpop.f32.mrf.mxu2  ;;  %v2130_v53 = vpop.f32.mrf.mxu0  ;;  %5179 = vmatmul.msk.bf16.vlgmr.msra.gmra.mxu2 %vm610_vm1, %v6864_v39  ;;  %v5249_v7 = vld [vmem:[%s5864_s30 + $0x984] sm:$0xf0]  ;;  %v5661_v41 = vld [vmem:[%s5864_s30 + $0xa0c] sm:$0xf] }
 0x17e   : > { %v5178_v51 = vor.u32 %v5627_v28, %v5177_v59  ;;  %v5142_v28 = vor.u32 %v5618_v35, %v5141_v5  ;;  %v5594_v20 = vld [vmem:[%s5864_s30 + $0x7f0] sm:$0xf0]  ;;  %v5629_v5 = vld [vmem:[%s5864_s30 + $0x908] sm:$0xf0] }
 0x17f   : > { %3260 = vmatmul.bf16.vlgmr.msra.gmra.mxu0 %v6868_v40 }
 0x180   : > { %3326 = vmatpush.bf16.msrb.mxu0 %v5106_v50  ;;  %3346 = vmatpush.bf16.msrb.mxu2 %v5178_v51 }
 0x181   : > { %3294 = vmatpush.bf16.msrb.mxu1 %v5054_v38  ;;  %v5647_v38 = vld [vmem:[%s5864_s30 + $0x998] sm:$0xf0]  ;;  %v2096_v12 = vpop.f32.mrf.mxu1  ;;  %v2114_v50 = vpop.f32.mrf.mxu3 }
 0x182   : > { %v5260_v37 = vor.u32 %v5647_v38, %v5259_v31  ;;  %v2115_v51 = vadd.f32 %v2114_v50, %v2096_v12  ;;  %2931 = vmatmul.bf16.gmra.mxu1 %v6727_v44  ;;  %v5295_v31 = vld [vmem:[%s5864_s30 + $0x9d8] sm:$0xf]  ;;  %v5211_v38 = vld [vmem:[%s5864_s30 + $0x930] sm:$0xf]  ;;  %v5649_v12 = vld [vmem:[%s5864_s30 + $0x9ac] sm:$0xf] }
 0x183   : > { %v5212_v44 = vor.u32 %v5635_v34, %v5211_v38  ;;  %v5267_v38 = vld [vmem:[%s5864_s30 + $0x998] sm:$0xf] }
 0x184   : > { %3327 = vmatpush.bf16.msrb.mxu0 %v5094_v47  ;;  %3347 = vmatpush.bf16.msrb.mxu2 %v5166_v33  ;;  %v6891_v24 = vadd.f32 %v2115_v51, %v6718_v0  ;;  %v5223_v47 = vld [vmem:[%s5864_s30 + $0x948] sm:$0xf] }
 0x185   : > { %3295 = vmatpush.bf16.msrb.mxu1 %v5042_v48  ;;  %v5308_v48 = vor.u32 %v5659_v49, %v5307_v60  ;;  %v2148_v59 = vpop.f32.mrf.mxu2  ;;  %v2132_v23 = vpop.f32.mrf.mxu0  ;;  %v5224_v29 = vor.u32 %v5638_v30, %v5223_v47  ;;  %v5045_v0 = vld [vmem:[%s5864_s30 + $0x7e8] sm:$0xf]  ;;  %v5651_v47 = vld [vmem:[%s5864_s30 + $0x9b8] sm:$0xf0]  ;;  %v5327_v30 = vld [vmem:[%s5864_s30 + $0xa10] sm:$0xf] }
 0x186   : > { %v2149_v1 = vadd.f32 %v2148_v59, %v2130_v53  ;;  %5034 = vmatmul.msk.bf16.gmra.mxu3 %vm610_vm1, %v6733_v9  ;;  %v5046_v33 = vor.u32 %v5594_v20, %v5045_v0  ;;  %v5273_v53 = vld [vmem:[%s5864_s30 + $0x9b4] sm:$0xf0]  ;;  %v5237_v0 = vld [vmem:[%s5864_s30 + $0x96c] sm:$0xf0]  ;;  %v5658_v20 = vld [vmem:[%s5864_s30 + $0x9f4] sm:$0xf] }
 0x187   : > { %3652 = vmatpush.bf16.msra.mxu3 %v5308_v48  ;;  %v5276_v49 = vor.u32 %v5649_v12, %v5273_v53  ;;  %v5637_v12 = vld [vmem:[%s5864_s30 + $0x94c] sm:$0xf]  ;;  %v5225_v53 = vld [vmem:[%s5864_s30 + $0x954] sm:$0xf0] }
 0x188   : > { %3328 = vmatpush.bf16.msrb.mxu0 %v5082_v55  ;;  %3348 = vmatpush.bf16.msrb.mxu2 %v5154_v3  ;;  %v6894_v45 = vadd.f32 %v2149_v1, %v6766_v8  ;;  %v5296_v8 = vor.u32 %v5656_v58, %v5295_v31  ;;  %v5284_v3 = vor.u32 %v5653_v10, %v5283_v36  ;;  %v5640_v31 = vld [vmem:[%s5864_s30 + $0x964] sm:$0xf]  ;;  %v5315_v10 = vld [vmem:[%s5864_s30 + $0x9f8] sm:$0xf] }
 0x189   : > { %3629 = vmatpush.bf16.msra.mxu1 %v5272_v19  ;;  %v2099_v19 = vpop.f32.mrf.mxu1 }
 0x18b   : > { %3653 = vmatpush.bf16.msra.mxu3 %v5296_v8  ;;  %v5240_v8 = vor.u32 %v5640_v31, %v5237_v0  ;;  %v5231_v31 = vld [vmem:[%s5864_s30 + $0x950] sm:$0xf] }
 0x18c   : > { %3329 = vmatpush.bf16.msrb.mxu0 %v5070_v13  ;;  %3349 = vmatpush.bf16.msrb.mxu2 %v5142_v28  ;;  %v5187_v13 = vld [vmem:[%s5864_s30 + $0x900] sm:$0xf]  ;;  %v5643_v28 = vld [vmem:[%s5864_s30 + $0x97c] sm:$0xf] }
 0x18d   : > { %3630 = vmatpush.bf16.msra.mxu1 %v5260_v37  ;;  %v2117_v37 = vpop.f32.mrf.mxu3  ;;  %v2150_v56 = vpop.f32.mrf.mxu2  ;;  %5180 = vmatmul.msk.bf16.gmra.mxu2 %vm610_vm1, %v6851_v42  ;;  %v5188_v50 = vor.u32 %v5629_v5, %v5187_v13  ;;  %v5634_v13 = vld [vmem:[%s5864_s30 + $0x934] sm:$0xf]  ;;  %v5213_v5 = vld [vmem:[%s5864_s30 + $0x93c] sm:$0xf0] }
 0x18e   : > { %v2118_v9 = vadd.f32 %v2117_v37, %v2099_v19  ;;  %v2151_v27 = vadd.f32 %v2150_v56, %v2132_v23  ;;  %v2135_v60 = vpop.f32.mrf.mxu0  ;;  %v5321_v19 = vld [vmem:[%s5864_s30 + $0xa14] sm:$0xf0] }
 0x18f   : > { %3265 = vmatmul.bf16.gmra.mxu0 %v6853_v18  ;;  %3654 = vmatpush.bf16.msra.mxu3 %v5284_v3  ;;  %v5324_v23 = vor.u32 %v5661_v41, %v5321_v19  ;;  %v5655_v3 = vld [vmem:[%s5864_s30 + $0x9dc] sm:$0xf]  ;;  %v5201_v19 = vld [vmem:[%s5864_s30 + $0x924] sm:$0xf0] }
 0x190   : > { %3330 = vmatpush.bf16.msrb.mxu0 %v5058_v22  ;;  %v6910_v52 = vadd.f32 %v2118_v9, %v6746_v2  ;;  %v6913_v48 = vadd.f32 %v2151_v27, %v6787_v62  ;;  %v5261_v62 = vld [vmem:[%s5864_s30 + $0x99c] sm:$0xf0]  ;;  %v5279_v22 = vld [vmem:[%s5864_s30 + $0x9b0] sm:$0xf]  ;;  %v5631_v41 = vld [vmem:[%s5864_s30 + $0x91c] sm:$0xf] }
 0x191   : > { %3631 = vmatpush.bf16.msra.mxu1 %v5248_v21  ;;  %v2101_v55 = vpop.f32.mrf.mxu1  ;;  %v5632_v21 = vld [vmem:[%s5864_s30 + $0x920] sm:$0xf0]  ;;  %v5264_v25 = vor.u32 %v5646_v57, %v5261_v62  ;;  %3687 = vmatpush.bf16.msra.mxu2 %v5324_v23  ;;  %v5255_v57 = vld [vmem:[%s5864_s30 + $0x980] sm:$0xf]  ;;  %v5645_v62 = vld [vmem:[%s5864_s30 + $0x988] sm:$0xf0] }
 0x192   : > { %v5200_v2 = vor.u32 %v5632_v21, %v5199_v11  ;;  %3296 = vmatmul.bf16.vlgmr.msrb.gmra.mxu1 %v6868_v40  ;;  %v5660_v11 = vld [vmem:[%s5864_s30 + $0xa00] sm:$0xf0] }
 0x193   : > { %v5316_v21 = vor.u32 %v5660_v11, %v5315_v10 }
 0x194   : > { %3331 = vmatpush.bf16.msrb.mxu0 %v5046_v33  ;;  %v5309_v33 = vld [vmem:[%s5864_s30 + $0x9fc] sm:$0xf0] }
 0x195   : > { %3632 = vmatpush.bf16.msra.mxu1 %v5236_v4  ;;  %v2119_v35 = vpop.f32.mrf.mxu3  ;;  %v2153_v63 = vpop.f32.mrf.mxu2  ;;  %v5252_v4 = vor.u32 %v5643_v28, %v5249_v7  ;;  %v5312_v56 = vor.u32 %v5658_v20, %v5309_v33  ;;  %v5628_v20 = vld [vmem:[%s5864_s30 + $0x904] sm:$0xf] }
 0x196   : > { %v2154_v59 = vadd.f32 %v2153_v63, %v2135_v60  ;;  %v2137_v1 = vpop.f32.mrf.mxu0  ;;  %5181 = vmatmul.msk.bf16.vlgmr.msrb.gmra.mxu3 %vm610_vm1, %v6864_v39  ;;  %v5216_v35 = vor.u32 %v5634_v13, %v5213_v5  ;;  %v5652_v63 = vld [vmem:[%s5864_s30 + $0x9c4] sm:$0xf]  ;;  %v5195_v13 = vld [vmem:[%s5864_s30 + $0x908] sm:$0xf]  ;;  %v5630_v5 = vld [vmem:[%s5864_s30 + $0x910] sm:$0xf0] }
 0x197   : > { %3688 = vmatpush.bf16.msra.mxu2 %v5312_v56  ;;  %v5219_v56 = vld [vmem:[%s5864_s30 + $0x938] sm:$0xf] }
 0x198   : > { %3665 = vmatpush.bf16.msra.mxu0 %v5276_v49  ;;  %v6929_v14 = vadd.f32 %v2154_v59, %v6812_v26  ;;  %v5663_v26 = vld [vmem:[%s5864_s30 + $0xa18] sm:$0xf0]  ;;  %v5228_v49 = vor.u32 %v5637_v12, %v5225_v53  ;;  %v5243_v59 = vld [vmem:[%s5864_s30 + $0x968] sm:$0xf] }
 0x199   : > { %3633 = vmatpush.bf16.msra.mxu1 %v5224_v29  ;;  %v2166_v51 = vpop.f32.mrf.mxu1  ;;  %v5280_v29 = vor.u32 %v5651_v47, %v5279_v22  ;;  %v5328_v58 = vor.u32 %v5663_v26, %v5327_v30  ;;  %v5204_v47 = vor.u32 %v5631_v41, %v5201_v19 }
 0x19b   : > { %3723 = vmatpush.bf16.msrb.mxu3 %v5328_v58  ;;  %v5639_v58 = vld [vmem:[%s5864_s30 + $0x958] sm:$0xf0] }
 0x19c   : > { %3666 = vmatpush.bf16.msra.mxu0 %v5264_v25  ;;  %v5232_v0 = vor.u32 %v5639_v58, %v5231_v31 }
 0x19d   : > { %3634 = vmatpush.bf16.msra.mxu1 %v5212_v44  ;;  %v2184_v34 = vpop.f32.mrf.mxu3  ;;  %v2155_v37 = vpop.f32.mrf.mxu2  ;;  %v5648_v44 = vld [vmem:[%s5864_s30 + $0x9a0] sm:$0xf0]  ;;  %5183 = vmatmul.msk.bf16.vlgmr.msrb.gmra.mxu2 %vm610_vm1, %v6864_v39 }
 0x19e   : > { %v2185_v9 = vadd.f32 %v2184_v34, %v2166_v51  ;;  %v5268_v27 = vor.u32 %v5648_v44, %v5267_v38  ;;  %v2463_v60 = vpop.f32.mrf.mxu0  ;;  %v5189_v34 = vld [vmem:[%s5864_s30 + $0x90c] sm:$0xf0]  ;;  %v5636_v44 = vld [vmem:[%s5864_s30 + $0x940] sm:$0xf0] }
 0x19f   : > { %3332 = vmatmul.bf16.vlgmr.msrb.gmra.mxu0 %v6868_v40  ;;  %3724 = vmatpush.bf16.msrb.mxu3 %v5316_v21  ;;  %v5642_v40 = vld [vmem:[%s5864_s30 + $0x970] sm:$0xf0]  ;;  %v5192_v37 = vor.u32 %v5628_v20, %v5189_v34  ;;  %v5220_v12 = vor.u32 %v5636_v44, %v5219_v56 }
 0x1a0   : > { %3667 = vmatpush.bf16.msra.mxu0 %v5252_v4  ;;  %v6949_v36 = vadd.f32 %v2185_v9, %v6790_v16  ;;  %v5256_v16 = vor.u32 %v5645_v62, %v5255_v57  ;;  %v5244_v4 = vor.u32 %v5642_v40, %v5243_v59  ;;  %v5654_v57 = vld [vmem:[%s5864_s30 + $0x9d0] sm:$0xf0]  ;;  %v5207_v62 = vld [vmem:[%s5864_s30 + $0x920] sm:$0xf] }
 0x1a1   : > { %3635 = vmatpush.bf16.msra.mxu1 %v5200_v2  ;;  %v2168_v55 = vpop.f32.mrf.mxu1  ;;  %v5297_v2 = vld [vmem:[%s5864_s30 + $0x9e4] sm:$0xf0] }
 0x1a2   : > { %v5300_v25 = vor.u32 %v5655_v3, %v5297_v2  ;;  %3301 = vmatmul.bf16.gmra.mxu1 %v6853_v18  ;;  %v5291_v2 = vld [vmem:[%s5864_s30 + $0x9c8] sm:$0xf] }
 0x1a4   : > { %3668 = vmatpush.bf16.msra.mxu0 %v5240_v8  ;;  %3689 = vmatpush.bf16.msra.mxu2 %v5300_v25  ;;  %v5303_v8 = vld [vmem:[%s5864_s30 + $0x9e0] sm:$0xf]  ;;  %v5292_v25 = vor.u32 %v5654_v57, %v5291_v2 }
 0x1a5   : > { %3636 = vmatpush.bf16.msra.mxu1 %v5188_v50  ;;  %v5285_v50 = vld [vmem:[%s5864_s30 + $0x9cc] sm:$0xf0]  ;;  %v2186_v28 = vpop.f32.mrf.mxu3  ;;  %v2481_v39 = vpop.f32.mrf.mxu2 }
 0x1a6   : > { %v5288_v7 = vor.u32 %v5652_v63, %v5285_v50  ;;  %v2187_v51 = vadd.f32 %v2186_v28, %v2168_v55  ;;  %v2482_v1 = vadd.f32 %v2481_v39, %v2463_v60  ;;  %v2465_v22 = vpop.f32.mrf.mxu0  ;;  %5182 = vmatmul.msk.bf16.gmra.mxu3 %vm610_vm1, %v6851_v42  ;;  %v5196_v50 = vor.u32 %v5630_v5, %v5195_v13 }
 0x1a8   : > { %3669 = vmatpush.bf16.msra.mxu0 %v5228_v49  ;;  %v6969_v30 = vadd.f32 %v2187_v51, %v6815_v61  ;;  %v6972_v26 = vadd.f32 %v2482_v1, %v6871_v15  ;;  %3690 = vmatpush.bf16.msra.mxu2 %v5288_v7  ;;  %v5657_v61 = vld [vmem:[%s5864_s30 + $0x9e8] sm:$0xf0] }
 0x1a9   : > { %3701 = vmatpush.bf16.msrb.mxu1 %v5280_v29  ;;  %v2171_v23 = vpop.f32.mrf.mxu1  ;;  %v3369_v29 = vld [vmem:[%s5915_s13 + $0x8] sm:$0x88]  ;;  %v5304_v38 = vor.u32 %v5657_v61, %v5303_v8 }
 0x1aa   : > { %v3419_v33 = vunpack.c.l.b16 %v3369_v29  ;;  %v3420_v15 = vunpack.c.h.b16 %v3369_v29 }
 0x1ab   : > { %3725 = vmatpush.bf16.msrb.mxu3 %v5304_v38 }
 0x1ac   : > { %3670 = vmatpush.bf16.msra.mxu0 %v5216_v35  ;;  %v3421_v49 = vpack.c.b16 %v2629_v32, %v3419_v33  ;;  %v3422_v10 = vpack.c.b16 %v2630_v46, %v3420_v15  ;;  %v7004_v46 = vrot.slane %v6809_v54, 3 }
 0x1ad   : > { %3702 = vmatpush.bf16.msrb.mxu1 %v5268_v27  ;;  %v2189_v9 = vpop.f32.mrf.mxu3  ;;  %v2483_v27 = vpop.f32.mrf.mxu2  ;;  %5184 = vmatmul.msk.bf16.gmra.mxu2 %vm610_vm1, %v6851_v42 }
 0x1ae   : > { %v2190_v53 = vadd.f32 %v2189_v9, %v2171_v23  ;;  %v2484_v55 = vadd.f32 %v2483_v27, %v2465_v22  ;;  %v2468_v11 = vpop.f32.mrf.mxu0  ;;  %v3423_v32 = vrot.slane %v3421_v49, 3 }
 0x1af   : > { %3337 = vmatmul.bf16.gmra.mxu0 %v6853_v18  ;;  %3726 = vmatpush.bf16.msrb.mxu3 %v5292_v25 }
 0x1b0   : > { %3671 = vmatpush.bf16.msra.mxu0 %v5204_v47  ;;  %v6991_v3 = vadd.f32 %v2190_v53, %v6839_v43  ;;  %v6994_v21 = vadd.f32 %v2484_v55, %v6891_v24  ;;  %v3426_v43 = vrot.slane %v3422_v10, 3  ;;  %v7007_v24 = vrot.slane %v6804_v17, 3 }
 0x1b1   : > { %3703 = vmatpush.bf16.msrb.mxu1 %v5256_v16  ;;  %v2173_v60 = vpop.f32.mrf.mxu1  ;;  %v5633_v16 = vld [vmem:[%s5864_s30 + $0x928] sm:$0xf0]  ;;  %v3425_v18 = vsel %vm1472_vm3, %v3423_v32, %v7004_v46 }
 0x1b2   : > { %v5208_v6 = vor.u32 %v5633_v16, %v5207_v62  ;;  %v3428_v54 = vsel %vm1472_vm3, %v3426_v43, %v7007_v24  ;;  %3637 = vmatmul.bf16.vlgmr.msra.gmra.mxu1 %v3425_v18 }
 0x1b4   : > { %3672 = vmatpush.bf16.msra.mxu0 %v5192_v37 }
 0x1b5   : > { %3704 = vmatpush.bf16.msrb.mxu1 %v5244_v4  ;;  %v2191_v35 = vpop.f32.mrf.mxu3  ;;  %v2486_v63 = vpop.f32.mrf.mxu2 }
 0x1b6   : > { %v2487_v59 = vadd.f32 %v2486_v63, %v2468_v11  ;;  %v2470_v28 = vpop.f32.mrf.mxu0  ;;  %5329 = vmatmul.msk.bf16.vlgmr.msra.gmra.mxu3 %vm610_vm1, %v3428_v54 }
 0x1b8   : > { %v2568_v39 = vadd.f32 %v2487_v59, %v6910_v52 }
 0x1b9   : > { %3705 = vmatpush.bf16.msrb.mxu1 %v5232_v0  ;;  %v2499_v42 = vpop.f32.mrf.mxu1 }
 0x1bd   : > { %3706 = vmatpush.bf16.msrb.mxu1 %v5220_v12  ;;  %v2517_v17 = vpop.f32.mrf.mxu3  ;;  %v2488_v7 = vpop.f32.mrf.mxu2  ;;  %5331 = vmatmul.msk.bf16.vlgmr.msra.gmra.mxu2 %vm610_vm1, %v3428_v54 }
 0x1be   : > { %v2518_v40 = vadd.f32 %v2517_v17, %v2499_v42  ;;  %v2535_v1 = vpop.f32.mrf.mxu0 }
 0x1bf   : > { %3673 = vmatmul.bf16.vlgmr.msra.gmra.mxu0 %v3425_v18 }
 0x1c0   : > { %v2563_v4 = vadd.f32 %v2518_v40, %v6894_v45 }
 0x1c1   : > { %3707 = vmatpush.bf16.msrb.mxu1 %v5208_v6  ;;  %v2501_v51 = vpop.f32.mrf.mxu1 }
 0x1c2   : > { %3642 = vmatmul.bf16.gmra.mxu1 %v7004_v46 }
 0x1c5   : > { %3708 = vmatpush.bf16.msrb.mxu1 %v5196_v50  ;;  %v2519_v41 = vpop.f32.mrf.mxu3  ;;  %v2553_v19 = vpop.f32.mrf.mxu2 }
 0x1c6   : > { %v2520_v23 = vadd.f32 %v2519_v41, %v2501_v51  ;;  %v2554_v22 = vadd.f32 %v2553_v19, %v2535_v1  ;;  %v2537_v52 = vpop.f32.mrf.mxu0  ;;  %5330 = vmatmul.msk.bf16.gmra.mxu3 %vm610_vm1, %v7007_v24 }
 0x1c8   : > { %v2566_v29 = vadd.f32 %v2520_v23, %v6913_v48  ;;  %v2564_v31 = vadd.f32 %v2554_v22, %v6949_v36 }
 0x1c9   : > { %v2504_v47 = vpop.f32.mrf.mxu1 }
 0x1cd   : > { %v2522_v58 = vpop.f32.mrf.mxu3  ;;  %v2555_v45 = vpop.f32.mrf.mxu2  ;;  %5332 = vmatmul.msk.bf16.gmra.mxu2 %vm610_vm1, %v7007_v24 }
 0x1ce   : > { %v2523_v0 = vadd.f32 %v2522_v58, %v2504_v47  ;;  %v2556_v8 = vadd.f32 %v2555_v45, %v2537_v52  ;;  %v2540_v20 = vpop.f32.mrf.mxu0 }
 0x1cf   : > { %3678 = vmatmul.bf16.gmra.mxu0 %v7004_v46 }
 0x1d0   : > { %v2569_v33 = vadd.f32 %v2523_v0, %v6929_v14  ;;  %v2567_v15 = vadd.f32 %v2556_v8, %v6969_v30 }
 0x1d1   : > { %v2506_v61 = vpop.f32.mrf.mxu1 }
 0x1d2   : > { %3709 = vmatmul.bf16.vlgmr.msrb.gmra.mxu1 %v3425_v18 }
 0x1d5   : > { %v2524_v48 = vpop.f32.mrf.mxu3  ;;  %v2558_v36 = vpop.f32.mrf.mxu2 }
 0x1d6   : > { %v2559_v38 = vadd.f32 %v2558_v36, %v2540_v20  ;;  %v2542_v37 = vpop.f32.mrf.mxu0  ;;  %5333 = vmatmul.msk.bf16.vlgmr.msrb.gmra.mxu3 %vm610_vm1, %v3428_v54 }
 0x1d8   : > { %v2570_v56 = vadd.f32 %v2559_v38, %v6991_v3 }
 0x1d9   : > { %v2855_v34 = vpop.f32.mrf.mxu1 }
 0x1dd   : > { %v2873_v44 = vpop.f32.mrf.mxu3  ;;  %v2560_v9 = vpop.f32.mrf.mxu2 }
 0x1de   : > { %v2874_v14 = vadd.f32 %v2873_v44, %v2855_v34  ;;  %v2891_v30 = vpop.f32.mrf.mxu0 }
 0x1e0   : > { %v2954_v12 = vadd.f32 %v2874_v14, %v6972_v26 }
 0x1e1   : > { %v2857_v27 = vpop.f32.mrf.mxu1 }
 0x1e2   : > { %3714 = vmatmul.bf16.gmra.mxu1 %v7004_v46 }
 0x1e5   : > { %v2875_v53 = vpop.f32.mrf.mxu3  ;;  %v2909_v55 = vpop.f32.mrf.mxu2 }
 0x1e6   : > { %v2876_v60 = vadd.f32 %v2875_v53, %v2857_v27  ;;  %v2910_v49 = vadd.f32 %v2909_v55, %v2891_v30  ;;  %v2893_v11 = vpop.f32.mrf.mxu0  ;;  %5334 = vmatmul.msk.bf16.gmra.mxu3 %vm610_vm1, %v7007_v24 }
 0x1e8   : > { %v2957_v2 = vadd.f32 %v2876_v60, %v6994_v21  ;;  %v2955_v57 = vadd.f32 %v2910_v49, %v2563_v4 }
 0x1e9   : > { %v2860_v10 = vpop.f32.mrf.mxu1 }
 0x1ed   : > { %v2878_v3 = vpop.f32.mrf.mxu3  ;;  %v2911_v62 = vpop.f32.mrf.mxu2 }
 0x1ee   : > { %v2879_v25 = vadd.f32 %v2878_v3, %v2860_v10  ;;  %v2912_v16 = vadd.f32 %v2911_v62, %v2893_v11  ;;  %v2896_v26 = vpop.f32.mrf.mxu0 }
 0x1f0   : > { %v2960_v32 = vadd.f32 %v2879_v25, %v2568_v39  ;;  %v2958_v43 = vadd.f32 %v2912_v16, %v2566_v29 }
 0x1f1   : > { %v2862_v6 = vpop.f32.mrf.mxu1 }
 0x1f5   : > { %v2880_v13 = vpop.f32.mrf.mxu3  ;;  %v2914_v5 = vpop.f32.mrf.mxu2 }
 0x1f6   : > { %v2915_v35 = vadd.f32 %v2914_v5, %v2896_v26  ;;  %v2898_v50 = vpop.f32.mrf.mxu0 }
 0x1f8   : > { %v2961_v21 = vadd.f32 %v2915_v35, %v2569_v33 }
 0x1f9   : > { %v2927_v63 = vpop.f32.mrf.mxu1 }
 0x1fd   : > { %v2945_v59 = vpop.f32.mrf.mxu3  ;;  %v2916_v42 = vpop.f32.mrf.mxu2 }
 0x1fe   : > { %v2946_v46 = vadd.f32 %v2945_v59, %v2927_v63  ;;  %v3261_v54 = vpop.f32.mrf.mxu0 }
 0x200   : > { %v2956_v24 = vadd.f32 %v2946_v46, %v2564_v31 }
 0x201   : > { %v2929_v18 = vpop.f32.mrf.mxu1 }
 0x205   : > { %v2947_v28 = vpop.f32.mrf.mxu3  ;;  %v3279_v17 = vpop.f32.mrf.mxu2 }
 0x206   : > { %v2948_v7 = vadd.f32 %v2947_v28, %v2929_v18  ;;  %v3280_v40 = vadd.f32 %v3279_v17, %v3261_v54  ;;  %v3263_v1 = vpop.f32.mrf.mxu0 }
 0x208   : > { %v2959_v39 = vadd.f32 %v2948_v7, %v2567_v15  ;;  %v3360_v4 = vadd.f32 %v3280_v40, %v2954_v12 }
 0x209   : > { %v2932_v51 = vpop.f32.mrf.mxu1 }
 0x20d   : > { %v2950_v41 = vpop.f32.mrf.mxu3  ;;  %v3281_v19 = vpop.f32.mrf.mxu2 }
 0x20e   : > { %v2951_v23 = vadd.f32 %v2950_v41, %v2932_v51  ;;  %v3282_v22 = vadd.f32 %v3281_v19, %v3263_v1  ;;  %v3266_v52 = vpop.f32.mrf.mxu0 }
 0x210   : > { %v2962_v29 = vadd.f32 %v2951_v23, %v2570_v56  ;;  %v3363_v58 = vadd.f32 %v3282_v22, %v2957_v2 }
 0x211   : > { %v2934_v47 = vpop.f32.mrf.mxu1 }
 0x215   : > { %v2952_v45 = vpop.f32.mrf.mxu3  ;;  %v3284_v0 = vpop.f32.mrf.mxu2 }
 0x216   : > { %v3285_v8 = vadd.f32 %v3284_v0, %v3266_v52  ;;  %v3268_v61 = vpop.f32.mrf.mxu0 }
 0x218   : > { %v3366_v20 = vadd.f32 %v3285_v8, %v2960_v32 }
 0x219   : > { %v3297_v31 = vpop.f32.mrf.mxu1 }
 0x21d   : > { %v3315_v33 = vpop.f32.mrf.mxu3  ;;  %v3286_v48 = vpop.f32.mrf.mxu2 }
 0x21e   : > { %v3316_v36 = vadd.f32 %v3315_v33, %v3297_v31  ;;  %v3333_v15 = vpop.f32.mrf.mxu0 }
 0x220   : > { %v3361_v34 = vadd.f32 %v3316_v36, %v2955_v57 }
 0x221   : > { %v3299_v38 = vpop.f32.mrf.mxu1 }
 0x225   : > { %v3317_v37 = vpop.f32.mrf.mxu3  ;;  %v3351_v44 = vpop.f32.mrf.mxu2 }
 0x226   : > { %v3318_v9 = vadd.f32 %v3317_v37, %v3299_v38  ;;  %v3352_v14 = vadd.f32 %v3351_v44, %v3333_v15  ;;  %v3335_v30 = vpop.f32.mrf.mxu0 }
 0x228   : > { %v3364_v56 = vadd.f32 %v3318_v9, %v2958_v43  ;;  %v3362_v12 = vadd.f32 %v3352_v14, %v2956_v24 }
 0x229   : > { %v3302_v27 = vpop.f32.mrf.mxu1 }
 0x22d   : > { %v3320_v53 = vpop.f32.mrf.mxu3  ;;  %v3353_v55 = vpop.f32.mrf.mxu2 }
 0x22e   : > { %v3321_v60 = vadd.f32 %v3320_v53, %v3302_v27  ;;  %v3354_v49 = vadd.f32 %v3353_v55, %v3335_v30  ;;  %v3338_v11 = vpop.f32.mrf.mxu0 }
 0x230   : > { %v3367_v2 = vadd.f32 %v3321_v60, %v2961_v21  ;;  %v3365_v3 = vadd.f32 %v3354_v49, %v2959_v39 }
 0x231   : > { %v3304_v10 = vpop.f32.mrf.mxu1 }
 0x235   : > { %v3322_v62 = vpop.f32.mrf.mxu3  ;;  %v3356_v25 = vpop.f32.mrf.mxu2 }
 0x236   : > { %v3357_v16 = vadd.f32 %v3356_v25, %v3338_v11  ;;  %v3340_v6 = vpop.f32.mrf.mxu0 }
 0x238   : > { %v3368_v26 = vadd.f32 %v3357_v16, %v2962_v29 }
 0x239   : > { %v3638_v57 = vpop.f32.mrf.mxu1 }
 0x23d   : > { %v3656_v32 = vpop.f32.mrf.mxu3  ;;  %v3358_v13 = vpop.f32.mrf.mxu2 }
 0x23e   : > { %v3657_v5 = vadd.f32 %v3656_v32, %v3638_v57  ;;  %v3674_v43 = vpop.f32.mrf.mxu0 }
 0x240   : > { %v7036_v63 = vadd.f32 %v3657_v5, %v3360_v4 }
 0x241   : > { %v3640_v35 = vpop.f32.mrf.mxu1 }
 0x245   : > { %v3658_v50 = vpop.f32.mrf.mxu3  ;;  %v3692_v59 = vpop.f32.mrf.mxu2 }
 0x246   : > { %v3659_v42 = vadd.f32 %v3658_v50, %v3640_v35  ;;  %v3693_v46 = vadd.f32 %v3692_v59, %v3674_v43  ;;  %v3676_v21 = vpop.f32.mrf.mxu0 }
 0x248   : > { %v7038_v54 = vadd.f32 %v3659_v42, %v3363_v58  ;;  %v7040_v24 = vadd.f32 %v3693_v46, %v3361_v34 }
 0x249   : > { %v3643_v18 = vpop.f32.mrf.mxu1 }
 0x24d   : > { %v3661_v28 = vpop.f32.mrf.mxu3  ;;  %v3694_v17 = vpop.f32.mrf.mxu2 }
 0x24e   : > { %v3662_v7 = vadd.f32 %v3661_v28, %v3643_v18  ;;  %v3695_v40 = vadd.f32 %v3694_v17, %v3676_v21  ;;  %v3679_v1 = vpop.f32.mrf.mxu0 }
 0x250   : > { %v7042_v39 = vadd.f32 %v3662_v7, %v3366_v20  ;;  %v7044_v4 = vadd.f32 %v3695_v40, %v3364_v56 }
 0x251   : > { %v3645_v51 = vpop.f32.mrf.mxu1 }
 0x255   : > { %v3663_v41 = vpop.f32.mrf.mxu3  ;;  %v3697_v19 = vpop.f32.mrf.mxu2 }
 0x256   : > { %v3698_v23 = vadd.f32 %v3697_v19, %v3679_v1  ;;  %v3681_v47 = vpop.f32.mrf.mxu0 }
 0x258   : > { %v7046_v52 = vadd.f32 %v3698_v23, %v3367_v2 }
 0x259   : > { %v3710_v22 = vpop.f32.mrf.mxu1 }
 0x25d   : > { %v3728_v29 = vpop.f32.mrf.mxu3  ;;  %v3699_v58 = vpop.f32.mrf.mxu2 }
 0x25e   : > { %v3729_v45 = vadd.f32 %v3728_v29, %v3710_v22 }
 0x260   : > { %v7048_v8 = vadd.f32 %v3729_v45, %v3362_v12 }
 0x261   : > { %v3712_v0 = vpop.f32.mrf.mxu1 }
 0x265   : > { %v3730_v31 = vpop.f32.mrf.mxu3 }
 0x266   : > { %v3731_v61 = vadd.f32 %v3730_v31, %v3712_v0 }
 0x268   : > { %v7050_v20 = vadd.f32 %v3731_v61, %v3365_v3 }
 0x269   : > { %v3715_v33 = vpop.f32.mrf.mxu1 }
 0x26d   : > { %v3733_v48 = vpop.f32.mrf.mxu3 }
 0x26e   : > { %v3734_v36 = vadd.f32 %v3733_v48, %v3715_v33 }
 0x270   : > { %v7052_v15 = vadd.f32 %v3734_v36, %v3368_v26 }
 0x271   : > { %v3717_v38 = vpop.f32.mrf.mxu1  ;;  %3749 = sbr.rel (%p5335_p10) target bundleno = 639 (0x27f), region = 40 }
 0x275   : > { %v3735_v34 = vpop.f32.mrf.mxu3 }
 0x276   : > { %3750 = vst [vmem:[%s5932_s26] sm:$0xff] %v7036_v63 }
 0x277   : > { %3751 = vst [vmem:[%s5932_s26 + $0x8] sm:$0xff] %v7040_v24 }
 0x278   : > { %3752 = vst [vmem:[%s5932_s26 + $0x10] sm:$0xff] %v7048_v8 }
 0x279   : > { %3753 = vst [vmem:[%s5932_s26 + $0x18] sm:$0xff] %v7038_v54 }
 0x27a   : > { %3754 = vst [vmem:[%s5932_s26 + $0x20] sm:$0xff] %v7044_v4 }
 0x27b   : > { %3755 = vst [vmem:[%s5932_s26 + $0x28] sm:$0xff] %v7050_v20 }
 0x27c   : > { %3756 = vst [vmem:[%s5932_s26 + $0x30] sm:$0xff] %v7042_v39 }
 0x27d   : > { %3757 = vst [vmem:[%s5932_s26 + $0x38] sm:$0xff] %v7046_v52 }
 0x27e   : > { %3758 = vst [vmem:[%s5932_s26 + $0x40] sm:$0xff] %v7052_v15 }
 0x27f PF: > { %p5336_p11 = scmp.ne.s32.totalorder %s5755_s15, 1 }
 0x281   : > { %3762 = sbr.rel (%p5336_p11) target bundleno = 658 (0x292), region = 44 }
 0x286   : > { %v3763_v37 = vld [vmem:[%s5932_s26] sm:$0xff]  ;;  %v3764_v44 = vld [vmem:[%s5932_s26 + $0x8] sm:$0xff]  ;;  %v3765_v9 = vld [vmem:[%s5932_s26 + $0x10] sm:$0xff] }
 0x287   : > { %v3772_v14 = vadd.f32 %v3763_v37, %v7036_v63  ;;  %v3773_v27 = vadd.f32 %v3764_v44, %v7040_v24  ;;  %v3774_v30 = vadd.f32 %v3765_v9, %v7048_v8  ;;  %v3766_v56 = vld [vmem:[%s5932_s26 + $0x18] sm:$0xff]  ;;  %v3767_v12 = vld [vmem:[%s5932_s26 + $0x20] sm:$0xff]  ;;  %v3768_v53 = vld [vmem:[%s5932_s26 + $0x28] sm:$0xff] }
 0x288   : > { %v3775_v55 = vadd.f32 %v3766_v56, %v7038_v54  ;;  %v3769_v60 = vld [vmem:[%s5932_s26 + $0x30] sm:$0xff]  ;;  %v3776_v49 = vadd.f32 %v3767_v12, %v7044_v4  ;;  %v3770_v10 = vld [vmem:[%s5932_s26 + $0x38] sm:$0xff]  ;;  %v3777_v11 = vadd.f32 %v3768_v53, %v7050_v20  ;;  %v3771_v2 = vld [vmem:[%s5932_s26 + $0x40] sm:$0xff] }
 0x289   : > { %3781 = vst [vmem:[%s5932_s26] sm:$0xff] %v3772_v14  ;;  %v3778_v3 = vadd.f32 %v3769_v60, %v7042_v39  ;;  %v3779_v62 = vadd.f32 %v3770_v10, %v7046_v52  ;;  %v3780_v25 = vadd.f32 %v3771_v2, %v7052_v15 }
 0x28a   : > { %3782 = vst [vmem:[%s5932_s26 + $0x8] sm:$0xff] %v3773_v27 }
 0x28b   : > { %3783 = vst [vmem:[%s5932_s26 + $0x10] sm:$0xff] %v3774_v30 }
 0x28c   : > { %3784 = vst [vmem:[%s5932_s26 + $0x18] sm:$0xff] %v3775_v55 }
 0x28d   : > { %3785 = vst [vmem:[%s5932_s26 + $0x20] sm:$0xff] %v3776_v49 }
 0x28e   : > { %3786 = vst [vmem:[%s5932_s26 + $0x28] sm:$0xff] %v3777_v11 }
 0x28f   : > { %3787 = vst [vmem:[%s5932_s26 + $0x30] sm:$0xff] %v3778_v3 }
 0x290   : > { %3788 = vst [vmem:[%s5932_s26 + $0x38] sm:$0xff] %v3779_v62 }
 0x291   : > { %3789 = vst [vmem:[%s5932_s26 + $0x40] sm:$0xff] %v3780_v25 }
 0x292 PF: > { %p5337_p12 = scmp.ne.s32.totalorder %s5755_s15, 2 }
 0x294   : > { %3793 = sbr.rel (%p5337_p12) target bundleno = 684 (0x2ac), region = 48 }
 0x299   : > { %v3794_v16 = vld [vmem:[%s5932_s26] sm:$0xff]  ;;  %v3795_v5 = vld [vmem:[%s5932_s26 + $0x8] sm:$0xff]  ;;  %v3796_v43 = vld [vmem:[%s5932_s26 + $0x10] sm:$0xff] }
 0x29a   : > { %v3812_v57 = vld [vmem:[%s7158_s2] sm:$0x7]  ;;  %v3803_v26 = vadd.f32 %v3794_v16, %v7036_v63  ;;  %v3797_v50 = vld [vmem:[%s5932_s26 + $0x18] sm:$0xff]  ;;  %v3804_v59 = vadd.f32 %v3795_v5, %v7040_v24  ;;  %v3805_v46 = vadd.f32 %v3796_v43, %v7048_v8  ;;  %v3799_v28 = vld [vmem:[%s5932_s26 + $0x28] sm:$0xff] }
 0x29b   : > { %v3829_v6 = vld [vmem:[%s7159_s3] sm:$0x7]  ;;  %v3814_v32 = vperm.slane %v3812_v57, 0  ;;  %v3815_v35 = vperm.slane %v3812_v57, 1  ;;  %v3816_v18 = vperm.slane %v3812_v57, 2  ;;  %v3800_v17 = vld [vmem:[%s5932_s26 + $0x30] sm:$0xff]  ;;  %v3806_v63 = vadd.f32 %v3797_v50, %v7038_v54 }
 0x29c   : > { %v3831_v13 = vperm.slane %v3829_v6, 0  ;;  %v3832_v42 = vperm.slane %v3829_v6, 1  ;;  %v3798_v21 = vld [vmem:[%s5932_s26 + $0x20] sm:$0xff]  ;;  %v3833_v40 = vperm.slane %v3829_v6, 2  ;;  %v3801_v1 = vld [vmem:[%s5932_s26 + $0x38] sm:$0xff]  ;;  %v3808_v23 = vadd.f32 %v3799_v28, %v7050_v20 }
 0x29d   : > { %v3820_v7 = vmul.f32 %v3814_v32, %v3803_v26  ;;  %v3807_v51 = vadd.f32 %v3798_v21, %v7044_v4  ;;  %v3821_v41 = vmul.f32 %v3815_v35, %v3804_v59  ;;  %v3822_v19 = vmul.f32 %v3816_v18, %v3805_v46  ;;  %v3802_v31 = vld [vmem:[%s5932_s26 + $0x40] sm:$0xff] }
 0x29e   : > { %v3809_v24 = vadd.f32 %v3800_v17, %v7042_v39  ;;  %v3823_v47 = vmul.f32 %v3814_v32, %v3806_v63  ;;  %v3810_v58 = vadd.f32 %v3801_v1, %v7046_v52  ;;  %v3825_v8 = vmul.f32 %v3816_v18, %v3808_v23 }
 0x29f   : > { %v3837_v22 = vadd.f32 %v3831_v13, %v3820_v7  ;;  %v3824_v29 = vmul.f32 %v3815_v35, %v3807_v51  ;;  %v3838_v45 = vadd.f32 %v3832_v42, %v3821_v41  ;;  %v3839_v0 = vadd.f32 %v3833_v40, %v3822_v19 }
 0x2a0   : > { %v3826_v54 = vmul.f32 %v3814_v32, %v3809_v24  ;;  %v3840_v61 = vadd.f32 %v3831_v13, %v3823_v47  ;;  %v3827_v20 = vmul.f32 %v3815_v35, %v3810_v58  ;;  %v3842_v36 = vadd.f32 %v3833_v40, %v3825_v8 }
 0x2a1   : > { %v3846_v4 = vmax.f32 %v3837_v22, 0.0  ;;  %v3841_v33 = vadd.f32 %v3832_v42, %v3824_v29  ;;  %v3847_v48 = vmax.f32 %v3838_v45, 0.0  ;;  %v3848_v39 = vmax.f32 %v3839_v0, 0.0 }
 0x2a2   : > { %v3843_v38 = vadd.f32 %v3831_v13, %v3826_v54  ;;  %v3849_v52 = vmax.f32 %v3840_v61, 0.0  ;;  %v3844_v37 = vadd.f32 %v3832_v42, %v3827_v20  ;;  %v3811_v44 = vadd.f32 %v3802_v31, %v7052_v15 }
 0x2a3   : > { %3855 = vst [vmem:[%s5932_s26] sm:$0xff] %v3846_v4  ;;  %v3850_v34 = vmax.f32 %v3841_v33, 0.0  ;;  %v3851_v9 = vmax.f32 %v3842_v36, 0.0 }
 0x2a4   : > { %3856 = vst [vmem:[%s5932_s26 + $0x8] sm:$0xff] %v3847_v48  ;;  %v3852_v14 = vmax.f32 %v3843_v38, 0.0  ;;  %v3828_v27 = vmul.f32 %v3816_v18, %v3811_v44  ;;  %v3853_v30 = vmax.f32 %v3844_v37, 0.0 }
 0x2a5   : > { %3857 = vst [vmem:[%s5932_s26 + $0x10] sm:$0xff] %v3848_v39 }
 0x2a6   : > { %3858 = vst [vmem:[%s5932_s26 + $0x18] sm:$0xff] %v3849_v52  ;;  %v3845_v56 = vadd.f32 %v3833_v40, %v3828_v27 }
 0x2a7   : > { %3859 = vst [vmem:[%s5932_s26 + $0x20] sm:$0xff] %v3850_v34 }
 0x2a8   : > { %3860 = vst [vmem:[%s5932_s26 + $0x28] sm:$0xff] %v3851_v9  ;;  %v3854_v12 = vmax.f32 %v3845_v56, 0.0 }
 0x2a9   : > { %3861 = vst [vmem:[%s5932_s26 + $0x30] sm:$0xff] %v3852_v14 }
 0x2aa   : > { %3862 = vst [vmem:[%s5932_s26 + $0x38] sm:$0xff] %v3853_v30 }
 0x2ab   : > { %3863 = vst [vmem:[%s5932_s26 + $0x40] sm:$0xff] %v3854_v12 }
 0x2ac PF: > { %s14_s21 = sadd.s32 1, %s5779_s21   ;;  %s7161_s15 = smov %s5767_s18 }
 0x2ad   : > { %p11_p13 = scmp.ge.s32.totalorder %s14_s21, 14   ;;  %s7162_s16 = smov %s5771_s19 }
 0x2ae   : > { %s7163_s17 = smov %s5775_s20  ;;  %s7164_s18 = smov %s7168_s22 }
 0x2af   : > { %s7165_s19 = smov %s7172_s23  ;;  %s7166_s20 = smov %s7176_s24 }
 0x2b0   :  { %13 = sbr.rel (!%p11_p13) target bundleno = 4 (0x4), region = 81 }

</bundles_post_ra>
